<compile_context>
chip_gen: v5e
topology: v5e:2x2
jax: 0.10.0
libtpu: 0.0.40
codegen_flags: <defaults>
</compile_context>

<pallas_src>
import functools

import jax
import jax.numpy as jnp
from jax.experimental import pallas as pl
from jax.experimental.pallas import tpu as pltpu

BN_EPS = 1e-5
EXPANSION = 4

# Set to jnp.bfloat16 on v6e/v7x for ~2x MXU rate and half the HBM bytes on the
# matmul operands (accumulation stays f32, BN/ReLU epilogue stays f32).
MATMUL_DTYPE = jnp.float32


def _row_tile(m, target=1024):
    """Largest divisor of m that is a multiple of 8 and <= target (else m)."""
    for t in range(min(target, m), 7, -1):
        if m % t == 0 and t % 8 == 0:
            return t
    return m


def _bn_scale_shift(partial_stats, count, gamma, beta):
    """Fold exact batch stats (from per-tile partials) into scale/shift."""
    s = jnp.sum(partial_stats, axis=0)                       # (2, C)
    mean = s[0] / count
    var = jnp.maximum(s[1] / count - mean * mean, 0.0)       # biased variance
    scale = gamma * jax.lax.rsqrt(var + BN_EPS)              # (1, C)
    shift = beta - mean * scale                              # (1, C)
    return scale, shift


# ----------------------------- kernels ------------------------------------ #

def _conv1x1_stats_kernel(x_ref, w_ref, y_ref, stats_ref):
    # x: (TM, Cin), w: (Cin, Cmid) -> y tile + per-tile (sum, sumsq) for BN1.
    y = jnp.dot(x_ref[...].astype(MATMUL_DTYPE), w_ref[...].astype(MATMUL_DTYPE),
                preferred_element_type=jnp.float32)
    y_ref[...] = y.astype(y_ref.dtype)
    st = jnp.concatenate([jnp.sum(y, axis=0, keepdims=True),
                          jnp.sum(y * y, axis=0, keepdims=True)], axis=0)
    stats_ref[...] = st[None]


def _conv3x3_kernel(y1_ref, scale_ref, shift_ref, w_ref, y2_ref, stats_ref,
                    pad_ref, acc_ref, *, H, W):
    # One image per grid step.  BN1(scale/shift)+ReLU fused on the fly, 1-pixel
    # halo built in a VMEM scratch (no HBM pad copy), 9-tap matmul accumulation
    # into a VMEM scratch accumulator.  stride==1 only (identity residual).
    C = y1_ref.shape[-1]
    Co = w_ref.shape[-1]
    a = jnp.maximum(y1_ref[...] * scale_ref[...] + shift_ref[...], 0.0)

    pad_ref[...] = jnp.zeros_like(pad_ref)
    pad_ref[:, 1:H + 1, 1:W + 1, :] = a.astype(pad_ref.dtype)

    acc_ref[...] = jnp.zeros_like(acc_ref)
    for dy in range(3):
        for dx in range(3):
            patch = pad_ref[:, dy:dy + H, dx:dx + W, :]
            acc_ref[...] += jnp.dot(
                patch.reshape(H * W, C).astype(MATMUL_DTYPE),
                w_ref[dy, dx].astype(MATMUL_DTYPE),
                preferred_element_type=jnp.float32)

    y2 = acc_ref[...]
    y2_ref[...] = y2.reshape(1, H, W, Co).astype(y2_ref.dtype)
    st = jnp.concatenate([jnp.sum(y2, axis=0, keepdims=True),
                          jnp.sum(y2 * y2, axis=0, keepdims=True)], axis=0)
    stats_ref[...] = st[None]


def _conv3_stats_kernel(y2_ref, scale_ref, shift_ref, w_ref, stats_ref):
    # Stats-only pass for BN3: BN2+ReLU -> conv3, emit per-tile (sum, sumsq).
    a = jnp.maximum(y2_ref[...] * scale_ref[...] + shift_ref[...], 0.0)
    y3 = jnp.dot(a.astype(MATMUL_DTYPE), w_ref[...].astype(MATMUL_DTYPE),
                 preferred_element_type=jnp.float32)
    st = jnp.concatenate([jnp.sum(y3, axis=0, keepdims=True),
                          jnp.sum(y3 * y3, axis=0, keepdims=True)], axis=0)
    stats_ref[...] = st[None]


def _conv3_out_kernel(y2_ref, scale2_ref, shift2_ref, w_ref, scale3_ref,
                      shift3_ref, res_ref, o_ref):
    # BN2+ReLU -> conv3 (recomputed) -> BN3 -> + residual -> ReLU.
    a = jnp.maximum(y2_ref[...] * scale2_ref[...] + shift2_ref[...], 0.0)
    y3 = jnp.dot(a.astype(MATMUL_DTYPE), w_ref[...].astype(MATMUL_DTYPE),
                 preferred_element_type=jnp.float32)
    out = y3 * scale3_ref[...] + shift3_ref[...] + res_ref[...].astype(jnp.float32)
    o_ref[...] = jnp.maximum(out, 0.0).astype(o_ref.dtype)


# --------------------------- kernel wrappers ------------------------------- #

_PARALLEL = pltpu.CompilerParams(dimension_semantics=("parallel",))


def conv1_with_stats(x2d, w1):
    M, Cin = x2d.shape
    Cmid = w1.shape[1]
    TM = _row_tile(M)
    nt = M // TM
    return pl.pallas_call(
        _conv1x1_stats_kernel,
        grid=(nt,),
        in_specs=[pl.BlockSpec((TM, Cin), lambda i: (i, 0)),
                  pl.BlockSpec((Cin, Cmid), lambda i: (0, 0))],
        out_specs=[pl.BlockSpec((TM, Cmid), lambda i: (i, 0)),
                   pl.BlockSpec((1, 2, Cmid), lambda i: (i, 0, 0))],
        out_shape=[jax.ShapeDtypeStruct((M, Cmid), jnp.float32),
                   jax.ShapeDtypeStruct((nt, 2, Cmid), jnp.float32)],
        compiler_params=_PARALLEL,
    )(x2d, w1)


def conv2_with_stats(y1_nhwc, scale1, shift1, w2):
    N, H, W, C = y1_nhwc.shape
    Co = w2.shape[-1]
    kern = functools.partial(_conv3x3_kernel, H=H, W=W)
    return pl.pallas_call(
        kern,
        grid=(N,),
        in_specs=[pl.BlockSpec((1, H, W, C), lambda n: (n, 0, 0, 0)),
                  pl.BlockSpec((1, C), lambda n: (0, 0)),
                  pl.BlockSpec((1, C), lambda n: (0, 0)),
                  pl.BlockSpec((3, 3, C, Co), lambda n: (0, 0, 0, 0))],
        out_specs=[pl.BlockSpec((1, H, W, Co), lambda n: (n, 0, 0, 0)),
                   pl.BlockSpec((1, 2, Co), lambda n: (n, 0, 0))],
        out_shape=[jax.ShapeDtypeStruct((N, H, W, Co), jnp.float32),
                   jax.ShapeDtypeStruct((N, 2, Co), jnp.float32)],
        scratch_shapes=[pltpu.VMEM((1, H + 2, W + 2, C), jnp.float32),
                        pltpu.VMEM((H * W, Co), jnp.float32)],
        compiler_params=_PARALLEL,
    )(y1_nhwc, scale1, shift1, w2)


def conv3_stats(y2_2d, scale2, shift2, w3):
    M, C = y2_2d.shape
    Co = w3.shape[1]
    TM = _row_tile(M)
    nt = M // TM
    return pl.pallas_call(
        _conv3_stats_kernel,
        grid=(nt,),
        in_specs=[pl.BlockSpec((TM, C), lambda i: (i, 0)),
                  pl.BlockSpec((1, C), lambda i: (0, 0)),
                  pl.BlockSpec((1, C), lambda i: (0, 0)),
                  pl.BlockSpec((C, Co), lambda i: (0, 0))],
        out_specs=pl.BlockSpec((1, 2, Co), lambda i: (i, 0, 0)),
        out_shape=jax.ShapeDtypeStruct((nt, 2, Co), jnp.float32),
        compiler_params=_PARALLEL,
    )(y2_2d, scale2, shift2, w3)


def conv3_bn_add_relu(y2_2d, scale2, shift2, w3, scale3, shift3, res2d):
    M, C = y2_2d.shape
    Co = w3.shape[1]
    TM = _row_tile(M)
    nt = M // TM
    return pl.pallas_call(
        _conv3_out_kernel,
        grid=(nt,),
        in_specs=[pl.BlockSpec((TM, C), lambda i: (i, 0)),
                  pl.BlockSpec((1, C), lambda i: (0, 0)),
                  pl.BlockSpec((1, C), lambda i: (0, 0)),
                  pl.BlockSpec((C, Co), lambda i: (0, 0)),
                  pl.BlockSpec((1, Co), lambda i: (0, 0)),
                  pl.BlockSpec((1, Co), lambda i: (0, 0)),
                  pl.BlockSpec((TM, Co), lambda i: (i, 0))],
        out_specs=pl.BlockSpec((TM, Co), lambda i: (i, 0)),
        out_shape=jax.ShapeDtypeStruct((M, Co), res2d.dtype),
        input_output_aliases={6: 0},     # residual buffer reused as output
        compiler_params=_PARALLEL,
    )(y2_2d, scale2, shift2, w3, scale3, shift3, res2d)


# ------------------------------ forward ------------------------------------ #

def bottleneck_forward_nhwc(x_nhwc, params, stride=1):
    """Bottleneck.forward (downsample=None, identity residual), NHWC layout."""
    N, H, W, Cin = x_nhwc.shape
    Cmid = params["w1"].shape[1]
    Cout = params["w3"].shape[1]
    assert Cout == EXPANSION * Cmid
    # downsample=None -> identity residual; requires stride=1, Cin == planes*4.
    assert stride == 1 and Cin == Cout, \
        "identity residual (downsample=None) needs stride=1 and inplanes == planes*4"
    # TODO(synk): stride>1 + optional `downsample` submodule (strided 1x1 conv + BN)
    # branch not implemented (the module only exercises it when downsample is given).

    M = N * H * W
    x2d = x_nhwc.reshape(M, Cin)

    # conv1 (1x1) + per-tile BN1 batch-stat partials
    y1, st1 = conv1_with_stats(x2d, params["w1"])
    scale1, shift1 = _bn_scale_shift(st1, M, params["g1"], params["b1"])

    # BN1+ReLU fused into conv2 (3x3, pad=1) with in-VMEM halo; BN2 stat partials
    y2, st2 = conv2_with_stats(y1.reshape(N, H, W, Cmid), scale1, shift1,
                               params["w2"])
    scale2, shift2 = _bn_scale_shift(st2, M, params["g2"], params["b2"])
    y2_2d = y2.reshape(M, Cmid)

    # BN3 batch stats (stats-only pass; conv3 recomputed in the output pass so
    # the 4x-wide conv3 activation never hits HBM)
    st3 = conv3_stats(y2_2d, scale2, shift2, params["w3"])
    scale3, shift3 = _bn_scale_shift(st3, M, params["g3"], params["b3"])

    # BN2+ReLU -> conv3 -> BN3 -> + residual -> ReLU, all in one kernel
    out2d = conv3_bn_add_relu(y2_2d, scale2, shift2, params["w3"],
                              scale3, shift3, x2d)
    return out2d.reshape(N, H, W, Cout)


def bottleneck_forward(x_nchw, params, stride=1):
    """PyTorch-compatible NCHW interface.

    Prefer bottleneck_forward_nhwc from an NHWC network: the two transposes
    below are extra full HBM passes that only exist for layout parity.
    """
    x_nhwc = jnp.transpose(x_nchw, (0, 2, 3, 1))           # NCHW -> NHWC
    out = bottleneck_forward_nhwc(x_nhwc, params, stride)
    return jnp.transpose(out, (0, 3, 1, 2))                # NHWC -> NCHW


# ------------------------- deterministic params ----------------------------- #

def init_params(key, inplanes, planes):
    # NOTE: conv weights are stored pre-transposed for NHWC matmuls:
    # 1x1 as (Cin, Cout), 3x3 as (kh, kw, Cin, Cout).  PyTorch (Cout, Cin, kh, kw)
    # weights must be permuted before use.
    ks = jax.random.split(key, 9)
    cout = EXPANSION * planes

    def nrm(k, shape, fan_in):
        return jax.random.normal(k, shape, jnp.float32) / jnp.sqrt(float(fan_in))

    return {
        "w1": nrm(ks[0], (inplanes, planes), inplanes),
        "w2": nrm(ks[1], (3, 3, planes, planes), 9 * planes),
        "w3": nrm(ks[2], (planes, cout), planes),
        "g1": 1.0 + 0.1 * jax.random.normal(ks[3], (1, planes), jnp.float32),
        "b1": 0.1 * jax.random.normal(ks[4], (1, planes), jnp.float32),
        "g2": 1.0 + 0.1 * jax.random.normal(ks[5], (1, planes), jnp.float32),
        "b2": 0.1 * jax.random.normal(ks[6], (1, planes), jnp.float32),
        "g3": 1.0 + 0.1 * jax.random.normal(ks[7], (1, cout), jnp.float32),
        "b3": 0.1 * jax.random.normal(ks[8], (1, cout), jnp.float32),
    }


if __name__ == "__main__":
    key = jax.random.PRNGKey(0)
    k_x, k_p = jax.random.split(key)

    # Lane-dense channels (multiples of 128) so the MXU/store path is dense;
    # inplanes == planes*4 is required by the identity residual (downsample=None).
    inplanes, planes = 512, 128
    N, H, W = 2, 16, 16
    x = jax.random.normal(k_x, (N, inplanes, H, W), jnp.float32)   # NCHW
    params = init_params(k_p, inplanes, planes)

    out = jax.jit(bottleneck_forward)(x, params)
    out = jax.block_until_ready(out)
    assert out.shape == (N, inplanes, H, W)
    assert bool(jnp.all(jnp.isfinite(out)))
    assert bool(jnp.all(out >= 0.0))   # final ReLU
    print("KERNEL_OK")
</pallas_src>

<mosaic_0001>
module attributes {stable_mosaic.version = 11 : i64} {
  func.func @_conv3x3_kernel(%arg0: i32, %arg1: memref<1x16x16x128xf32, #tpu.memory_space<vmem>>, %arg2: memref<1x128xf32, #tpu.memory_space<vmem>>, %arg3: memref<1x128xf32, #tpu.memory_space<vmem>>, %arg4: memref<3x3x128x128xf32, #tpu.memory_space<vmem>>, %arg5: memref<1x16x16x128xf32, #tpu.memory_space<vmem>>, %arg6: memref<1x2x128xf32, #tpu.memory_space<vmem>>, %arg7: memref<1x18x18x128xf32, #tpu.memory_space<vmem>>, %arg8: memref<256x128xf32, #tpu.memory_space<vmem>>) attributes {dimension_semantics = [#tpu.dimension_semantics<parallel>], iteration_bounds = array<i64: 2>, scalar_prefetch = 0 : i64, scratch_operands = 2 : i64, tpu.core_type = #tpu.core_type<tc>, window_params = [{transform_indices = @transform_0, window_bounds = array<i64: 1, 16, 16, 128>}, {pipeline_mode = #tpu.pipeline_mode<synchronous>, transform_indices = @transform_1, window_bounds = array<i64: 1, 128>}, {pipeline_mode = #tpu.pipeline_mode<synchronous>, transform_indices = @transform_2, window_bounds = array<i64: 1, 128>}, {pipeline_mode = #tpu.pipeline_mode<synchronous>, transform_indices = @transform_3, window_bounds = array<i64: 3, 3, 128, 128>}, {transform_indices = @transform_4, window_bounds = array<i64: 1, 16, 16, 128>}, {transform_indices = @transform_5, window_bounds = array<i64: 1, 2, 128>}]} {
    %c0 = arith.constant 0 : index
    %c0_0 = arith.constant 0 : index
    %c0_1 = arith.constant 0 : index
    %c0_2 = arith.constant 0 : index
    %0 = vector.load %arg1[%c0, %c0_0, %c0_1, %c0_2] : memref<1x16x16x128xf32, #tpu.memory_space<vmem>>, vector<1x16x16x128xf32>
    %c0_3 = arith.constant 0 : index
    %c0_4 = arith.constant 0 : index
    %1 = vector.load %arg2[%c0_3, %c0_4] : memref<1x128xf32, #tpu.memory_space<vmem>>, vector<1x128xf32>
    %2 = vector.shape_cast %1 : vector<1x128xf32> to vector<1x1x1x128xf32>
    %3 = vector.broadcast %2 : vector<1x1x1x128xf32> to vector<1x16x16x128xf32>
    %4 = arith.mulf %0, %3 : vector<1x16x16x128xf32>
    %c0_5 = arith.constant 0 : index
    %c0_6 = arith.constant 0 : index
    %5 = vector.load %arg3[%c0_5, %c0_6] : memref<1x128xf32, #tpu.memory_space<vmem>>, vector<1x128xf32>
    %6 = vector.shape_cast %5 : vector<1x128xf32> to vector<1x1x1x128xf32>
    %7 = vector.broadcast %6 : vector<1x1x1x128xf32> to vector<1x16x16x128xf32>
    %8 = arith.addf %4, %7 : vector<1x16x16x128xf32>
    %cst = arith.constant 0.000000e+00 : f32
    %9 = vector.broadcast %cst : f32 to vector<1x16x16x128xf32>
    %10 = arith.maximumf %8, %9 : vector<1x16x16x128xf32>
    %cst_7 = arith.constant 0.000000e+00 : f32
    %11 = vector.broadcast %cst_7 : f32 to vector<1x18x18x128xf32>
    %c0_8 = arith.constant 0 : index
    %c0_9 = arith.constant 0 : index
    %c0_10 = arith.constant 0 : index
    %c0_11 = arith.constant 0 : index
    %12 = vector.load %arg7[%c0_8, %c0_9, %c0_10, %c0_11] : memref<1x18x18x128xf32, #tpu.memory_space<vmem>>, vector<1x18x18x128xf32>
    tpu.vector_store %arg7[%c0_8, %c0_9, %c0_10, %c0_11], %11 {strides = array<i32>} : memref<1x18x18x128xf32, #tpu.memory_space<vmem>>, vector<1x18x18x128xf32>,
    %c0_12 = arith.constant 0 : index
    %c1 = arith.constant 1 : index
    %c1_13 = arith.constant 1 : index
    %c0_14 = arith.constant 0 : index
    %13 = vector.load %arg7[%c0_12, %c1, %c1_13, %c0_14] : memref<1x18x18x128xf32, #tpu.memory_space<vmem>>, vector<1x16x16x128xf32>
    tpu.vector_store %arg7[%c0_12, %c1, %c1_13, %c0_14], %10 {strides = array<i32>} : memref<1x18x18x128xf32, #tpu.memory_space<vmem>>, vector<1x16x16x128xf32>,
    %cst_15 = arith.constant 0.000000e+00 : f32
    %14 = vector.broadcast %cst_15 : f32 to vector<256x128xf32>
    %c0_16 = arith.constant 0 : index
    %c0_17 = arith.constant 0 : index
    %15 = vector.load %arg8[%c0_16, %c0_17] : memref<256x128xf32, #tpu.memory_space<vmem>>, vector<256x128xf32>
    tpu.vector_store %arg8[%c0_16, %c0_17], %14 {strides = array<i32>} : memref<256x128xf32, #tpu.memory_space<vmem>>, vector<256x128xf32>,
    %c0_18 = arith.constant 0 : index
    %c0_19 = arith.constant 0 : index
    %c0_20 = arith.constant 0 : index
    %c0_21 = arith.constant 0 : index
    %16 = vector.load %arg7[%c0_18, %c0_19, %c0_20, %c0_21] : memref<1x18x18x128xf32, #tpu.memory_space<vmem>>, vector<1x16x16x128xf32>
    %c0_22 = arith.constant 0 : index
    %c0_23 = arith.constant 0 : index
    %17 = vector.load %arg8[%c0_22, %c0_23] : memref<256x128xf32, #tpu.memory_space<vmem>>, vector<256x128xf32>
    %18 = vector.shape_cast %16 : vector<1x16x16x128xf32> to vector<256x128xf32>
    %c0_24 = arith.constant 0 : index
    %c0_25 = arith.constant 0 : index
    %c0_26 = arith.constant 0 : index
    %c0_27 = arith.constant 0 : index
    %19 = vector.load %arg4[%c0_24, %c0_25, %c0_26, %c0_27] : memref<3x3x128x128xf32, #tpu.memory_space<vmem>>, vector<1x1x128x128xf32>
    %20 = vector.shape_cast %19 : vector<1x1x128x128xf32> to vector<128x128xf32>
    %cst_28 = arith.constant dense<0.000000e+00> : vector<256x128xf32>
    %21 = tpu.matmul %18, %20, %cst_28 {dimension_numbers = #tpu.dot_dimension_numbers<[1], [0], [0], [1], [0, 0, 1, 1], [], []>} : vector<256x128xf32>, vector<128x128xf32>, vector<256x128xf32> -> vector<256x128xf32>
    %22 = arith.addf %17, %21 : vector<256x128xf32>
    %c0_29 = arith.constant 0 : index
    %c0_30 = arith.constant 0 : index
    %23 = vector.load %arg8[%c0_29, %c0_30] : memref<256x128xf32, #tpu.memory_space<vmem>>, vector<256x128xf32>
    tpu.vector_store %arg8[%c0_29, %c0_30], %22 {strides = array<i32>} : memref<256x128xf32, #tpu.memory_space<vmem>>, vector<256x128xf32>,
    %c0_31 = arith.constant 0 : index
    %c0_32 = arith.constant 0 : index
    %c1_33 = arith.constant 1 : index
    %c0_34 = arith.constant 0 : index
    %24 = vector.load %arg7[%c0_31, %c0_32, %c1_33, %c0_34] : memref<1x18x18x128xf32, #tpu.memory_space<vmem>>, vector<1x16x16x128xf32>
    %c0_35 = arith.constant 0 : index
    %c0_36 = arith.constant 0 : index
    %25 = vector.load %arg8[%c0_35, %c0_36] : memref<256x128xf32, #tpu.memory_space<vmem>>, vector<256x128xf32>
    %26 = vector.shape_cast %24 : vector<1x16x16x128xf32> to vector<256x128xf32>
    %c0_37 = arith.constant 0 : index
    %c1_38 = arith.constant 1 : index
    %c0_39 = arith.constant 0 : index
    %c0_40 = arith.constant 0 : index
    %27 = vector.load %arg4[%c0_37, %c1_38, %c0_39, %c0_40] : memref<3x3x128x128xf32, #tpu.memory_space<vmem>>, vector<1x1x128x128xf32>
    %28 = vector.shape_cast %27 : vector<1x1x128x128xf32> to vector<128x128xf32>
    %cst_41 = arith.constant dense<0.000000e+00> : vector<256x128xf32>
    %29 = tpu.matmul %26, %28, %cst_41 {dimension_numbers = #tpu.dot_dimension_numbers<[1], [0], [0], [1], [0, 0, 1, 1], [], []>} : vector<256x128xf32>, vector<128x128xf32>, vector<256x128xf32> -> vector<256x128xf32>
    %30 = arith.addf %25, %29 : vector<256x128xf32>
    %c0_42 = arith.constant 0 : index
    %c0_43 = arith.constant 0 : index
    %31 = vector.load %arg8[%c0_42, %c0_43] : memref<256x128xf32, #tpu.memory_space<vmem>>, vector<256x128xf32>
    tpu.vector_store %arg8[%c0_42, %c0_43], %30 {strides = array<i32>} : memref<256x128xf32, #tpu.memory_space<vmem>>, vector<256x128xf32>,
    %c0_44 = arith.constant 0 : index
    %c0_45 = arith.constant 0 : index
    %c2 = arith.constant 2 : index
    %c0_46 = arith.constant 0 : index
    %32 = vector.load %arg7[%c0_44, %c0_45, %c2, %c0_46] : memref<1x18x18x128xf32, #tpu.memory_space<vmem>>, vector<1x16x16x128xf32>
    %c0_47 = arith.constant 0 : index
    %c0_48 = arith.constant 0 : index
    %33 = vector.load %arg8[%c0_47, %c0_48] : memref<256x128xf32, #tpu.memory_space<vmem>>, vector<256x128xf32>
    %34 = vector.shape_cast %32 : vector<1x16x16x128xf32> to vector<256x128xf32>
    %c0_49 = arith.constant 0 : index
    %c2_50 = arith.constant 2 : index
    %c0_51 = arith.constant 0 : index
    %c0_52 = arith.constant 0 : index
    %35 = vector.load %arg4[%c0_49, %c2_50, %c0_51, %c0_52] : memref<3x3x128x128xf32, #tpu.memory_space<vmem>>, vector<1x1x128x128xf32>
    %36 = vector.shape_cast %35 : vector<1x1x128x128xf32> to vector<128x128xf32>
    %cst_53 = arith.constant dense<0.000000e+00> : vector<256x128xf32>
    %37 = tpu.matmul %34, %36, %cst_53 {dimension_numbers = #tpu.dot_dimension_numbers<[1], [0], [0], [1], [0, 0, 1, 1], [], []>} : vector<256x128xf32>, vector<128x128xf32>, vector<256x128xf32> -> vector<256x128xf32>
    %38 = arith.addf %33, %37 : vector<256x128xf32>
    %c0_54 = arith.constant 0 : index
    %c0_55 = arith.constant 0 : index
    %39 = vector.load %arg8[%c0_54, %c0_55] : memref<256x128xf32, #tpu.memory_space<vmem>>, vector<256x128xf32>
    tpu.vector_store %arg8[%c0_54, %c0_55], %38 {strides = array<i32>} : memref<256x128xf32, #tpu.memory_space<vmem>>, vector<256x128xf32>,
    %c0_56 = arith.constant 0 : index
    %c1_57 = arith.constant 1 : index
    %c0_58 = arith.constant 0 : index
    %c0_59 = arith.constant 0 : index
    %40 = vector.load %arg7[%c0_56, %c1_57, %c0_58, %c0_59] : memref<1x18x18x128xf32, #tpu.memory_space<vmem>>, vector<1x16x16x128xf32>
    %c0_60 = arith.constant 0 : index
    %c0_61 = arith.constant 0 : index
    %41 = vector.load %arg8[%c0_60, %c0_61] : memref<256x128xf32, #tpu.memory_space<vmem>>, vector<256x128xf32>
    %42 = vector.shape_cast %40 : vector<1x16x16x128xf32> to vector<256x128xf32>
    %c1_62 = arith.constant 1 : index
    %c0_63 = arith.constant 0 : index
    %c0_64 = arith.constant 0 : index
    %c0_65 = arith.constant 0 : index
    %43 = vector.load %arg4[%c1_62, %c0_63, %c0_64, %c0_65] : memref<3x3x128x128xf32, #tpu.memory_space<vmem>>, vector<1x1x128x128xf32>
    %44 = vector.shape_cast %43 : vector<1x1x128x128xf32> to vector<128x128xf32>
    %cst_66 = arith.constant dense<0.000000e+00> : vector<256x128xf32>
    %45 = tpu.matmul %42, %44, %cst_66 {dimension_numbers = #tpu.dot_dimension_numbers<[1], [0], [0], [1], [0, 0, 1, 1], [], []>} : vector<256x128xf32>, vector<128x128xf32>, vector<256x128xf32> -> vector<256x128xf32>
    %46 = arith.addf %41, %45 : vector<256x128xf32>
    %c0_67 = arith.constant 0 : index
    %c0_68 = arith.constant 0 : index
    %47 = vector.load %arg8[%c0_67, %c0_68] : memref<256x128xf32, #tpu.memory_space<vmem>>, vector<256x128xf32>
    tpu.vector_store %arg8[%c0_67, %c0_68], %46 {strides = array<i32>} : memref<256x128xf32, #tpu.memory_space<vmem>>, vector<256x128xf32>,
    %c0_69 = arith.constant 0 : index
    %c1_70 = arith.constant 1 : index
    %c1_71 = arith.constant 1 : index
    %c0_72 = arith.constant 0 : index
    %48 = vector.load %arg7[%c0_69, %c1_70, %c1_71, %c0_72] : memref<1x18x18x128xf32, #tpu.memory_space<vmem>>, vector<1x16x16x128xf32>
    %c0_73 = arith.constant 0 : index
    %c0_74 = arith.constant 0 : index
    %49 = vector.load %arg8[%c0_73, %c0_74] : memref<256x128xf32, #tpu.memory_space<vmem>>, vector<256x128xf32>
    %50 = vector.shape_cast %48 : vector<1x16x16x128xf32> to vector<256x128xf32>
    %c1_75 = arith.constant 1 : index
    %c1_76 = arith.constant 1 : index
    %c0_77 = arith.constant 0 : index
    %c0_78 = arith.constant 0 : index
    %51 = vector.load %arg4[%c1_75, %c1_76, %c0_77, %c0_78] : memref<3x3x128x128xf32, #tpu.memory_space<vmem>>, vector<1x1x128x128xf32>
    %52 = vector.shape_cast %51 : vector<1x1x128x128xf32> to vector<128x128xf32>
    %cst_79 = arith.constant dense<0.000000e+00> : vector<256x128xf32>
    %53 = tpu.matmul %50, %52, %cst_79 {dimension_numbers = #tpu.dot_dimension_numbers<[1], [0], [0], [1], [0, 0, 1, 1], [], []>} : vector<256x128xf32>, vector<128x128xf32>, vector<256x128xf32> -> vector<256x128xf32>
    %54 = arith.addf %49, %53 : vector<256x128xf32>
    %c0_80 = arith.constant 0 : index
    %c0_81 = arith.constant 0 : index
    %55 = vector.load %arg8[%c0_80, %c0_81] : memref<256x128xf32, #tpu.memory_space<vmem>>, vector<256x128xf32>
    tpu.vector_store %arg8[%c0_80, %c0_81], %54 {strides = array<i32>} : memref<256x128xf32, #tpu.memory_space<vmem>>, vector<256x128xf32>,
    %c0_82 = arith.constant 0 : index
    %c1_83 = arith.constant 1 : index
    %c2_84 = arith.constant 2 : index
    %c0_85 = arith.constant 0 : index
    %56 = vector.load %arg7[%c0_82, %c1_83, %c2_84, %c0_85] : memref<1x18x18x128xf32, #tpu.memory_space<vmem>>, vector<1x16x16x128xf32>
    %c0_86 = arith.constant 0 : index
    %c0_87 = arith.constant 0 : index
    %57 = vector.load %arg8[%c0_86, %c0_87] : memref<256x128xf32, #tpu.memory_space<vmem>>, vector<256x128xf32>
    %58 = vector.shape_cast %56 : vector<1x16x16x128xf32> to vector<256x128xf32>
    %c1_88 = arith.constant 1 : index
    %c2_89 = arith.constant 2 : index
    %c0_90 = arith.constant 0 : index
    %c0_91 = arith.constant 0 : index
    %59 = vector.load %arg4[%c1_88, %c2_89, %c0_90, %c0_91] : memref<3x3x128x128xf32, #tpu.memory_space<vmem>>, vector<1x1x128x128xf32>
    %60 = vector.shape_cast %59 : vector<1x1x128x128xf32> to vector<128x128xf32>
    %cst_92 = arith.constant dense<0.000000e+00> : vector<256x128xf32>
    %61 = tpu.matmul %58, %60, %cst_92 {dimension_numbers = #tpu.dot_dimension_numbers<[1], [0], [0], [1], [0, 0, 1, 1], [], []>} : vector<256x128xf32>, vector<128x128xf32>, vector<256x128xf32> -> vector<256x128xf32>
    %62 = arith.addf %57, %61 : vector<256x128xf32>
    %c0_93 = arith.constant 0 : index
    %c0_94 = arith.constant 0 : index
    %63 = vector.load %arg8[%c0_93, %c0_94] : memref<256x128xf32, #tpu.memory_space<vmem>>, vector<256x128xf32>
    tpu.vector_store %arg8[%c0_93, %c0_94], %62 {strides = array<i32>} : memref<256x128xf32, #tpu.memory_space<vmem>>, vector<256x128xf32>,
    %c0_95 = arith.constant 0 : index
    %c2_96 = arith.constant 2 : index
    %c0_97 = arith.constant 0 : index
    %c0_98 = arith.constant 0 : index
    %64 = vector.load %arg7[%c0_95, %c2_96, %c0_97, %c0_98] : memref<1x18x18x128xf32, #tpu.memory_space<vmem>>, vector<1x16x16x128xf32>
    %c0_99 = arith.constant 0 : index
    %c0_100 = arith.constant 0 : index
    %65 = vector.load %arg8[%c0_99, %c0_100] : memref<256x128xf32, #tpu.memory_space<vmem>>, vector<256x128xf32>
    %66 = vector.shape_cast %64 : vector<1x16x16x128xf32> to vector<256x128xf32>
    %c2_101 = arith.constant 2 : index
    %c0_102 = arith.constant 0 : index
    %c0_103 = arith.constant 0 : index
    %c0_104 = arith.constant 0 : index
    %67 = vector.load %arg4[%c2_101, %c0_102, %c0_103, %c0_104] : memref<3x3x128x128xf32, #tpu.memory_space<vmem>>, vector<1x1x128x128xf32>
    %68 = vector.shape_cast %67 : vector<1x1x128x128xf32> to vector<128x128xf32>
    %cst_105 = arith.constant dense<0.000000e+00> : vector<256x128xf32>
    %69 = tpu.matmul %66, %68, %cst_105 {dimension_numbers = #tpu.dot_dimension_numbers<[1], [0], [0], [1], [0, 0, 1, 1], [], []>} : vector<256x128xf32>, vector<128x128xf32>, vector<256x128xf32> -> vector<256x128xf32>
    %70 = arith.addf %65, %69 : vector<256x128xf32>
    %c0_106 = arith.constant 0 : index
    %c0_107 = arith.constant 0 : index
    %71 = vector.load %arg8[%c0_106, %c0_107] : memref<256x128xf32, #tpu.memory_space<vmem>>, vector<256x128xf32>
    tpu.vector_store %arg8[%c0_106, %c0_107], %70 {strides = array<i32>} : memref<256x128xf32, #tpu.memory_space<vmem>>, vector<256x128xf32>,
    %c0_108 = arith.constant 0 : index
    %c2_109 = arith.constant 2 : index
    %c1_110 = arith.constant 1 : index
    %c0_111 = arith.constant 0 : index
    %72 = vector.load %arg7[%c0_108, %c2_109, %c1_110, %c0_111] : memref<1x18x18x128xf32, #tpu.memory_space<vmem>>, vector<1x16x16x128xf32>
    %c0_112 = arith.constant 0 : index
    %c0_113 = arith.constant 0 : index
    %73 = vector.load %arg8[%c0_112, %c0_113] : memref<256x128xf32, #tpu.memory_space<vmem>>, vector<256x128xf32>
    %74 = vector.shape_cast %72 : vector<1x16x16x128xf32> to vector<256x128xf32>
    %c2_114 = arith.constant 2 : index
    %c1_115 = arith.constant 1 : index
    %c0_116 = arith.constant 0 : index
    %c0_117 = arith.constant 0 : index
    %75 = vector.load %arg4[%c2_114, %c1_115, %c0_116, %c0_117] : memref<3x3x128x128xf32, #tpu.memory_space<vmem>>, vector<1x1x128x128xf32>
    %76 = vector.shape_cast %75 : vector<1x1x128x128xf32> to vector<128x128xf32>
    %cst_118 = arith.constant dense<0.000000e+00> : vector<256x128xf32>
    %77 = tpu.matmul %74, %76, %cst_118 {dimension_numbers = #tpu.dot_dimension_numbers<[1], [0], [0], [1], [0, 0, 1, 1], [], []>} : vector<256x128xf32>, vector<128x128xf32>, vector<256x128xf32> -> vector<256x128xf32>
    %78 = arith.addf %73, %77 : vector<256x128xf32>
    %c0_119 = arith.constant 0 : index
    %c0_120 = arith.constant 0 : index
    %79 = vector.load %arg8[%c0_119, %c0_120] : memref<256x128xf32, #tpu.memory_space<vmem>>, vector<256x128xf32>
    tpu.vector_store %arg8[%c0_119, %c0_120], %78 {strides = array<i32>} : memref<256x128xf32, #tpu.memory_space<vmem>>, vector<256x128xf32>,
    %c0_121 = arith.constant 0 : index
    %c2_122 = arith.constant 2 : index
    %c2_123 = arith.constant 2 : index
    %c0_124 = arith.constant 0 : index
    %80 = vector.load %arg7[%c0_121, %c2_122, %c2_123, %c0_124] : memref<1x18x18x128xf32, #tpu.memory_space<vmem>>, vector<1x16x16x128xf32>
    %c0_125 = arith.constant 0 : index
    %c0_126 = arith.constant 0 : index
    %81 = vector.load %arg8[%c0_125, %c0_126] : memref<256x128xf32, #tpu.memory_space<vmem>>, vector<256x128xf32>
    %82 = vector.shape_cast %80 : vector<1x16x16x128xf32> to vector<256x128xf32>
    %c2_127 = arith.constant 2 : index
    %c2_128 = arith.constant 2 : index
    %c0_129 = arith.constant 0 : index
    %c0_130 = arith.constant 0 : index
    %83 = vector.load %arg4[%c2_127, %c2_128, %c0_129, %c0_130] : memref<3x3x128x128xf32, #tpu.memory_space<vmem>>, vector<1x1x128x128xf32>
    %84 = vector.shape_cast %83 : vector<1x1x128x128xf32> to vector<128x128xf32>
    %cst_131 = arith.constant dense<0.000000e+00> : vector<256x128xf32>
    %85 = tpu.matmul %82, %84, %cst_131 {dimension_numbers = #tpu.dot_dimension_numbers<[1], [0], [0], [1], [0, 0, 1, 1], [], []>} : vector<256x128xf32>, vector<128x128xf32>, vector<256x128xf32> -> vector<256x128xf32>
    %86 = arith.addf %81, %85 : vector<256x128xf32>
    %c0_132 = arith.constant 0 : index
    %c0_133 = arith.constant 0 : index
    %87 = vector.load %arg8[%c0_132, %c0_133] : memref<256x128xf32, #tpu.memory_space<vmem>>, vector<256x128xf32>
    tpu.vector_store %arg8[%c0_132, %c0_133], %86 {strides = array<i32>} : memref<256x128xf32, #tpu.memory_space<vmem>>, vector<256x128xf32>,
    %c0_134 = arith.constant 0 : index
    %c0_135 = arith.constant 0 : index
    %88 = vector.load %arg8[%c0_134, %c0_135] : memref<256x128xf32, #tpu.memory_space<vmem>>, vector<256x128xf32>
    %89 = vector.shape_cast %88 : vector<256x128xf32> to vector<1x16x16x128xf32>
    %c0_136 = arith.constant 0 : index
    %c0_137 = arith.constant 0 : index
    %c0_138 = arith.constant 0 : index
    %c0_139 = arith.constant 0 : index
    %90 = vector.load %arg5[%c0_136, %c0_137, %c0_138, %c0_139] : memref<1x16x16x128xf32, #tpu.memory_space<vmem>>, vector<1x16x16x128xf32>
    tpu.vector_store %arg5[%c0_136, %c0_137, %c0_138, %c0_139], %89 {strides = array<i32>} : memref<1x16x16x128xf32, #tpu.memory_space<vmem>>, vector<1x16x16x128xf32>,
    %cst_140 = arith.constant dense<0.000000e+00> : vector<128xf32>
    %91 = vector.multi_reduction <add>, %88, %cst_140 [0] : vector<256x128xf32> to vector<128xf32>
    %92 = vector.shape_cast %91 : vector<128xf32> to vector<1x128xf32>
    %93 = arith.mulf %88, %88 : vector<256x128xf32>
    %cst_141 = arith.constant dense<0.000000e+00> : vector<128xf32>
    %94 = vector.multi_reduction <add>, %93, %cst_141 [0] : vector<256x128xf32> to vector<128xf32>
    %95 = vector.shape_cast %94 : vector<128xf32> to vector<1x128xf32>
    %96 = tpu.concatenate %92, %95 in 0 : vector<1x128xf32>, vector<1x128xf32> -> vector<2x128xf32>
    %97 = vector.shape_cast %96 : vector<2x128xf32> to vector<1x2x128xf32>
    %c0_142 = arith.constant 0 : index
    %c0_143 = arith.constant 0 : index
    %c0_144 = arith.constant 0 : index
    %98 = vector.load %arg6[%c0_142, %c0_143, %c0_144] : memref<1x2x128xf32, #tpu.memory_space<vmem>>, vector<1x2x128xf32>
    tpu.vector_store %arg6[%c0_142, %c0_143, %c0_144], %97 {strides = array<i32>} : memref<1x2x128xf32, #tpu.memory_space<vmem>>, vector<1x2x128xf32>,
    return
  }
  func.func @transform_0(%arg0: i32) -> (i32, i32, i32, i32) {
    %c0_i32 = arith.constant 0 : i32
    %c0_i32_0 = arith.constant 0 : i32
    %c0_i32_1 = arith.constant 0 : i32
    %c0_i32_2 = arith.constant 0 : i32
    return %arg0, %c0_i32, %c0_i32_0, %c0_i32_1 : i32, i32, i32, i32
  }
  func.func @transform_1(%arg0: i32) -> (i32, i32) {
    %c0_i32 = arith.constant 0 : i32
    %c0_i32_0 = arith.constant 0 : i32
    %c0_i32_1 = arith.constant 0 : i32
    return %c0_i32, %c0_i32_0 : i32, i32
  }
  func.func @transform_2(%arg0: i32) -> (i32, i32) {
    %c0_i32 = arith.constant 0 : i32
    %c0_i32_0 = arith.constant 0 : i32
    %c0_i32_1 = arith.constant 0 : i32
    return %c0_i32, %c0_i32_0 : i32, i32
  }
  func.func @transform_3(%arg0: i32) -> (i32, i32, i32, i32) {
    %c0_i32 = arith.constant 0 : i32
    %c0_i32_0 = arith.constant 0 : i32
    %c0_i32_1 = arith.constant 0 : i32
    %c0_i32_2 = arith.constant 0 : i32
    %c0_i32_3 = arith.constant 0 : i32
    return %c0_i32, %c0_i32_0, %c0_i32_1, %c0_i32_2 : i32, i32, i32, i32
  }
  func.func @transform_4(%arg0: i32) -> (i32, i32, i32, i32) {
    %c0_i32 = arith.constant 0 : i32
    %c0_i32_0 = arith.constant 0 : i32
    %c0_i32_1 = arith.constant 0 : i32
    %c0_i32_2 = arith.constant 0 : i32
    return %arg0, %c0_i32, %c0_i32_0, %c0_i32_1 : i32, i32, i32, i32
  }
  func.func @transform_5(%arg0: i32) -> (i32, i32, i32) {
    %c0_i32 = arith.constant 0 : i32
    %c0_i32_0 = arith.constant 0 : i32
    %c0_i32_1 = arith.constant 0 : i32
    return %arg0, %c0_i32, %c0_i32_0 : i32, i32, i32
  }
}

module attributes {stable_mosaic.version = 11 : i64} {
  func.func @_conv1x1_stats_kernel(%arg0: i32, %arg1: memref<512x512xf32, #tpu.memory_space<vmem>>, %arg2: memref<512x128xf32, #tpu.memory_space<vmem>>, %arg3: memref<512x128xf32, #tpu.memory_space<vmem>>, %arg4: memref<1x2x128xf32, #tpu.memory_space<vmem>>) attributes {dimension_semantics = [#tpu.dimension_semantics<parallel>], iteration_bounds = array<i64: 1>, scalar_prefetch = 0 : i64, scratch_operands = 0 : i64, tpu.core_type = #tpu.core_type<tc>, window_params = [{transform_indices = @transform_0, window_bounds = array<i64: 512, 512>}, {pipeline_mode = #tpu.pipeline_mode<synchronous>, transform_indices = @transform_1, window_bounds = array<i64: 512, 128>}, {transform_indices = @transform_2, window_bounds = array<i64: 512, 128>}, {transform_indices = @transform_3, window_bounds = array<i64: 1, 2, 128>}]} {
    %c0 = arith.constant 0 : index
    %c0_0 = arith.constant 0 : index
    %0 = vector.load %arg1[%c0, %c0_0] : memref<512x512xf32, #tpu.memory_space<vmem>>, vector<512x512xf32>
    %c0_1 = arith.constant 0 : index
    %c0_2 = arith.constant 0 : index
    %1 = vector.load %arg2[%c0_1, %c0_2] : memref<512x128xf32, #tpu.memory_space<vmem>>, vector<512x128xf32>
    %cst = arith.constant dense<0.000000e+00> : vector<512x128xf32>
    %2 = tpu.matmul %0, %1, %cst {dimension_numbers = #tpu.dot_dimension_numbers<[1], [0], [0], [1], [0, 0, 1, 1], [], []>} : vector<512x512xf32>, vector<512x128xf32>, vector<512x128xf32> -> vector<512x128xf32>
    %c0_3 = arith.constant 0 : index
    %c0_4 = arith.constant 0 : index
    %3 = vector.load %arg3[%c0_3, %c0_4] : memref<512x128xf32, #tpu.memory_space<vmem>>, vector<512x128xf32>
    tpu.vector_store %arg3[%c0_3, %c0_4], %2 {strides = array<i32>} : memref<512x128xf32, #tpu.memory_space<vmem>>, vector<512x128xf32>,
    %cst_5 = arith.constant dense<0.000000e+00> : vector<128xf32>
    %4 = vector.multi_reduction <add>, %2, %cst_5 [0] : vector<512x128xf32> to vector<128xf32>
    %5 = vector.shape_cast %4 : vector<128xf32> to vector<1x128xf32>
    %6 = arith.mulf %2, %2 : vector<512x128xf32>
    %cst_6 = arith.constant dense<0.000000e+00> : vector<128xf32>
    %7 = vector.multi_reduction <add>, %6, %cst_6 [0] : vector<512x128xf32> to vector<128xf32>
    %8 = vector.shape_cast %7 : vector<128xf32> to vector<1x128xf32>
    %9 = tpu.concatenate %5, %8 in 0 : vector<1x128xf32>, vector<1x128xf32> -> vector<2x128xf32>
    %10 = vector.shape_cast %9 : vector<2x128xf32> to vector<1x2x128xf32>
    %c0_7 = arith.constant 0 : index
    %c0_8 = arith.constant 0 : index
    %c0_9 = arith.constant 0 : index
    %11 = vector.load %arg4[%c0_7, %c0_8, %c0_9] : memref<1x2x128xf32, #tpu.memory_space<vmem>>, vector<1x2x128xf32>
    tpu.vector_store %arg4[%c0_7, %c0_8, %c0_9], %10 {strides = array<i32>} : memref<1x2x128xf32, #tpu.memory_space<vmem>>, vector<1x2x128xf32>,
    return
  }
  func.func @transform_0(%arg0: i32) -> (i32, i32) {
    %c0_i32 = arith.constant 0 : i32
    %c0_i32_0 = arith.constant 0 : i32
    return %arg0, %c0_i32 : i32, i32
  }
  func.func @transform_1(%arg0: i32) -> (i32, i32) {
    %c0_i32 = arith.constant 0 : i32
    %c0_i32_0 = arith.constant 0 : i32
    %c0_i32_1 = arith.constant 0 : i32
    return %c0_i32, %c0_i32_0 : i32, i32
  }
  func.func @transform_2(%arg0: i32) -> (i32, i32) {
    %c0_i32 = arith.constant 0 : i32
    %c0_i32_0 = arith.constant 0 : i32
    return %arg0, %c0_i32 : i32, i32
  }
  func.func @transform_3(%arg0: i32) -> (i32, i32, i32) {
    %c0_i32 = arith.constant 0 : i32
    %c0_i32_0 = arith.constant 0 : i32
    %c0_i32_1 = arith.constant 0 : i32
    return %arg0, %c0_i32, %c0_i32_0 : i32, i32, i32
  }
}

module attributes {stable_mosaic.version = 11 : i64} {
  func.func @_conv3_stats_kernel(%arg0: i32, %arg1: memref<512x128xf32, #tpu.memory_space<vmem>>, %arg2: memref<1x128xf32, #tpu.memory_space<vmem>>, %arg3: memref<1x128xf32, #tpu.memory_space<vmem>>, %arg4: memref<128x512xf32, #tpu.memory_space<vmem>>, %arg5: memref<1x2x512xf32, #tpu.memory_space<vmem>>) attributes {dimension_semantics = [#tpu.dimension_semantics<parallel>], iteration_bounds = array<i64: 1>, scalar_prefetch = 0 : i64, scratch_operands = 0 : i64, tpu.core_type = #tpu.core_type<tc>, window_params = [{transform_indices = @transform_0, window_bounds = array<i64: 512, 128>}, {pipeline_mode = #tpu.pipeline_mode<synchronous>, transform_indices = @transform_1, window_bounds = array<i64: 1, 128>}, {pipeline_mode = #tpu.pipeline_mode<synchronous>, transform_indices = @transform_2, window_bounds = array<i64: 1, 128>}, {pipeline_mode = #tpu.pipeline_mode<synchronous>, transform_indices = @transform_3, window_bounds = array<i64: 128, 512>}, {transform_indices = @transform_4, window_bounds = array<i64: 1, 2, 512>}]} {
    %c0 = arith.constant 0 : index
    %c0_0 = arith.constant 0 : index
    %0 = vector.load %arg1[%c0, %c0_0] : memref<512x128xf32, #tpu.memory_space<vmem>>, vector<512x128xf32>
    %c0_1 = arith.constant 0 : index
    %c0_2 = arith.constant 0 : index
    %1 = vector.load %arg2[%c0_1, %c0_2] : memref<1x128xf32, #tpu.memory_space<vmem>>, vector<1x128xf32>
    %2 = vector.broadcast %1 : vector<1x128xf32> to vector<512x128xf32>
    %3 = arith.mulf %0, %2 : vector<512x128xf32>
    %c0_3 = arith.constant 0 : index
    %c0_4 = arith.constant 0 : index
    %4 = vector.load %arg3[%c0_3, %c0_4] : memref<1x128xf32, #tpu.memory_space<vmem>>, vector<1x128xf32>
    %5 = vector.broadcast %4 : vector<1x128xf32> to vector<512x128xf32>
    %6 = arith.addf %3, %5 : vector<512x128xf32>
    %cst = arith.constant 0.000000e+00 : f32
    %7 = vector.broadcast %cst : f32 to vector<512x128xf32>
    %8 = arith.maximumf %6, %7 : vector<512x128xf32>
    %c0_5 = arith.constant 0 : index
    %c0_6 = arith.constant 0 : index
    %9 = vector.load %arg4[%c0_5, %c0_6] : memref<128x512xf32, #tpu.memory_space<vmem>>, vector<128x512xf32>
    %cst_7 = arith.constant dense<0.000000e+00> : vector<512x512xf32>
    %10 = tpu.matmul %8, %9, %cst_7 {dimension_numbers = #tpu.dot_dimension_numbers<[1], [0], [0], [1], [0, 0, 1, 1], [], []>} : vector<512x128xf32>, vector<128x512xf32>, vector<512x512xf32> -> vector<512x512xf32>
    %cst_8 = arith.constant dense<0.000000e+00> : vector<512xf32>
    %11 = vector.multi_reduction <add>, %10, %cst_8 [0] : vector<512x512xf32> to vector<512xf32>
    %12 = vector.shape_cast %11 : vector<512xf32> to vector<1x512xf32>
    %13 = arith.mulf %10, %10 : vector<512x512xf32>
    %cst_9 = arith.constant dense<0.000000e+00> : vector<512xf32>
    %14 = vector.multi_reduction <add>, %13, %cst_9 [0] : vector<512x512xf32> to vector<512xf32>
    %15 = vector.shape_cast %14 : vector<512xf32> to vector<1x512xf32>
    %16 = tpu.concatenate %12, %15 in 0 : vector<1x512xf32>, vector<1x512xf32> -> vector<2x512xf32>
    %17 = vector.shape_cast %16 : vector<2x512xf32> to vector<1x2x512xf32>
    %c0_10 = arith.constant 0 : index
    %c0_11 = arith.constant 0 : index
    %c0_12 = arith.constant 0 : index
    %18 = vector.load %arg5[%c0_10, %c0_11, %c0_12] : memref<1x2x512xf32, #tpu.memory_space<vmem>>, vector<1x2x512xf32>
    tpu.vector_store %arg5[%c0_10, %c0_11, %c0_12], %17 {strides = array<i32>} : memref<1x2x512xf32, #tpu.memory_space<vmem>>, vector<1x2x512xf32>,
    return
  }
  func.func @transform_0(%arg0: i32) -> (i32, i32) {
    %c0_i32 = arith.constant 0 : i32
    %c0_i32_0 = arith.constant 0 : i32
    return %arg0, %c0_i32 : i32, i32
  }
  func.func @transform_1(%arg0: i32) -> (i32, i32) {
    %c0_i32 = arith.constant 0 : i32
    %c0_i32_0 = arith.constant 0 : i32
    %c0_i32_1 = arith.constant 0 : i32
    return %c0_i32, %c0_i32_0 : i32, i32
  }
  func.func @transform_2(%arg0: i32) -> (i32, i32) {
    %c0_i32 = arith.constant 0 : i32
    %c0_i32_0 = arith.constant 0 : i32
    %c0_i32_1 = arith.constant 0 : i32
    return %c0_i32, %c0_i32_0 : i32, i32
  }
  func.func @transform_3(%arg0: i32) -> (i32, i32) {
    %c0_i32 = arith.constant 0 : i32
    %c0_i32_0 = arith.constant 0 : i32
    %c0_i32_1 = arith.constant 0 : i32
    return %c0_i32, %c0_i32_0 : i32, i32
  }
  func.func @transform_4(%arg0: i32) -> (i32, i32, i32) {
    %c0_i32 = arith.constant 0 : i32
    %c0_i32_0 = arith.constant 0 : i32
    %c0_i32_1 = arith.constant 0 : i32
    return %arg0, %c0_i32, %c0_i32_0 : i32, i32, i32
  }
}

module attributes {stable_mosaic.version = 11 : i64} {
  func.func @_conv3_out_kernel(%arg0: i32, %arg1: memref<512x128xf32, #tpu.memory_space<vmem>>, %arg2: memref<1x128xf32, #tpu.memory_space<vmem>>, %arg3: memref<1x128xf32, #tpu.memory_space<vmem>>, %arg4: memref<128x512xf32, #tpu.memory_space<vmem>>, %arg5: memref<1x512xf32, #tpu.memory_space<vmem>>, %arg6: memref<1x512xf32, #tpu.memory_space<vmem>>, %arg7: memref<512x512xf32, #tpu.memory_space<vmem>>, %arg8: memref<512x512xf32, #tpu.memory_space<vmem>>) attributes {dimension_semantics = [#tpu.dimension_semantics<parallel>], iteration_bounds = array<i64: 1>, scalar_prefetch = 0 : i64, scratch_operands = 0 : i64, tpu.core_type = #tpu.core_type<tc>, window_params = [{transform_indices = @transform_0, window_bounds = array<i64: 512, 128>}, {pipeline_mode = #tpu.pipeline_mode<synchronous>, transform_indices = @transform_1, window_bounds = array<i64: 1, 128>}, {pipeline_mode = #tpu.pipeline_mode<synchronous>, transform_indices = @transform_2, window_bounds = array<i64: 1, 128>}, {pipeline_mode = #tpu.pipeline_mode<synchronous>, transform_indices = @transform_3, window_bounds = array<i64: 128, 512>}, {pipeline_mode = #tpu.pipeline_mode<synchronous>, transform_indices = @transform_4, window_bounds = array<i64: 1, 512>}, {pipeline_mode = #tpu.pipeline_mode<synchronous>, transform_indices = @transform_5, window_bounds = array<i64: 1, 512>}, {transform_indices = @transform_6, window_bounds = array<i64: 512, 512>}, {transform_indices = @transform_7, window_bounds = array<i64: 512, 512>}]} {
    %c0 = arith.constant 0 : index
    %c0_0 = arith.constant 0 : index
    %0 = vector.load %arg1[%c0, %c0_0] : memref<512x128xf32, #tpu.memory_space<vmem>>, vector<512x128xf32>
    %c0_1 = arith.constant 0 : index
    %c0_2 = arith.constant 0 : index
    %1 = vector.load %arg2[%c0_1, %c0_2] : memref<1x128xf32, #tpu.memory_space<vmem>>, vector<1x128xf32>
    %2 = vector.broadcast %1 : vector<1x128xf32> to vector<512x128xf32>
    %3 = arith.mulf %0, %2 : vector<512x128xf32>
    %c0_3 = arith.constant 0 : index
    %c0_4 = arith.constant 0 : index
    %4 = vector.load %arg3[%c0_3, %c0_4] : memref<1x128xf32, #tpu.memory_space<vmem>>, vector<1x128xf32>
    %5 = vector.broadcast %4 : vector<1x128xf32> to vector<512x128xf32>
    %6 = arith.addf %3, %5 : vector<512x128xf32>
    %cst = arith.constant 0.000000e+00 : f32
    %7 = vector.broadcast %cst : f32 to vector<512x128xf32>
    %8 = arith.maximumf %6, %7 : vector<512x128xf32>
    %c0_5 = arith.constant 0 : index
    %c0_6 = arith.constant 0 : index
    %9 = vector.load %arg4[%c0_5, %c0_6] : memref<128x512xf32, #tpu.memory_space<vmem>>, vector<128x512xf32>
    %cst_7 = arith.constant dense<0.000000e+00> : vector<512x512xf32>
    %10 = tpu.matmul %8, %9, %cst_7 {dimension_numbers = #tpu.dot_dimension_numbers<[1], [0], [0], [1], [0, 0, 1, 1], [], []>} : vector<512x128xf32>, vector<128x512xf32>, vector<512x512xf32> -> vector<512x512xf32>
    %c0_8 = arith.constant 0 : index
    %c0_9 = arith.constant 0 : index
    %11 = vector.load %arg5[%c0_8, %c0_9] : memref<1x512xf32, #tpu.memory_space<vmem>>, vector<1x512xf32>
    %12 = vector.broadcast %11 : vector<1x512xf32> to vector<512x512xf32>
    %13 = arith.mulf %10, %12 : vector<512x512xf32>
    %c0_10 = arith.constant 0 : index
    %c0_11 = arith.constant 0 : index
    %14 = vector.load %arg6[%c0_10, %c0_11] : memref<1x512xf32, #tpu.memory_space<vmem>>, vector<1x512xf32>
    %15 = vector.broadcast %14 : vector<1x512xf32> to vector<512x512xf32>
    %16 = arith.addf %13, %15 : vector<512x512xf32>
    %c0_12 = arith.constant 0 : index
    %c0_13 = arith.constant 0 : index
    %17 = vector.load %arg7[%c0_12, %c0_13] : memref<512x512xf32, #tpu.memory_space<vmem>>, vector<512x512xf32>
    %18 = arith.addf %16, %17 : vector<512x512xf32>
    %cst_14 = arith.constant 0.000000e+00 : f32
    %19 = vector.broadcast %cst_14 : f32 to vector<512x512xf32>
    %20 = arith.maximumf %18, %19 : vector<512x512xf32>
    %c0_15 = arith.constant 0 : index
    %c0_16 = arith.constant 0 : index
    %21 = vector.load %arg8[%c0_15, %c0_16] : memref<512x512xf32, #tpu.memory_space<vmem>>, vector<512x512xf32>
    tpu.vector_store %arg8[%c0_15, %c0_16], %20 {strides = array<i32>} : memref<512x512xf32, #tpu.memory_space<vmem>>, vector<512x512xf32>,
    return
  }
  func.func @transform_0(%arg0: i32) -> (i32, i32) {
    %c0_i32 = arith.constant 0 : i32
    %c0_i32_0 = arith.constant 0 : i32
    return %arg0, %c0_i32 : i32, i32
  }
  func.func @transform_1(%arg0: i32) -> (i32, i32) {
    %c0_i32 = arith.constant 0 : i32
    %c0_i32_0 = arith.constant 0 : i32
    %c0_i32_1 = arith.constant 0 : i32
    return %c0_i32, %c0_i32_0 : i32, i32
  }
  func.func @transform_2(%arg0: i32) -> (i32, i32) {
    %c0_i32 = arith.constant 0 : i32
    %c0_i32_0 = arith.constant 0 : i32
    %c0_i32_1 = arith.constant 0 : i32
    return %c0_i32, %c0_i32_0 : i32, i32
  }
  func.func @transform_3(%arg0: i32) -> (i32, i32) {
    %c0_i32 = arith.constant 0 : i32
    %c0_i32_0 = arith.constant 0 : i32
    %c0_i32_1 = arith.constant 0 : i32
    return %c0_i32, %c0_i32_0 : i32, i32
  }
  func.func @transform_4(%arg0: i32) -> (i32, i32) {
    %c0_i32 = arith.constant 0 : i32
    %c0_i32_0 = arith.constant 0 : i32
    %c0_i32_1 = arith.constant 0 : i32
    return %c0_i32, %c0_i32_0 : i32, i32
  }
  func.func @transform_5(%arg0: i32) -> (i32, i32) {
    %c0_i32 = arith.constant 0 : i32
    %c0_i32_0 = arith.constant 0 : i32
    %c0_i32_1 = arith.constant 0 : i32
    return %c0_i32, %c0_i32_0 : i32, i32
  }
  func.func @transform_6(%arg0: i32) -> (i32, i32) {
    %c0_i32 = arith.constant 0 : i32
    %c0_i32_0 = arith.constant 0 : i32
    return %arg0, %c0_i32 : i32, i32
  }
  func.func @transform_7(%arg0: i32) -> (i32, i32) {
    %c0_i32 = arith.constant 0 : i32
    %c0_i32_0 = arith.constant 0 : i32
    return %arg0, %c0_i32 : i32, i32
  }
}

</mosaic_0001>

<bundles_post_ra>
// kernel: bottleneck_forward.4
= control target key start
LH: loop header
LB: loop body
LE: loop exit
PB: predicated region body
PF: predicated region fallthrough
CT: control target
= control target key end

     0   :  { %vm1435_vm0 = vcmask 1040384   ;;  %s2633_s1 = inlined_call_operand.vmem [shape: f32[512,128], index: 1, kind: input, shape index: {}]   ;;  %s2634_s0 = inlined_call_operand.vmem [shape: f32[512,512], index: 0, kind: input, shape index: {}]   ;;  %s2635_s2 = inlined_call_operand.vmem [shape: f32[512,128], index: 2, kind: output, shape index: {0}]   ;;  %s2636_s3 = inlined_call_operand.vmem [shape: f32[1,2,128], index: 3, kind: output, shape index: {1}]  }
   0x1   :  { %v316_v0 = vld [vmem:[%s2633_s1 + $0x178] sm:$0xff]  ;;  %v315_v1 = vld [vmem:[%s2633_s1 + $0x170] sm:$0xff]  ;;  %v314_v5 = vld [vmem:[%s2633_s1 + $0x168] sm:$0xff] }
   0x2   :  { %v332_v2 = vld [vmem:[%s2633_s1 + $0x1f8] sm:$0xff]  ;;  %751 = vmatpush.msra.mxu2 %v316_v0  ;;  %v331_v6 = vld [vmem:[%s2633_s1 + $0x1f0] sm:$0xff]  ;;  %v330_v9 = vld [vmem:[%s2633_s1 + $0x1e8] sm:$0xff] }
   0x3   :  { %960 = vmatpush.msra.mxu3 %v332_v2  ;;  %v284_v3 = vld [vmem:[%s2633_s1 + $0x78] sm:$0xff]  ;;  %v283_v7 = vld [vmem:[%s2633_s1 + $0x70] sm:$0xff]  ;;  %v282_v10 = vld [vmem:[%s2633_s1 + $0x68] sm:$0xff] }
   0x4   :  { %v300_v4 = vld [vmem:[%s2633_s1 + $0xf8] sm:$0xff]  ;;  %333 = vmatpush.msra.mxu0 %v284_v3  ;;  %v299_v8 = vld [vmem:[%s2633_s1 + $0xf0] sm:$0xff]  ;;  %752 = vmatpush.msra.mxu2 %v315_v1  ;;  %v313_v11 = vld [vmem:[%s2633_s1 + $0x160] sm:$0xff] }
   0x5   :  { %542 = vmatpush.msra.mxu1 %v300_v4  ;;  %961 = vmatpush.msra.mxu3 %v331_v6  ;;  %v298_v12 = vld [vmem:[%s2633_s1 + $0xe8] sm:$0xff]  ;;  %v329_v13 = vld [vmem:[%s2633_s1 + $0x1e0] sm:$0xff]  ;;  %v312_v16 = vld [vmem:[%s2633_s1 + $0x158] sm:$0xff] }
   0x6   :  { %334 = vmatpush.msra.mxu0 %v283_v7  ;;  %753 = vmatpush.msra.mxu2 %v314_v5  ;;  %v281_v14 = vld [vmem:[%s2633_s1 + $0x60] sm:$0xff]  ;;  %v328_v17 = vld [vmem:[%s2633_s1 + $0x1d8] sm:$0xff]  ;;  %v311_v20 = vld [vmem:[%s2633_s1 + $0x150] sm:$0xff] }
   0x7   :  { %543 = vmatpush.msra.mxu1 %v299_v8  ;;  %962 = vmatpush.msra.mxu3 %v330_v9  ;;  %v297_v15 = vld [vmem:[%s2633_s1 + $0xe0] sm:$0xff]  ;;  %v280_v18 = vld [vmem:[%s2633_s1 + $0x58] sm:$0xff]  ;;  %v327_v21 = vld [vmem:[%s2633_s1 + $0x1d0] sm:$0xff] }
   0x8   :  { %335 = vmatpush.msra.mxu0 %v282_v10  ;;  %754 = vmatpush.msra.mxu2 %v313_v11  ;;  %v296_v19 = vld [vmem:[%s2633_s1 + $0xd8] sm:$0xff]  ;;  %v279_v22 = vld [vmem:[%s2633_s1 + $0x50] sm:$0xff]  ;;  %v310_v24 = vld [vmem:[%s2633_s1 + $0x148] sm:$0xff] }
   0x9   :  { %544 = vmatpush.msra.mxu1 %v298_v12  ;;  %963 = vmatpush.msra.mxu3 %v329_v13  ;;  %v295_v23 = vld [vmem:[%s2633_s1 + $0xd0] sm:$0xff]  ;;  %v326_v25 = vld [vmem:[%s2633_s1 + $0x1c8] sm:$0xff]  ;;  %v309_v28 = vld [vmem:[%s2633_s1 + $0x140] sm:$0xff] }
   0xa   :  { %336 = vmatpush.msra.mxu0 %v281_v14  ;;  %755 = vmatpush.msra.mxu2 %v312_v16  ;;  %v278_v26 = vld [vmem:[%s2633_s1 + $0x48] sm:$0xff]  ;;  %v325_v29 = vld [vmem:[%s2633_s1 + $0x1c0] sm:$0xff]  ;;  %v308_v32 = vld [vmem:[%s2633_s1 + $0x138] sm:$0xff] }
   0xb   :  { %545 = vmatpush.msra.mxu1 %v297_v15  ;;  %964 = vmatpush.msra.mxu3 %v328_v17  ;;  %v294_v27 = vld [vmem:[%s2633_s1 + $0xc8] sm:$0xff]  ;;  %v277_v30 = vld [vmem:[%s2633_s1 + $0x40] sm:$0xff]  ;;  %v324_v33 = vld [vmem:[%s2633_s1 + $0x1b8] sm:$0xff] }
   0xc   :  { %337 = vmatpush.msra.mxu0 %v280_v18  ;;  %756 = vmatpush.msra.mxu2 %v311_v20  ;;  %v293_v31 = vld [vmem:[%s2633_s1 + $0xc0] sm:$0xff]  ;;  %v276_v34 = vld [vmem:[%s2633_s1 + $0x38] sm:$0xff]  ;;  %v307_v36 = vld [vmem:[%s2633_s1 + $0x130] sm:$0xff] }
   0xd   :  { %546 = vmatpush.msra.mxu1 %v296_v19  ;;  %965 = vmatpush.msra.mxu3 %v327_v21  ;;  %v292_v35 = vld [vmem:[%s2633_s1 + $0xb8] sm:$0xff]  ;;  %v323_v37 = vld [vmem:[%s2633_s1 + $0x1b0] sm:$0xff]  ;;  %v306_v40 = vld [vmem:[%s2633_s1 + $0x128] sm:$0xff] }
   0xe   :  { %338 = vmatpush.msra.mxu0 %v279_v22  ;;  %757 = vmatpush.msra.mxu2 %v310_v24  ;;  %v275_v38 = vld [vmem:[%s2633_s1 + $0x30] sm:$0xff]  ;;  %v322_v41 = vld [vmem:[%s2633_s1 + $0x1a8] sm:$0xff]  ;;  %v305_v44 = vld [vmem:[%s2633_s1 + $0x120] sm:$0xff] }
   0xf   :  { %547 = vmatpush.msra.mxu1 %v295_v23  ;;  %966 = vmatpush.msra.mxu3 %v326_v25  ;;  %v291_v39 = vld [vmem:[%s2633_s1 + $0xb0] sm:$0xff]  ;;  %v274_v42 = vld [vmem:[%s2633_s1 + $0x28] sm:$0xff]  ;;  %v321_v45 = vld [vmem:[%s2633_s1 + $0x1a0] sm:$0xff] }
  0x10   :  { %339 = vmatpush.msra.mxu0 %v278_v26  ;;  %758 = vmatpush.msra.mxu2 %v309_v28  ;;  %v290_v43 = vld [vmem:[%s2633_s1 + $0xa8] sm:$0xff]  ;;  %v273_v46 = vld [vmem:[%s2633_s1 + $0x20] sm:$0xff]  ;;  %v304_v48 = vld [vmem:[%s2633_s1 + $0x118] sm:$0xff] }
  0x11   :  { %548 = vmatpush.msra.mxu1 %v294_v27  ;;  %967 = vmatpush.msra.mxu3 %v325_v29  ;;  %v289_v47 = vld [vmem:[%s2633_s1 + $0xa0] sm:$0xff]  ;;  %v320_v49 = vld [vmem:[%s2633_s1 + $0x198] sm:$0xff]  ;;  %v303_v52 = vld [vmem:[%s2633_s1 + $0x110] sm:$0xff] }
  0x12   :  { %340 = vmatpush.msra.mxu0 %v277_v30  ;;  %759 = vmatpush.msra.mxu2 %v308_v32  ;;  %v272_v50 = vld [vmem:[%s2633_s1 + $0x18] sm:$0xff]  ;;  %v319_v53 = vld [vmem:[%s2633_s1 + $0x190] sm:$0xff]  ;;  %v302_v56 = vld [vmem:[%s2633_s1 + $0x108] sm:$0xff] }
  0x13   :  { %549 = vmatpush.msra.mxu1 %v293_v31  ;;  %968 = vmatpush.msra.mxu3 %v324_v33  ;;  %v288_v51 = vld [vmem:[%s2633_s1 + $0x98] sm:$0xff]  ;;  %v271_v54 = vld [vmem:[%s2633_s1 + $0x10] sm:$0xff]  ;;  %v318_v57 = vld [vmem:[%s2633_s1 + $0x188] sm:$0xff] }
  0x14   :  { %341 = vmatpush.msra.mxu0 %v276_v34  ;;  %760 = vmatpush.msra.mxu2 %v307_v36  ;;  %v287_v55 = vld [vmem:[%s2633_s1 + $0x90] sm:$0xff]  ;;  %v270_v58 = vld [vmem:[%s2633_s1 + $0x8] sm:$0xff]  ;;  %v301_v60 = vld [vmem:[%s2633_s1 + $0x100] sm:$0xff] }
  0x15   :  { %550 = vmatpush.msra.mxu1 %v292_v35  ;;  %969 = vmatpush.msra.mxu3 %v323_v37  ;;  %v286_v59 = vld [vmem:[%s2633_s1 + $0x88] sm:$0xff]  ;;  %v317_v61 = vld [vmem:[%s2633_s1 + $0x180] sm:$0xff]  ;;  %v15_v62 = vld [vmem:[%s2634_s0 + $0x10] sm:$0xff] }
  0x16   :  { %342 = vmatpush.msra.mxu0 %v275_v38  ;;  %761 = vmatpush.msra.mxu2 %v306_v40  ;;  %v16_v63 = vld [vmem:[%s2634_s0 + $0x18] sm:$0xff]  ;;  %v269_v0 = vld [vmem:[%s2633_s1] sm:$0xff]  ;;  %v14_v3 = vld [vmem:[%s2634_s0 + $0x8] sm:$0xff] }
  0x17   :  { %551 = vmatpush.msra.mxu1 %v291_v39  ;;  %970 = vmatpush.msra.mxu3 %v322_v41  ;;  %v285_v1 = vld [vmem:[%s2633_s1 + $0x80] sm:$0xff]  ;;  %v19_v4 = vld [vmem:[%s2634_s0 + $0x30] sm:$0xff]  ;;  %v20_v5 = vld [vmem:[%s2634_s0 + $0x38] sm:$0xff] }
  0x18   :  { %343 = vmatpush.msra.mxu0 %v274_v42  ;;  %762 = vmatpush.msra.mxu2 %v305_v44  ;;  %v13_v2 = vld [vmem:[%s2634_s0] sm:$0xff]  ;;  %v18_v7 = vld [vmem:[%s2634_s0 + $0x28] sm:$0xff]  ;;  %v23_v8 = vld [vmem:[%s2634_s0 + $0x50] sm:$0xff] }
  0x19   :  { %552 = vmatpush.msra.mxu1 %v290_v43  ;;  %971 = vmatpush.msra.mxu3 %v321_v45  ;;  %v17_v6 = vld [vmem:[%s2634_s0 + $0x20] sm:$0xff]  ;;  %v24_v9 = vld [vmem:[%s2634_s0 + $0x58] sm:$0xff]  ;;  %v22_v11 = vld [vmem:[%s2634_s0 + $0x48] sm:$0xff] }
  0x1a   :  { %344 = vmatpush.msra.mxu0 %v273_v46  ;;  %763 = vmatpush.msra.mxu2 %v304_v48  ;;  %v21_v10 = vld [vmem:[%s2634_s0 + $0x40] sm:$0xff]  ;;  %v27_v12 = vld [vmem:[%s2634_s0 + $0x70] sm:$0xff]  ;;  %v28_v13 = vld [vmem:[%s2634_s0 + $0x78] sm:$0xff] }
  0x1b   :  { %553 = vmatpush.msra.mxu1 %v289_v47  ;;  %972 = vmatpush.msra.mxu3 %v320_v49  ;;  %v25_v14 = vld [vmem:[%s2634_s0 + $0x60] sm:$0xff]  ;;  %v26_v15 = vld [vmem:[%s2634_s0 + $0x68] sm:$0xff]  ;;  %v31_v16 = vld [vmem:[%s2634_s0 + $0x90] sm:$0xff] }
  0x1c   :  { %345 = vmatpush.msra.mxu0 %v272_v50  ;;  %764 = vmatpush.msra.mxu2 %v303_v52  ;;  %v32_v17 = vld [vmem:[%s2634_s0 + $0x98] sm:$0xff]  ;;  %v29_v18 = vld [vmem:[%s2634_s0 + $0x80] sm:$0xff]  ;;  %v30_v19 = vld [vmem:[%s2634_s0 + $0x88] sm:$0xff] }
  0x1d   :  { %554 = vmatpush.msra.mxu1 %v288_v51  ;;  %973 = vmatpush.msra.mxu3 %v319_v53  ;;  %v35_v20 = vld [vmem:[%s2634_s0 + $0xb0] sm:$0xff]  ;;  %v36_v21 = vld [vmem:[%s2634_s0 + $0xb8] sm:$0xff]  ;;  %v33_v22 = vld [vmem:[%s2634_s0 + $0xa0] sm:$0xff] }
  0x1e   :  { %346 = vmatpush.msra.mxu0 %v271_v54  ;;  %765 = vmatpush.msra.mxu2 %v302_v56  ;;  %v34_v23 = vld [vmem:[%s2634_s0 + $0xa8] sm:$0xff]  ;;  %v39_v24 = vld [vmem:[%s2634_s0 + $0xd0] sm:$0xff]  ;;  %v40_v25 = vld [vmem:[%s2634_s0 + $0xd8] sm:$0xff] }
  0x1f   :  { %555 = vmatpush.msra.mxu1 %v287_v55  ;;  %974 = vmatpush.msra.mxu3 %v318_v57  ;;  %v37_v26 = vld [vmem:[%s2634_s0 + $0xc0] sm:$0xff]  ;;  %v38_v27 = vld [vmem:[%s2634_s0 + $0xc8] sm:$0xff]  ;;  %v43_v28 = vld [vmem:[%s2634_s0 + $0xf0] sm:$0xff] }
  0x20   :  { %347 = vmatpush.msra.mxu0 %v270_v58  ;;  %766 = vmatpush.msra.mxu2 %v301_v60  ;;  %v44_v29 = vld [vmem:[%s2634_s0 + $0xf8] sm:$0xff]  ;;  %v41_v30 = vld [vmem:[%s2634_s0 + $0xe0] sm:$0xff]  ;;  %v42_v31 = vld [vmem:[%s2634_s0 + $0xe8] sm:$0xff] }
  0x21   :  { %556 = vmatpush.msra.mxu1 %v286_v59  ;;  %975 = vmatpush.msra.mxu3 %v317_v61  ;;  %v47_v32 = vld [vmem:[%s2634_s0 + $0x110] sm:$0xff]  ;;  %v48_v33 = vld [vmem:[%s2634_s0 + $0x118] sm:$0xff]  ;;  %v45_v34 = vld [vmem:[%s2634_s0 + $0x100] sm:$0xff] }
  0x22   :  { %767 = vmatmul.f32.vlgmr.msra.gmra.mxu2 %v15_v62  ;;  %976 = vmatmul.f32.vlgmr.msra.gmra.mxu3 %v16_v63  ;;  %v46_v35 = vld [vmem:[%s2634_s0 + $0x108] sm:$0xff]  ;;  %v51_v36 = vld [vmem:[%s2634_s0 + $0x130] sm:$0xff]  ;;  %v52_v37 = vld [vmem:[%s2634_s0 + $0x138] sm:$0xff] }
  0x23   :  { %348 = vmatpush.msra.mxu0 %v269_v0  ;;  %557 = vmatpush.msra.mxu1 %v285_v1  ;;  %v49_v38 = vld [vmem:[%s2634_s0 + $0x120] sm:$0xff]  ;;  %v50_v39 = vld [vmem:[%s2634_s0 + $0x128] sm:$0xff]  ;;  %v55_v40 = vld [vmem:[%s2634_s0 + $0x150] sm:$0xff] }
  0x24   :  { %349 = vmatmul.f32.vlgmr.msra.gmra.mxu0 %v13_v2  ;;  %558 = vmatmul.f32.vlgmr.msra.gmra.mxu1 %v14_v3  ;;  %v56_v41 = vld [vmem:[%s2634_s0 + $0x158] sm:$0xff]  ;;  %v53_v42 = vld [vmem:[%s2634_s0 + $0x140] sm:$0xff]  ;;  %v54_v43 = vld [vmem:[%s2634_s0 + $0x148] sm:$0xff] }
  0x25   :  { %v59_v44 = vld [vmem:[%s2634_s0 + $0x170] sm:$0xff]  ;;  %v60_v45 = vld [vmem:[%s2634_s0 + $0x178] sm:$0xff]  ;;  %v57_v46 = vld [vmem:[%s2634_s0 + $0x160] sm:$0xff] }
  0x26   :  { %v58_v47 = vld [vmem:[%s2634_s0 + $0x168] sm:$0xff]  ;;  %v63_v48 = vld [vmem:[%s2634_s0 + $0x190] sm:$0xff]  ;;  %v64_v49 = vld [vmem:[%s2634_s0 + $0x198] sm:$0xff] }
  0x27   :  { %v61_v50 = vld [vmem:[%s2634_s0 + $0x180] sm:$0xff]  ;;  %v62_v51 = vld [vmem:[%s2634_s0 + $0x188] sm:$0xff]  ;;  %v67_v52 = vld [vmem:[%s2634_s0 + $0x1b0] sm:$0xff] }
  0x28   :  { %v68_v53 = vld [vmem:[%s2634_s0 + $0x1b8] sm:$0xff]  ;;  %v65_v54 = vld [vmem:[%s2634_s0 + $0x1a0] sm:$0xff]  ;;  %v66_v55 = vld [vmem:[%s2634_s0 + $0x1a8] sm:$0xff] }
  0x29   :  { %v71_v56 = vld [vmem:[%s2634_s0 + $0x1d0] sm:$0xff]  ;;  %v72_v57 = vld [vmem:[%s2634_s0 + $0x1d8] sm:$0xff]  ;;  %v69_v58 = vld [vmem:[%s2634_s0 + $0x1c0] sm:$0xff] }
  0x2a   :  { %770 = vmatmul.f32.gmra.mxu2 %v19_v4  ;;  %979 = vmatmul.f32.gmra.mxu3 %v20_v5  ;;  %v70_v59 = vld [vmem:[%s2634_s0 + $0x1c8] sm:$0xff]  ;;  %v75_v60 = vld [vmem:[%s2634_s0 + $0x1f0] sm:$0xff]  ;;  %v76_v61 = vld [vmem:[%s2634_s0 + $0x1f8] sm:$0xff] }
  0x2b   :  { %v73_v62 = vld [vmem:[%s2634_s0 + $0x1e0] sm:$0xff]  ;;  %v74_v63 = vld [vmem:[%s2634_s0 + $0x1e8] sm:$0xff]  ;;  %v79_v0 = vld [vmem:[%s2634_s0 + $0x210] sm:$0xff] }
  0x2c   :  { %352 = vmatmul.f32.gmra.mxu0 %v17_v6  ;;  %561 = vmatmul.f32.gmra.mxu1 %v18_v7  ;;  %v80_v1 = vld [vmem:[%s2634_s0 + $0x218] sm:$0xff]  ;;  %v77_v4 = vld [vmem:[%s2634_s0 + $0x200] sm:$0xff]  ;;  %v78_v5 = vld [vmem:[%s2634_s0 + $0x208] sm:$0xff] }
  0x32   :  { %773 = vmatmul.f32.gmra.mxu2 %v23_v8  ;;  %982 = vmatmul.f32.gmra.mxu3 %v24_v9 }
  0x34   :  { %355 = vmatmul.f32.gmra.mxu0 %v21_v10  ;;  %564 = vmatmul.f32.gmra.mxu1 %v22_v11  ;;  %v83_v10 = vld [vmem:[%s2634_s0 + $0x230] sm:$0xff]  ;;  %v84_v11 = vld [vmem:[%s2634_s0 + $0x238] sm:$0xff] }
  0x3a   :  { %776 = vmatmul.f32.gmra.mxu2 %v27_v12  ;;  %985 = vmatmul.f32.gmra.mxu3 %v28_v13 }
  0x3c   :  { %358 = vmatmul.f32.gmra.mxu0 %v25_v14  ;;  %567 = vmatmul.f32.gmra.mxu1 %v26_v15  ;;  %v81_v15 = vld [vmem:[%s2634_s0 + $0x220] sm:$0xff] }
  0x42   :  { %779 = vmatmul.f32.gmra.mxu2 %v31_v16  ;;  %988 = vmatmul.f32.gmra.mxu3 %v32_v17  ;;  %v82_v16 = vld [vmem:[%s2634_s0 + $0x228] sm:$0xff] }
  0x44   :  { %361 = vmatmul.f32.gmra.mxu0 %v29_v18  ;;  %570 = vmatmul.f32.gmra.mxu1 %v30_v19 }
  0x4a   :  { %782 = vmatmul.f32.gmra.mxu2 %v35_v20  ;;  %991 = vmatmul.f32.gmra.mxu3 %v36_v21  ;;  %v87_v21 = vld [vmem:[%s2634_s0 + $0x250] sm:$0xff] }
  0x4c   :  { %364 = vmatmul.f32.gmra.mxu0 %v33_v22  ;;  %573 = vmatmul.f32.gmra.mxu1 %v34_v23  ;;  %v88_v22 = vld [vmem:[%s2634_s0 + $0x258] sm:$0xff] }
  0x52   :  { %785 = vmatmul.f32.gmra.mxu2 %v39_v24  ;;  %994 = vmatmul.f32.gmra.mxu3 %v40_v25 }
  0x54   :  { %367 = vmatmul.f32.gmra.mxu0 %v37_v26  ;;  %576 = vmatmul.f32.gmra.mxu1 %v38_v27  ;;  %v85_v27 = vld [vmem:[%s2634_s0 + $0x240] sm:$0xff] }
  0x5a   :  { %788 = vmatmul.f32.gmra.mxu2 %v43_v28  ;;  %997 = vmatmul.f32.gmra.mxu3 %v44_v29  ;;  %v86_v28 = vld [vmem:[%s2634_s0 + $0x248] sm:$0xff] }
  0x5c   :  { %370 = vmatmul.f32.gmra.mxu0 %v41_v30  ;;  %579 = vmatmul.f32.gmra.mxu1 %v42_v31 }
  0x62   :  { %791 = vmatmul.f32.gmra.mxu2 %v47_v32  ;;  %1000 = vmatmul.f32.gmra.mxu3 %v48_v33 }
  0x64   :  { %373 = vmatmul.f32.gmra.mxu0 %v45_v34  ;;  %582 = vmatmul.f32.gmra.mxu1 %v46_v35 }
  0x6a   :  { %794 = vmatmul.f32.gmra.mxu2 %v51_v36  ;;  %1003 = vmatmul.f32.gmra.mxu3 %v52_v37  ;;  %v91_v36 = vld [vmem:[%s2634_s0 + $0x270] sm:$0xff]  ;;  %v92_v37 = vld [vmem:[%s2634_s0 + $0x278] sm:$0xff] }
  0x6c   :  { %376 = vmatmul.f32.gmra.mxu0 %v49_v38  ;;  %585 = vmatmul.f32.gmra.mxu1 %v50_v39 }
  0x72   :  { %797 = vmatmul.f32.gmra.mxu2 %v55_v40  ;;  %1006 = vmatmul.f32.gmra.mxu3 %v56_v41  ;;  %v89_v41 = vld [vmem:[%s2634_s0 + $0x260] sm:$0xff] }
  0x74   :  { %379 = vmatmul.f32.gmra.mxu0 %v53_v42  ;;  %588 = vmatmul.f32.gmra.mxu1 %v54_v43  ;;  %v90_v42 = vld [vmem:[%s2634_s0 + $0x268] sm:$0xff] }
  0x7a   :  { %800 = vmatmul.f32.gmra.mxu2 %v59_v44  ;;  %1009 = vmatmul.f32.gmra.mxu3 %v60_v45 }
  0x7c   :  { %382 = vmatmul.f32.gmra.mxu0 %v57_v46  ;;  %591 = vmatmul.f32.gmra.mxu1 %v58_v47 }
  0x82   :  { %803 = vmatmul.f32.gmra.mxu2 %v63_v48  ;;  %1012 = vmatmul.f32.gmra.mxu3 %v64_v49 }
  0x84   :  { %385 = vmatmul.f32.gmra.mxu0 %v61_v50  ;;  %594 = vmatmul.f32.gmra.mxu1 %v62_v51  ;;  %v95_v50 = vld [vmem:[%s2634_s0 + $0x290] sm:$0xff]  ;;  %v96_v51 = vld [vmem:[%s2634_s0 + $0x298] sm:$0xff] }
  0x8a   :  { %806 = vmatmul.f32.gmra.mxu2 %v67_v52  ;;  %1015 = vmatmul.f32.gmra.mxu3 %v68_v53 }
  0x8c   :  { %388 = vmatmul.f32.gmra.mxu0 %v65_v54  ;;  %597 = vmatmul.f32.gmra.mxu1 %v66_v55  ;;  %v93_v55 = vld [vmem:[%s2634_s0 + $0x280] sm:$0xff] }
  0x92   :  { %809 = vmatmul.f32.gmra.mxu2 %v71_v56  ;;  %1018 = vmatmul.f32.gmra.mxu3 %v72_v57  ;;  %v94_v56 = vld [vmem:[%s2634_s0 + $0x288] sm:$0xff] }
  0x94   :  { %391 = vmatmul.f32.gmra.mxu0 %v69_v58  ;;  %600 = vmatmul.f32.gmra.mxu1 %v70_v59 }
  0x9a   :  { %812 = vmatmul.f32.gmra.mxu2 %v75_v60  ;;  %1021 = vmatmul.f32.gmra.mxu3 %v76_v61 }
  0x9c   :  { %394 = vmatmul.f32.gmra.mxu0 %v73_v62  ;;  %603 = vmatmul.f32.gmra.mxu1 %v74_v63 }
  0xa1   :  { %v350_v2 = vpop.f32.mrf.mxu0  ;;  %v559_v3 = vpop.f32.mrf.mxu1 }
  0xa2   :  { %815 = vmatmul.f32.gmra.mxu2 %v79_v0  ;;  %v560_v6 = vadd.f32 %v559_v3, %v350_v2  ;;  %1024 = vmatmul.f32.gmra.mxu3 %v80_v1  ;;  %v99_v0 = vld [vmem:[%s2634_s0 + $0x2b0] sm:$0xff]  ;;  %v100_v1 = vld [vmem:[%s2634_s0 + $0x2b8] sm:$0xff] }
  0xa4   :  { %397 = vmatmul.f32.gmra.mxu0 %v77_v4  ;;  %606 = vmatmul.f32.gmra.mxu1 %v78_v5  ;;  %v97_v5 = vld [vmem:[%s2634_s0 + $0x2a0] sm:$0xff] }
  0xa5   :  { %v768_v7 = vpop.f32.mrf.mxu2  ;;  %v977_v8 = vpop.f32.mrf.mxu3 }
  0xa6   :  { %v769_v9 = vadd.f32 %v768_v7, %v560_v6  ;;  %v98_v6 = vld [vmem:[%s2634_s0 + $0x2a8] sm:$0xff] }
  0xa8   :  { %v978_v12 = vadd.f32 %v977_v8, %v769_v9 }
  0xa9   :  { %v353_v13 = vpop.f32.mrf.mxu0  ;;  %v562_v14 = vpop.f32.mrf.mxu1 }
  0xaa   :  { %1169 = vst [vmem:[%s2635_s2] sm:$0xff] %v978_v12  ;;  %818 = vmatmul.f32.gmra.mxu2 %v83_v10  ;;  %v563_v17 = vadd.f32 %v562_v14, %v353_v13  ;;  %1027 = vmatmul.f32.gmra.mxu3 %v84_v11  ;;  %v1302_v24 = vmul.f32 %v978_v12, %v978_v12  ;;  %v103_v14 = vld [vmem:[%s2634_s0 + $0x2d0] sm:$0xff] }
  0xac   :  { %400 = vmatmul.f32.gmra.mxu0 %v81_v15  ;;  %609 = vmatmul.f32.gmra.mxu1 %v82_v16  ;;  %v104_v15 = vld [vmem:[%s2634_s0 + $0x2d8] sm:$0xff] }
  0xad   :  { %v771_v18 = vpop.f32.mrf.mxu2  ;;  %v980_v19 = vpop.f32.mrf.mxu3 }
  0xae   :  { %v772_v20 = vadd.f32 %v771_v18, %v563_v17 }
  0xb0   :  { %v981_v23 = vadd.f32 %v980_v19, %v772_v20  ;;  %v101_v19 = vld [vmem:[%s2634_s0 + $0x2c0] sm:$0xff]  ;;  %v102_v20 = vld [vmem:[%s2634_s0 + $0x2c8] sm:$0xff] }
  0xb1   :  { %v356_v25 = vpop.f32.mrf.mxu0  ;;  %v565_v26 = vpop.f32.mrf.mxu1 }
  0xb2   :  { %1170 = vst [vmem:[%s2635_s2 + $0x8] sm:$0xff] %v981_v23  ;;  %v1233_v29 = vadd.f32 %v981_v23, %v978_v12  ;;  %v1303_v30 = vmul.f32 %v981_v23, %v981_v23  ;;  %821 = vmatmul.f32.gmra.mxu2 %v87_v21  ;;  %v566_v31 = vadd.f32 %v565_v26, %v356_v25 }
  0xb3   :  { %1030 = vmatmul.f32.gmra.mxu3 %v88_v22 }
  0xb4   :  { %v1366_v32 = vadd.f32 %v1303_v30, %v1302_v24  ;;  %403 = vmatmul.f32.gmra.mxu0 %v85_v27  ;;  %612 = vmatmul.f32.gmra.mxu1 %v86_v28  ;;  %v107_v28 = vld [vmem:[%s2634_s0 + $0x2f0] sm:$0xff] }
  0xb5   :  { %v774_v33 = vpop.f32.mrf.mxu2  ;;  %v983_v34 = vpop.f32.mrf.mxu3 }
  0xb6   :  { %v775_v35 = vadd.f32 %v774_v33, %v566_v31  ;;  %v105_v33 = vld [vmem:[%s2634_s0 + $0x2e0] sm:$0xff] }
  0xb8   :  { %v984_v38 = vadd.f32 %v983_v34, %v775_v35  ;;  %v106_v34 = vld [vmem:[%s2634_s0 + $0x2e8] sm:$0xff] }
  0xb9   :  { %v359_v39 = vpop.f32.mrf.mxu0  ;;  %v568_v40 = vpop.f32.mrf.mxu1 }
  0xba   :  { %1171 = vst [vmem:[%s2635_s2 + $0x10] sm:$0xff] %v984_v38  ;;  %v1234_v43 = vadd.f32 %v1233_v29, %v984_v38  ;;  %v1304_v44 = vmul.f32 %v984_v38, %v984_v38  ;;  %824 = vmatmul.f32.gmra.mxu2 %v91_v36  ;;  %v569_v45 = vadd.f32 %v568_v40, %v359_v39  ;;  %v108_v29 = vld [vmem:[%s2634_s0 + $0x2f8] sm:$0xff] }
  0xbb   :  { %1033 = vmatmul.f32.gmra.mxu3 %v92_v37 }
  0xbc   :  { %v1367_v46 = vadd.f32 %v1366_v32, %v1304_v44  ;;  %406 = vmatmul.f32.gmra.mxu0 %v89_v41  ;;  %615 = vmatmul.f32.gmra.mxu1 %v90_v42  ;;  %v111_v42 = vld [vmem:[%s2634_s0 + $0x310] sm:$0xff] }
  0xbd   :  { %v777_v47 = vpop.f32.mrf.mxu2  ;;  %v986_v48 = vpop.f32.mrf.mxu3 }
  0xbe   :  { %v778_v49 = vadd.f32 %v777_v47, %v569_v45  ;;  %v109_v47 = vld [vmem:[%s2634_s0 + $0x300] sm:$0xff] }
  0xc0   :  { %v987_v52 = vadd.f32 %v986_v48, %v778_v49  ;;  %v110_v48 = vld [vmem:[%s2634_s0 + $0x308] sm:$0xff] }
  0xc1   :  { %v362_v53 = vpop.f32.mrf.mxu0  ;;  %v571_v54 = vpop.f32.mrf.mxu1 }
  0xc2   :  { %1172 = vst [vmem:[%s2635_s2 + $0x18] sm:$0xff] %v987_v52  ;;  %v1235_v57 = vadd.f32 %v1234_v43, %v987_v52  ;;  %v1305_v58 = vmul.f32 %v987_v52, %v987_v52  ;;  %827 = vmatmul.f32.gmra.mxu2 %v95_v50  ;;  %v572_v59 = vadd.f32 %v571_v54, %v362_v53  ;;  %v112_v43 = vld [vmem:[%s2634_s0 + $0x318] sm:$0xff] }
  0xc3   :  { %1036 = vmatmul.f32.gmra.mxu3 %v96_v51 }
  0xc4   :  { %v1368_v60 = vadd.f32 %v1367_v46, %v1305_v58  ;;  %409 = vmatmul.f32.gmra.mxu0 %v93_v55  ;;  %618 = vmatmul.f32.gmra.mxu1 %v94_v56  ;;  %v115_v56 = vld [vmem:[%s2634_s0 + $0x330] sm:$0xff] }
  0xc5   :  { %v780_v61 = vpop.f32.mrf.mxu2  ;;  %v989_v62 = vpop.f32.mrf.mxu3 }
  0xc6   :  { %v781_v63 = vadd.f32 %v780_v61, %v572_v59  ;;  %v113_v61 = vld [vmem:[%s2634_s0 + $0x320] sm:$0xff] }
  0xc8   :  { %v990_v2 = vadd.f32 %v989_v62, %v781_v63  ;;  %v114_v62 = vld [vmem:[%s2634_s0 + $0x328] sm:$0xff] }
  0xc9   :  { %v365_v3 = vpop.f32.mrf.mxu0  ;;  %v574_v4 = vpop.f32.mrf.mxu1 }
  0xca   :  { %1173 = vst [vmem:[%s2635_s2 + $0x20] sm:$0xff] %v990_v2  ;;  %v1236_v7 = vadd.f32 %v1235_v57, %v990_v2  ;;  %v1306_v8 = vmul.f32 %v990_v2, %v990_v2  ;;  %830 = vmatmul.f32.gmra.mxu2 %v99_v0  ;;  %v575_v9 = vadd.f32 %v574_v4, %v365_v3  ;;  %v116_v57 = vld [vmem:[%s2634_s0 + $0x338] sm:$0xff] }
  0xcb   :  { %1039 = vmatmul.f32.gmra.mxu3 %v100_v1 }
  0xcc   :  { %v1369_v10 = vadd.f32 %v1368_v60, %v1306_v8  ;;  %412 = vmatmul.f32.gmra.mxu0 %v97_v5  ;;  %621 = vmatmul.f32.gmra.mxu1 %v98_v6  ;;  %v119_v6 = vld [vmem:[%s2634_s0 + $0x350] sm:$0xff] }
  0xcd   :  { %v783_v11 = vpop.f32.mrf.mxu2  ;;  %v992_v12 = vpop.f32.mrf.mxu3 }
  0xce   :  { %v784_v13 = vadd.f32 %v783_v11, %v575_v9  ;;  %v117_v11 = vld [vmem:[%s2634_s0 + $0x340] sm:$0xff] }
  0xd0   :  { %v993_v16 = vadd.f32 %v992_v12, %v784_v13  ;;  %v118_v12 = vld [vmem:[%s2634_s0 + $0x348] sm:$0xff] }
  0xd1   :  { %v368_v17 = vpop.f32.mrf.mxu0  ;;  %v577_v18 = vpop.f32.mrf.mxu1 }
  0xd2   :  { %1174 = vst [vmem:[%s2635_s2 + $0x28] sm:$0xff] %v993_v16  ;;  %v1237_v21 = vadd.f32 %v1236_v7, %v993_v16  ;;  %v1307_v22 = vmul.f32 %v993_v16, %v993_v16  ;;  %833 = vmatmul.f32.gmra.mxu2 %v103_v14  ;;  %v578_v23 = vadd.f32 %v577_v18, %v368_v17  ;;  %v120_v7 = vld [vmem:[%s2634_s0 + $0x358] sm:$0xff] }
  0xd3   :  { %1042 = vmatmul.f32.gmra.mxu3 %v104_v15 }
  0xd4   :  { %v1370_v24 = vadd.f32 %v1369_v10, %v1307_v22  ;;  %415 = vmatmul.f32.gmra.mxu0 %v101_v19  ;;  %624 = vmatmul.f32.gmra.mxu1 %v102_v20  ;;  %v123_v20 = vld [vmem:[%s2634_s0 + $0x370] sm:$0xff] }
  0xd5   :  { %v786_v25 = vpop.f32.mrf.mxu2  ;;  %v995_v26 = vpop.f32.mrf.mxu3 }
  0xd6   :  { %v787_v27 = vadd.f32 %v786_v25, %v578_v23  ;;  %v121_v25 = vld [vmem:[%s2634_s0 + $0x360] sm:$0xff] }
  0xd8   :  { %v996_v30 = vadd.f32 %v995_v26, %v787_v27  ;;  %v122_v26 = vld [vmem:[%s2634_s0 + $0x368] sm:$0xff] }
  0xd9   :  { %v371_v31 = vpop.f32.mrf.mxu0  ;;  %v580_v32 = vpop.f32.mrf.mxu1 }
  0xda   :  { %1175 = vst [vmem:[%s2635_s2 + $0x30] sm:$0xff] %v996_v30  ;;  %v1238_v35 = vadd.f32 %v1237_v21, %v996_v30  ;;  %v1308_v36 = vmul.f32 %v996_v30, %v996_v30  ;;  %836 = vmatmul.f32.gmra.mxu2 %v107_v28  ;;  %v581_v37 = vadd.f32 %v580_v32, %v371_v31  ;;  %v124_v21 = vld [vmem:[%s2634_s0 + $0x378] sm:$0xff] }
  0xdb   :  { %1045 = vmatmul.f32.gmra.mxu3 %v108_v29 }
  0xdc   :  { %v1371_v38 = vadd.f32 %v1370_v24, %v1308_v36  ;;  %418 = vmatmul.f32.gmra.mxu0 %v105_v33  ;;  %627 = vmatmul.f32.gmra.mxu1 %v106_v34  ;;  %v127_v34 = vld [vmem:[%s2634_s0 + $0x390] sm:$0xff] }
  0xdd   :  { %v789_v39 = vpop.f32.mrf.mxu2  ;;  %v998_v40 = vpop.f32.mrf.mxu3 }
  0xde   :  { %v790_v41 = vadd.f32 %v789_v39, %v581_v37  ;;  %v125_v39 = vld [vmem:[%s2634_s0 + $0x380] sm:$0xff] }
  0xe0   :  { %v999_v44 = vadd.f32 %v998_v40, %v790_v41  ;;  %v126_v40 = vld [vmem:[%s2634_s0 + $0x388] sm:$0xff] }
  0xe1   :  { %v374_v45 = vpop.f32.mrf.mxu0  ;;  %v583_v46 = vpop.f32.mrf.mxu1 }
  0xe2   :  { %1176 = vst [vmem:[%s2635_s2 + $0x38] sm:$0xff] %v999_v44  ;;  %v1239_v49 = vadd.f32 %v1238_v35, %v999_v44  ;;  %v1309_v50 = vmul.f32 %v999_v44, %v999_v44  ;;  %839 = vmatmul.f32.gmra.mxu2 %v111_v42  ;;  %v584_v51 = vadd.f32 %v583_v46, %v374_v45  ;;  %v128_v35 = vld [vmem:[%s2634_s0 + $0x398] sm:$0xff] }
  0xe3   :  { %1048 = vmatmul.f32.gmra.mxu3 %v112_v43 }
  0xe4   :  { %v1372_v52 = vadd.f32 %v1371_v38, %v1309_v50  ;;  %421 = vmatmul.f32.gmra.mxu0 %v109_v47  ;;  %630 = vmatmul.f32.gmra.mxu1 %v110_v48  ;;  %v131_v48 = vld [vmem:[%s2634_s0 + $0x3b0] sm:$0xff] }
  0xe5   :  { %v792_v53 = vpop.f32.mrf.mxu2  ;;  %v1001_v54 = vpop.f32.mrf.mxu3 }
  0xe6   :  { %v793_v55 = vadd.f32 %v792_v53, %v584_v51  ;;  %v129_v53 = vld [vmem:[%s2634_s0 + $0x3a0] sm:$0xff] }
  0xe8   :  { %v1002_v58 = vadd.f32 %v1001_v54, %v793_v55  ;;  %v130_v54 = vld [vmem:[%s2634_s0 + $0x3a8] sm:$0xff] }
  0xe9   :  { %v377_v59 = vpop.f32.mrf.mxu0  ;;  %v586_v60 = vpop.f32.mrf.mxu1 }
  0xea   :  { %1177 = vst [vmem:[%s2635_s2 + $0x40] sm:$0xff] %v1002_v58  ;;  %v1240_v63 = vadd.f32 %v1239_v49, %v1002_v58  ;;  %v1310_v0 = vmul.f32 %v1002_v58, %v1002_v58  ;;  %842 = vmatmul.f32.gmra.mxu2 %v115_v56  ;;  %v587_v1 = vadd.f32 %v586_v60, %v377_v59  ;;  %v132_v49 = vld [vmem:[%s2634_s0 + $0x3b8] sm:$0xff] }
  0xeb   :  { %1051 = vmatmul.f32.gmra.mxu3 %v116_v57 }
  0xec   :  { %v1373_v2 = vadd.f32 %v1372_v52, %v1310_v0  ;;  %424 = vmatmul.f32.gmra.mxu0 %v113_v61  ;;  %633 = vmatmul.f32.gmra.mxu1 %v114_v62  ;;  %v135_v62 = vld [vmem:[%s2634_s0 + $0x3d0] sm:$0xff] }
  0xed   :  { %v795_v3 = vpop.f32.mrf.mxu2  ;;  %v1004_v4 = vpop.f32.mrf.mxu3 }
  0xee   :  { %v796_v5 = vadd.f32 %v795_v3, %v587_v1  ;;  %v133_v3 = vld [vmem:[%s2634_s0 + $0x3c0] sm:$0xff] }
  0xf0   :  { %v1005_v8 = vadd.f32 %v1004_v4, %v796_v5  ;;  %v134_v4 = vld [vmem:[%s2634_s0 + $0x3c8] sm:$0xff] }
  0xf1   :  { %v380_v9 = vpop.f32.mrf.mxu0  ;;  %v589_v10 = vpop.f32.mrf.mxu1 }
  0xf2   :  { %1178 = vst [vmem:[%s2635_s2 + $0x48] sm:$0xff] %v1005_v8  ;;  %v1241_v13 = vadd.f32 %v1240_v63, %v1005_v8  ;;  %v1311_v14 = vmul.f32 %v1005_v8, %v1005_v8  ;;  %845 = vmatmul.f32.gmra.mxu2 %v119_v6  ;;  %v590_v15 = vadd.f32 %v589_v10, %v380_v9  ;;  %v136_v63 = vld [vmem:[%s2634_s0 + $0x3d8] sm:$0xff] }
  0xf3   :  { %1054 = vmatmul.f32.gmra.mxu3 %v120_v7 }
  0xf4   :  { %v1374_v16 = vadd.f32 %v1373_v2, %v1311_v14  ;;  %427 = vmatmul.f32.gmra.mxu0 %v117_v11  ;;  %636 = vmatmul.f32.gmra.mxu1 %v118_v12  ;;  %v139_v12 = vld [vmem:[%s2634_s0 + $0x3f0] sm:$0xff] }
  0xf5   :  { %v798_v17 = vpop.f32.mrf.mxu2  ;;  %v1007_v18 = vpop.f32.mrf.mxu3 }
  0xf6   :  { %v799_v19 = vadd.f32 %v798_v17, %v590_v15  ;;  %v137_v17 = vld [vmem:[%s2634_s0 + $0x3e0] sm:$0xff] }
  0xf8   :  { %v1008_v22 = vadd.f32 %v1007_v18, %v799_v19  ;;  %v138_v18 = vld [vmem:[%s2634_s0 + $0x3e8] sm:$0xff] }
  0xf9   :  { %v383_v23 = vpop.f32.mrf.mxu0  ;;  %v592_v24 = vpop.f32.mrf.mxu1 }
  0xfa   :  { %1179 = vst [vmem:[%s2635_s2 + $0x50] sm:$0xff] %v1008_v22  ;;  %v1242_v27 = vadd.f32 %v1241_v13, %v1008_v22  ;;  %v1312_v28 = vmul.f32 %v1008_v22, %v1008_v22  ;;  %848 = vmatmul.f32.gmra.mxu2 %v123_v20  ;;  %v593_v29 = vadd.f32 %v592_v24, %v383_v23  ;;  %v140_v13 = vld [vmem:[%s2634_s0 + $0x3f8] sm:$0xff] }
  0xfb   :  { %1057 = vmatmul.f32.gmra.mxu3 %v124_v21 }
  0xfc   :  { %v1375_v30 = vadd.f32 %v1374_v16, %v1312_v28  ;;  %430 = vmatmul.f32.gmra.mxu0 %v121_v25  ;;  %639 = vmatmul.f32.gmra.mxu1 %v122_v26  ;;  %v143_v26 = vld [vmem:[%s2634_s0 + $0x410] sm:$0xff] }
  0xfd   :  { %v801_v31 = vpop.f32.mrf.mxu2  ;;  %v1010_v32 = vpop.f32.mrf.mxu3 }
  0xfe   :  { %v802_v33 = vadd.f32 %v801_v31, %v593_v29  ;;  %v141_v31 = vld [vmem:[%s2634_s0 + $0x400] sm:$0xff] }
 0x100   :  { %v1011_v36 = vadd.f32 %v1010_v32, %v802_v33  ;;  %v142_v32 = vld [vmem:[%s2634_s0 + $0x408] sm:$0xff] }
 0x101   :  { %v386_v37 = vpop.f32.mrf.mxu0  ;;  %v595_v38 = vpop.f32.mrf.mxu1 }
 0x102   :  { %1180 = vst [vmem:[%s2635_s2 + $0x58] sm:$0xff] %v1011_v36  ;;  %v1243_v41 = vadd.f32 %v1242_v27, %v1011_v36  ;;  %v1313_v42 = vmul.f32 %v1011_v36, %v1011_v36  ;;  %851 = vmatmul.f32.gmra.mxu2 %v127_v34  ;;  %v596_v43 = vadd.f32 %v595_v38, %v386_v37  ;;  %v144_v27 = vld [vmem:[%s2634_s0 + $0x418] sm:$0xff] }
 0x103   :  { %1060 = vmatmul.f32.gmra.mxu3 %v128_v35 }
 0x104   :  { %v1376_v44 = vadd.f32 %v1375_v30, %v1313_v42  ;;  %433 = vmatmul.f32.gmra.mxu0 %v125_v39  ;;  %642 = vmatmul.f32.gmra.mxu1 %v126_v40  ;;  %v147_v40 = vld [vmem:[%s2634_s0 + $0x430] sm:$0xff] }
 0x105   :  { %v804_v45 = vpop.f32.mrf.mxu2  ;;  %v1013_v46 = vpop.f32.mrf.mxu3 }
 0x106   :  { %v805_v47 = vadd.f32 %v804_v45, %v596_v43  ;;  %v145_v45 = vld [vmem:[%s2634_s0 + $0x420] sm:$0xff] }
 0x108   :  { %v1014_v50 = vadd.f32 %v1013_v46, %v805_v47  ;;  %v146_v46 = vld [vmem:[%s2634_s0 + $0x428] sm:$0xff] }
 0x109   :  { %v389_v51 = vpop.f32.mrf.mxu0  ;;  %v598_v52 = vpop.f32.mrf.mxu1 }
 0x10a   :  { %1181 = vst [vmem:[%s2635_s2 + $0x60] sm:$0xff] %v1014_v50  ;;  %v1244_v55 = vadd.f32 %v1243_v41, %v1014_v50  ;;  %v1314_v56 = vmul.f32 %v1014_v50, %v1014_v50  ;;  %854 = vmatmul.f32.gmra.mxu2 %v131_v48  ;;  %v599_v57 = vadd.f32 %v598_v52, %v389_v51  ;;  %v148_v41 = vld [vmem:[%s2634_s0 + $0x438] sm:$0xff] }
 0x10b   :  { %1063 = vmatmul.f32.gmra.mxu3 %v132_v49 }
 0x10c   :  { %v1377_v58 = vadd.f32 %v1376_v44, %v1314_v56  ;;  %436 = vmatmul.f32.gmra.mxu0 %v129_v53  ;;  %645 = vmatmul.f32.gmra.mxu1 %v130_v54  ;;  %v151_v54 = vld [vmem:[%s2634_s0 + $0x450] sm:$0xff] }
 0x10d   :  { %v807_v59 = vpop.f32.mrf.mxu2  ;;  %v1016_v60 = vpop.f32.mrf.mxu3 }
 0x10e   :  { %v808_v61 = vadd.f32 %v807_v59, %v599_v57  ;;  %v149_v59 = vld [vmem:[%s2634_s0 + $0x440] sm:$0xff] }
 0x110   :  { %v1017_v0 = vadd.f32 %v1016_v60, %v808_v61  ;;  %v150_v60 = vld [vmem:[%s2634_s0 + $0x448] sm:$0xff] }
 0x111   :  { %v392_v1 = vpop.f32.mrf.mxu0  ;;  %v601_v2 = vpop.f32.mrf.mxu1 }
 0x112   :  { %1182 = vst [vmem:[%s2635_s2 + $0x68] sm:$0xff] %v1017_v0  ;;  %v1245_v5 = vadd.f32 %v1244_v55, %v1017_v0  ;;  %v1315_v6 = vmul.f32 %v1017_v0, %v1017_v0  ;;  %857 = vmatmul.f32.gmra.mxu2 %v135_v62  ;;  %v602_v7 = vadd.f32 %v601_v2, %v392_v1  ;;  %v152_v55 = vld [vmem:[%s2634_s0 + $0x458] sm:$0xff] }
 0x113   :  { %1066 = vmatmul.f32.gmra.mxu3 %v136_v63 }
 0x114   :  { %v1378_v8 = vadd.f32 %v1377_v58, %v1315_v6  ;;  %439 = vmatmul.f32.gmra.mxu0 %v133_v3  ;;  %648 = vmatmul.f32.gmra.mxu1 %v134_v4  ;;  %v155_v4 = vld [vmem:[%s2634_s0 + $0x470] sm:$0xff] }
 0x115   :  { %v810_v9 = vpop.f32.mrf.mxu2  ;;  %v1019_v10 = vpop.f32.mrf.mxu3 }
 0x116   :  { %v811_v11 = vadd.f32 %v810_v9, %v602_v7  ;;  %v153_v9 = vld [vmem:[%s2634_s0 + $0x460] sm:$0xff] }
 0x118   :  { %v1020_v14 = vadd.f32 %v1019_v10, %v811_v11  ;;  %v154_v10 = vld [vmem:[%s2634_s0 + $0x468] sm:$0xff] }
 0x119   :  { %v395_v15 = vpop.f32.mrf.mxu0  ;;  %v604_v16 = vpop.f32.mrf.mxu1 }
 0x11a   :  { %1183 = vst [vmem:[%s2635_s2 + $0x70] sm:$0xff] %v1020_v14  ;;  %v1246_v19 = vadd.f32 %v1245_v5, %v1020_v14  ;;  %v1316_v20 = vmul.f32 %v1020_v14, %v1020_v14  ;;  %860 = vmatmul.f32.gmra.mxu2 %v139_v12  ;;  %v605_v21 = vadd.f32 %v604_v16, %v395_v15  ;;  %v156_v5 = vld [vmem:[%s2634_s0 + $0x478] sm:$0xff] }
 0x11b   :  { %1069 = vmatmul.f32.gmra.mxu3 %v140_v13 }
 0x11c   :  { %v1379_v22 = vadd.f32 %v1378_v8, %v1316_v20  ;;  %442 = vmatmul.f32.gmra.mxu0 %v137_v17  ;;  %651 = vmatmul.f32.gmra.mxu1 %v138_v18  ;;  %v159_v18 = vld [vmem:[%s2634_s0 + $0x490] sm:$0xff] }
 0x11d   :  { %v813_v23 = vpop.f32.mrf.mxu2  ;;  %v1022_v24 = vpop.f32.mrf.mxu3 }
 0x11e   :  { %v814_v25 = vadd.f32 %v813_v23, %v605_v21  ;;  %v157_v23 = vld [vmem:[%s2634_s0 + $0x480] sm:$0xff] }
 0x120   :  { %v1023_v28 = vadd.f32 %v1022_v24, %v814_v25  ;;  %v158_v24 = vld [vmem:[%s2634_s0 + $0x488] sm:$0xff] }
 0x121   :  { %v398_v29 = vpop.f32.mrf.mxu0  ;;  %v607_v30 = vpop.f32.mrf.mxu1 }
 0x122   :  { %1184 = vst [vmem:[%s2635_s2 + $0x78] sm:$0xff] %v1023_v28  ;;  %v1247_v33 = vadd.f32 %v1246_v19, %v1023_v28  ;;  %v1317_v34 = vmul.f32 %v1023_v28, %v1023_v28  ;;  %863 = vmatmul.f32.gmra.mxu2 %v143_v26  ;;  %v608_v35 = vadd.f32 %v607_v30, %v398_v29  ;;  %v160_v19 = vld [vmem:[%s2634_s0 + $0x498] sm:$0xff] }
 0x123   :  { %1072 = vmatmul.f32.gmra.mxu3 %v144_v27 }
 0x124   :  { %v1380_v36 = vadd.f32 %v1379_v22, %v1317_v34  ;;  %445 = vmatmul.f32.gmra.mxu0 %v141_v31  ;;  %654 = vmatmul.f32.gmra.mxu1 %v142_v32  ;;  %v163_v32 = vld [vmem:[%s2634_s0 + $0x4b0] sm:$0xff] }
 0x125   :  { %v816_v37 = vpop.f32.mrf.mxu2  ;;  %v1025_v38 = vpop.f32.mrf.mxu3 }
 0x126   :  { %v817_v39 = vadd.f32 %v816_v37, %v608_v35  ;;  %v161_v37 = vld [vmem:[%s2634_s0 + $0x4a0] sm:$0xff] }
 0x128   :  { %v1026_v42 = vadd.f32 %v1025_v38, %v817_v39  ;;  %v162_v38 = vld [vmem:[%s2634_s0 + $0x4a8] sm:$0xff] }
 0x129   :  { %v401_v43 = vpop.f32.mrf.mxu0  ;;  %v610_v44 = vpop.f32.mrf.mxu1 }
 0x12a   :  { %1185 = vst [vmem:[%s2635_s2 + $0x80] sm:$0xff] %v1026_v42  ;;  %v1248_v47 = vadd.f32 %v1247_v33, %v1026_v42  ;;  %v1318_v48 = vmul.f32 %v1026_v42, %v1026_v42  ;;  %866 = vmatmul.f32.gmra.mxu2 %v147_v40  ;;  %v611_v49 = vadd.f32 %v610_v44, %v401_v43  ;;  %v164_v33 = vld [vmem:[%s2634_s0 + $0x4b8] sm:$0xff] }
 0x12b   :  { %1075 = vmatmul.f32.gmra.mxu3 %v148_v41 }
 0x12c   :  { %v1381_v50 = vadd.f32 %v1380_v36, %v1318_v48  ;;  %448 = vmatmul.f32.gmra.mxu0 %v145_v45  ;;  %657 = vmatmul.f32.gmra.mxu1 %v146_v46  ;;  %v167_v46 = vld [vmem:[%s2634_s0 + $0x4d0] sm:$0xff] }
 0x12d   :  { %v819_v51 = vpop.f32.mrf.mxu2  ;;  %v1028_v52 = vpop.f32.mrf.mxu3 }
 0x12e   :  { %v820_v53 = vadd.f32 %v819_v51, %v611_v49  ;;  %v165_v51 = vld [vmem:[%s2634_s0 + $0x4c0] sm:$0xff] }
 0x130   :  { %v1029_v56 = vadd.f32 %v1028_v52, %v820_v53  ;;  %v166_v52 = vld [vmem:[%s2634_s0 + $0x4c8] sm:$0xff] }
 0x131   :  { %v404_v57 = vpop.f32.mrf.mxu0  ;;  %v613_v58 = vpop.f32.mrf.mxu1 }
 0x132   :  { %1186 = vst [vmem:[%s2635_s2 + $0x88] sm:$0xff] %v1029_v56  ;;  %v1249_v61 = vadd.f32 %v1248_v47, %v1029_v56  ;;  %v1319_v62 = vmul.f32 %v1029_v56, %v1029_v56  ;;  %869 = vmatmul.f32.gmra.mxu2 %v151_v54  ;;  %v614_v63 = vadd.f32 %v613_v58, %v404_v57  ;;  %v168_v47 = vld [vmem:[%s2634_s0 + $0x4d8] sm:$0xff] }
 0x133   :  { %1078 = vmatmul.f32.gmra.mxu3 %v152_v55 }
 0x134   :  { %v1382_v0 = vadd.f32 %v1381_v50, %v1319_v62  ;;  %451 = vmatmul.f32.gmra.mxu0 %v149_v59  ;;  %660 = vmatmul.f32.gmra.mxu1 %v150_v60  ;;  %v171_v60 = vld [vmem:[%s2634_s0 + $0x4f0] sm:$0xff] }
 0x135   :  { %v822_v1 = vpop.f32.mrf.mxu2 }
 0x136   :  { %v1031_v2 = vpop.f32.mrf.mxu3  ;;  %v823_v3 = vadd.f32 %v822_v1, %v614_v63  ;;  %v169_v1 = vld [vmem:[%s2634_s0 + $0x4e0] sm:$0xff] }
 0x138   :  { %v1032_v6 = vadd.f32 %v1031_v2, %v823_v3  ;;  %v170_v2 = vld [vmem:[%s2634_s0 + $0x4e8] sm:$0xff] }
 0x139   :  { %v407_v7 = vpop.f32.mrf.mxu0  ;;  %v616_v8 = vpop.f32.mrf.mxu1 }
 0x13a   :  { %1187 = vst [vmem:[%s2635_s2 + $0x90] sm:$0xff] %v1032_v6  ;;  %v1250_v11 = vadd.f32 %v1249_v61, %v1032_v6  ;;  %v1320_v12 = vmul.f32 %v1032_v6, %v1032_v6  ;;  %872 = vmatmul.f32.gmra.mxu2 %v155_v4  ;;  %v617_v13 = vadd.f32 %v616_v8, %v407_v7  ;;  %v172_v61 = vld [vmem:[%s2634_s0 + $0x4f8] sm:$0xff] }
 0x13b   :  { %1081 = vmatmul.f32.gmra.mxu3 %v156_v5 }
 0x13c   :  { %v1383_v14 = vadd.f32 %v1382_v0, %v1320_v12  ;;  %454 = vmatmul.f32.gmra.mxu0 %v153_v9  ;;  %663 = vmatmul.f32.gmra.mxu1 %v154_v10  ;;  %v175_v10 = vld [vmem:[%s2634_s0 + $0x510] sm:$0xff] }
 0x13d   :  { %v825_v15 = vpop.f32.mrf.mxu2 }
 0x13e   :  { %v1034_v16 = vpop.f32.mrf.mxu3  ;;  %v826_v17 = vadd.f32 %v825_v15, %v617_v13  ;;  %v173_v15 = vld [vmem:[%s2634_s0 + $0x500] sm:$0xff] }
 0x140   :  { %v1035_v20 = vadd.f32 %v1034_v16, %v826_v17  ;;  %v174_v16 = vld [vmem:[%s2634_s0 + $0x508] sm:$0xff] }
 0x141   :  { %v410_v21 = vpop.f32.mrf.mxu0  ;;  %v619_v22 = vpop.f32.mrf.mxu1 }
 0x142   :  { %1188 = vst [vmem:[%s2635_s2 + $0x98] sm:$0xff] %v1035_v20  ;;  %v1251_v25 = vadd.f32 %v1250_v11, %v1035_v20  ;;  %v1321_v26 = vmul.f32 %v1035_v20, %v1035_v20  ;;  %875 = vmatmul.f32.gmra.mxu2 %v159_v18  ;;  %v620_v27 = vadd.f32 %v619_v22, %v410_v21  ;;  %v176_v11 = vld [vmem:[%s2634_s0 + $0x518] sm:$0xff] }
 0x143   :  { %1084 = vmatmul.f32.gmra.mxu3 %v160_v19 }
 0x144   :  { %v1384_v28 = vadd.f32 %v1383_v14, %v1321_v26  ;;  %457 = vmatmul.f32.gmra.mxu0 %v157_v23  ;;  %666 = vmatmul.f32.gmra.mxu1 %v158_v24  ;;  %v179_v24 = vld [vmem:[%s2634_s0 + $0x530] sm:$0xff] }
 0x145   :  { %v828_v29 = vpop.f32.mrf.mxu2 }
 0x146   :  { %v1037_v30 = vpop.f32.mrf.mxu3  ;;  %v829_v31 = vadd.f32 %v828_v29, %v620_v27  ;;  %v177_v29 = vld [vmem:[%s2634_s0 + $0x520] sm:$0xff] }
 0x148   :  { %v1038_v34 = vadd.f32 %v1037_v30, %v829_v31  ;;  %v178_v30 = vld [vmem:[%s2634_s0 + $0x528] sm:$0xff] }
 0x149   :  { %v413_v35 = vpop.f32.mrf.mxu0  ;;  %v622_v36 = vpop.f32.mrf.mxu1 }
 0x14a   :  { %1189 = vst [vmem:[%s2635_s2 + $0xa0] sm:$0xff] %v1038_v34  ;;  %v1252_v39 = vadd.f32 %v1251_v25, %v1038_v34  ;;  %v1322_v40 = vmul.f32 %v1038_v34, %v1038_v34  ;;  %878 = vmatmul.f32.gmra.mxu2 %v163_v32  ;;  %v623_v41 = vadd.f32 %v622_v36, %v413_v35  ;;  %v180_v25 = vld [vmem:[%s2634_s0 + $0x538] sm:$0xff] }
 0x14b   :  { %1087 = vmatmul.f32.gmra.mxu3 %v164_v33 }
 0x14c   :  { %v1385_v42 = vadd.f32 %v1384_v28, %v1322_v40  ;;  %460 = vmatmul.f32.gmra.mxu0 %v161_v37  ;;  %669 = vmatmul.f32.gmra.mxu1 %v162_v38  ;;  %v183_v38 = vld [vmem:[%s2634_s0 + $0x550] sm:$0xff] }
 0x14d   :  { %v831_v43 = vpop.f32.mrf.mxu2 }
 0x14e   :  { %v1040_v44 = vpop.f32.mrf.mxu3  ;;  %v832_v45 = vadd.f32 %v831_v43, %v623_v41  ;;  %v181_v43 = vld [vmem:[%s2634_s0 + $0x540] sm:$0xff] }
 0x150   :  { %v1041_v48 = vadd.f32 %v1040_v44, %v832_v45  ;;  %v182_v44 = vld [vmem:[%s2634_s0 + $0x548] sm:$0xff] }
 0x151   :  { %v416_v49 = vpop.f32.mrf.mxu0  ;;  %v625_v50 = vpop.f32.mrf.mxu1 }
 0x152   :  { %1190 = vst [vmem:[%s2635_s2 + $0xa8] sm:$0xff] %v1041_v48  ;;  %v1253_v53 = vadd.f32 %v1252_v39, %v1041_v48  ;;  %v1323_v54 = vmul.f32 %v1041_v48, %v1041_v48  ;;  %881 = vmatmul.f32.gmra.mxu2 %v167_v46  ;;  %v626_v55 = vadd.f32 %v625_v50, %v416_v49  ;;  %v184_v39 = vld [vmem:[%s2634_s0 + $0x558] sm:$0xff] }
 0x153   :  { %1090 = vmatmul.f32.gmra.mxu3 %v168_v47 }
 0x154   :  { %v1386_v56 = vadd.f32 %v1385_v42, %v1323_v54  ;;  %463 = vmatmul.f32.gmra.mxu0 %v165_v51  ;;  %672 = vmatmul.f32.gmra.mxu1 %v166_v52  ;;  %v187_v52 = vld [vmem:[%s2634_s0 + $0x570] sm:$0xff] }
 0x155   :  { %v834_v57 = vpop.f32.mrf.mxu2 }
 0x156   :  { %v1043_v58 = vpop.f32.mrf.mxu3  ;;  %v835_v59 = vadd.f32 %v834_v57, %v626_v55  ;;  %v185_v57 = vld [vmem:[%s2634_s0 + $0x560] sm:$0xff] }
 0x158   :  { %v1044_v62 = vadd.f32 %v1043_v58, %v835_v59  ;;  %v186_v58 = vld [vmem:[%s2634_s0 + $0x568] sm:$0xff] }
 0x159   :  { %v419_v63 = vpop.f32.mrf.mxu0  ;;  %v628_v0 = vpop.f32.mrf.mxu1 }
 0x15a   :  { %1191 = vst [vmem:[%s2635_s2 + $0xb0] sm:$0xff] %v1044_v62  ;;  %v1254_v3 = vadd.f32 %v1253_v53, %v1044_v62  ;;  %v1324_v4 = vmul.f32 %v1044_v62, %v1044_v62  ;;  %884 = vmatmul.f32.gmra.mxu2 %v171_v60  ;;  %v629_v5 = vadd.f32 %v628_v0, %v419_v63  ;;  %v188_v53 = vld [vmem:[%s2634_s0 + $0x578] sm:$0xff] }
 0x15b   :  { %1093 = vmatmul.f32.gmra.mxu3 %v172_v61 }
 0x15c   :  { %v1387_v6 = vadd.f32 %v1386_v56, %v1324_v4  ;;  %466 = vmatmul.f32.gmra.mxu0 %v169_v1  ;;  %675 = vmatmul.f32.gmra.mxu1 %v170_v2  ;;  %v191_v2 = vld [vmem:[%s2634_s0 + $0x590] sm:$0xff] }
 0x15d   :  { %v837_v7 = vpop.f32.mrf.mxu2 }
 0x15e   :  { %v1046_v8 = vpop.f32.mrf.mxu3  ;;  %v838_v9 = vadd.f32 %v837_v7, %v629_v5  ;;  %v189_v7 = vld [vmem:[%s2634_s0 + $0x580] sm:$0xff] }
 0x160   :  { %v1047_v12 = vadd.f32 %v1046_v8, %v838_v9  ;;  %v190_v8 = vld [vmem:[%s2634_s0 + $0x588] sm:$0xff] }
 0x161   :  { %v422_v13 = vpop.f32.mrf.mxu0  ;;  %v631_v14 = vpop.f32.mrf.mxu1 }
 0x162   :  { %1192 = vst [vmem:[%s2635_s2 + $0xb8] sm:$0xff] %v1047_v12  ;;  %v1255_v17 = vadd.f32 %v1254_v3, %v1047_v12  ;;  %v1325_v18 = vmul.f32 %v1047_v12, %v1047_v12  ;;  %887 = vmatmul.f32.gmra.mxu2 %v175_v10  ;;  %v632_v19 = vadd.f32 %v631_v14, %v422_v13  ;;  %v192_v3 = vld [vmem:[%s2634_s0 + $0x598] sm:$0xff] }
 0x163   :  { %1096 = vmatmul.f32.gmra.mxu3 %v176_v11 }
 0x164   :  { %v1388_v20 = vadd.f32 %v1387_v6, %v1325_v18  ;;  %469 = vmatmul.f32.gmra.mxu0 %v173_v15  ;;  %678 = vmatmul.f32.gmra.mxu1 %v174_v16  ;;  %v195_v16 = vld [vmem:[%s2634_s0 + $0x5b0] sm:$0xff] }
 0x165   :  { %v840_v21 = vpop.f32.mrf.mxu2 }
 0x166   :  { %v1049_v22 = vpop.f32.mrf.mxu3  ;;  %v841_v23 = vadd.f32 %v840_v21, %v632_v19  ;;  %v193_v21 = vld [vmem:[%s2634_s0 + $0x5a0] sm:$0xff] }
 0x168   :  { %v1050_v26 = vadd.f32 %v1049_v22, %v841_v23  ;;  %v194_v22 = vld [vmem:[%s2634_s0 + $0x5a8] sm:$0xff] }
 0x169   :  { %v425_v27 = vpop.f32.mrf.mxu0  ;;  %v634_v28 = vpop.f32.mrf.mxu1 }
 0x16a   :  { %1193 = vst [vmem:[%s2635_s2 + $0xc0] sm:$0xff] %v1050_v26  ;;  %v1256_v31 = vadd.f32 %v1255_v17, %v1050_v26  ;;  %v1326_v32 = vmul.f32 %v1050_v26, %v1050_v26  ;;  %890 = vmatmul.f32.gmra.mxu2 %v179_v24  ;;  %v635_v33 = vadd.f32 %v634_v28, %v425_v27  ;;  %v196_v17 = vld [vmem:[%s2634_s0 + $0x5b8] sm:$0xff] }
 0x16b   :  { %1099 = vmatmul.f32.gmra.mxu3 %v180_v25 }
 0x16c   :  { %v1389_v34 = vadd.f32 %v1388_v20, %v1326_v32  ;;  %472 = vmatmul.f32.gmra.mxu0 %v177_v29  ;;  %681 = vmatmul.f32.gmra.mxu1 %v178_v30  ;;  %v199_v30 = vld [vmem:[%s2634_s0 + $0x5d0] sm:$0xff] }
 0x16d   :  { %v843_v35 = vpop.f32.mrf.mxu2 }
 0x16e   :  { %v1052_v36 = vpop.f32.mrf.mxu3  ;;  %v844_v37 = vadd.f32 %v843_v35, %v635_v33  ;;  %v197_v35 = vld [vmem:[%s2634_s0 + $0x5c0] sm:$0xff] }
 0x170   :  { %v1053_v40 = vadd.f32 %v1052_v36, %v844_v37  ;;  %v198_v36 = vld [vmem:[%s2634_s0 + $0x5c8] sm:$0xff] }
 0x171   :  { %v428_v41 = vpop.f32.mrf.mxu0  ;;  %v637_v42 = vpop.f32.mrf.mxu1 }
 0x172   :  { %1194 = vst [vmem:[%s2635_s2 + $0xc8] sm:$0xff] %v1053_v40  ;;  %v1257_v45 = vadd.f32 %v1256_v31, %v1053_v40  ;;  %v1327_v46 = vmul.f32 %v1053_v40, %v1053_v40  ;;  %893 = vmatmul.f32.gmra.mxu2 %v183_v38  ;;  %v638_v47 = vadd.f32 %v637_v42, %v428_v41  ;;  %v200_v31 = vld [vmem:[%s2634_s0 + $0x5d8] sm:$0xff] }
 0x173   :  { %1102 = vmatmul.f32.gmra.mxu3 %v184_v39 }
 0x174   :  { %v1390_v48 = vadd.f32 %v1389_v34, %v1327_v46  ;;  %475 = vmatmul.f32.gmra.mxu0 %v181_v43  ;;  %684 = vmatmul.f32.gmra.mxu1 %v182_v44  ;;  %v203_v44 = vld [vmem:[%s2634_s0 + $0x5f0] sm:$0xff] }
 0x175   :  { %v846_v49 = vpop.f32.mrf.mxu2 }
 0x176   :  { %v1055_v50 = vpop.f32.mrf.mxu3  ;;  %v847_v51 = vadd.f32 %v846_v49, %v638_v47  ;;  %v201_v49 = vld [vmem:[%s2634_s0 + $0x5e0] sm:$0xff] }
 0x178   :  { %v1056_v54 = vadd.f32 %v1055_v50, %v847_v51  ;;  %v202_v50 = vld [vmem:[%s2634_s0 + $0x5e8] sm:$0xff] }
 0x179   :  { %v431_v55 = vpop.f32.mrf.mxu0  ;;  %v640_v56 = vpop.f32.mrf.mxu1 }
 0x17a   :  { %1195 = vst [vmem:[%s2635_s2 + $0xd0] sm:$0xff] %v1056_v54  ;;  %v1258_v59 = vadd.f32 %v1257_v45, %v1056_v54  ;;  %v1328_v60 = vmul.f32 %v1056_v54, %v1056_v54  ;;  %896 = vmatmul.f32.gmra.mxu2 %v187_v52  ;;  %v641_v61 = vadd.f32 %v640_v56, %v431_v55  ;;  %v204_v45 = vld [vmem:[%s2634_s0 + $0x5f8] sm:$0xff] }
 0x17b   :  { %1105 = vmatmul.f32.gmra.mxu3 %v188_v53 }
 0x17c   :  { %v1391_v62 = vadd.f32 %v1390_v48, %v1328_v60  ;;  %478 = vmatmul.f32.gmra.mxu0 %v185_v57  ;;  %687 = vmatmul.f32.gmra.mxu1 %v186_v58  ;;  %v207_v58 = vld [vmem:[%s2634_s0 + $0x610] sm:$0xff] }
 0x17d   :  { %v849_v63 = vpop.f32.mrf.mxu2 }
 0x17e   :  { %v1058_v0 = vpop.f32.mrf.mxu3  ;;  %v850_v1 = vadd.f32 %v849_v63, %v641_v61  ;;  %v205_v63 = vld [vmem:[%s2634_s0 + $0x600] sm:$0xff] }
 0x180   :  { %v1059_v4 = vadd.f32 %v1058_v0, %v850_v1  ;;  %v206_v0 = vld [vmem:[%s2634_s0 + $0x608] sm:$0xff] }
 0x181   :  { %v434_v5 = vpop.f32.mrf.mxu0  ;;  %v643_v6 = vpop.f32.mrf.mxu1 }
 0x182   :  { %1196 = vst [vmem:[%s2635_s2 + $0xd8] sm:$0xff] %v1059_v4  ;;  %v1259_v9 = vadd.f32 %v1258_v59, %v1059_v4  ;;  %v1329_v10 = vmul.f32 %v1059_v4, %v1059_v4  ;;  %899 = vmatmul.f32.gmra.mxu2 %v191_v2  ;;  %v644_v11 = vadd.f32 %v643_v6, %v434_v5  ;;  %v208_v59 = vld [vmem:[%s2634_s0 + $0x618] sm:$0xff] }
 0x183   :  { %1108 = vmatmul.f32.gmra.mxu3 %v192_v3 }
 0x184   :  { %v1392_v12 = vadd.f32 %v1391_v62, %v1329_v10  ;;  %481 = vmatmul.f32.gmra.mxu0 %v189_v7  ;;  %690 = vmatmul.f32.gmra.mxu1 %v190_v8  ;;  %v211_v8 = vld [vmem:[%s2634_s0 + $0x630] sm:$0xff] }
 0x185   :  { %v852_v13 = vpop.f32.mrf.mxu2 }
 0x186   :  { %v1061_v14 = vpop.f32.mrf.mxu3  ;;  %v853_v15 = vadd.f32 %v852_v13, %v644_v11  ;;  %v209_v13 = vld [vmem:[%s2634_s0 + $0x620] sm:$0xff] }
 0x188   :  { %v1062_v18 = vadd.f32 %v1061_v14, %v853_v15  ;;  %v210_v14 = vld [vmem:[%s2634_s0 + $0x628] sm:$0xff] }
 0x189   :  { %v437_v19 = vpop.f32.mrf.mxu0  ;;  %v646_v20 = vpop.f32.mrf.mxu1 }
 0x18a   :  { %1197 = vst [vmem:[%s2635_s2 + $0xe0] sm:$0xff] %v1062_v18  ;;  %v1260_v23 = vadd.f32 %v1259_v9, %v1062_v18  ;;  %v1330_v24 = vmul.f32 %v1062_v18, %v1062_v18  ;;  %902 = vmatmul.f32.gmra.mxu2 %v195_v16  ;;  %v647_v25 = vadd.f32 %v646_v20, %v437_v19  ;;  %v212_v9 = vld [vmem:[%s2634_s0 + $0x638] sm:$0xff] }
 0x18b   :  { %1111 = vmatmul.f32.gmra.mxu3 %v196_v17 }
 0x18c   :  { %v1393_v26 = vadd.f32 %v1392_v12, %v1330_v24  ;;  %484 = vmatmul.f32.gmra.mxu0 %v193_v21  ;;  %693 = vmatmul.f32.gmra.mxu1 %v194_v22  ;;  %v215_v22 = vld [vmem:[%s2634_s0 + $0x650] sm:$0xff] }
 0x18d   :  { %v855_v27 = vpop.f32.mrf.mxu2 }
 0x18e   :  { %v1064_v28 = vpop.f32.mrf.mxu3  ;;  %v856_v29 = vadd.f32 %v855_v27, %v647_v25  ;;  %v213_v27 = vld [vmem:[%s2634_s0 + $0x640] sm:$0xff] }
 0x190   :  { %v1065_v32 = vadd.f32 %v1064_v28, %v856_v29  ;;  %v214_v28 = vld [vmem:[%s2634_s0 + $0x648] sm:$0xff] }
 0x191   :  { %v440_v33 = vpop.f32.mrf.mxu0  ;;  %v649_v34 = vpop.f32.mrf.mxu1 }
 0x192   :  { %1198 = vst [vmem:[%s2635_s2 + $0xe8] sm:$0xff] %v1065_v32  ;;  %v1261_v37 = vadd.f32 %v1260_v23, %v1065_v32  ;;  %v1331_v38 = vmul.f32 %v1065_v32, %v1065_v32  ;;  %905 = vmatmul.f32.gmra.mxu2 %v199_v30  ;;  %v650_v39 = vadd.f32 %v649_v34, %v440_v33  ;;  %v216_v23 = vld [vmem:[%s2634_s0 + $0x658] sm:$0xff] }
 0x193   :  { %1114 = vmatmul.f32.gmra.mxu3 %v200_v31 }
 0x194   :  { %v1394_v40 = vadd.f32 %v1393_v26, %v1331_v38  ;;  %487 = vmatmul.f32.gmra.mxu0 %v197_v35  ;;  %696 = vmatmul.f32.gmra.mxu1 %v198_v36  ;;  %v219_v36 = vld [vmem:[%s2634_s0 + $0x670] sm:$0xff] }
 0x195   :  { %v858_v41 = vpop.f32.mrf.mxu2 }
 0x196   :  { %v1067_v42 = vpop.f32.mrf.mxu3  ;;  %v859_v43 = vadd.f32 %v858_v41, %v650_v39  ;;  %v217_v41 = vld [vmem:[%s2634_s0 + $0x660] sm:$0xff] }
 0x198   :  { %v1068_v46 = vadd.f32 %v1067_v42, %v859_v43  ;;  %v218_v42 = vld [vmem:[%s2634_s0 + $0x668] sm:$0xff] }
 0x199   :  { %v443_v47 = vpop.f32.mrf.mxu0  ;;  %v652_v48 = vpop.f32.mrf.mxu1 }
 0x19a   :  { %1199 = vst [vmem:[%s2635_s2 + $0xf0] sm:$0xff] %v1068_v46  ;;  %v1262_v51 = vadd.f32 %v1261_v37, %v1068_v46  ;;  %v1332_v52 = vmul.f32 %v1068_v46, %v1068_v46  ;;  %908 = vmatmul.f32.gmra.mxu2 %v203_v44  ;;  %v653_v53 = vadd.f32 %v652_v48, %v443_v47  ;;  %v220_v37 = vld [vmem:[%s2634_s0 + $0x678] sm:$0xff] }
 0x19b   :  { %1117 = vmatmul.f32.gmra.mxu3 %v204_v45 }
 0x19c   :  { %v1395_v54 = vadd.f32 %v1394_v40, %v1332_v52  ;;  %490 = vmatmul.f32.gmra.mxu0 %v201_v49  ;;  %699 = vmatmul.f32.gmra.mxu1 %v202_v50  ;;  %v223_v50 = vld [vmem:[%s2634_s0 + $0x690] sm:$0xff] }
 0x19d   :  { %v861_v55 = vpop.f32.mrf.mxu2 }
 0x19e   :  { %v1070_v56 = vpop.f32.mrf.mxu3  ;;  %v862_v57 = vadd.f32 %v861_v55, %v653_v53  ;;  %v221_v55 = vld [vmem:[%s2634_s0 + $0x680] sm:$0xff] }
 0x1a0   :  { %v1071_v60 = vadd.f32 %v1070_v56, %v862_v57  ;;  %v222_v56 = vld [vmem:[%s2634_s0 + $0x688] sm:$0xff] }
 0x1a1   :  { %v446_v61 = vpop.f32.mrf.mxu0  ;;  %v655_v62 = vpop.f32.mrf.mxu1 }
 0x1a2   :  { %1200 = vst [vmem:[%s2635_s2 + $0xf8] sm:$0xff] %v1071_v60  ;;  %v1263_v1 = vadd.f32 %v1262_v51, %v1071_v60  ;;  %v1333_v2 = vmul.f32 %v1071_v60, %v1071_v60  ;;  %911 = vmatmul.f32.gmra.mxu2 %v207_v58  ;;  %v656_v3 = vadd.f32 %v655_v62, %v446_v61  ;;  %v224_v51 = vld [vmem:[%s2634_s0 + $0x698] sm:$0xff] }
 0x1a3   :  { %1120 = vmatmul.f32.gmra.mxu3 %v208_v59 }
 0x1a4   :  { %v1396_v4 = vadd.f32 %v1395_v54, %v1333_v2  ;;  %493 = vmatmul.f32.gmra.mxu0 %v205_v63  ;;  %702 = vmatmul.f32.gmra.mxu1 %v206_v0  ;;  %v227_v0 = vld [vmem:[%s2634_s0 + $0x6b0] sm:$0xff] }
 0x1a5   :  { %v864_v5 = vpop.f32.mrf.mxu2 }
 0x1a6   :  { %v1073_v6 = vpop.f32.mrf.mxu3  ;;  %v865_v7 = vadd.f32 %v864_v5, %v656_v3  ;;  %v225_v5 = vld [vmem:[%s2634_s0 + $0x6a0] sm:$0xff] }
 0x1a8   :  { %v1074_v10 = vadd.f32 %v1073_v6, %v865_v7  ;;  %v226_v6 = vld [vmem:[%s2634_s0 + $0x6a8] sm:$0xff] }
 0x1a9   :  { %v449_v11 = vpop.f32.mrf.mxu0  ;;  %v658_v12 = vpop.f32.mrf.mxu1 }
 0x1aa   :  { %1201 = vst [vmem:[%s2635_s2 + $0x100] sm:$0xff] %v1074_v10  ;;  %v1264_v15 = vadd.f32 %v1263_v1, %v1074_v10  ;;  %v1334_v16 = vmul.f32 %v1074_v10, %v1074_v10  ;;  %914 = vmatmul.f32.gmra.mxu2 %v211_v8  ;;  %v659_v17 = vadd.f32 %v658_v12, %v449_v11  ;;  %v228_v1 = vld [vmem:[%s2634_s0 + $0x6b8] sm:$0xff] }
 0x1ab   :  { %1123 = vmatmul.f32.gmra.mxu3 %v212_v9 }
 0x1ac   :  { %v1397_v18 = vadd.f32 %v1396_v4, %v1334_v16  ;;  %496 = vmatmul.f32.gmra.mxu0 %v209_v13  ;;  %705 = vmatmul.f32.gmra.mxu1 %v210_v14  ;;  %v231_v14 = vld [vmem:[%s2634_s0 + $0x6d0] sm:$0xff] }
 0x1ad   :  { %v867_v19 = vpop.f32.mrf.mxu2 }
 0x1ae   :  { %v1076_v20 = vpop.f32.mrf.mxu3  ;;  %v868_v21 = vadd.f32 %v867_v19, %v659_v17  ;;  %v229_v19 = vld [vmem:[%s2634_s0 + $0x6c0] sm:$0xff] }
 0x1b0   :  { %v1077_v24 = vadd.f32 %v1076_v20, %v868_v21  ;;  %v230_v20 = vld [vmem:[%s2634_s0 + $0x6c8] sm:$0xff] }
 0x1b1   :  { %v452_v25 = vpop.f32.mrf.mxu0  ;;  %v661_v26 = vpop.f32.mrf.mxu1 }
 0x1b2   :  { %1202 = vst [vmem:[%s2635_s2 + $0x108] sm:$0xff] %v1077_v24  ;;  %v1265_v29 = vadd.f32 %v1264_v15, %v1077_v24  ;;  %v1335_v30 = vmul.f32 %v1077_v24, %v1077_v24  ;;  %917 = vmatmul.f32.gmra.mxu2 %v215_v22  ;;  %v662_v31 = vadd.f32 %v661_v26, %v452_v25  ;;  %v232_v15 = vld [vmem:[%s2634_s0 + $0x6d8] sm:$0xff] }
 0x1b3   :  { %1126 = vmatmul.f32.gmra.mxu3 %v216_v23 }
 0x1b4   :  { %v1398_v32 = vadd.f32 %v1397_v18, %v1335_v30  ;;  %499 = vmatmul.f32.gmra.mxu0 %v213_v27  ;;  %708 = vmatmul.f32.gmra.mxu1 %v214_v28  ;;  %v235_v28 = vld [vmem:[%s2634_s0 + $0x6f0] sm:$0xff] }
 0x1b5   :  { %v870_v33 = vpop.f32.mrf.mxu2 }
 0x1b6   :  { %v1079_v34 = vpop.f32.mrf.mxu3  ;;  %v871_v35 = vadd.f32 %v870_v33, %v662_v31  ;;  %v233_v33 = vld [vmem:[%s2634_s0 + $0x6e0] sm:$0xff] }
 0x1b8   :  { %v1080_v38 = vadd.f32 %v1079_v34, %v871_v35  ;;  %v234_v34 = vld [vmem:[%s2634_s0 + $0x6e8] sm:$0xff] }
 0x1b9   :  { %v455_v39 = vpop.f32.mrf.mxu0  ;;  %v664_v40 = vpop.f32.mrf.mxu1 }
 0x1ba   :  { %1203 = vst [vmem:[%s2635_s2 + $0x110] sm:$0xff] %v1080_v38  ;;  %v1266_v43 = vadd.f32 %v1265_v29, %v1080_v38  ;;  %v1336_v44 = vmul.f32 %v1080_v38, %v1080_v38  ;;  %920 = vmatmul.f32.gmra.mxu2 %v219_v36  ;;  %v665_v45 = vadd.f32 %v664_v40, %v455_v39  ;;  %v236_v29 = vld [vmem:[%s2634_s0 + $0x6f8] sm:$0xff] }
 0x1bb   :  { %1129 = vmatmul.f32.gmra.mxu3 %v220_v37 }
 0x1bc   :  { %v1399_v46 = vadd.f32 %v1398_v32, %v1336_v44  ;;  %502 = vmatmul.f32.gmra.mxu0 %v217_v41  ;;  %711 = vmatmul.f32.gmra.mxu1 %v218_v42  ;;  %v239_v42 = vld [vmem:[%s2634_s0 + $0x710] sm:$0xff] }
 0x1bd   :  { %v873_v47 = vpop.f32.mrf.mxu2 }
 0x1be   :  { %v1082_v48 = vpop.f32.mrf.mxu3  ;;  %v874_v49 = vadd.f32 %v873_v47, %v665_v45  ;;  %v237_v47 = vld [vmem:[%s2634_s0 + $0x700] sm:$0xff] }
 0x1c0   :  { %v1083_v52 = vadd.f32 %v1082_v48, %v874_v49  ;;  %v238_v48 = vld [vmem:[%s2634_s0 + $0x708] sm:$0xff] }
 0x1c1   :  { %v458_v53 = vpop.f32.mrf.mxu0  ;;  %v667_v54 = vpop.f32.mrf.mxu1 }
 0x1c2   :  { %1204 = vst [vmem:[%s2635_s2 + $0x118] sm:$0xff] %v1083_v52  ;;  %v1267_v57 = vadd.f32 %v1266_v43, %v1083_v52  ;;  %v1337_v58 = vmul.f32 %v1083_v52, %v1083_v52  ;;  %923 = vmatmul.f32.gmra.mxu2 %v223_v50  ;;  %v668_v59 = vadd.f32 %v667_v54, %v458_v53  ;;  %v240_v43 = vld [vmem:[%s2634_s0 + $0x718] sm:$0xff] }
 0x1c3   :  { %1132 = vmatmul.f32.gmra.mxu3 %v224_v51 }
 0x1c4   :  { %v1400_v60 = vadd.f32 %v1399_v46, %v1337_v58  ;;  %505 = vmatmul.f32.gmra.mxu0 %v221_v55  ;;  %714 = vmatmul.f32.gmra.mxu1 %v222_v56  ;;  %v243_v56 = vld [vmem:[%s2634_s0 + $0x730] sm:$0xff] }
 0x1c5   :  { %v876_v61 = vpop.f32.mrf.mxu2 }
 0x1c6   :  { %v1085_v62 = vpop.f32.mrf.mxu3  ;;  %v877_v63 = vadd.f32 %v876_v61, %v668_v59  ;;  %v241_v61 = vld [vmem:[%s2634_s0 + $0x720] sm:$0xff] }
 0x1c8   :  { %v1086_v2 = vadd.f32 %v1085_v62, %v877_v63  ;;  %v242_v62 = vld [vmem:[%s2634_s0 + $0x728] sm:$0xff] }
 0x1c9   :  { %v461_v3 = vpop.f32.mrf.mxu0  ;;  %v670_v4 = vpop.f32.mrf.mxu1 }
 0x1ca   :  { %1205 = vst [vmem:[%s2635_s2 + $0x120] sm:$0xff] %v1086_v2  ;;  %v1268_v7 = vadd.f32 %v1267_v57, %v1086_v2  ;;  %v1338_v8 = vmul.f32 %v1086_v2, %v1086_v2  ;;  %926 = vmatmul.f32.gmra.mxu2 %v227_v0  ;;  %v671_v9 = vadd.f32 %v670_v4, %v461_v3  ;;  %v244_v57 = vld [vmem:[%s2634_s0 + $0x738] sm:$0xff] }
 0x1cb   :  { %1135 = vmatmul.f32.gmra.mxu3 %v228_v1 }
 0x1cc   :  { %v1401_v10 = vadd.f32 %v1400_v60, %v1338_v8  ;;  %508 = vmatmul.f32.gmra.mxu0 %v225_v5  ;;  %717 = vmatmul.f32.gmra.mxu1 %v226_v6  ;;  %v247_v6 = vld [vmem:[%s2634_s0 + $0x750] sm:$0xff] }
 0x1cd   :  { %v879_v11 = vpop.f32.mrf.mxu2 }
 0x1ce   :  { %v1088_v12 = vpop.f32.mrf.mxu3  ;;  %v880_v13 = vadd.f32 %v879_v11, %v671_v9  ;;  %v245_v11 = vld [vmem:[%s2634_s0 + $0x740] sm:$0xff] }
 0x1d0   :  { %v1089_v16 = vadd.f32 %v1088_v12, %v880_v13  ;;  %v246_v12 = vld [vmem:[%s2634_s0 + $0x748] sm:$0xff] }
 0x1d1   :  { %v464_v17 = vpop.f32.mrf.mxu0  ;;  %v673_v18 = vpop.f32.mrf.mxu1 }
 0x1d2   :  { %1206 = vst [vmem:[%s2635_s2 + $0x128] sm:$0xff] %v1089_v16  ;;  %v1269_v21 = vadd.f32 %v1268_v7, %v1089_v16  ;;  %v1339_v22 = vmul.f32 %v1089_v16, %v1089_v16  ;;  %929 = vmatmul.f32.gmra.mxu2 %v231_v14  ;;  %v674_v23 = vadd.f32 %v673_v18, %v464_v17  ;;  %v248_v7 = vld [vmem:[%s2634_s0 + $0x758] sm:$0xff] }
 0x1d3   :  { %1138 = vmatmul.f32.gmra.mxu3 %v232_v15 }
 0x1d4   :  { %v1402_v24 = vadd.f32 %v1401_v10, %v1339_v22  ;;  %511 = vmatmul.f32.gmra.mxu0 %v229_v19  ;;  %720 = vmatmul.f32.gmra.mxu1 %v230_v20  ;;  %v251_v20 = vld [vmem:[%s2634_s0 + $0x770] sm:$0xff] }
 0x1d5   :  { %v882_v25 = vpop.f32.mrf.mxu2 }
 0x1d6   :  { %v1091_v26 = vpop.f32.mrf.mxu3  ;;  %v883_v27 = vadd.f32 %v882_v25, %v674_v23  ;;  %v249_v25 = vld [vmem:[%s2634_s0 + $0x760] sm:$0xff] }
 0x1d8   :  { %v1092_v30 = vadd.f32 %v1091_v26, %v883_v27  ;;  %v250_v26 = vld [vmem:[%s2634_s0 + $0x768] sm:$0xff] }
 0x1d9   :  { %v467_v31 = vpop.f32.mrf.mxu0  ;;  %v676_v32 = vpop.f32.mrf.mxu1 }
 0x1da   :  { %1207 = vst [vmem:[%s2635_s2 + $0x130] sm:$0xff] %v1092_v30  ;;  %v1270_v35 = vadd.f32 %v1269_v21, %v1092_v30  ;;  %v1340_v36 = vmul.f32 %v1092_v30, %v1092_v30  ;;  %932 = vmatmul.f32.gmra.mxu2 %v235_v28  ;;  %v677_v37 = vadd.f32 %v676_v32, %v467_v31  ;;  %v252_v21 = vld [vmem:[%s2634_s0 + $0x778] sm:$0xff] }
 0x1db   :  { %1141 = vmatmul.f32.gmra.mxu3 %v236_v29 }
 0x1dc   :  { %v1403_v38 = vadd.f32 %v1402_v24, %v1340_v36  ;;  %514 = vmatmul.f32.gmra.mxu0 %v233_v33  ;;  %723 = vmatmul.f32.gmra.mxu1 %v234_v34  ;;  %v255_v34 = vld [vmem:[%s2634_s0 + $0x790] sm:$0xff] }
 0x1dd   :  { %v885_v39 = vpop.f32.mrf.mxu2 }
 0x1de   :  { %v1094_v40 = vpop.f32.mrf.mxu3  ;;  %v886_v41 = vadd.f32 %v885_v39, %v677_v37  ;;  %v253_v39 = vld [vmem:[%s2634_s0 + $0x780] sm:$0xff] }
 0x1e0   :  { %v1095_v44 = vadd.f32 %v1094_v40, %v886_v41  ;;  %v254_v40 = vld [vmem:[%s2634_s0 + $0x788] sm:$0xff] }
 0x1e1   :  { %v470_v45 = vpop.f32.mrf.mxu0  ;;  %v679_v46 = vpop.f32.mrf.mxu1 }
 0x1e2   :  { %1208 = vst [vmem:[%s2635_s2 + $0x138] sm:$0xff] %v1095_v44  ;;  %v1271_v49 = vadd.f32 %v1270_v35, %v1095_v44  ;;  %v1341_v50 = vmul.f32 %v1095_v44, %v1095_v44  ;;  %935 = vmatmul.f32.gmra.mxu2 %v239_v42  ;;  %v680_v51 = vadd.f32 %v679_v46, %v470_v45  ;;  %v256_v35 = vld [vmem:[%s2634_s0 + $0x798] sm:$0xff] }
 0x1e3   :  { %1144 = vmatmul.f32.gmra.mxu3 %v240_v43 }
 0x1e4   :  { %v1404_v52 = vadd.f32 %v1403_v38, %v1341_v50  ;;  %517 = vmatmul.f32.gmra.mxu0 %v237_v47  ;;  %726 = vmatmul.f32.gmra.mxu1 %v238_v48  ;;  %v259_v48 = vld [vmem:[%s2634_s0 + $0x7b0] sm:$0xff] }
 0x1e5   :  { %v888_v53 = vpop.f32.mrf.mxu2 }
 0x1e6   :  { %v1097_v54 = vpop.f32.mrf.mxu3  ;;  %v889_v55 = vadd.f32 %v888_v53, %v680_v51  ;;  %v257_v53 = vld [vmem:[%s2634_s0 + $0x7a0] sm:$0xff] }
 0x1e8   :  { %v1098_v58 = vadd.f32 %v1097_v54, %v889_v55  ;;  %v258_v54 = vld [vmem:[%s2634_s0 + $0x7a8] sm:$0xff] }
 0x1e9   :  { %v473_v59 = vpop.f32.mrf.mxu0  ;;  %v682_v60 = vpop.f32.mrf.mxu1 }
 0x1ea   :  { %1209 = vst [vmem:[%s2635_s2 + $0x140] sm:$0xff] %v1098_v58  ;;  %v1272_v63 = vadd.f32 %v1271_v49, %v1098_v58  ;;  %v1342_v0 = vmul.f32 %v1098_v58, %v1098_v58  ;;  %938 = vmatmul.f32.gmra.mxu2 %v243_v56  ;;  %v683_v1 = vadd.f32 %v682_v60, %v473_v59  ;;  %v260_v49 = vld [vmem:[%s2634_s0 + $0x7b8] sm:$0xff] }
 0x1eb   :  { %1147 = vmatmul.f32.gmra.mxu3 %v244_v57 }
 0x1ec   :  { %v1405_v2 = vadd.f32 %v1404_v52, %v1342_v0  ;;  %520 = vmatmul.f32.gmra.mxu0 %v241_v61  ;;  %729 = vmatmul.f32.gmra.mxu1 %v242_v62  ;;  %v263_v62 = vld [vmem:[%s2634_s0 + $0x7d0] sm:$0xff] }
 0x1ed   :  { %v891_v3 = vpop.f32.mrf.mxu2 }
 0x1ee   :  { %v1100_v4 = vpop.f32.mrf.mxu3  ;;  %v892_v5 = vadd.f32 %v891_v3, %v683_v1  ;;  %v261_v3 = vld [vmem:[%s2634_s0 + $0x7c0] sm:$0xff] }
 0x1f0   :  { %v1101_v8 = vadd.f32 %v1100_v4, %v892_v5  ;;  %v262_v4 = vld [vmem:[%s2634_s0 + $0x7c8] sm:$0xff] }
 0x1f1   :  { %v476_v9 = vpop.f32.mrf.mxu0  ;;  %v685_v10 = vpop.f32.mrf.mxu1 }
 0x1f2   :  { %1210 = vst [vmem:[%s2635_s2 + $0x148] sm:$0xff] %v1101_v8  ;;  %v1273_v13 = vadd.f32 %v1272_v63, %v1101_v8  ;;  %v1343_v14 = vmul.f32 %v1101_v8, %v1101_v8  ;;  %941 = vmatmul.f32.gmra.mxu2 %v247_v6  ;;  %v686_v15 = vadd.f32 %v685_v10, %v476_v9  ;;  %v264_v63 = vld [vmem:[%s2634_s0 + $0x7d8] sm:$0xff] }
 0x1f3   :  { %1150 = vmatmul.f32.gmra.mxu3 %v248_v7 }
 0x1f4   :  { %v1406_v16 = vadd.f32 %v1405_v2, %v1343_v14  ;;  %523 = vmatmul.f32.gmra.mxu0 %v245_v11  ;;  %732 = vmatmul.f32.gmra.mxu1 %v246_v12  ;;  %v267_v12 = vld [vmem:[%s2634_s0 + $0x7f0] sm:$0xff] }
 0x1f5   :  { %v894_v17 = vpop.f32.mrf.mxu2 }
 0x1f6   :  { %v1103_v18 = vpop.f32.mrf.mxu3  ;;  %v895_v19 = vadd.f32 %v894_v17, %v686_v15  ;;  %v265_v17 = vld [vmem:[%s2634_s0 + $0x7e0] sm:$0xff] }
 0x1f8   :  { %v1104_v22 = vadd.f32 %v1103_v18, %v895_v19  ;;  %v266_v18 = vld [vmem:[%s2634_s0 + $0x7e8] sm:$0xff] }
 0x1f9   :  { %v479_v23 = vpop.f32.mrf.mxu0  ;;  %v688_v24 = vpop.f32.mrf.mxu1 }
 0x1fa   :  { %1211 = vst [vmem:[%s2635_s2 + $0x150] sm:$0xff] %v1104_v22  ;;  %v1274_v27 = vadd.f32 %v1273_v13, %v1104_v22  ;;  %v1344_v28 = vmul.f32 %v1104_v22, %v1104_v22  ;;  %944 = vmatmul.f32.gmra.mxu2 %v251_v20  ;;  %v689_v29 = vadd.f32 %v688_v24, %v479_v23  ;;  %v268_v13 = vld [vmem:[%s2634_s0 + $0x7f8] sm:$0xff] }
 0x1fb   :  { %1153 = vmatmul.f32.gmra.mxu3 %v252_v21 }
 0x1fc   :  { %v1407_v30 = vadd.f32 %v1406_v16, %v1344_v28  ;;  %526 = vmatmul.f32.gmra.mxu0 %v249_v25  ;;  %735 = vmatmul.f32.gmra.mxu1 %v250_v26 }
 0x1fd   :  { %v897_v31 = vpop.f32.mrf.mxu2 }
 0x1fe   :  { %v1106_v32 = vpop.f32.mrf.mxu3  ;;  %v898_v33 = vadd.f32 %v897_v31, %v689_v29 }
 0x200   :  { %v1107_v36 = vadd.f32 %v1106_v32, %v898_v33 }
 0x201   :  { %v482_v37 = vpop.f32.mrf.mxu0  ;;  %v691_v38 = vpop.f32.mrf.mxu1 }
 0x202   :  { %1212 = vst [vmem:[%s2635_s2 + $0x158] sm:$0xff] %v1107_v36  ;;  %v1275_v41 = vadd.f32 %v1274_v27, %v1107_v36  ;;  %v1345_v42 = vmul.f32 %v1107_v36, %v1107_v36  ;;  %947 = vmatmul.f32.gmra.mxu2 %v255_v34  ;;  %v692_v43 = vadd.f32 %v691_v38, %v482_v37 }
 0x203   :  { %1156 = vmatmul.f32.gmra.mxu3 %v256_v35 }
 0x204   :  { %v1408_v44 = vadd.f32 %v1407_v30, %v1345_v42  ;;  %529 = vmatmul.f32.gmra.mxu0 %v253_v39  ;;  %738 = vmatmul.f32.gmra.mxu1 %v254_v40 }
 0x205   :  { %v900_v45 = vpop.f32.mrf.mxu2 }
 0x206   :  { %v1109_v46 = vpop.f32.mrf.mxu3  ;;  %v901_v47 = vadd.f32 %v900_v45, %v692_v43 }
 0x208   :  { %v1110_v50 = vadd.f32 %v1109_v46, %v901_v47 }
 0x209   :  { %v485_v51 = vpop.f32.mrf.mxu0  ;;  %v694_v52 = vpop.f32.mrf.mxu1 }
 0x20a   :  { %1213 = vst [vmem:[%s2635_s2 + $0x160] sm:$0xff] %v1110_v50  ;;  %v1276_v55 = vadd.f32 %v1275_v41, %v1110_v50  ;;  %v1346_v56 = vmul.f32 %v1110_v50, %v1110_v50  ;;  %950 = vmatmul.f32.gmra.mxu2 %v259_v48  ;;  %v695_v57 = vadd.f32 %v694_v52, %v485_v51 }
 0x20b   :  { %1159 = vmatmul.f32.gmra.mxu3 %v260_v49 }
 0x20c   :  { %v1409_v58 = vadd.f32 %v1408_v44, %v1346_v56  ;;  %532 = vmatmul.f32.gmra.mxu0 %v257_v53  ;;  %741 = vmatmul.f32.gmra.mxu1 %v258_v54 }
 0x20d   :  { %v903_v59 = vpop.f32.mrf.mxu2 }
 0x20e   :  { %v1112_v60 = vpop.f32.mrf.mxu3  ;;  %v904_v61 = vadd.f32 %v903_v59, %v695_v57 }
 0x210   :  { %v1113_v0 = vadd.f32 %v1112_v60, %v904_v61 }
 0x211   :  { %v488_v1 = vpop.f32.mrf.mxu0  ;;  %v697_v2 = vpop.f32.mrf.mxu1 }
 0x212   :  { %1214 = vst [vmem:[%s2635_s2 + $0x168] sm:$0xff] %v1113_v0  ;;  %v1277_v5 = vadd.f32 %v1276_v55, %v1113_v0  ;;  %v1347_v6 = vmul.f32 %v1113_v0, %v1113_v0  ;;  %953 = vmatmul.f32.gmra.mxu2 %v263_v62  ;;  %v698_v7 = vadd.f32 %v697_v2, %v488_v1 }
 0x213   :  { %1162 = vmatmul.f32.gmra.mxu3 %v264_v63 }
 0x214   :  { %v1410_v8 = vadd.f32 %v1409_v58, %v1347_v6  ;;  %535 = vmatmul.f32.gmra.mxu0 %v261_v3  ;;  %744 = vmatmul.f32.gmra.mxu1 %v262_v4 }
 0x215   :  { %v906_v9 = vpop.f32.mrf.mxu2 }
 0x216   :  { %v1115_v10 = vpop.f32.mrf.mxu3  ;;  %v907_v11 = vadd.f32 %v906_v9, %v698_v7 }
 0x218   :  { %v1116_v14 = vadd.f32 %v1115_v10, %v907_v11 }
 0x219   :  { %v491_v15 = vpop.f32.mrf.mxu0  ;;  %v700_v16 = vpop.f32.mrf.mxu1 }
 0x21a   :  { %1215 = vst [vmem:[%s2635_s2 + $0x170] sm:$0xff] %v1116_v14  ;;  %v1278_v19 = vadd.f32 %v1277_v5, %v1116_v14  ;;  %v1348_v20 = vmul.f32 %v1116_v14, %v1116_v14  ;;  %956 = vmatmul.f32.gmra.mxu2 %v267_v12  ;;  %v701_v21 = vadd.f32 %v700_v16, %v491_v15 }
 0x21b   :  { %1165 = vmatmul.f32.gmra.mxu3 %v268_v13 }
 0x21c   :  { %v1411_v22 = vadd.f32 %v1410_v8, %v1348_v20  ;;  %538 = vmatmul.f32.gmra.mxu0 %v265_v17  ;;  %747 = vmatmul.f32.gmra.mxu1 %v266_v18 }
 0x21d   :  { %v909_v23 = vpop.f32.mrf.mxu2 }
 0x21e   :  { %v1118_v24 = vpop.f32.mrf.mxu3  ;;  %v910_v25 = vadd.f32 %v909_v23, %v701_v21 }
 0x220   :  { %v1119_v26 = vadd.f32 %v1118_v24, %v910_v25 }
 0x221   :  { %v494_v27 = vpop.f32.mrf.mxu0  ;;  %v703_v28 = vpop.f32.mrf.mxu1 }
 0x222   :  { %1216 = vst [vmem:[%s2635_s2 + $0x178] sm:$0xff] %v1119_v26  ;;  %v1279_v29 = vadd.f32 %v1278_v19, %v1119_v26  ;;  %v1349_v30 = vmul.f32 %v1119_v26, %v1119_v26  ;;  %v704_v31 = vadd.f32 %v703_v28, %v494_v27 }
 0x224   :  { %v1412_v32 = vadd.f32 %v1411_v22, %v1349_v30 }
 0x225   :  { %v912_v33 = vpop.f32.mrf.mxu2 }
 0x226   :  { %v1121_v34 = vpop.f32.mrf.mxu3  ;;  %v913_v35 = vadd.f32 %v912_v33, %v704_v31 }
 0x228   :  { %v1122_v36 = vadd.f32 %v1121_v34, %v913_v35 }
 0x229   :  { %v497_v37 = vpop.f32.mrf.mxu0  ;;  %v706_v38 = vpop.f32.mrf.mxu1 }
 0x22a   :  { %1217 = vst [vmem:[%s2635_s2 + $0x180] sm:$0xff] %v1122_v36  ;;  %v1280_v39 = vadd.f32 %v1279_v29, %v1122_v36  ;;  %v1350_v40 = vmul.f32 %v1122_v36, %v1122_v36  ;;  %v707_v41 = vadd.f32 %v706_v38, %v497_v37 }
 0x22c   :  { %v1413_v42 = vadd.f32 %v1412_v32, %v1350_v40 }
 0x22d   :  { %v915_v43 = vpop.f32.mrf.mxu2 }
 0x22e   :  { %v1124_v44 = vpop.f32.mrf.mxu3  ;;  %v916_v45 = vadd.f32 %v915_v43, %v707_v41 }
 0x230   :  { %v1125_v46 = vadd.f32 %v1124_v44, %v916_v45 }
 0x231   :  { %v500_v47 = vpop.f32.mrf.mxu0  ;;  %v709_v48 = vpop.f32.mrf.mxu1 }
 0x232   :  { %1218 = vst [vmem:[%s2635_s2 + $0x188] sm:$0xff] %v1125_v46  ;;  %v1281_v49 = vadd.f32 %v1280_v39, %v1125_v46  ;;  %v1351_v50 = vmul.f32 %v1125_v46, %v1125_v46  ;;  %v710_v51 = vadd.f32 %v709_v48, %v500_v47 }
 0x234   :  { %v1414_v52 = vadd.f32 %v1413_v42, %v1351_v50 }
 0x235   :  { %v918_v53 = vpop.f32.mrf.mxu2 }
 0x236   :  { %v1127_v54 = vpop.f32.mrf.mxu3  ;;  %v919_v55 = vadd.f32 %v918_v53, %v710_v51 }
 0x238   :  { %v1128_v56 = vadd.f32 %v1127_v54, %v919_v55 }
 0x239   :  { %v503_v57 = vpop.f32.mrf.mxu0  ;;  %v712_v58 = vpop.f32.mrf.mxu1 }
 0x23a   :  { %1219 = vst [vmem:[%s2635_s2 + $0x190] sm:$0xff] %v1128_v56  ;;  %v1282_v59 = vadd.f32 %v1281_v49, %v1128_v56  ;;  %v1352_v60 = vmul.f32 %v1128_v56, %v1128_v56  ;;  %v713_v61 = vadd.f32 %v712_v58, %v503_v57 }
 0x23c   :  { %v1415_v62 = vadd.f32 %v1414_v52, %v1352_v60 }
 0x23d   :  { %v921_v63 = vpop.f32.mrf.mxu2 }
 0x23e   :  { %v1130_v0 = vpop.f32.mrf.mxu3  ;;  %v922_v1 = vadd.f32 %v921_v63, %v713_v61 }
 0x240   :  { %v1131_v2 = vadd.f32 %v1130_v0, %v922_v1 }
 0x241   :  { %v506_v3 = vpop.f32.mrf.mxu0  ;;  %v715_v4 = vpop.f32.mrf.mxu1 }
 0x242   :  { %1220 = vst [vmem:[%s2635_s2 + $0x198] sm:$0xff] %v1131_v2  ;;  %v1283_v5 = vadd.f32 %v1282_v59, %v1131_v2  ;;  %v1353_v6 = vmul.f32 %v1131_v2, %v1131_v2  ;;  %v716_v7 = vadd.f32 %v715_v4, %v506_v3 }
 0x244   :  { %v1416_v8 = vadd.f32 %v1415_v62, %v1353_v6 }
 0x245   :  { %v924_v9 = vpop.f32.mrf.mxu2 }
 0x246   :  { %v1133_v10 = vpop.f32.mrf.mxu3  ;;  %v925_v11 = vadd.f32 %v924_v9, %v716_v7 }
 0x248   :  { %v1134_v12 = vadd.f32 %v1133_v10, %v925_v11 }
 0x249   :  { %v509_v13 = vpop.f32.mrf.mxu0  ;;  %v718_v14 = vpop.f32.mrf.mxu1 }
 0x24a   :  { %1221 = vst [vmem:[%s2635_s2 + $0x1a0] sm:$0xff] %v1134_v12  ;;  %v2585_v15 = vadd.f32 %v1283_v5, %v1134_v12  ;;  %v1354_v16 = vmul.f32 %v1134_v12, %v1134_v12  ;;  %v719_v17 = vadd.f32 %v718_v14, %v509_v13 }
 0x24c   :  { %v2587_v18 = vadd.f32 %v1416_v8, %v1354_v16 }
 0x24d   :  { %v927_v19 = vpop.f32.mrf.mxu2 }
 0x24e   :  { %v1136_v20 = vpop.f32.mrf.mxu3  ;;  %v928_v21 = vadd.f32 %v927_v19, %v719_v17 }
 0x250   :  { %v2589_v22 = vadd.f32 %v1136_v20, %v928_v21 }
 0x251   :  { %v512_v23 = vpop.f32.mrf.mxu0  ;;  %v721_v24 = vpop.f32.mrf.mxu1 }
 0x252   :  { %1222 = vst [vmem:[%s2635_s2 + $0x1a8] sm:$0xff] %v2589_v22  ;;  %v722_v25 = vadd.f32 %v721_v24, %v512_v23  ;;  %v1355_v11 = vmul.f32 %v2589_v22, %v2589_v22  ;;  %v1285_v14 = vadd.f32 %v2585_v15, %v2589_v22 }
 0x254   :  { %v1418_v19 = vadd.f32 %v2587_v18, %v1355_v11 }
 0x255   :  { %v930_v26 = vpop.f32.mrf.mxu2 }
 0x256   :  { %v1139_v27 = vpop.f32.mrf.mxu3  ;;  %v931_v28 = vadd.f32 %v930_v26, %v722_v25 }
 0x258   :  { %v1140_v29 = vadd.f32 %v1139_v27, %v931_v28 }
 0x259   :  { %v515_v30 = vpop.f32.mrf.mxu0  ;;  %v724_v31 = vpop.f32.mrf.mxu1 }
 0x25a   :  { %1223 = vst [vmem:[%s2635_s2 + $0x1b0] sm:$0xff] %v1140_v29  ;;  %v725_v32 = vadd.f32 %v724_v31, %v515_v30  ;;  %v1356_v16 = vmul.f32 %v1140_v29, %v1140_v29  ;;  %v1286_v20 = vadd.f32 %v1285_v14, %v1140_v29 }
 0x25c   :  { %v1419_v26 = vadd.f32 %v1418_v19, %v1356_v16 }
 0x25d   :  { %v933_v33 = vpop.f32.mrf.mxu2 }
 0x25e   :  { %v1142_v34 = vpop.f32.mrf.mxu3  ;;  %v934_v35 = vadd.f32 %v933_v33, %v725_v32 }
 0x260   :  { %v1143_v36 = vadd.f32 %v1142_v34, %v934_v35 }
 0x261   :  { %v518_v37 = vpop.f32.mrf.mxu0  ;;  %v727_v38 = vpop.f32.mrf.mxu1 }
 0x262   :  { %1224 = vst [vmem:[%s2635_s2 + $0x1b8] sm:$0xff] %v1143_v36  ;;  %v728_v39 = vadd.f32 %v727_v38, %v518_v37  ;;  %v1357_v21 = vmul.f32 %v1143_v36, %v1143_v36  ;;  %v1287_v27 = vadd.f32 %v1286_v20, %v1143_v36 }
 0x264   :  { %v1420_v31 = vadd.f32 %v1419_v26, %v1357_v21 }
 0x265   :  { %v936_v40 = vpop.f32.mrf.mxu2 }
 0x266   :  { %v1145_v41 = vpop.f32.mrf.mxu3  ;;  %v937_v42 = vadd.f32 %v936_v40, %v728_v39 }
 0x268   :  { %v1146_v43 = vadd.f32 %v1145_v41, %v937_v42 }
 0x269   :  { %v521_v44 = vpop.f32.mrf.mxu0  ;;  %v730_v45 = vpop.f32.mrf.mxu1 }
 0x26a   :  { %1225 = vst [vmem:[%s2635_s2 + $0x1c0] sm:$0xff] %v1146_v43  ;;  %v731_v46 = vadd.f32 %v730_v45, %v521_v44  ;;  %v1358_v28 = vmul.f32 %v1146_v43, %v1146_v43  ;;  %v1288_v32 = vadd.f32 %v1287_v27, %v1146_v43 }
 0x26c   :  { %v1421_v34 = vadd.f32 %v1420_v31, %v1358_v28 }
 0x26d   :  { %v939_v47 = vpop.f32.mrf.mxu2 }
 0x26e   :  { %v1148_v48 = vpop.f32.mrf.mxu3  ;;  %v940_v49 = vadd.f32 %v939_v47, %v731_v46 }
 0x270   :  { %v1149_v50 = vadd.f32 %v1148_v48, %v940_v49 }
 0x271   :  { %v524_v51 = vpop.f32.mrf.mxu0  ;;  %v733_v52 = vpop.f32.mrf.mxu1 }
 0x272   :  { %1226 = vst [vmem:[%s2635_s2 + $0x1c8] sm:$0xff] %v1149_v50  ;;  %v734_v53 = vadd.f32 %v733_v52, %v524_v51  ;;  %v1359_v15 = vmul.f32 %v1149_v50, %v1149_v50  ;;  %v1289_v18 = vadd.f32 %v1288_v32, %v1149_v50 }
 0x274   :  { %v1422_v37 = vadd.f32 %v1421_v34, %v1359_v15 }
 0x275   :  { %v942_v54 = vpop.f32.mrf.mxu2 }
 0x276   :  { %v1151_v55 = vpop.f32.mrf.mxu3  ;;  %v943_v56 = vadd.f32 %v942_v54, %v734_v53 }
 0x278   :  { %v1152_v57 = vadd.f32 %v1151_v55, %v943_v56 }
 0x279   :  { %v527_v58 = vpop.f32.mrf.mxu0  ;;  %v736_v59 = vpop.f32.mrf.mxu1 }
 0x27a   :  { %1227 = vst [vmem:[%s2635_s2 + $0x1d0] sm:$0xff] %v1152_v57  ;;  %v737_v60 = vadd.f32 %v736_v59, %v527_v58  ;;  %v1360_v29 = vmul.f32 %v1152_v57, %v1152_v57  ;;  %v1290_v38 = vadd.f32 %v1289_v18, %v1152_v57 }
 0x27c   :  { %v1423_v42 = vadd.f32 %v1422_v37, %v1360_v29 }
 0x27d   :  { %v945_v61 = vpop.f32.mrf.mxu2 }
 0x27e   :  { %v1154_v62 = vpop.f32.mrf.mxu3  ;;  %v946_v63 = vadd.f32 %v945_v61, %v737_v60 }
 0x280   :  { %v1155_v0 = vadd.f32 %v1154_v62, %v946_v63 }
 0x281   :  { %v530_v1 = vpop.f32.mrf.mxu0  ;;  %v739_v2 = vpop.f32.mrf.mxu1 }
 0x282   :  { %1228 = vst [vmem:[%s2635_s2 + $0x1d8] sm:$0xff] %v1155_v0  ;;  %v740_v3 = vadd.f32 %v739_v2, %v530_v1  ;;  %v1361_v39 = vmul.f32 %v1155_v0, %v1155_v0  ;;  %v1291_v44 = vadd.f32 %v1290_v38, %v1155_v0 }
 0x284   :  { %v1424_v46 = vadd.f32 %v1423_v42, %v1361_v39 }
 0x285   :  { %v948_v4 = vpop.f32.mrf.mxu2 }
 0x286   :  { %v1157_v5 = vpop.f32.mrf.mxu3  ;;  %v949_v6 = vadd.f32 %v948_v4, %v740_v3 }
 0x288   :  { %v1158_v7 = vadd.f32 %v1157_v5, %v949_v6 }
 0x289   :  { %v533_v8 = vpop.f32.mrf.mxu0  ;;  %v742_v9 = vpop.f32.mrf.mxu1 }
 0x28a   :  { %1229 = vst [vmem:[%s2635_s2 + $0x1e0] sm:$0xff] %v1158_v7  ;;  %v743_v10 = vadd.f32 %v742_v9, %v533_v8  ;;  %v1362_v45 = vmul.f32 %v1158_v7, %v1158_v7  ;;  %v1292_v47 = vadd.f32 %v1291_v44, %v1158_v7 }
 0x28c   :  { %v1425_v51 = vadd.f32 %v1424_v46, %v1362_v45 }
 0x28d   :  { %v951_v12 = vpop.f32.mrf.mxu2 }
 0x28e   :  { %v1160_v13 = vpop.f32.mrf.mxu3  ;;  %v952_v17 = vadd.f32 %v951_v12, %v743_v10 }
 0x290   :  { %v1161_v23 = vadd.f32 %v1160_v13, %v952_v17 }
 0x291   :  { %v536_v24 = vpop.f32.mrf.mxu0  ;;  %v745_v25 = vpop.f32.mrf.mxu1 }
 0x292   :  { %1230 = vst [vmem:[%s2635_s2 + $0x1e8] sm:$0xff] %v1161_v23  ;;  %v746_v30 = vadd.f32 %v745_v25, %v536_v24  ;;  %v1363_v48 = vmul.f32 %v1161_v23, %v1161_v23  ;;  %v1293_v52 = vadd.f32 %v1292_v47, %v1161_v23 }
 0x294   :  { %v1426_v55 = vadd.f32 %v1425_v51, %v1363_v48 }
 0x295   :  { %v954_v22 = vpop.f32.mrf.mxu2 }
 0x296   :  { %v1163_v33 = vpop.f32.mrf.mxu3  ;;  %v955_v35 = vadd.f32 %v954_v22, %v746_v30 }
 0x298   :  { %v1164_v40 = vadd.f32 %v1163_v33, %v955_v35 }
 0x299   :  { %v539_v36 = vpop.f32.mrf.mxu0  ;;  %v748_v41 = vpop.f32.mrf.mxu1 }
 0x29a   :  { %1231 = vst [vmem:[%s2635_s2 + $0x1f0] sm:$0xff] %v1164_v40  ;;  %v749_v43 = vadd.f32 %v748_v41, %v539_v36  ;;  %v1364_v53 = vmul.f32 %v1164_v40, %v1164_v40  ;;  %v1294_v56 = vadd.f32 %v1293_v52, %v1164_v40 }
 0x29c   :  { %v1427_v58 = vadd.f32 %v1426_v55, %v1364_v53 }
 0x29d   :  { %v957_v49 = vpop.f32.mrf.mxu2 }
 0x29e   :  { %v1166_v50 = vpop.f32.mrf.mxu3  ;;  %v958_v54 = vadd.f32 %v957_v49, %v749_v43 }
 0x2a0   :  { %v1167_v57 = vadd.f32 %v1166_v50, %v958_v54 }
 0x2a2   :  { %1232 = vst [vmem:[%s2635_s2 + $0x1f8] sm:$0xff] %v1167_v57  ;;  %v1295_v59 = vadd.f32 %v1294_v56, %v1167_v57  ;;  %v1365_v60 = vmul.f32 %v1167_v57, %v1167_v57 }
 0x2a4   :  { %v1296_v61 = vrot.slane %v1295_v59, 4  ;;  %v1428_v62 = vadd.f32 %v1427_v58, %v1365_v60 }
 0x2a6   :  { %v1297_v63 = vadd.f32 %v1296_v61, %v1295_v59  ;;  %v1429_v0 = vrot.slane %v1428_v62, 4 }
 0x2a8   :  { %v1298_v1 = vrot.slane %v1297_v63, 2  ;;  %v1430_v2 = vadd.f32 %v1429_v0, %v1428_v62 }
 0x2aa   :  { %v1299_v3 = vadd.f32 %v1298_v1, %v1297_v63  ;;  %v1431_v4 = vrot.slane %v1430_v2, 2 }
 0x2ac   :  { %v1300_v5 = vrot.slane %v1299_v3, 1  ;;  %v1432_v6 = vadd.f32 %v1431_v4, %v1430_v2 }
 0x2ae   :  { %v1433_v7 = vrot.slane %v1432_v6, 1  ;;  %v1301_v8 = vadd.f32 %v1300_v5, %v1299_v3 }
 0x2b0   :  { %v1434_v9 = vadd.f32 %v1433_v7, %v1432_v6 }
 0x2b2   :  { %v1436_v10 = vsel %vm1435_vm0, %v1301_v8, %v1434_v9 }
 0x2b3   :  { %1437 = vst [vmem:[%s2636_s3] sm:$0x3] %v1436_v10 }

// kernel: bottleneck_forward.6
= control target key start
LH: loop header
LB: loop body
LE: loop exit
PB: predicated region body
PF: predicated region fallthrough
CT: control target
= control target key end

     0   :  { %vm1989_vm0 = vcmask 1040384   ;;  %vm2001_vm1 = vcmask 1041408   ;;  %vm2003_vm2 = vcmask 1045508   ;;  %vm2005_vm3 = vcmask 1043456   ;;  %s3073_s3 = inlined_call_operand.vmem [shape: f32[128,512], index: 3, kind: input, shape index: {}]   ;;  %s3074_s0 = inlined_call_operand.vmem [shape: f32[512,128], index: 0, kind: input, shape index: {}]   ;;  %s3075_s1 = inlined_call_operand.vmem [shape: f32[1,128], index: 1, kind: input, shape index: {}]   ;;  %s3076_s2 = inlined_call_operand.vmem [shape: f32[1,128], index: 2, kind: input, shape index: {}]   ;;  %s3077_s4 = inlined_call_operand.vmem [shape: f32[1,2,512], index: 4, kind: output, shape index: {}]  }
   0x1   :  { %v341_v0 = vld [vmem:[%s3073_s3 + $0x1e0] sm:$0xff]  ;;  %v342_v1 = vld [vmem:[%s3073_s3 + $0x1e8] sm:$0xff]  ;;  %v343_v2 = vld [vmem:[%s3073_s3 + $0x1f0] sm:$0xff] }
   0x2   :  { %345 = vmatpush.msra.mxu0 %v341_v0  ;;  %554 = vmatpush.msra.mxu1 %v342_v1  ;;  %v344_v3 = vld [vmem:[%s3073_s3 + $0x1f8] sm:$0xff]  ;;  %v337_v4 = vld [vmem:[%s3073_s3 + $0x1c0] sm:$0xff]  ;;  %v338_v5 = vld [vmem:[%s3073_s3 + $0x1c8] sm:$0xff] }
   0x3   :  { %763 = vmatpush.msra.mxu2 %v343_v2  ;;  %972 = vmatpush.msra.mxu3 %v344_v3  ;;  %v339_v6 = vld [vmem:[%s3073_s3 + $0x1d0] sm:$0xff]  ;;  %v340_v7 = vld [vmem:[%s3073_s3 + $0x1d8] sm:$0xff]  ;;  %v333_v8 = vld [vmem:[%s3073_s3 + $0x1a0] sm:$0xff] }
   0x4   :  { %346 = vmatpush.msra.mxu0 %v337_v4  ;;  %555 = vmatpush.msra.mxu1 %v338_v5  ;;  %v334_v9 = vld [vmem:[%s3073_s3 + $0x1a8] sm:$0xff]  ;;  %v335_v10 = vld [vmem:[%s3073_s3 + $0x1b0] sm:$0xff]  ;;  %v336_v11 = vld [vmem:[%s3073_s3 + $0x1b8] sm:$0xff] }
   0x5   :  { %764 = vmatpush.msra.mxu2 %v339_v6  ;;  %973 = vmatpush.msra.mxu3 %v340_v7  ;;  %v329_v12 = vld [vmem:[%s3073_s3 + $0x180] sm:$0xff]  ;;  %v330_v13 = vld [vmem:[%s3073_s3 + $0x188] sm:$0xff]  ;;  %v331_v14 = vld [vmem:[%s3073_s3 + $0x190] sm:$0xff] }
   0x6   :  { %347 = vmatpush.msra.mxu0 %v333_v8  ;;  %556 = vmatpush.msra.mxu1 %v334_v9  ;;  %v332_v15 = vld [vmem:[%s3073_s3 + $0x198] sm:$0xff]  ;;  %v325_v16 = vld [vmem:[%s3073_s3 + $0x160] sm:$0xff]  ;;  %v326_v17 = vld [vmem:[%s3073_s3 + $0x168] sm:$0xff] }
   0x7   :  { %765 = vmatpush.msra.mxu2 %v335_v10  ;;  %974 = vmatpush.msra.mxu3 %v336_v11  ;;  %v327_v18 = vld [vmem:[%s3073_s3 + $0x170] sm:$0xff]  ;;  %v328_v19 = vld [vmem:[%s3073_s3 + $0x178] sm:$0xff]  ;;  %v321_v20 = vld [vmem:[%s3073_s3 + $0x140] sm:$0xff] }
   0x8   :  { %348 = vmatpush.msra.mxu0 %v329_v12  ;;  %557 = vmatpush.msra.mxu1 %v330_v13  ;;  %v322_v21 = vld [vmem:[%s3073_s3 + $0x148] sm:$0xff]  ;;  %v323_v22 = vld [vmem:[%s3073_s3 + $0x150] sm:$0xff]  ;;  %v324_v23 = vld [vmem:[%s3073_s3 + $0x158] sm:$0xff] }
   0x9   :  { %766 = vmatpush.msra.mxu2 %v331_v14  ;;  %975 = vmatpush.msra.mxu3 %v332_v15  ;;  %v317_v24 = vld [vmem:[%s3073_s3 + $0x120] sm:$0xff]  ;;  %v318_v25 = vld [vmem:[%s3073_s3 + $0x128] sm:$0xff]  ;;  %v319_v26 = vld [vmem:[%s3073_s3 + $0x130] sm:$0xff] }
   0xa   :  { %349 = vmatpush.msra.mxu0 %v325_v16  ;;  %558 = vmatpush.msra.mxu1 %v326_v17  ;;  %v320_v27 = vld [vmem:[%s3073_s3 + $0x138] sm:$0xff]  ;;  %v313_v28 = vld [vmem:[%s3073_s3 + $0x100] sm:$0xff]  ;;  %v314_v29 = vld [vmem:[%s3073_s3 + $0x108] sm:$0xff] }
   0xb   :  { %767 = vmatpush.msra.mxu2 %v327_v18  ;;  %976 = vmatpush.msra.mxu3 %v328_v19  ;;  %v315_v30 = vld [vmem:[%s3073_s3 + $0x110] sm:$0xff]  ;;  %v316_v31 = vld [vmem:[%s3073_s3 + $0x118] sm:$0xff]  ;;  %v309_v32 = vld [vmem:[%s3073_s3 + $0xe0] sm:$0xff] }
   0xc   :  { %350 = vmatpush.msra.mxu0 %v321_v20  ;;  %559 = vmatpush.msra.mxu1 %v322_v21  ;;  %v310_v33 = vld [vmem:[%s3073_s3 + $0xe8] sm:$0xff]  ;;  %v311_v34 = vld [vmem:[%s3073_s3 + $0xf0] sm:$0xff]  ;;  %v312_v35 = vld [vmem:[%s3073_s3 + $0xf8] sm:$0xff] }
   0xd   :  { %768 = vmatpush.msra.mxu2 %v323_v22  ;;  %977 = vmatpush.msra.mxu3 %v324_v23  ;;  %v305_v36 = vld [vmem:[%s3073_s3 + $0xc0] sm:$0xff]  ;;  %v306_v37 = vld [vmem:[%s3073_s3 + $0xc8] sm:$0xff]  ;;  %v307_v38 = vld [vmem:[%s3073_s3 + $0xd0] sm:$0xff] }
   0xe   :  { %351 = vmatpush.msra.mxu0 %v317_v24  ;;  %560 = vmatpush.msra.mxu1 %v318_v25  ;;  %v308_v39 = vld [vmem:[%s3073_s3 + $0xd8] sm:$0xff]  ;;  %v301_v40 = vld [vmem:[%s3073_s3 + $0xa0] sm:$0xff]  ;;  %v302_v41 = vld [vmem:[%s3073_s3 + $0xa8] sm:$0xff] }
   0xf   :  { %769 = vmatpush.msra.mxu2 %v319_v26  ;;  %978 = vmatpush.msra.mxu3 %v320_v27  ;;  %v303_v42 = vld [vmem:[%s3073_s3 + $0xb0] sm:$0xff]  ;;  %v304_v43 = vld [vmem:[%s3073_s3 + $0xb8] sm:$0xff]  ;;  %v297_v44 = vld [vmem:[%s3073_s3 + $0x80] sm:$0xff] }
  0x10   :  { %352 = vmatpush.msra.mxu0 %v313_v28  ;;  %561 = vmatpush.msra.mxu1 %v314_v29  ;;  %v298_v45 = vld [vmem:[%s3073_s3 + $0x88] sm:$0xff]  ;;  %v299_v46 = vld [vmem:[%s3073_s3 + $0x90] sm:$0xff]  ;;  %v300_v47 = vld [vmem:[%s3073_s3 + $0x98] sm:$0xff] }
  0x11   :  { %770 = vmatpush.msra.mxu2 %v315_v30  ;;  %979 = vmatpush.msra.mxu3 %v316_v31  ;;  %v293_v48 = vld [vmem:[%s3073_s3 + $0x60] sm:$0xff]  ;;  %v294_v49 = vld [vmem:[%s3073_s3 + $0x68] sm:$0xff]  ;;  %v295_v53 = vld [vmem:[%s3073_s3 + $0x70] sm:$0xff] }
  0x12   :  { %353 = vmatpush.msra.mxu0 %v309_v32  ;;  %562 = vmatpush.msra.mxu1 %v310_v33  ;;  %v17_v50 = vld [vmem:[%s3074_s0] sm:$0xff]  ;;  %v296_v54 = vld [vmem:[%s3073_s3 + $0x78] sm:$0xff]  ;;  %v290_v56 = vld [vmem:[%s3073_s3 + $0x48] sm:$0xff] }
  0x13   :  { %771 = vmatpush.msra.mxu2 %v311_v34  ;;  %980 = vmatpush.msra.mxu3 %v312_v35  ;;  %v2200_v51 = vld [vmem:[%s3075_s1] ss:$0 sm:$0xff]  ;;  %v291_v58 = vld [vmem:[%s3073_s3 + $0x50] sm:$0xff]  ;;  %v292_v59 = vld [vmem:[%s3073_s3 + $0x58] sm:$0xff] }
  0x14   :  { %354 = vmatpush.msra.mxu0 %v305_v36  ;;  %563 = vmatpush.msra.mxu1 %v306_v37  ;;  %v2205_v52 = vld [vmem:[%s3076_s2] ss:$0 sm:$0xff]  ;;  %v85_v57 = vmul.f32 %v2200_v51, %v17_v50  ;;  %v286_v61 = vld [vmem:[%s3073_s3 + $0x28] sm:$0xff]  ;;  %v287_v0 = vld [vmem:[%s3073_s3 + $0x30] sm:$0xff] }
  0x15   :  { %772 = vmatpush.msra.mxu2 %v307_v38  ;;  %981 = vmatpush.msra.mxu3 %v308_v39  ;;  %v289_v55 = vld [vmem:[%s3073_s3 + $0x40] sm:$0xff]  ;;  %v18_v63 = vld [vmem:[%s3074_s0 + $0x8] sm:$0xff]  ;;  %v288_v1 = vld [vmem:[%s3073_s3 + $0x38] sm:$0xff] }
  0x16   :  { %355 = vmatpush.msra.mxu0 %v301_v40  ;;  %564 = vmatpush.msra.mxu1 %v302_v41  ;;  %v285_v60 = vld [vmem:[%s3073_s3 + $0x20] sm:$0xff]  ;;  %v153_v62 = vadd.f32 %v2205_v52, %v85_v57  ;;  %v282_v3 = vld [vmem:[%s3073_s3 + $0x8] sm:$0xff]  ;;  %v283_v4 = vld [vmem:[%s3073_s3 + $0x10] sm:$0xff]  ;;  %v86_v7 = vmul.f32 %v2200_v51, %v18_v63 }
  0x17   :  { %773 = vmatpush.msra.mxu2 %v303_v42  ;;  %982 = vmatpush.msra.mxu3 %v304_v43  ;;  %v281_v2 = vld [vmem:[%s3073_s3] sm:$0xff]  ;;  %v284_v5 = vld [vmem:[%s3073_s3 + $0x18] sm:$0xff]  ;;  %v19_v9 = vld [vmem:[%s3074_s0 + $0x10] sm:$0xff] }
  0x18   :  { %356 = vmatpush.msra.mxu0 %v297_v44  ;;  %565 = vmatpush.msra.mxu1 %v298_v45  ;;  %v217_v6 = vmax.f32 %v153_v62, 0.0  ;;  %v154_v8 = vadd.f32 %v2205_v52, %v86_v7  ;;  %v87_v11 = vmul.f32 %v2200_v51, %v19_v9  ;;  %v20_v13 = vld [vmem:[%s3074_s0 + $0x18] sm:$0xff]  ;;  %v21_v17 = vld [vmem:[%s3074_s0 + $0x20] sm:$0xff]  ;;  %v22_v21 = vld [vmem:[%s3074_s0 + $0x28] sm:$0xff] }
  0x19   :  { %774 = vmatpush.msra.mxu2 %v299_v46  ;;  %983 = vmatpush.msra.mxu3 %v300_v47  ;;  %v88_v15 = vmul.f32 %v2200_v51, %v20_v13  ;;  %v89_v19 = vmul.f32 %v2200_v51, %v21_v17  ;;  %v90_v23 = vmul.f32 %v2200_v51, %v22_v21  ;;  %v23_v25 = vld [vmem:[%s3074_s0 + $0x30] sm:$0xff]  ;;  %v24_v29 = vld [vmem:[%s3074_s0 + $0x38] sm:$0xff]  ;;  %v25_v33 = vld [vmem:[%s3074_s0 + $0x40] sm:$0xff] }
  0x1a   :  { %357 = vmatpush.msra.mxu0 %v293_v48  ;;  %566 = vmatpush.msra.mxu1 %v294_v49  ;;  %v218_v10 = vmax.f32 %v154_v8, 0.0  ;;  %v155_v12 = vadd.f32 %v2205_v52, %v87_v11  ;;  %v91_v27 = vmul.f32 %v2200_v51, %v23_v25  ;;  %v92_v31 = vmul.f32 %v2200_v51, %v24_v29  ;;  %v26_v37 = vld [vmem:[%s3074_s0 + $0x48] sm:$0xff]  ;;  %v27_v41 = vld [vmem:[%s3074_s0 + $0x50] sm:$0xff]  ;;  %v28_v45 = vld [vmem:[%s3074_s0 + $0x58] sm:$0xff] }
  0x1b   :  { %775 = vmatpush.msra.mxu2 %v295_v53  ;;  %984 = vmatpush.msra.mxu3 %v296_v54  ;;  %v156_v16 = vadd.f32 %v2205_v52, %v88_v15  ;;  %v157_v20 = vadd.f32 %v2205_v52, %v89_v19  ;;  %v158_v24 = vadd.f32 %v2205_v52, %v90_v23  ;;  %v29_v49 = vld [vmem:[%s3074_s0 + $0x60] sm:$0xff]  ;;  %v32_v63 = vld [vmem:[%s3074_s0 + $0x78] sm:$0xff]  ;;  %v34_v7 = vld [vmem:[%s3074_s0 + $0x88] sm:$0xff] }
  0x1c   :  { %358 = vmatpush.msra.mxu0 %v289_v55  ;;  %567 = vmatpush.msra.mxu1 %v290_v56  ;;  %v219_v14 = vmax.f32 %v155_v12, 0.0  ;;  %v159_v28 = vadd.f32 %v2205_v52, %v91_v27  ;;  %v160_v32 = vadd.f32 %v2205_v52, %v92_v31  ;;  %v93_v35 = vmul.f32 %v2200_v51, %v25_v33  ;;  %v30_v55 = vld [vmem:[%s3074_s0 + $0x68] sm:$0xff]  ;;  %v35_v13 = vld [vmem:[%s3074_s0 + $0x90] sm:$0xff]  ;;  %v36_v21 = vld [vmem:[%s3074_s0 + $0x98] sm:$0xff] }
  0x1d   :  { %776 = vmatpush.msra.mxu2 %v291_v58  ;;  %985 = vmatpush.msra.mxu3 %v292_v59  ;;  %v220_v18 = vmax.f32 %v156_v16, 0.0  ;;  %v221_v22 = vmax.f32 %v157_v20, 0.0  ;;  %v222_v26 = vmax.f32 %v158_v24, 0.0  ;;  %v94_v39 = vmul.f32 %v2200_v51, %v26_v37  ;;  %v31_v59 = vld [vmem:[%s3074_s0 + $0x70] sm:$0xff]  ;;  %v37_v37 = vld [vmem:[%s3074_s0 + $0xa0] sm:$0xff] }
  0x1e   :  { %359 = vmatpush.msra.mxu0 %v285_v60  ;;  %568 = vmatpush.msra.mxu1 %v286_v61  ;;  %v223_v30 = vmax.f32 %v159_v28, 0.0  ;;  %v224_v34 = vmax.f32 %v160_v32, 0.0  ;;  %v161_v36 = vadd.f32 %v2205_v52, %v93_v35  ;;  %v95_v43 = vmul.f32 %v2200_v51, %v27_v41 }
  0x1f   :  { %777 = vmatpush.msra.mxu2 %v287_v0  ;;  %986 = vmatpush.msra.mxu3 %v288_v1  ;;  %v162_v40 = vadd.f32 %v2205_v52, %v94_v39  ;;  %v96_v47 = vmul.f32 %v2200_v51, %v28_v45  ;;  %v97_v53 = vmul.f32 %v2200_v51, %v29_v49 }
  0x20   :  { %360 = vmatpush.msra.mxu0 %v281_v2  ;;  %569 = vmatpush.msra.mxu1 %v282_v3  ;;  %v225_v38 = vmax.f32 %v161_v36, 0.0  ;;  %v163_v44 = vadd.f32 %v2205_v52, %v95_v43  ;;  %v98_v57 = vmul.f32 %v2200_v51, %v30_v55  ;;  %v99_v61 = vmul.f32 %v2200_v51, %v31_v59  ;;  %v33_v3 = vld [vmem:[%s3074_s0 + $0x80] sm:$0xff] }
  0x21   :  { %778 = vmatpush.msra.mxu2 %v283_v4  ;;  %987 = vmatpush.msra.mxu3 %v284_v5  ;;  %v226_v42 = vmax.f32 %v162_v40, 0.0  ;;  %v164_v48 = vadd.f32 %v2205_v52, %v96_v47  ;;  %v165_v54 = vadd.f32 %v2205_v52, %v97_v53  ;;  %v100_v1 = vmul.f32 %v2200_v51, %v32_v63  ;;  %v38_v53 = vld [vmem:[%s3074_s0 + $0xa8] sm:$0xff] }
  0x22   :  { %361 = vmatmul.f32.vlgmr.msra.gmra.mxu0 %v217_v6  ;;  %570 = vmatmul.f32.vlgmr.msra.gmra.mxu1 %v217_v6  ;;  %v227_v46 = vmax.f32 %v163_v44, 0.0  ;;  %v166_v58 = vadd.f32 %v2205_v52, %v98_v57  ;;  %v167_v62 = vadd.f32 %v2205_v52, %v99_v61  ;;  %v101_v5 = vmul.f32 %v2200_v51, %v33_v3  ;;  %v39_v3 = vld [vmem:[%s3074_s0 + $0xb0] sm:$0xff] }
  0x23   :  { %779 = vmatmul.f32.vlgmr.msra.gmra.mxu2 %v217_v6  ;;  %988 = vmatmul.f32.vlgmr.msra.gmra.mxu3 %v217_v6  ;;  %v228_v50 = vmax.f32 %v164_v48, 0.0  ;;  %v229_v56 = vmax.f32 %v165_v54, 0.0  ;;  %v168_v2 = vadd.f32 %v2205_v52, %v100_v1  ;;  %v102_v9 = vmul.f32 %v2200_v51, %v34_v7 }
  0x24   :  { %v230_v60 = vmax.f32 %v166_v58, 0.0  ;;  %v231_v0 = vmax.f32 %v167_v62, 0.0  ;;  %v169_v6 = vadd.f32 %v2205_v52, %v101_v5  ;;  %v103_v17 = vmul.f32 %v2200_v51, %v35_v13 }
  0x25   :  { %v232_v4 = vmax.f32 %v168_v2, 0.0  ;;  %v170_v12 = vadd.f32 %v2205_v52, %v102_v9  ;;  %v104_v27 = vmul.f32 %v2200_v51, %v36_v21  ;;  %v105_v41 = vmul.f32 %v2200_v51, %v37_v37  ;;  %v40_v21 = vld [vmem:[%s3074_s0 + $0xb8] sm:$0xff]  ;;  %v41_v37 = vld [vmem:[%s3074_s0 + $0xc0] sm:$0xff] }
  0x26   :  { %v233_v8 = vmax.f32 %v169_v6, 0.0  ;;  %v171_v20 = vadd.f32 %v2205_v52, %v103_v17  ;;  %v106_v57 = vmul.f32 %v2200_v51, %v38_v53  ;;  %v107_v7 = vmul.f32 %v2200_v51, %v39_v3 }
  0x27   :  { %v234_v16 = vmax.f32 %v170_v12, 0.0  ;;  %v172_v36 = vadd.f32 %v2205_v52, %v104_v27 }
  0x28   :  { %v174_v2 = vadd.f32 %v2205_v52, %v106_v57 }
  0x29   :  { %v236_v40 = vmax.f32 %v172_v36, 0.0 }
  0x2a   :  { %364 = vmatmul.f32.gmra.mxu0 %v218_v10  ;;  %573 = vmatmul.f32.gmra.mxu1 %v218_v10  ;;  %v238_v6 = vmax.f32 %v174_v2, 0.0 }
  0x2b   :  { %782 = vmatmul.f32.gmra.mxu2 %v218_v10  ;;  %991 = vmatmul.f32.gmra.mxu3 %v218_v10 }
  0x32   :  { %367 = vmatmul.f32.gmra.mxu0 %v219_v14  ;;  %576 = vmatmul.f32.gmra.mxu1 %v219_v14 }
  0x33   :  { %785 = vmatmul.f32.gmra.mxu2 %v219_v14  ;;  %994 = vmatmul.f32.gmra.mxu3 %v219_v14 }
  0x3a   :  { %370 = vmatmul.f32.gmra.mxu0 %v220_v18  ;;  %579 = vmatmul.f32.gmra.mxu1 %v220_v18 }
  0x3b   :  { %788 = vmatmul.f32.gmra.mxu2 %v220_v18  ;;  %997 = vmatmul.f32.gmra.mxu3 %v220_v18 }
  0x42   :  { %373 = vmatmul.f32.gmra.mxu0 %v221_v22  ;;  %582 = vmatmul.f32.gmra.mxu1 %v221_v22 }
  0x43   :  { %791 = vmatmul.f32.gmra.mxu2 %v221_v22  ;;  %1000 = vmatmul.f32.gmra.mxu3 %v221_v22 }
  0x4a   :  { %376 = vmatmul.f32.gmra.mxu0 %v222_v26  ;;  %585 = vmatmul.f32.gmra.mxu1 %v222_v26 }
  0x4b   :  { %794 = vmatmul.f32.gmra.mxu2 %v222_v26  ;;  %1003 = vmatmul.f32.gmra.mxu3 %v222_v26  ;;  %v235_v26 = vmax.f32 %v171_v20, 0.0  ;;  %v175_v20 = vadd.f32 %v2205_v52, %v107_v7  ;;  %v43_v7 = vld [vmem:[%s3074_s0 + $0xd0] sm:$0xff] }
  0x52   :  { %379 = vmatmul.f32.gmra.mxu0 %v223_v30  ;;  %588 = vmatmul.f32.gmra.mxu1 %v223_v30 }
  0x53   :  { %797 = vmatmul.f32.gmra.mxu2 %v223_v30  ;;  %1006 = vmatmul.f32.gmra.mxu3 %v223_v30 }
  0x5a   :  { %382 = vmatmul.f32.gmra.mxu0 %v224_v34  ;;  %591 = vmatmul.f32.gmra.mxu1 %v224_v34 }
  0x5b   :  { %800 = vmatmul.f32.gmra.mxu2 %v224_v34  ;;  %1009 = vmatmul.f32.gmra.mxu3 %v224_v34 }
  0x62   :  { %385 = vmatmul.f32.gmra.mxu0 %v225_v38  ;;  %594 = vmatmul.f32.gmra.mxu1 %v225_v38 }
  0x63   :  { %803 = vmatmul.f32.gmra.mxu2 %v225_v38  ;;  %1012 = vmatmul.f32.gmra.mxu3 %v225_v38 }
  0x6a   :  { %388 = vmatmul.f32.gmra.mxu0 %v226_v42  ;;  %597 = vmatmul.f32.gmra.mxu1 %v226_v42 }
  0x6b   :  { %806 = vmatmul.f32.gmra.mxu2 %v226_v42  ;;  %1015 = vmatmul.f32.gmra.mxu3 %v226_v42 }
  0x72   :  { %391 = vmatmul.f32.gmra.mxu0 %v227_v46  ;;  %600 = vmatmul.f32.gmra.mxu1 %v227_v46 }
  0x73   :  { %809 = vmatmul.f32.gmra.mxu2 %v227_v46  ;;  %1018 = vmatmul.f32.gmra.mxu3 %v227_v46 }
  0x7a   :  { %394 = vmatmul.f32.gmra.mxu0 %v228_v50  ;;  %603 = vmatmul.f32.gmra.mxu1 %v228_v50 }
  0x7b   :  { %812 = vmatmul.f32.gmra.mxu2 %v228_v50  ;;  %1021 = vmatmul.f32.gmra.mxu3 %v228_v50  ;;  %v173_v50 = vadd.f32 %v2205_v52, %v105_v41  ;;  %v109_v41 = vmul.f32 %v2200_v51, %v41_v37 }
  0x82   :  { %397 = vmatmul.f32.gmra.mxu0 %v229_v56  ;;  %606 = vmatmul.f32.gmra.mxu1 %v229_v56 }
  0x83   :  { %815 = vmatmul.f32.gmra.mxu2 %v229_v56  ;;  %1024 = vmatmul.f32.gmra.mxu3 %v229_v56  ;;  %v237_v56 = vmax.f32 %v173_v50, 0.0 }
  0x8a   :  { %400 = vmatmul.f32.gmra.mxu0 %v230_v60  ;;  %609 = vmatmul.f32.gmra.mxu1 %v230_v60 }
  0x8b   :  { %818 = vmatmul.f32.gmra.mxu2 %v230_v60  ;;  %1027 = vmatmul.f32.gmra.mxu3 %v230_v60 }
  0x92   :  { %403 = vmatmul.f32.gmra.mxu0 %v231_v0  ;;  %612 = vmatmul.f32.gmra.mxu1 %v231_v0 }
  0x93   :  { %821 = vmatmul.f32.gmra.mxu2 %v231_v0  ;;  %1030 = vmatmul.f32.gmra.mxu3 %v231_v0 }
  0x9a   :  { %406 = vmatmul.f32.gmra.mxu0 %v232_v4  ;;  %615 = vmatmul.f32.gmra.mxu1 %v232_v4 }
  0x9b   :  { %824 = vmatmul.f32.gmra.mxu2 %v232_v4  ;;  %1033 = vmatmul.f32.gmra.mxu3 %v232_v4 }
  0x9f   :  { %v2335_v10 = vpop.f32.mrf.mxu0  ;;  %v2337_v11 = vpop.f32.mrf.mxu1 }
  0xa2   :  { %409 = vmatmul.f32.gmra.mxu0 %v233_v8  ;;  %618 = vmatmul.f32.gmra.mxu1 %v233_v8 }
  0xa3   :  { %827 = vmatmul.f32.gmra.mxu2 %v233_v8  ;;  %1036 = vmatmul.f32.gmra.mxu3 %v233_v8 }
  0xa6   :  { %v780_v14 = vpop.f32.mrf.mxu2  ;;  %v989_v15 = vpop.f32.mrf.mxu3 }
  0xa7   :  { %v2344_v18 = vpop.f32.mrf.mxu0  ;;  %v2346_v19 = vpop.f32.mrf.mxu1  ;;  %v1459_v22 = vmul.f32 %v780_v14, %v780_v14  ;;  %v1460_v23 = vmul.f32 %v989_v15, %v989_v15 }
  0xaa   :  { %412 = vmatmul.f32.gmra.mxu0 %v234_v16  ;;  %621 = vmatmul.f32.gmra.mxu1 %v234_v16 }
  0xab   :  { %830 = vmatmul.f32.gmra.mxu2 %v234_v16  ;;  %1039 = vmatmul.f32.gmra.mxu3 %v234_v16 }
  0xae   :  { %v783_v24 = vpop.f32.mrf.mxu2  ;;  %v992_v25 = vpop.f32.mrf.mxu3 }
  0xaf   :  { %v1319_v28 = vadd.f32 %v783_v24, %v780_v14  ;;  %v1463_v29 = vmul.f32 %v783_v24, %v783_v24  ;;  %v1388_v30 = vadd.f32 %v992_v25, %v989_v15  ;;  %v1464_v31 = vmul.f32 %v992_v25, %v992_v25  ;;  %v2353_v32 = vpop.f32.mrf.mxu0  ;;  %v2355_v33 = vpop.f32.mrf.mxu1 }
  0xb0   :  { %v239_v24 = vmax.f32 %v175_v20, 0.0  ;;  %v108_v25 = vmul.f32 %v2200_v51, %v40_v21 }
  0xb1   :  { %v1851_v34 = vadd.f32 %v1463_v29, %v1459_v22  ;;  %v1920_v35 = vadd.f32 %v1464_v31, %v1460_v23 }
  0xb2   :  { %415 = vmatmul.f32.gmra.mxu0 %v235_v26  ;;  %624 = vmatmul.f32.gmra.mxu1 %v235_v26  ;;  %v176_v36 = vadd.f32 %v2205_v52, %v108_v25 }
  0xb3   :  { %833 = vmatmul.f32.gmra.mxu2 %v235_v26  ;;  %1042 = vmatmul.f32.gmra.mxu3 %v235_v26 }
  0xb6   :  { %v786_v38 = vpop.f32.mrf.mxu2  ;;  %v995_v39 = vpop.f32.mrf.mxu3 }
  0xb7   :  { %v1320_v42 = vadd.f32 %v1319_v28, %v786_v38  ;;  %v1467_v43 = vmul.f32 %v786_v38, %v786_v38  ;;  %v1389_v44 = vadd.f32 %v1388_v30, %v995_v39  ;;  %v1468_v45 = vmul.f32 %v995_v39, %v995_v39  ;;  %v2362_v46 = vpop.f32.mrf.mxu0  ;;  %v2364_v47 = vpop.f32.mrf.mxu1 }
  0xb9   :  { %v1852_v48 = vadd.f32 %v1851_v34, %v1467_v43  ;;  %v1921_v49 = vadd.f32 %v1920_v35, %v1468_v45 }
  0xba   :  { %418 = vmatmul.f32.gmra.mxu0 %v236_v40  ;;  %627 = vmatmul.f32.gmra.mxu1 %v236_v40 }
  0xbb   :  { %836 = vmatmul.f32.gmra.mxu2 %v236_v40  ;;  %1045 = vmatmul.f32.gmra.mxu3 %v236_v40  ;;  %v240_v40 = vmax.f32 %v176_v36, 0.0 }
  0xbe   :  { %v789_v54 = vpop.f32.mrf.mxu2  ;;  %v998_v55 = vpop.f32.mrf.mxu3 }
  0xbf   :  { %v1321_v58 = vadd.f32 %v1320_v42, %v789_v54  ;;  %v1471_v59 = vmul.f32 %v789_v54, %v789_v54  ;;  %v1390_v60 = vadd.f32 %v1389_v44, %v998_v55  ;;  %v1472_v61 = vmul.f32 %v998_v55, %v998_v55  ;;  %v2371_v62 = vpop.f32.mrf.mxu0  ;;  %v2373_v63 = vpop.f32.mrf.mxu1  ;;  %v42_v55 = vld [vmem:[%s3074_s0 + $0xc8] sm:$0xff] }
  0xc0   :  { %v177_v54 = vadd.f32 %v2205_v52, %v109_v41 }
  0xc1   :  { %v1853_v0 = vadd.f32 %v1852_v48, %v1471_v59  ;;  %v1922_v1 = vadd.f32 %v1921_v49, %v1472_v61  ;;  %v110_v59 = vmul.f32 %v2200_v51, %v42_v55 }
  0xc2   :  { %421 = vmatmul.f32.gmra.mxu0 %v237_v56  ;;  %630 = vmatmul.f32.gmra.mxu1 %v237_v56 }
  0xc3   :  { %839 = vmatmul.f32.gmra.mxu2 %v237_v56  ;;  %1048 = vmatmul.f32.gmra.mxu3 %v237_v56 }
  0xc6   :  { %v792_v4 = vpop.f32.mrf.mxu2  ;;  %v1001_v5 = vpop.f32.mrf.mxu3 }
  0xc7   :  { %v1322_v8 = vadd.f32 %v1321_v58, %v792_v4  ;;  %v1475_v9 = vmul.f32 %v792_v4, %v792_v4  ;;  %v1391_v12 = vadd.f32 %v1390_v60, %v1001_v5  ;;  %v1476_v13 = vmul.f32 %v1001_v5, %v1001_v5  ;;  %v2380_v14 = vpop.f32.mrf.mxu0  ;;  %v2382_v15 = vpop.f32.mrf.mxu1 }
  0xc8   :  { %v241_v58 = vmax.f32 %v177_v54, 0.0 }
  0xc9   :  { %v1854_v16 = vadd.f32 %v1853_v0, %v1475_v9  ;;  %v1923_v17 = vadd.f32 %v1922_v1, %v1476_v13  ;;  %v111_v13 = vmul.f32 %v2200_v51, %v43_v7 }
  0xca   :  { %424 = vmatmul.f32.gmra.mxu0 %v238_v6  ;;  %633 = vmatmul.f32.gmra.mxu1 %v238_v6 }
  0xcb   :  { %842 = vmatmul.f32.gmra.mxu2 %v238_v6  ;;  %1051 = vmatmul.f32.gmra.mxu3 %v238_v6  ;;  %v178_v6 = vadd.f32 %v2205_v52, %v110_v59 }
  0xce   :  { %v795_v22 = vpop.f32.mrf.mxu2  ;;  %v1004_v23 = vpop.f32.mrf.mxu3 }
  0xcf   :  { %v1323_v26 = vadd.f32 %v1322_v8, %v795_v22  ;;  %v1479_v27 = vmul.f32 %v795_v22, %v795_v22  ;;  %v1392_v28 = vadd.f32 %v1391_v12, %v1004_v23  ;;  %v1480_v29 = vmul.f32 %v1004_v23, %v1004_v23  ;;  %v2389_v30 = vpop.f32.mrf.mxu0  ;;  %v2391_v31 = vpop.f32.mrf.mxu1 }
  0xd0   :  { %v242_v12 = vmax.f32 %v178_v6, 0.0 }
  0xd1   :  { %v1855_v34 = vadd.f32 %v1854_v16, %v1479_v27  ;;  %v1924_v35 = vadd.f32 %v1923_v17, %v1480_v29  ;;  %v44_v27 = vld [vmem:[%s3074_s0 + $0xd8] sm:$0xff] }
  0xd2   :  { %427 = vmatmul.f32.gmra.mxu0 %v239_v24  ;;  %636 = vmatmul.f32.gmra.mxu1 %v239_v24 }
  0xd3   :  { %845 = vmatmul.f32.gmra.mxu2 %v239_v24  ;;  %1054 = vmatmul.f32.gmra.mxu3 %v239_v24 }
  0xd6   :  { %v798_v38 = vpop.f32.mrf.mxu2  ;;  %v1007_v39 = vpop.f32.mrf.mxu3 }
  0xd7   :  { %v1324_v42 = vadd.f32 %v1323_v26, %v798_v38  ;;  %v1483_v43 = vmul.f32 %v798_v38, %v798_v38  ;;  %v1393_v44 = vadd.f32 %v1392_v28, %v1007_v39  ;;  %v1484_v45 = vmul.f32 %v1007_v39, %v1007_v39  ;;  %v2398_v48 = vpop.f32.mrf.mxu0  ;;  %v2400_v49 = vpop.f32.mrf.mxu1 }
  0xd8   :  { %v179_v26 = vadd.f32 %v2205_v52, %v111_v13 }
  0xd9   :  { %v1856_v50 = vadd.f32 %v1855_v34, %v1483_v43  ;;  %v1925_v53 = vadd.f32 %v1924_v35, %v1484_v45  ;;  %v112_v35 = vmul.f32 %v2200_v51, %v44_v27  ;;  %v45_v45 = vld [vmem:[%s3074_s0 + $0xe0] sm:$0xff]  ;;  %v47_v27 = vld [vmem:[%s3074_s0 + $0xf0] sm:$0xff] }
  0xda   :  { %430 = vmatmul.f32.gmra.mxu0 %v240_v40  ;;  %639 = vmatmul.f32.gmra.mxu1 %v240_v40  ;;  %v243_v34 = vmax.f32 %v179_v26, 0.0  ;;  %v113_v55 = vmul.f32 %v2200_v51, %v45_v45 }
  0xdb   :  { %848 = vmatmul.f32.gmra.mxu2 %v240_v40  ;;  %1057 = vmatmul.f32.gmra.mxu3 %v240_v40 }
  0xde   :  { %v801_v56 = vpop.f32.mrf.mxu2  ;;  %v1010_v57 = vpop.f32.mrf.mxu3 }
  0xdf   :  { %v1325_v60 = vadd.f32 %v1324_v42, %v801_v56  ;;  %v1487_v61 = vmul.f32 %v801_v56, %v801_v56  ;;  %v1394_v0 = vadd.f32 %v1393_v44, %v1010_v57  ;;  %v1488_v1 = vmul.f32 %v1010_v57, %v1010_v57  ;;  %v2407_v2 = vpop.f32.mrf.mxu0  ;;  %v2409_v3 = vpop.f32.mrf.mxu1 }
  0xe0   :  { %v180_v44 = vadd.f32 %v2205_v52, %v112_v35  ;;  %v115_v35 = vmul.f32 %v2200_v51, %v47_v27 }
  0xe1   :  { %v1857_v4 = vadd.f32 %v1856_v50, %v1487_v61  ;;  %v1926_v5 = vadd.f32 %v1925_v53, %v1488_v1 }
  0xe2   :  { %433 = vmatmul.f32.gmra.mxu0 %v241_v58  ;;  %642 = vmatmul.f32.gmra.mxu1 %v241_v58  ;;  %v244_v54 = vmax.f32 %v180_v44, 0.0 }
  0xe3   :  { %851 = vmatmul.f32.gmra.mxu2 %v241_v58  ;;  %1060 = vmatmul.f32.gmra.mxu3 %v241_v58 }
  0xe6   :  { %v804_v8 = vpop.f32.mrf.mxu2  ;;  %v1013_v9 = vpop.f32.mrf.mxu3 }
  0xe7   :  { %v1326_v16 = vadd.f32 %v1325_v60, %v804_v8  ;;  %v1491_v17 = vmul.f32 %v804_v8, %v804_v8  ;;  %v1395_v20 = vadd.f32 %v1394_v0, %v1013_v9  ;;  %v1492_v21 = vmul.f32 %v1013_v9, %v1013_v9  ;;  %v2416_v22 = vpop.f32.mrf.mxu0  ;;  %v2418_v23 = vpop.f32.mrf.mxu1 }
  0xe9   :  { %v1858_v24 = vadd.f32 %v1857_v4, %v1491_v17  ;;  %v1927_v25 = vadd.f32 %v1926_v5, %v1492_v21  ;;  %v181_v4 = vadd.f32 %v2205_v52, %v113_v55  ;;  %v46_v5 = vld [vmem:[%s3074_s0 + $0xe8] sm:$0xff] }
  0xea   :  { %436 = vmatmul.f32.gmra.mxu0 %v242_v12  ;;  %645 = vmatmul.f32.gmra.mxu1 %v242_v12  ;;  %v114_v9 = vmul.f32 %v2200_v51, %v46_v5 }
  0xeb   :  { %854 = vmatmul.f32.gmra.mxu2 %v242_v12  ;;  %1063 = vmatmul.f32.gmra.mxu3 %v242_v12  ;;  %v245_v8 = vmax.f32 %v181_v4, 0.0 }
  0xec   :  { %v182_v26 = vadd.f32 %v2205_v52, %v114_v9  ;;  %v49_v9 = vld [vmem:[%s3074_s0 + $0x100] sm:$0xff] }
  0xee   :  { %v807_v28 = vpop.f32.mrf.mxu2  ;;  %v1016_v29 = vpop.f32.mrf.mxu3 }
  0xef   :  { %v1327_v36 = vadd.f32 %v1326_v16, %v807_v28  ;;  %v1495_v37 = vmul.f32 %v807_v28, %v807_v28  ;;  %v1396_v38 = vadd.f32 %v1395_v20, %v1016_v29  ;;  %v1496_v39 = vmul.f32 %v1016_v29, %v1016_v29  ;;  %v2425_v40 = vpop.f32.mrf.mxu0  ;;  %v2427_v41 = vpop.f32.mrf.mxu1 }
  0xf1   :  { %v1859_v42 = vadd.f32 %v1858_v24, %v1495_v37  ;;  %v1928_v43 = vadd.f32 %v1927_v25, %v1496_v39 }
  0xf2   :  { %439 = vmatmul.f32.gmra.mxu0 %v243_v34  ;;  %648 = vmatmul.f32.gmra.mxu1 %v243_v34 }
  0xf3   :  { %857 = vmatmul.f32.gmra.mxu2 %v243_v34  ;;  %1066 = vmatmul.f32.gmra.mxu3 %v243_v34  ;;  %v246_v34 = vmax.f32 %v182_v26, 0.0 }
  0xf6   :  { %v810_v50 = vpop.f32.mrf.mxu2  ;;  %v1019_v53 = vpop.f32.mrf.mxu3 }
  0xf7   :  { %v1328_v56 = vadd.f32 %v1327_v36, %v810_v50  ;;  %v1499_v57 = vmul.f32 %v810_v50, %v810_v50  ;;  %v1397_v58 = vadd.f32 %v1396_v38, %v1019_v53  ;;  %v1500_v59 = vmul.f32 %v1019_v53, %v1019_v53  ;;  %v2434_v60 = vpop.f32.mrf.mxu0  ;;  %v2436_v61 = vpop.f32.mrf.mxu1  ;;  %v48_v53 = vld [vmem:[%s3074_s0 + $0xf8] sm:$0xff] }
  0xf8   :  { %v183_v50 = vadd.f32 %v2205_v52, %v115_v35 }
  0xf9   :  { %v1860_v0 = vadd.f32 %v1859_v42, %v1499_v57  ;;  %v1929_v1 = vadd.f32 %v1928_v43, %v1500_v59  ;;  %v116_v57 = vmul.f32 %v2200_v51, %v48_v53 }
  0xfa   :  { %442 = vmatmul.f32.gmra.mxu0 %v244_v54  ;;  %651 = vmatmul.f32.gmra.mxu1 %v244_v54 }
  0xfb   :  { %860 = vmatmul.f32.gmra.mxu2 %v244_v54  ;;  %1069 = vmatmul.f32.gmra.mxu3 %v244_v54 }
  0xfe   :  { %v813_v6 = vpop.f32.mrf.mxu2  ;;  %v1022_v7 = vpop.f32.mrf.mxu3 }
  0xff   :  { %v1329_v12 = vadd.f32 %v1328_v56, %v813_v6  ;;  %v1503_v13 = vmul.f32 %v813_v6, %v813_v6  ;;  %v1398_v16 = vadd.f32 %v1397_v58, %v1022_v7  ;;  %v1504_v17 = vmul.f32 %v1022_v7, %v1022_v7  ;;  %v2443_v20 = vpop.f32.mrf.mxu0  ;;  %v2445_v21 = vpop.f32.mrf.mxu1 }
 0x100   :  { %v247_v56 = vmax.f32 %v183_v50, 0.0 }
 0x101   :  { %v1861_v24 = vadd.f32 %v1860_v0, %v1503_v13  ;;  %v1930_v25 = vadd.f32 %v1929_v1, %v1504_v17  ;;  %v117_v17 = vmul.f32 %v2200_v51, %v49_v9 }
 0x102   :  { %445 = vmatmul.f32.gmra.mxu0 %v245_v8  ;;  %654 = vmatmul.f32.gmra.mxu1 %v245_v8 }
 0x103   :  { %863 = vmatmul.f32.gmra.mxu2 %v245_v8  ;;  %1072 = vmatmul.f32.gmra.mxu3 %v245_v8  ;;  %v184_v8 = vadd.f32 %v2205_v52, %v116_v57 }
 0x106   :  { %v816_v28 = vpop.f32.mrf.mxu2  ;;  %v1025_v29 = vpop.f32.mrf.mxu3 }
 0x107   :  { %v1330_v36 = vadd.f32 %v1329_v12, %v816_v28  ;;  %v1507_v37 = vmul.f32 %v816_v28, %v816_v28  ;;  %v1399_v38 = vadd.f32 %v1398_v16, %v1025_v29  ;;  %v1508_v39 = vmul.f32 %v1025_v29, %v1025_v29  ;;  %v2452_v42 = vpop.f32.mrf.mxu0  ;;  %v2454_v43 = vpop.f32.mrf.mxu1 }
 0x108   :  { %v248_v16 = vmax.f32 %v184_v8, 0.0 }
 0x109   :  { %v1862_v44 = vadd.f32 %v1861_v24, %v1507_v37  ;;  %v1931_v45 = vadd.f32 %v1930_v25, %v1508_v39  ;;  %v50_v37 = vld [vmem:[%s3074_s0 + $0x108] sm:$0xff] }
 0x10a   :  { %448 = vmatmul.f32.gmra.mxu0 %v246_v34  ;;  %657 = vmatmul.f32.gmra.mxu1 %v246_v34 }
 0x10b   :  { %866 = vmatmul.f32.gmra.mxu2 %v246_v34  ;;  %1075 = vmatmul.f32.gmra.mxu3 %v246_v34 }
 0x10e   :  { %v819_v54 = vpop.f32.mrf.mxu2  ;;  %v1028_v55 = vpop.f32.mrf.mxu3 }
 0x10f   :  { %v1331_v58 = vadd.f32 %v1330_v36, %v819_v54  ;;  %v1511_v59 = vmul.f32 %v819_v54, %v819_v54  ;;  %v1400_v0 = vadd.f32 %v1399_v38, %v1028_v55  ;;  %v1512_v1 = vmul.f32 %v1028_v55, %v1028_v55  ;;  %v2461_v4 = vpop.f32.mrf.mxu0  ;;  %v2463_v5 = vpop.f32.mrf.mxu1 }
 0x110   :  { %v185_v36 = vadd.f32 %v2205_v52, %v117_v17 }
 0x111   :  { %v1863_v6 = vadd.f32 %v1862_v44, %v1511_v59  ;;  %v1932_v7 = vadd.f32 %v1931_v45, %v1512_v1  ;;  %v118_v45 = vmul.f32 %v2200_v51, %v50_v37  ;;  %v51_v1 = vld [vmem:[%s3074_s0 + $0x110] sm:$0xff] }
 0x112   :  { %451 = vmatmul.f32.gmra.mxu0 %v247_v56  ;;  %660 = vmatmul.f32.gmra.mxu1 %v247_v56  ;;  %v249_v44 = vmax.f32 %v185_v36, 0.0  ;;  %v119_v9 = vmul.f32 %v2200_v51, %v51_v1  ;;  %v53_v1 = vld [vmem:[%s3074_s0 + $0x120] sm:$0xff] }
 0x113   :  { %869 = vmatmul.f32.gmra.mxu2 %v247_v56  ;;  %1078 = vmatmul.f32.gmra.mxu3 %v247_v56 }
 0x116   :  { %v822_v12 = vpop.f32.mrf.mxu2  ;;  %v1031_v13 = vpop.f32.mrf.mxu3 }
 0x117   :  { %v1332_v24 = vadd.f32 %v1331_v58, %v822_v12  ;;  %v1515_v25 = vmul.f32 %v822_v12, %v822_v12  ;;  %v1401_v26 = vadd.f32 %v1400_v0, %v1031_v13  ;;  %v1516_v27 = vmul.f32 %v1031_v13, %v1031_v13  ;;  %v2470_v28 = vpop.f32.mrf.mxu0  ;;  %v2472_v29 = vpop.f32.mrf.mxu1 }
 0x118   :  { %v186_v0 = vadd.f32 %v2205_v52, %v118_v45 }
 0x119   :  { %v1864_v34 = vadd.f32 %v1863_v6, %v1515_v25  ;;  %v1933_v35 = vadd.f32 %v1932_v7, %v1516_v27 }
 0x11a   :  { %454 = vmatmul.f32.gmra.mxu0 %v248_v16  ;;  %663 = vmatmul.f32.gmra.mxu1 %v248_v16  ;;  %v250_v8 = vmax.f32 %v186_v0, 0.0 }
 0x11b   :  { %872 = vmatmul.f32.gmra.mxu2 %v248_v16  ;;  %1081 = vmatmul.f32.gmra.mxu3 %v248_v16 }
 0x11e   :  { %v825_v38 = vpop.f32.mrf.mxu2  ;;  %v1034_v39 = vpop.f32.mrf.mxu3 }
 0x11f   :  { %v1333_v50 = vadd.f32 %v1332_v24, %v825_v38  ;;  %v1519_v53 = vmul.f32 %v825_v38, %v825_v38  ;;  %v1402_v54 = vadd.f32 %v1401_v26, %v1034_v39  ;;  %v1520_v55 = vmul.f32 %v1034_v39, %v1034_v39  ;;  %v2479_v56 = vpop.f32.mrf.mxu0  ;;  %v2481_v57 = vpop.f32.mrf.mxu1 }
 0x121   :  { %v1865_v58 = vadd.f32 %v1864_v34, %v1519_v53  ;;  %v1934_v59 = vadd.f32 %v1933_v35, %v1520_v55  ;;  %v187_v34 = vadd.f32 %v2205_v52, %v119_v9  ;;  %v52_v35 = vld [vmem:[%s3074_s0 + $0x118] sm:$0xff]  ;;  %v121_v9 = vmul.f32 %v2200_v51, %v53_v1 }
 0x122   :  { %457 = vmatmul.f32.gmra.mxu0 %v249_v44  ;;  %666 = vmatmul.f32.gmra.mxu1 %v249_v44  ;;  %v120_v39 = vmul.f32 %v2200_v51, %v52_v35  ;;  %v54_v51 = vld [vmem:[%s3074_s0 + $0x128] sm:$0xff] }
 0x123   :  { %875 = vmatmul.f32.gmra.mxu2 %v249_v44  ;;  %1084 = vmatmul.f32.gmra.mxu3 %v249_v44  ;;  %v251_v38 = vmax.f32 %v187_v34, 0.0 }
 0x124   :  { %v188_v0 = vadd.f32 %v2205_v52, %v120_v39 }
 0x126   :  { %v828_v6 = vpop.f32.mrf.mxu2  ;;  %v1037_v7 = vpop.f32.mrf.mxu3 }
 0x127   :  { %v1334_v12 = vadd.f32 %v1333_v50, %v828_v6  ;;  %v1523_v13 = vmul.f32 %v828_v6, %v828_v6  ;;  %v1403_v16 = vadd.f32 %v1402_v54, %v1037_v7  ;;  %v1524_v17 = vmul.f32 %v1037_v7, %v1037_v7  ;;  %v2488_v24 = vpop.f32.mrf.mxu0  ;;  %v2490_v25 = vpop.f32.mrf.mxu1 }
 0x129   :  { %v1866_v26 = vadd.f32 %v1865_v58, %v1523_v13  ;;  %v1935_v27 = vadd.f32 %v1934_v59, %v1524_v17 }
 0x12a   :  { %460 = vmatmul.f32.gmra.mxu0 %v250_v8  ;;  %669 = vmatmul.f32.gmra.mxu1 %v250_v8 }
 0x12b   :  { %878 = vmatmul.f32.gmra.mxu2 %v250_v8  ;;  %1087 = vmatmul.f32.gmra.mxu3 %v250_v8  ;;  %v252_v8 = vmax.f32 %v188_v0, 0.0 }
 0x12e   :  { %v831_v36 = vpop.f32.mrf.mxu2  ;;  %v1040_v37 = vpop.f32.mrf.mxu3 }
 0x12f   :  { %v1335_v44 = vadd.f32 %v1334_v12, %v831_v36  ;;  %v1527_v45 = vmul.f32 %v831_v36, %v831_v36  ;;  %v1404_v50 = vadd.f32 %v1403_v16, %v1040_v37  ;;  %v1528_v53 = vmul.f32 %v1040_v37, %v1040_v37  ;;  %v2497_v54 = vpop.f32.mrf.mxu0  ;;  %v2499_v55 = vpop.f32.mrf.mxu1 }
 0x130   :  { %3097 = vst [vmem:[#allocation2_spill] sm:$0xff] %v2499_v55  ;;  %v189_v36 = vadd.f32 %v2205_v52, %v121_v9  ;;  %v55_v9 = vld [vmem:[%s3074_s0 + $0x130] sm:$0xff]  ;;  %v1469_v55 = vmul.f32 %v2362_v46, %v2362_v46 }
 0x131   :  { %v1867_v58 = vadd.f32 %v1866_v26, %v1527_v45  ;;  %v1936_v59 = vadd.f32 %v1935_v27, %v1528_v53 }
 0x132   :  { %463 = vmatmul.f32.gmra.mxu0 %v251_v38  ;;  %672 = vmatmul.f32.gmra.mxu1 %v251_v38  ;;  %v253_v39 = vmax.f32 %v189_v36, 0.0 }
 0x133   :  { %881 = vmatmul.f32.gmra.mxu2 %v251_v38  ;;  %1090 = vmatmul.f32.gmra.mxu3 %v251_v38 }
 0x136   :  { %v834_v6 = vpop.f32.mrf.mxu2  ;;  %v1043_v7 = vpop.f32.mrf.mxu3 }
 0x137   :  { %v1336_v12 = vadd.f32 %v1335_v44, %v834_v6  ;;  %v1531_v13 = vmul.f32 %v834_v6, %v834_v6  ;;  %v1405_v16 = vadd.f32 %v1404_v50, %v1043_v7  ;;  %v1532_v17 = vmul.f32 %v1043_v7, %v1043_v7  ;;  %v2506_v26 = vpop.f32.mrf.mxu0  ;;  %v2508_v27 = vpop.f32.mrf.mxu1  ;;  %v2517_v44 = vld [vmem:[%s3075_s1] ss:$0 sm:$0xff] }
 0x138   :  { %3098 = vst [vmem:[#allocation3_spill] sm:$0xff] %v2506_v26  ;;  %v122_v45 = vmul.f32 %v2517_v44, %v54_v51  ;;  %v2527_v7 = vld [vmem:[%s3076_s2] ss:$0 sm:$0xff] }
 0x139   :  { %3099 = vst [vmem:[#allocation4_spill] sm:$0xff] %v2508_v27  ;;  %v1868_v34 = vadd.f32 %v1867_v58, %v1531_v13  ;;  %v1937_v35 = vadd.f32 %v1936_v59, %v1532_v17  ;;  %v123_v17 = vmul.f32 %v2517_v44, %v55_v9 }
 0x13a   :  { %466 = vmatmul.f32.gmra.mxu0 %v252_v8  ;;  %675 = vmatmul.f32.gmra.mxu1 %v252_v8 }
 0x13b   :  { %884 = vmatmul.f32.gmra.mxu2 %v252_v8  ;;  %1093 = vmatmul.f32.gmra.mxu3 %v252_v8  ;;  %v190_v8 = vadd.f32 %v2527_v7, %v122_v45 }
 0x13e   :  { %v837_v37 = vpop.f32.mrf.mxu2  ;;  %v1046_v38 = vpop.f32.mrf.mxu3 }
 0x13f   :  { %v1337_v50 = vadd.f32 %v1336_v12, %v837_v37  ;;  %v1535_v53 = vmul.f32 %v837_v37, %v837_v37  ;;  %v1406_v58 = vadd.f32 %v1405_v16, %v1046_v38  ;;  %v1536_v52 = vmul.f32 %v1046_v38, %v1046_v38  ;;  %v2520_v59 = vpop.f32.mrf.mxu0  ;;  %v2522_v0 = vpop.f32.mrf.mxu1 }
 0x140   :  { %3100 = vst [vmem:[#allocation5_spill] sm:$0xff] %v2520_v59  ;;  %v254_v16 = vmax.f32 %v190_v8, 0.0 }
 0x141   :  { %3101 = vst [vmem:[#allocation6_spill] sm:$0xff] %v2522_v0  ;;  %v1869_v1 = vadd.f32 %v1868_v34, %v1535_v53  ;;  %v1938_v6 = vadd.f32 %v1937_v35, %v1536_v52  ;;  %v56_v52 = vld [vmem:[%s3074_s0 + $0x138] sm:$0xff] }
 0x142   :  { %469 = vmatmul.f32.gmra.mxu0 %v253_v39  ;;  %678 = vmatmul.f32.gmra.mxu1 %v253_v39  ;;  %v124_v9 = vmul.f32 %v2517_v44, %v56_v52 }
 0x143   :  { %887 = vmatmul.f32.gmra.mxu2 %v253_v39  ;;  %1096 = vmatmul.f32.gmra.mxu3 %v253_v39  ;;  %v191_v39 = vadd.f32 %v2527_v7, %v123_v17 }
 0x146   :  { %v840_v12 = vpop.f32.mrf.mxu2  ;;  %v1049_v13 = vpop.f32.mrf.mxu3 }
 0x147   :  { %v1338_v34 = vadd.f32 %v1337_v50, %v840_v12  ;;  %v1539_v35 = vmul.f32 %v840_v12, %v840_v12  ;;  %v1407_v36 = vadd.f32 %v1406_v58, %v1049_v13  ;;  %v1540_v51 = vmul.f32 %v1049_v13, %v1049_v13  ;;  %v2534_v37 = vpop.f32.mrf.mxu0  ;;  %v2536_v38 = vpop.f32.mrf.mxu1 }
 0x148   :  { %3102 = vst [vmem:[#allocation7_spill] sm:$0xff] %v2534_v37  ;;  %v255_v58 = vmax.f32 %v191_v39, 0.0  ;;  %v57_v39 = vld [vmem:[%s3074_s0 + $0x140] sm:$0xff] }
 0x149   :  { %3103 = vst [vmem:[#allocation8_spill] sm:$0xff] %v2536_v38  ;;  %v1870_v45 = vadd.f32 %v1869_v1, %v1539_v35  ;;  %v1939_v53 = vadd.f32 %v1938_v6, %v1540_v51 }
 0x14a   :  { %472 = vmatmul.f32.gmra.mxu0 %v254_v16  ;;  %681 = vmatmul.f32.gmra.mxu1 %v254_v16 }
 0x14b   :  { %890 = vmatmul.f32.gmra.mxu2 %v254_v16  ;;  %1099 = vmatmul.f32.gmra.mxu3 %v254_v16  ;;  %v192_v16 = vadd.f32 %v2527_v7, %v124_v9 }
 0x14e   :  { %v843_v50 = vpop.f32.mrf.mxu2  ;;  %v1052_v8 = vpop.f32.mrf.mxu3 }
 0x14f   :  { %v1339_v12 = vadd.f32 %v1338_v34, %v843_v50  ;;  %v1543_v13 = vmul.f32 %v843_v50, %v843_v50  ;;  %v1408_v38 = vadd.f32 %v1407_v36, %v1052_v8  ;;  %v1544_v1 = vmul.f32 %v1052_v8, %v1052_v8  ;;  %v2543_v6 = vpop.f32.mrf.mxu0  ;;  %v2545_v35 = vpop.f32.mrf.mxu1 }
 0x150   :  { %3104 = vst [vmem:[#allocation9_spill] sm:$0xff] %v2543_v6  ;;  %v256_v36 = vmax.f32 %v192_v16, 0.0  ;;  %v125_v50 = vmul.f32 %v2517_v44, %v57_v39  ;;  %v58_v16 = vld [vmem:[%s3074_s0 + $0x148] sm:$0xff] }
 0x151   :  { %3105 = vst [vmem:[#allocation10_spill] sm:$0xff] %v2545_v35  ;;  %v1871_v17 = vadd.f32 %v1870_v45, %v1543_v13  ;;  %v1940_v51 = vadd.f32 %v1939_v53, %v1544_v1 }
 0x152   :  { %475 = vmatmul.f32.gmra.mxu0 %v255_v58  ;;  %684 = vmatmul.f32.gmra.mxu1 %v255_v58 }
 0x153   :  { %893 = vmatmul.f32.gmra.mxu2 %v255_v58  ;;  %1102 = vmatmul.f32.gmra.mxu3 %v255_v58  ;;  %v193_v58 = vadd.f32 %v2527_v7, %v125_v50 }
 0x156   :  { %v846_v34 = vpop.f32.mrf.mxu2  ;;  %v1055_v52 = vpop.f32.mrf.mxu3 }
 0x157   :  { %v1340_v8 = vadd.f32 %v1339_v12, %v846_v34  ;;  %v1547_v6 = vmul.f32 %v846_v34, %v846_v34  ;;  %v1409_v35 = vadd.f32 %v1408_v38, %v1055_v52  ;;  %v1548_v45 = vmul.f32 %v1055_v52, %v1055_v52  ;;  %v2552_v53 = vpop.f32.mrf.mxu0  ;;  %v2554_v13 = vpop.f32.mrf.mxu1 }
 0x158   :  { %3106 = vst [vmem:[#allocation11_spill] sm:$0xff] %v2552_v53  ;;  %v257_v38 = vmax.f32 %v193_v58, 0.0  ;;  %v126_v34 = vmul.f32 %v2517_v44, %v58_v16  ;;  %v59_v58 = vld [vmem:[%s3074_s0 + $0x150] sm:$0xff] }
 0x159   :  { %3107 = vst [vmem:[#allocation12_spill] sm:$0xff] %v2554_v13  ;;  %v1872_v9 = vadd.f32 %v1871_v17, %v1547_v6  ;;  %v1941_v1 = vadd.f32 %v1940_v51, %v1548_v45 }
 0x15a   :  { %478 = vmatmul.f32.gmra.mxu0 %v256_v36  ;;  %687 = vmatmul.f32.gmra.mxu1 %v256_v36 }
 0x15b   :  { %896 = vmatmul.f32.gmra.mxu2 %v256_v36  ;;  %1105 = vmatmul.f32.gmra.mxu3 %v256_v36  ;;  %v194_v36 = vadd.f32 %v2527_v7, %v126_v34 }
 0x15e   :  { %v849_v12 = vpop.f32.mrf.mxu2  ;;  %v1058_v39 = vpop.f32.mrf.mxu3 }
 0x15f   :  { %v1341_v52 = vadd.f32 %v1340_v8, %v849_v12  ;;  %v1551_v53 = vmul.f32 %v849_v12, %v849_v12  ;;  %v1410_v13 = vadd.f32 %v1409_v35, %v1058_v39  ;;  %v1552_v6 = vmul.f32 %v1058_v39, %v1058_v39  ;;  %v2561_v17 = vpop.f32.mrf.mxu0  ;;  %v2563_v51 = vpop.f32.mrf.mxu1 }
 0x160   :  { %3108 = vst [vmem:[#allocation13_spill] sm:$0xff] %v2561_v17  ;;  %v258_v35 = vmax.f32 %v194_v36, 0.0  ;;  %v127_v12 = vmul.f32 %v2517_v44, %v59_v58  ;;  %v60_v36 = vld [vmem:[%s3074_s0 + $0x158] sm:$0xff] }
 0x161   :  { %3109 = vst [vmem:[#allocation14_spill] sm:$0xff] %v2563_v51  ;;  %v1873_v50 = vadd.f32 %v1872_v9, %v1551_v53  ;;  %v1942_v45 = vadd.f32 %v1941_v1, %v1552_v6 }
 0x162   :  { %481 = vmatmul.f32.gmra.mxu0 %v257_v38  ;;  %690 = vmatmul.f32.gmra.mxu1 %v257_v38 }
 0x163   :  { %899 = vmatmul.f32.gmra.mxu2 %v257_v38  ;;  %1108 = vmatmul.f32.gmra.mxu3 %v257_v38  ;;  %v195_v38 = vadd.f32 %v2527_v7, %v127_v12 }
 0x166   :  { %v852_v8 = vpop.f32.mrf.mxu2  ;;  %v1061_v16 = vpop.f32.mrf.mxu3 }
 0x167   :  { %v1342_v39 = vadd.f32 %v1341_v52, %v852_v8  ;;  %v1555_v17 = vmul.f32 %v852_v8, %v852_v8  ;;  %v1411_v51 = vadd.f32 %v1410_v13, %v1061_v16  ;;  %v1556_v53 = vmul.f32 %v1061_v16, %v1061_v16  ;;  %v2570_v9 = vpop.f32.mrf.mxu0  ;;  %v2572_v1 = vpop.f32.mrf.mxu1 }
 0x168   :  { %3110 = vst [vmem:[#allocation15_spill] sm:$0xff] %v2570_v9  ;;  %v259_v13 = vmax.f32 %v195_v38, 0.0  ;;  %v128_v8 = vmul.f32 %v2517_v44, %v60_v36  ;;  %v61_v38 = vld [vmem:[%s3074_s0 + $0x160] sm:$0xff] }
 0x169   :  { %3111 = vst [vmem:[#allocation16_spill] sm:$0xff] %v2572_v1  ;;  %v1874_v34 = vadd.f32 %v1873_v50, %v1555_v17  ;;  %v1943_v6 = vadd.f32 %v1942_v45, %v1556_v53 }
 0x16a   :  { %484 = vmatmul.f32.gmra.mxu0 %v258_v35  ;;  %693 = vmatmul.f32.gmra.mxu1 %v258_v35 }
 0x16b   :  { %902 = vmatmul.f32.gmra.mxu2 %v258_v35  ;;  %1111 = vmatmul.f32.gmra.mxu3 %v258_v35  ;;  %v196_v35 = vadd.f32 %v2527_v7, %v128_v8 }
 0x16e   :  { %v855_v52 = vpop.f32.mrf.mxu2  ;;  %v1064_v58 = vpop.f32.mrf.mxu3 }
 0x16f   :  { %v1343_v16 = vadd.f32 %v1342_v39, %v855_v52  ;;  %v1559_v9 = vmul.f32 %v855_v52, %v855_v52  ;;  %v1412_v1 = vadd.f32 %v1411_v51, %v1064_v58  ;;  %v1560_v17 = vmul.f32 %v1064_v58, %v1064_v58  ;;  %v2579_v50 = vpop.f32.mrf.mxu0  ;;  %v2581_v45 = vpop.f32.mrf.mxu1 }
 0x170   :  { %3112 = vst [vmem:[#allocation17_spill] sm:$0xff] %v2579_v50  ;;  %v260_v51 = vmax.f32 %v196_v35, 0.0  ;;  %v129_v52 = vmul.f32 %v2517_v44, %v61_v38  ;;  %v62_v35 = vld [vmem:[%s3074_s0 + $0x168] sm:$0xff]  ;;  %v1250_v38 = vadd.f32 %v2346_v19, %v2337_v11 }
 0x171   :  { %3113 = vst [vmem:[#allocation18_spill] sm:$0xff] %v2581_v45  ;;  %v1875_v12 = vadd.f32 %v1874_v34, %v1559_v9  ;;  %v1944_v53 = vadd.f32 %v1943_v6, %v1560_v17 }
 0x172   :  { %487 = vmatmul.f32.gmra.mxu0 %v259_v13  ;;  %696 = vmatmul.f32.gmra.mxu1 %v259_v13  ;;  %v1251_v26 = vadd.f32 %v1250_v38, %v2355_v33 }
 0x173   :  { %905 = vmatmul.f32.gmra.mxu2 %v259_v13  ;;  %1114 = vmatmul.f32.gmra.mxu3 %v259_v13  ;;  %v197_v13 = vadd.f32 %v2527_v7, %v129_v52 }
 0x176   :  { %v858_v39 = vpop.f32.mrf.mxu2  ;;  %v1067_v36 = vpop.f32.mrf.mxu3 }
 0x177   :  { %v1344_v58 = vadd.f32 %v1343_v16, %v858_v39  ;;  %v1563_v50 = vmul.f32 %v858_v39, %v858_v39  ;;  %v1413_v45 = vadd.f32 %v1412_v1, %v1067_v36  ;;  %v1564_v9 = vmul.f32 %v1067_v36, %v1067_v36  ;;  %v2588_v34 = vpop.f32.mrf.mxu0  ;;  %v2590_v6 = vpop.f32.mrf.mxu1 }
 0x178   :  { %3114 = vst [vmem:[#allocation19_spill] sm:$0xff] %v2588_v34  ;;  %v1457_v1 = vmul.f32 %v2335_v10, %v2335_v10  ;;  %v1461_v16 = vmul.f32 %v2344_v18, %v2344_v18  ;;  %v1465_v39 = vmul.f32 %v2353_v32, %v2353_v32  ;;  %v1466_v36 = vmul.f32 %v2355_v33, %v2355_v33  ;;  %v63_v33 = vld [vmem:[%s3074_s0 + $0x170] sm:$0xff] }
 0x179   :  { %3115 = vst [vmem:[#allocation20_spill] sm:$0xff] %v2590_v6  ;;  %v1876_v8 = vadd.f32 %v1875_v12, %v1563_v50  ;;  %v1945_v17 = vadd.f32 %v1944_v53, %v1564_v9  ;;  %v1462_v50 = vmul.f32 %v2346_v19, %v2346_v19  ;;  %v1458_v12 = vmul.f32 %v2337_v11, %v2337_v11 }
 0x17a   :  { %490 = vmatmul.f32.gmra.mxu0 %v260_v51  ;;  %699 = vmatmul.f32.gmra.mxu1 %v260_v51  ;;  %v1181_v53 = vadd.f32 %v2344_v18, %v2335_v10  ;;  %v261_v9 = vmax.f32 %v197_v13, 0.0  ;;  %v130_v6 = vmul.f32 %v2517_v44, %v62_v35  ;;  %v1713_v11 = vadd.f32 %v1461_v16, %v1457_v1 }
 0x17b   :  { %908 = vmatmul.f32.gmra.mxu2 %v260_v51  ;;  %1117 = vmatmul.f32.gmra.mxu3 %v260_v51  ;;  %v1782_v18 = vadd.f32 %v1462_v50, %v1458_v12  ;;  %v1470_v13 = vmul.f32 %v2364_v47, %v2364_v47 }
 0x17c   :  { %v1182_v19 = vadd.f32 %v1181_v53, %v2353_v32  ;;  %v1252_v32 = vadd.f32 %v1251_v26, %v2364_v47  ;;  %v1477_v47 = vmul.f32 %v2380_v14, %v2380_v14  ;;  %v1478_v26 = vmul.f32 %v2382_v15, %v2382_v15 }
 0x17d   :  { %v131_v53 = vmul.f32 %v2517_v44, %v63_v33 }
 0x17e   :  { %v861_v51 = vpop.f32.mrf.mxu2  ;;  %v1070_v52 = vpop.f32.mrf.mxu3  ;;  %v1183_v1 = vadd.f32 %v1182_v19, %v2362_v46  ;;  %v1253_v46 = vadd.f32 %v1252_v32, %v2373_v63 }
 0x17f   :  { %v1345_v34 = vadd.f32 %v1344_v58, %v861_v51  ;;  %v1567_v37 = vmul.f32 %v861_v51, %v861_v51  ;;  %v1414_v0 = vadd.f32 %v1413_v45, %v1070_v52  ;;  %v1568_v59 = vmul.f32 %v1070_v52, %v1070_v52  ;;  %v2613_v27 = vpop.f32.mrf.mxu0  ;;  %v2615_v10 = vpop.f32.mrf.mxu1 }
 0x180   :  { %v1714_v45 = vadd.f32 %v1713_v11, %v1465_v39  ;;  %v198_v51 = vadd.f32 %v2527_v7, %v130_v6  ;;  %v1783_v52 = vadd.f32 %v1782_v18, %v1466_v36  ;;  %v1184_v6 = vadd.f32 %v1183_v1, %v2371_v62 }
 0x181   :  { %v1877_v58 = vadd.f32 %v1876_v8, %v1567_v37  ;;  %v1946_v35 = vadd.f32 %v1945_v17, %v1568_v59  ;;  %v1473_v37 = vmul.f32 %v2371_v62, %v2371_v62  ;;  %v1474_v59 = vmul.f32 %v2373_v63, %v2373_v63 }
 0x182   :  { %493 = vmatmul.f32.gmra.mxu0 %v261_v9  ;;  %702 = vmatmul.f32.gmra.mxu1 %v261_v9  ;;  %v1715_v8 = vadd.f32 %v1714_v45, %v1469_v55  ;;  %v1784_v17 = vadd.f32 %v1783_v52, %v1470_v13  ;;  %v262_v12 = vmax.f32 %v198_v51, 0.0  ;;  %v1185_v18 = vadd.f32 %v1184_v6, %v2380_v14 }
 0x183   :  { %911 = vmatmul.f32.gmra.mxu2 %v261_v9  ;;  %1120 = vmatmul.f32.gmra.mxu3 %v261_v9  ;;  %v1254_v19 = vadd.f32 %v1253_v46, %v2382_v15  ;;  %v1481_v13 = vmul.f32 %v2389_v30, %v2389_v30  ;;  %v1482_v45 = vmul.f32 %v2391_v31, %v2391_v31  ;;  %v64_v15 = vld [vmem:[%s3074_s0 + $0x178] sm:$0xff] }
 0x184   :  { %v1716_v63 = vadd.f32 %v1715_v8, %v1473_v37  ;;  %v1785_v11 = vadd.f32 %v1784_v17, %v1474_v59  ;;  %v199_v52 = vadd.f32 %v2527_v7, %v131_v53  ;;  %v1186_v32 = vadd.f32 %v1185_v18, %v2389_v30 }
 0x185   :  { %v1255_v14 = vadd.f32 %v1254_v19, %v2391_v31  ;;  %v1489_v31 = vmul.f32 %v2407_v2, %v2407_v2  ;;  %v1490_v8 = vmul.f32 %v2409_v3, %v2409_v3  ;;  %v1494_v18 = vmul.f32 %v2418_v23, %v2418_v23 }
 0x186   :  { %v864_v16 = vpop.f32.mrf.mxu2  ;;  %v1073_v50 = vpop.f32.mrf.mxu3  ;;  %v1786_v1 = vadd.f32 %v1785_v11, %v1478_v26  ;;  %v1187_v59 = vadd.f32 %v1186_v32, %v2398_v48  ;;  %v263_v46 = vmax.f32 %v199_v52, 0.0  ;;  %v1493_v11 = vmul.f32 %v2416_v22, %v2416_v22 }
 0x187   :  { %v1346_v38 = vadd.f32 %v1345_v34, %v864_v16  ;;  %v1571_v39 = vmul.f32 %v864_v16, %v864_v16  ;;  %v1415_v36 = vadd.f32 %v1414_v0, %v1073_v50  ;;  %v1572_v55 = vmul.f32 %v1073_v50, %v1073_v50  ;;  %v2640_v9 = vpop.f32.mrf.mxu0  ;;  %v2642_v62 = vpop.f32.mrf.mxu1 }
 0x188   :  { %v1717_v0 = vadd.f32 %v1716_v63, %v1477_v47  ;;  %v1787_v37 = vadd.f32 %v1786_v1, %v1482_v45  ;;  %v1256_v30 = vadd.f32 %v1255_v14, %v2400_v49  ;;  %v132_v47 = vmul.f32 %v2517_v44, %v64_v15 }
 0x189   :  { %v1878_v34 = vadd.f32 %v1877_v58, %v1571_v39  ;;  %v1947_v51 = vadd.f32 %v1946_v35, %v1572_v55  ;;  %v1485_v58 = vmul.f32 %v2398_v48, %v2398_v48  ;;  %v1486_v35 = vmul.f32 %v2400_v49, %v2400_v49 }
 0x18a   :  { %496 = vmatmul.f32.gmra.mxu0 %v262_v12  ;;  %705 = vmatmul.f32.gmra.mxu1 %v262_v12  ;;  %v1718_v33 = vadd.f32 %v1717_v0, %v1481_v13  ;;  %v1188_v55 = vadd.f32 %v1187_v59, %v2407_v2  ;;  %v1257_v63 = vadd.f32 %v1256_v30, %v2409_v3  ;;  %v65_v3 = vld [vmem:[%s3074_s0 + $0x180] sm:$0xff] }
 0x18b   :  { %914 = vmatmul.f32.gmra.mxu2 %v262_v12  ;;  %1123 = vmatmul.f32.gmra.mxu3 %v262_v12  ;;  %v1788_v39 = vadd.f32 %v1787_v37, %v1486_v35  ;;  %v200_v13 = vadd.f32 %v2527_v7, %v132_v47  ;;  %v1502_v14 = vmul.f32 %v2436_v61, %v2436_v61 }
 0x18c   :  { %v1719_v49 = vadd.f32 %v1718_v33, %v1485_v58  ;;  %v1189_v0 = vadd.f32 %v1188_v55, %v2416_v22  ;;  %v1258_v2 = vadd.f32 %v1257_v63, %v2418_v23  ;;  %v1501_v23 = vmul.f32 %v2434_v60, %v2434_v60 }
 0x18d   :  { %v1789_v45 = vadd.f32 %v1788_v39, %v1490_v8  ;;  %v264_v35 = vmax.f32 %v200_v13, 0.0  ;;  %v133_v33 = vmul.f32 %v2517_v44, %v65_v3  ;;  %v1505_v47 = vmul.f32 %v2443_v20, %v2443_v20 }
 0x18e   :  { %v867_v17 = vpop.f32.mrf.mxu2  ;;  %v1076_v6 = vpop.f32.mrf.mxu3  ;;  %v1190_v32 = vadd.f32 %v1189_v0, %v2425_v40  ;;  %v1259_v22 = vadd.f32 %v1258_v2, %v2427_v41  ;;  %v1509_v63 = vmul.f32 %v2452_v42, %v2452_v42 }
 0x18f   :  { %v1347_v26 = vadd.f32 %v1346_v38, %v867_v17  ;;  %v1575_v16 = vmul.f32 %v867_v17, %v867_v17  ;;  %v1416_v50 = vadd.f32 %v1415_v36, %v1076_v6  ;;  %v1576_v12 = vmul.f32 %v1076_v6, %v1076_v6  ;;  %v2667_v53 = vpop.f32.mrf.mxu0  ;;  %v2669_v48 = vpop.f32.mrf.mxu1 }
 0x190   :  { %v1720_v36 = vadd.f32 %v1719_v49, %v1489_v31  ;;  %v1790_v1 = vadd.f32 %v1789_v45, %v1494_v18  ;;  %v1191_v6 = vadd.f32 %v1190_v32, %v2434_v60  ;;  %v201_v49 = vadd.f32 %v2527_v7, %v133_v33 }
 0x191   :  { %v1879_v38 = vadd.f32 %v1878_v34, %v1575_v16  ;;  %v1948_v19 = vadd.f32 %v1947_v51, %v1576_v12  ;;  %v1497_v34 = vmul.f32 %v2425_v40, %v2425_v40  ;;  %v1498_v51 = vmul.f32 %v2427_v41, %v2427_v41 }
 0x192   :  { %499 = vmatmul.f32.gmra.mxu0 %v263_v46  ;;  %708 = vmatmul.f32.gmra.mxu1 %v263_v46  ;;  %v1721_v52 = vadd.f32 %v1720_v36, %v1493_v11  ;;  %v1506_v16 = vmul.f32 %v2445_v21, %v2445_v21  ;;  %v1192_v55 = vadd.f32 %v1191_v6, %v2443_v20  ;;  %v265_v0 = vmax.f32 %v201_v49, 0.0 }
 0x193   :  { %917 = vmatmul.f32.gmra.mxu2 %v263_v46  ;;  %1126 = vmatmul.f32.gmra.mxu3 %v263_v46  ;;  %v1791_v17 = vadd.f32 %v1790_v1, %v1498_v51  ;;  %v1260_v46 = vadd.f32 %v1259_v22, %v2436_v61  ;;  %v66_v61 = vld [vmem:[%s3074_s0 + $0x188] sm:$0xff]  ;;  %v1510_v11 = vmul.f32 %v2454_v43, %v2454_v43 }
 0x194   :  { %v1722_v41 = vadd.f32 %v1721_v52, %v1497_v34  ;;  %v1514_v36 = vmul.f32 %v2463_v5, %v2463_v5  ;;  %v134_v2 = vmul.f32 %v2517_v44, %v66_v61 }
 0x195   :  { %v1792_v39 = vadd.f32 %v1791_v17, %v1502_v14  ;;  %v1261_v60 = vadd.f32 %v1260_v46, %v2445_v21  ;;  %v1513_v21 = vmul.f32 %v2461_v4, %v2461_v4  ;;  %v1517_v14 = vmul.f32 %v2470_v28, %v2470_v28 }
 0x196   :  { %v870_v15 = vpop.f32.mrf.mxu2  ;;  %v1079_v58 = vpop.f32.mrf.mxu3 }
 0x197   :  { %v1348_v37 = vadd.f32 %v1347_v26, %v870_v15  ;;  %v1579_v59 = vmul.f32 %v870_v15, %v870_v15  ;;  %v1417_v30 = vadd.f32 %v1416_v50, %v1079_v58  ;;  %v1580_v31 = vmul.f32 %v1079_v58, %v1079_v58  ;;  %v2694_v8 = vpop.f32.mrf.mxu0  ;;  %v2696_v40 = vpop.f32.mrf.mxu1 }
 0x198   :  { %v1723_v50 = vadd.f32 %v1722_v41, %v1501_v23  ;;  %v1262_v20 = vadd.f32 %v1261_v60, %v2454_v43  ;;  %v1518_v15 = vmul.f32 %v2472_v29, %v2472_v29  ;;  %v1522_v41 = vmul.f32 %v2481_v57, %v2481_v57 }
 0x199   :  { %v1880_v26 = vadd.f32 %v1879_v38, %v1579_v59  ;;  %v1949_v12 = vadd.f32 %v1948_v19, %v1580_v31  ;;  %v1793_v38 = vadd.f32 %v1792_v39, %v1506_v16  ;;  %v1193_v19 = vadd.f32 %v1192_v55, %v2452_v42 }
 0x19a   :  { %502 = vmatmul.f32.gmra.mxu0 %v264_v35  ;;  %711 = vmatmul.f32.gmra.mxu1 %v264_v35  ;;  %v1724_v18 = vadd.f32 %v1723_v50, %v1505_v47  ;;  %v1263_v23 = vadd.f32 %v1262_v20, %v2463_v5  ;;  %v67_v5 = vld [vmem:[%s3074_s0 + $0x190] sm:$0xff]  ;;  %v1521_v31 = vmul.f32 %v2479_v56, %v2479_v56 }
 0x19b   :  { %920 = vmatmul.f32.gmra.mxu2 %v264_v35  ;;  %1129 = vmatmul.f32.gmra.mxu3 %v264_v35  ;;  %v1794_v32 = vadd.f32 %v1793_v38, %v1510_v11  ;;  %v1194_v22 = vadd.f32 %v1193_v19, %v2461_v4  ;;  %v1526_v47 = vmul.f32 %v2490_v25, %v2490_v25  ;;  %v3116_v19 = vld [vmem:[#allocation2_spill] sm:$0xff] }
 0x19c   :  { %v1725_v43 = vadd.f32 %v1724_v18, %v1509_v63  ;;  %v1264_v4 = vadd.f32 %v1263_v23, %v2472_v29  ;;  %v1525_v29 = vmul.f32 %v2488_v24, %v2488_v24  ;;  %v135_v50 = vmul.f32 %v2517_v44, %v67_v5  ;;  %v3119_v23 = vld [vmem:[#allocation5_spill] sm:$0xff] }
 0x19d   :  { %v1795_v59 = vadd.f32 %v1794_v32, %v1514_v36  ;;  %v1529_v38 = vmul.f32 %v2497_v54, %v2497_v54  ;;  %v1530_v20 = vmul.f32 %v3116_v19, %v3116_v19 }
 0x19e   :  { %v873_v13 = vpop.f32.mrf.mxu2  ;;  %v1082_v45 = vpop.f32.mrf.mxu3  ;;  %v1726_v33 = vadd.f32 %v1725_v43, %v1513_v21 }
 0x19f   :  { %v1349_v3 = vadd.f32 %v1348_v37, %v873_v13  ;;  %v1583_v34 = vmul.f32 %v873_v13, %v873_v13  ;;  %v1418_v51 = vadd.f32 %v1417_v30, %v1082_v45  ;;  %v1584_v52 = vmul.f32 %v1082_v45, %v1082_v45  ;;  %v2721_v1 = vpop.f32.mrf.mxu0  ;;  %v2723_v42 = vpop.f32.mrf.mxu1 }
 0x1a0   :  { %v202_v37 = vadd.f32 %v2527_v7, %v134_v2  ;;  %v1195_v30 = vadd.f32 %v1194_v22, %v2470_v28  ;;  %v1727_v17 = vadd.f32 %v1726_v33, %v1517_v14  ;;  %v1796_v6 = vadd.f32 %v1795_v59, %v1518_v15  ;;  %v3120_v15 = vld [vmem:[#allocation6_spill] sm:$0xff] }
 0x1a1   :  { %v1881_v58 = vadd.f32 %v1880_v26, %v1583_v34  ;;  %v1950_v35 = vadd.f32 %v1949_v12, %v1584_v52  ;;  %v1265_v28 = vadd.f32 %v1264_v4, %v2481_v57  ;;  %v203_v45 = vadd.f32 %v2527_v7, %v135_v50 }
 0x1a2   :  { %505 = vmatmul.f32.gmra.mxu0 %v265_v0  ;;  %714 = vmatmul.f32.gmra.mxu1 %v265_v0  ;;  %v1196_v46 = vadd.f32 %v1195_v30, %v2479_v56  ;;  %v266_v12 = vmax.f32 %v202_v37, 0.0  ;;  %v1728_v57 = vadd.f32 %v1727_v17, %v1521_v31  ;;  %v1797_v63 = vadd.f32 %v1796_v6, %v1522_v41 }
 0x1a3   :  { %923 = vmatmul.f32.gmra.mxu2 %v265_v0  ;;  %1132 = vmatmul.f32.gmra.mxu3 %v265_v0  ;;  %v1266_v18 = vadd.f32 %v1265_v28, %v2490_v25  ;;  %v68_v25 = vld [vmem:[%s3074_s0 + $0x198] sm:$0xff]  ;;  %v1537_v14 = vmul.f32 %v3119_v23, %v3119_v23  ;;  %v267_v37 = vmax.f32 %v203_v45, 0.0 }
 0x1a4   :  { %v1197_v11 = vadd.f32 %v1196_v46, %v2488_v24  ;;  %v1729_v13 = vadd.f32 %v1728_v57, %v1525_v29  ;;  %v1798_v0 = vadd.f32 %v1797_v63, %v1526_v47  ;;  %v136_v59 = vmul.f32 %v2517_v44, %v68_v25  ;;  %v3121_v47 = vld [vmem:[#allocation7_spill] sm:$0xff] }
 0x1a5   :  { %v1267_v24 = vadd.f32 %v1266_v18, %v3116_v19  ;;  %v3123_v18 = vld [vmem:[#allocation9_spill] sm:$0xff]  ;;  %v3124_v19 = vld [vmem:[#allocation10_spill] sm:$0xff] }
 0x1a6   :  { %v876_v16 = vpop.f32.mrf.mxu2  ;;  %v1085_v26 = vpop.f32.mrf.mxu3  ;;  %v1198_v2 = vadd.f32 %v1197_v11, %v2497_v54  ;;  %v1730_v43 = vadd.f32 %v1729_v13, %v1529_v38  ;;  %v1799_v32 = vadd.f32 %v1798_v0, %v1530_v20  ;;  %v69_v11 = vld [vmem:[%s3074_s0 + $0x1a0] sm:$0xff]  ;;  %v1545_v38 = vmul.f32 %v3123_v18, %v3123_v18  ;;  %v3125_v0 = vld [vmem:[#allocation11_spill] sm:$0xff] }
 0x1a7   :  { %v1350_v49 = vadd.f32 %v1349_v3, %v876_v16  ;;  %v1587_v39 = vmul.f32 %v876_v16, %v876_v16  ;;  %v1419_v55 = vadd.f32 %v1418_v51, %v1085_v26  ;;  %v1588_v60 = vmul.f32 %v1085_v26, %v1085_v26  ;;  %v2748_v61 = vpop.f32.mrf.mxu0  ;;  %v2750_v56 = vpop.f32.mrf.mxu1  ;;  %v3117_v3 = vld [vmem:[#allocation3_spill] sm:$0xff]  ;;  %v3118_v51 = vld [vmem:[#allocation4_spill] sm:$0xff] }
 0x1a8   :  { %v1533_v34 = vmul.f32 %v3117_v3, %v3117_v3  ;;  %v1534_v52 = vmul.f32 %v3118_v51, %v3118_v51  ;;  %v1199_v22 = vadd.f32 %v1198_v2, %v3117_v3  ;;  %v1268_v54 = vadd.f32 %v1267_v24, %v3118_v51  ;;  %v3122_v26 = vld [vmem:[#allocation8_spill] sm:$0xff] }
 0x1a9   :  { %v1882_v21 = vadd.f32 %v1881_v58, %v1587_v39  ;;  %v1951_v36 = vadd.f32 %v1950_v35, %v1588_v60  ;;  %v1538_v58 = vmul.f32 %v3120_v15, %v3120_v15  ;;  %v1541_v16 = vmul.f32 %v3121_v47, %v3121_v47  ;;  %v3126_v24 = vld [vmem:[#allocation12_spill] sm:$0xff] }
 0x1aa   :  { %508 = vmatmul.f32.gmra.mxu0 %v266_v12  ;;  %717 = vmatmul.f32.gmra.mxu1 %v266_v12  ;;  %v1731_v6 = vadd.f32 %v1730_v43, %v1533_v34  ;;  %v1800_v46 = vadd.f32 %v1799_v32, %v1534_v52  ;;  %v1200_v28 = vadd.f32 %v1199_v22, %v3119_v23 }
 0x1ab   :  { %926 = vmatmul.f32.gmra.mxu2 %v266_v12  ;;  %1135 = vmatmul.f32.gmra.mxu3 %v266_v12  ;;  %v1269_v29 = vadd.f32 %v1268_v54, %v3120_v15  ;;  %v1542_v12 = vmul.f32 %v3122_v26, %v3122_v26  ;;  %v1546_v20 = vmul.f32 %v3124_v19, %v3124_v19 }
 0x1ac   :  { %v1732_v39 = vadd.f32 %v1731_v6, %v1537_v14  ;;  %v1801_v60 = vadd.f32 %v1800_v46, %v1538_v58  ;;  %v1201_v57 = vadd.f32 %v1200_v28, %v3121_v47  ;;  %v1549_v2 = vmul.f32 %v3125_v0, %v3125_v0 }
 0x1ad   :  { %v1270_v63 = vadd.f32 %v1269_v29, %v3122_v26  ;;  %v1550_v25 = vmul.f32 %v3126_v24, %v3126_v24  ;;  %v137_v52 = vmul.f32 %v2517_v44, %v69_v11  ;;  %v3129_v26 = vld [vmem:[#allocation15_spill] sm:$0xff] }
 0x1ae   :  { %v879_v35 = vpop.f32.mrf.mxu2  ;;  %v1088_v33 = vpop.f32.mrf.mxu3  ;;  %v1202_v13 = vadd.f32 %v1201_v57, %v3123_v18  ;;  %v3132_v18 = vld [vmem:[#allocation18_spill] sm:$0xff] }
 0x1af   :  { %v1351_v30 = vadd.f32 %v1350_v49, %v879_v35  ;;  %v1591_v4 = vmul.f32 %v879_v35, %v879_v35  ;;  %v1420_v5 = vadd.f32 %v1419_v55, %v1088_v33  ;;  %v1592_v31 = vmul.f32 %v1088_v33, %v1088_v33  ;;  %v2775_v41 = vpop.f32.mrf.mxu0  ;;  %v2777_v17 = vpop.f32.mrf.mxu1 }
 0x1b0   :  { %v204_v55 = vadd.f32 %v2527_v7, %v136_v59  ;;  %v1271_v45 = vadd.f32 %v1270_v63, %v3124_v19  ;;  %v1203_v35 = vadd.f32 %v1202_v13, %v3125_v0  ;;  %v205_v46 = vadd.f32 %v2527_v7, %v137_v52  ;;  %v3131_v63 = vld [vmem:[#allocation17_spill] sm:$0xff] }
 0x1b1   :  { %v1883_v50 = vadd.f32 %v1882_v21, %v1591_v4  ;;  %v1952_v49 = vadd.f32 %v1951_v36, %v1592_v31  ;;  %v1733_v21 = vadd.f32 %v1732_v39, %v1541_v16  ;;  %v1802_v36 = vadd.f32 %v1801_v60, %v1542_v12  ;;  %v3128_v4 = vld [vmem:[#allocation14_spill] sm:$0xff]  ;;  %v70_v16 = vld [vmem:[%s3074_s0 + $0x1a8] sm:$0xff] }
 0x1b2   :  { %511 = vmatmul.f32.gmra.mxu0 %v267_v37  ;;  %720 = vmatmul.f32.gmra.mxu1 %v267_v37  ;;  %v268_v51 = vmax.f32 %v204_v55, 0.0  ;;  %v1272_v33 = vadd.f32 %v1271_v45, %v3126_v24  ;;  %v1554_v31 = vmul.f32 %v3128_v4, %v3128_v4  ;;  %v1557_v12 = vmul.f32 %v3129_v26, %v3129_v26 }
 0x1b3   :  { %929 = vmatmul.f32.gmra.mxu2 %v267_v37  ;;  %1138 = vmatmul.f32.gmra.mxu3 %v267_v37  ;;  %v1734_v15 = vadd.f32 %v1733_v21, %v1545_v38  ;;  %v1803_v58 = vadd.f32 %v1802_v36, %v1546_v20  ;;  %v3127_v37 = vld [vmem:[#allocation13_spill] sm:$0xff]  ;;  %v1561_v11 = vmul.f32 %v3131_v63, %v3131_v63  ;;  %v269_v21 = vmax.f32 %v205_v46, 0.0 }
 0x1b4   :  { %v1553_v59 = vmul.f32 %v3127_v37, %v3127_v37  ;;  %v1204_v29 = vadd.f32 %v1203_v35, %v3127_v37  ;;  %v1273_v47 = vadd.f32 %v1272_v33, %v3128_v4  ;;  %v1562_v38 = vmul.f32 %v3132_v18, %v3132_v18 }
 0x1b5   :  { %v1804_v28 = vadd.f32 %v1803_v58, %v1550_v25  ;;  %v138_v36 = vmul.f32 %v2517_v44, %v70_v16  ;;  %v1574_v16 = vmul.f32 %v2642_v62, %v2642_v62 }
 0x1b6   :  { %v882_v3 = vpop.f32.mrf.mxu2  ;;  %v1091_v34 = vpop.f32.mrf.mxu3  ;;  %v1205_v60 = vadd.f32 %v1204_v29, %v3129_v26 }
 0x1b7   :  { %v1352_v43 = vadd.f32 %v1351_v30, %v882_v3  ;;  %v1595_v32 = vmul.f32 %v882_v3, %v882_v3  ;;  %v1421_v22 = vadd.f32 %v1420_v5, %v1091_v34  ;;  %v1596_v54 = vmul.f32 %v1091_v34, %v1091_v34  ;;  %v2802_v23 = vpop.f32.mrf.mxu0  ;;  %v2804_v14 = vpop.f32.mrf.mxu1 }
 0x1b8   :  { %v1735_v5 = vadd.f32 %v1734_v15, %v1549_v2  ;;  %v1805_v55 = vadd.f32 %v1804_v28, %v1554_v31  ;;  %v3134_v15 = vld [vmem:[#allocation20_spill] sm:$0xff]  ;;  %v206_v33 = vadd.f32 %v2527_v7, %v138_v36 }
 0x1b9   :  { %v1884_v30 = vadd.f32 %v1883_v50, %v1595_v32  ;;  %v1953_v6 = vadd.f32 %v1952_v49, %v1596_v54  ;;  %v3130_v50 = vld [vmem:[#allocation16_spill] sm:$0xff]  ;;  %v3133_v32 = vld [vmem:[#allocation19_spill] sm:$0xff]  ;;  %v1566_v58 = vmul.f32 %v3134_v15, %v3134_v15 }
 0x1ba   :  { %514 = vmatmul.f32.gmra.mxu0 %v268_v51  ;;  %723 = vmatmul.f32.gmra.mxu1 %v268_v51  ;;  %v1558_v49 = vmul.f32 %v3130_v50, %v3130_v50  ;;  %v1736_v39 = vadd.f32 %v1735_v5, %v1553_v59  ;;  %v1274_v57 = vadd.f32 %v1273_v47, %v3130_v50  ;;  %v71_v31 = vld [vmem:[%s3074_s0 + $0x1b0] sm:$0xff]  ;;  %v270_v50 = vmax.f32 %v206_v33, 0.0 }
 0x1bb   :  { %932 = vmatmul.f32.gmra.mxu2 %v268_v51  ;;  %1141 = vmatmul.f32.gmra.mxu3 %v268_v51  ;;  %v1206_v51 = vadd.f32 %v1205_v60, %v3131_v63  ;;  %v1565_v54 = vmul.f32 %v3133_v32, %v3133_v32  ;;  %v1573_v47 = vmul.f32 %v2640_v9, %v2640_v9 }
 0x1bc   :  { %v1737_v3 = vadd.f32 %v1736_v39, %v1557_v12  ;;  %v1806_v34 = vadd.f32 %v1805_v55, %v1558_v49  ;;  %v1275_v52 = vadd.f32 %v1274_v57, %v3132_v18  ;;  %v139_v49 = vmul.f32 %v2517_v44, %v71_v31 }
 0x1bd   :  { %v1207_v59 = vadd.f32 %v1206_v51, %v3133_v32  ;;  %v1578_v44 = vmul.f32 %v2669_v48, %v2669_v48 }
 0x1be   :  { %v885_v19 = vpop.f32.mrf.mxu2  ;;  %v1094_v20 = vpop.f32.mrf.mxu3  ;;  %v1807_v37 = vadd.f32 %v1806_v34, %v1562_v38  ;;  %v1276_v4 = vadd.f32 %v1275_v52, %v3134_v15  ;;  %v1586_v52 = vmul.f32 %v2723_v42, %v2723_v42 }
 0x1bf   :  { %v1353_v13 = vadd.f32 %v1352_v43, %v885_v19  ;;  %v1599_v45 = vmul.f32 %v885_v19, %v885_v19  ;;  %v1422_v0 = vadd.f32 %v1421_v22, %v1094_v20  ;;  %v1600_v2 = vmul.f32 %v1094_v20, %v1094_v20  ;;  %v2829_v24 = vpop.f32.mrf.mxu0  ;;  %v2831_v25 = vpop.f32.mrf.mxu1 }
 0x1c0   :  { %v1738_v22 = vadd.f32 %v1737_v3, %v1561_v11  ;;  %v1808_v46 = vadd.f32 %v1807_v37, %v1566_v58  ;;  %v1208_v28 = vadd.f32 %v1207_v59, %v2613_v27  ;;  %v1277_v29 = vadd.f32 %v1276_v4, %v2615_v10  ;;  %v2885_v58 = vld [vmem:[%s3075_s1] ss:$0 sm:$0xff] }
 0x1c1   :  { %v1885_v43 = vadd.f32 %v1884_v30, %v1599_v45  ;;  %v1954_v35 = vadd.f32 %v1953_v6, %v1600_v2  ;;  %v1569_v30 = vmul.f32 %v2613_v27, %v2613_v27  ;;  %v1570_v6 = vmul.f32 %v2615_v10, %v2615_v10 }
 0x1c2   :  { %517 = vmatmul.f32.gmra.mxu0 %v269_v21  ;;  %726 = vmatmul.f32.gmra.mxu1 %v269_v21  ;;  %v1739_v5 = vadd.f32 %v1738_v22, %v1565_v54  ;;  %v1209_v18 = vadd.f32 %v1208_v28, %v2640_v9  ;;  %v1278_v38 = vadd.f32 %v1277_v29, %v2642_v62  ;;  %v72_v62 = vld [vmem:[%s3074_s0 + $0x1b8] sm:$0xff] }
 0x1c3   :  { %935 = vmatmul.f32.gmra.mxu2 %v269_v21  ;;  %1144 = vmatmul.f32.gmra.mxu3 %v269_v21  ;;  %v1809_v11 = vadd.f32 %v1808_v46, %v1570_v6  ;;  %v1577_v19 = vmul.f32 %v2667_v53, %v2667_v53  ;;  %v1581_v2 = vmul.f32 %v2694_v8, %v2694_v8 }
 0x1c4   :  { %v1740_v10 = vadd.f32 %v1739_v5, %v1569_v30  ;;  %v1279_v9 = vadd.f32 %v1278_v38, %v2669_v48  ;;  %v1582_v3 = vmul.f32 %v2696_v40, %v2696_v40  ;;  %v1585_v48 = vmul.f32 %v2721_v1, %v2721_v1 }
 0x1c5   :  { %v1810_v45 = vadd.f32 %v1809_v11, %v1574_v16  ;;  %v1589_v30 = vmul.f32 %v2748_v61, %v2748_v61  ;;  %v1590_v5 = vmul.f32 %v2750_v56, %v2750_v56 }
 0x1c6   :  { %v888_v26 = vpop.f32.mrf.mxu2  ;;  %v1097_v12 = vpop.f32.mrf.mxu3  ;;  %v1741_v36 = vadd.f32 %v1740_v10, %v1573_v47  ;;  %v1593_v47 = vmul.f32 %v2775_v41, %v2775_v41 }
 0x1c7   :  { %v1354_v39 = vadd.f32 %v1353_v13, %v888_v26  ;;  %v1603_v55 = vmul.f32 %v888_v26, %v888_v26  ;;  %v1423_v60 = vadd.f32 %v1422_v0, %v1097_v12  ;;  %v1604_v57 = vmul.f32 %v1097_v12, %v1097_v12  ;;  %v2856_v63 = vpop.f32.mrf.mxu0  ;;  %v2858_v27 = vpop.f32.mrf.mxu1 }
 0x1c8   :  { %v207_v13 = vadd.f32 %v2527_v7, %v139_v49  ;;  %v1210_v0 = vadd.f32 %v1209_v18, %v2667_v53  ;;  %v1742_v34 = vadd.f32 %v1741_v36, %v1577_v19  ;;  %v1811_v51 = vadd.f32 %v1810_v45, %v1578_v44 }
 0x1c9   :  { %v1886_v20 = vadd.f32 %v1885_v43, %v1603_v55  ;;  %v1955_v21 = vadd.f32 %v1954_v35, %v1604_v57  ;;  %v1280_v53 = vadd.f32 %v1279_v9, %v2696_v40  ;;  %v140_v43 = vmul.f32 %v2885_v58, %v72_v62 }
 0x1ca   :  { %520 = vmatmul.f32.gmra.mxu0 %v270_v50  ;;  %729 = vmatmul.f32.gmra.mxu1 %v270_v50  ;;  %v1211_v7 = vadd.f32 %v1210_v0, %v2694_v8  ;;  %v271_v15 = vmax.f32 %v207_v13, 0.0  ;;  %v1743_v59 = vadd.f32 %v1742_v34, %v1581_v2  ;;  %v1812_v4 = vadd.f32 %v1811_v51, %v1582_v3 }
 0x1cb   :  { %938 = vmatmul.f32.gmra.mxu2 %v270_v50  ;;  %1147 = vmatmul.f32.gmra.mxu3 %v270_v50  ;;  %v1281_v6 = vadd.f32 %v1280_v53, %v2723_v42  ;;  %v73_v42 = vld [vmem:[%s3074_s0 + $0x1c0] sm:$0xff]  ;;  %v1597_v18 = vmul.f32 %v2802_v23, %v2802_v23  ;;  %v1601_v62 = vmul.f32 %v2829_v24, %v2829_v24 }
 0x1cc   :  { %v1212_v31 = vadd.f32 %v1211_v7, %v2721_v1  ;;  %v1744_v29 = vadd.f32 %v1743_v59, %v1585_v48  ;;  %v2903_v1 = vld [vmem:[%s3076_s2] ss:$0 sm:$0xff]  ;;  %v1813_v26 = vadd.f32 %v1812_v4, %v1586_v52  ;;  %v141_v10 = vmul.f32 %v2885_v58, %v73_v42 }
 0x1cd   :  { %v208_v16 = vadd.f32 %v2903_v1, %v140_v43  ;;  %v1282_v50 = vadd.f32 %v1281_v6, %v2750_v56  ;;  %v1602_v2 = vmul.f32 %v2831_v25, %v2831_v25  ;;  %v1605_v53 = vmul.f32 %v2856_v63, %v2856_v63 }
 0x1ce   :  { %v891_v32 = vpop.f32.mrf.mxu2  ;;  %v1100_v54 = vpop.f32.mrf.mxu3  ;;  %v1213_v12 = vadd.f32 %v1212_v31, %v2748_v61  ;;  %v1745_v49 = vadd.f32 %v1744_v29, %v1589_v30  ;;  %v1814_v55 = vadd.f32 %v1813_v26, %v1590_v5  ;;  %v1598_v61 = vmul.f32 %v2804_v14, %v2804_v14 }
 0x1cf   :  { %v1355_v35 = vadd.f32 %v1354_v39, %v891_v32  ;;  %v1607_v8 = vmul.f32 %v891_v32, %v891_v32  ;;  %v1424_v22 = vadd.f32 %v1423_v60, %v1100_v54  ;;  %v1608_v40 = vmul.f32 %v1100_v54, %v1100_v54  ;;  %v2888_v33 = vpop.f32.mrf.mxu0  ;;  %v2890_v37 = vpop.f32.mrf.mxu1 }
 0x1d0   :  { %v1594_v39 = vmul.f32 %v2777_v17, %v2777_v17  ;;  %v1214_v60 = vadd.f32 %v1213_v12, %v2775_v41  ;;  %v1283_v57 = vadd.f32 %v1282_v50, %v2777_v17  ;;  %v1746_v11 = vadd.f32 %v1745_v49, %v1593_v47  ;;  %v74_v17 = vld [vmem:[%s3074_s0 + $0x1c8] sm:$0xff] }
 0x1d1   :  { %v1887_v46 = vadd.f32 %v1886_v20, %v1607_v8  ;;  %v1956_v28 = vadd.f32 %v1955_v21, %v1608_v40  ;;  %v272_v19 = vmax.f32 %v208_v16, 0.0  ;;  %v209_v51 = vadd.f32 %v2903_v1, %v141_v10 }
 0x1d2   :  { %523 = vmatmul.f32.gmra.mxu0 %v271_v15  ;;  %732 = vmatmul.f32.gmra.mxu1 %v271_v15  ;;  %v1815_v45 = vadd.f32 %v1814_v55, %v1594_v39  ;;  %v1215_v0 = vadd.f32 %v1214_v60, %v2802_v23  ;;  %v1284_v9 = vadd.f32 %v1283_v57, %v2804_v14  ;;  %v75_v55 = vld [vmem:[%s3074_s0 + $0x1d0] sm:$0xff] }
 0x1d3   :  { %941 = vmatmul.f32.gmra.mxu2 %v271_v15  ;;  %1150 = vmatmul.f32.gmra.mxu3 %v271_v15  ;;  %v1747_v7 = vadd.f32 %v1746_v11, %v1597_v18  ;;  %v142_v23 = vmul.f32 %v2885_v58, %v74_v17  ;;  %v1606_v54 = vmul.f32 %v2858_v27, %v2858_v27  ;;  %v273_v8 = vmax.f32 %v209_v51, 0.0 }
 0x1d4   :  { %v1816_v48 = vadd.f32 %v1815_v45, %v1598_v61  ;;  %v1216_v14 = vadd.f32 %v1215_v0, %v2829_v24  ;;  %v1285_v32 = vadd.f32 %v1284_v9, %v2831_v25  ;;  %v1610_v24 = vmul.f32 %v2890_v37, %v2890_v37 }
 0x1d5   :  { %v1748_v52 = vadd.f32 %v1747_v7, %v1601_v62  ;;  %v210_v25 = vadd.f32 %v2903_v1, %v142_v23 }
 0x1d6   :  { %v894_v56 = vpop.f32.mrf.mxu2  ;;  %v1103_v38 = vpop.f32.mrf.mxu3  ;;  %v1817_v15 = vadd.f32 %v1816_v48, %v1602_v2  ;;  %v1217_v43 = vadd.f32 %v1216_v14, %v2856_v63  ;;  %v1286_v40 = vadd.f32 %v1285_v32, %v2858_v27 }
 0x1d7   :  { %v1356_v44 = vadd.f32 %v1355_v35, %v894_v56  ;;  %v1611_v20 = vmul.f32 %v894_v56, %v894_v56  ;;  %v1425_v21 = vadd.f32 %v1424_v22, %v1103_v38  ;;  %v1612_v36 = vmul.f32 %v1103_v38, %v1103_v38  ;;  %v479_v13 = vpop.f32.mrf.mxu0  ;;  %v688_v41 = vpop.f32.mrf.mxu1 }
 0x1d8   :  { %v1609_v35 = vmul.f32 %v2888_v33, %v2888_v33  ;;  %v1749_v22 = vadd.f32 %v1748_v52, %v1605_v53  ;;  %v1218_v29 = vadd.f32 %v1217_v43, %v2888_v33  ;;  %v1613_v47 = vmul.f32 %v479_v13, %v479_v13  ;;  %v76_v53 = vld [vmem:[%s3074_s0 + $0x1d8] sm:$0xff] }
 0x1d9   :  { %v1888_v3 = vadd.f32 %v1887_v46, %v1611_v20  ;;  %v1957_v34 = vadd.f32 %v1956_v28, %v1612_v36  ;;  %v1818_v28 = vadd.f32 %v1817_v15, %v1606_v54  ;;  %v1614_v16 = vmul.f32 %v688_v41, %v688_v41 }
 0x1da   :  { %526 = vmatmul.f32.gmra.mxu0 %v272_v19  ;;  %735 = vmatmul.f32.gmra.mxu1 %v272_v19  ;;  %v1750_v42 = vadd.f32 %v1749_v22, %v1609_v35  ;;  %v1287_v27 = vadd.f32 %v1286_v40, %v2890_v37  ;;  %v1219_v60 = vadd.f32 %v1218_v29, %v479_v13  ;;  %v274_v11 = vmax.f32 %v210_v25, 0.0 }
 0x1db   :  { %944 = vmatmul.f32.gmra.mxu2 %v272_v19  ;;  %1153 = vmatmul.f32.gmra.mxu3 %v272_v19  ;;  %v1819_v50 = vadd.f32 %v1818_v28, %v1610_v24  ;;  %v143_v37 = vmul.f32 %v2885_v58, %v75_v55  ;;  %v144_v52 = vmul.f32 %v2885_v58, %v76_v53 }
 0x1dc   :  { %v1751_v33 = vadd.f32 %v1750_v42, %v1613_v47  ;;  %v1288_v57 = vadd.f32 %v1287_v27, %v688_v41 }
 0x1dd   :  { %v1820_v10 = vadd.f32 %v1819_v50, %v1614_v16  ;;  %v211_v7 = vadd.f32 %v2903_v1, %v143_v37  ;;  %v78_v37 = vld [vmem:[%s3074_s0 + $0x1e8] sm:$0xff] }
 0x1de   :  { %v897_v59 = vpop.f32.mrf.mxu2  ;;  %v1106_v4 = vpop.f32.mrf.mxu3 }
 0x1df   :  { %v1357_v31 = vadd.f32 %v1356_v44, %v897_v59  ;;  %v1615_v30 = vmul.f32 %v897_v59, %v897_v59  ;;  %v1426_v6 = vadd.f32 %v1425_v21, %v1106_v4  ;;  %v1616_v5 = vmul.f32 %v1106_v4, %v1106_v4  ;;  %v482_v46 = vpop.f32.mrf.mxu0  ;;  %v691_v63 = vpop.f32.mrf.mxu1 }
 0x1e0   :  { %v1617_v49 = vmul.f32 %v482_v46, %v482_v46  ;;  %v1618_v39 = vmul.f32 %v691_v63, %v691_v63  ;;  %v1220_v18 = vadd.f32 %v1219_v60, %v482_v46  ;;  %v1289_v56 = vadd.f32 %v1288_v57, %v691_v63 }
 0x1e1   :  { %v1889_v26 = vadd.f32 %v1888_v3, %v1615_v30  ;;  %v1958_v12 = vadd.f32 %v1957_v34, %v1616_v5  ;;  %v275_v14 = vmax.f32 %v211_v7, 0.0  ;;  %v77_v5 = vld [vmem:[%s3074_s0 + $0x1e0] sm:$0xff] }
 0x1e2   :  { %529 = vmatmul.f32.gmra.mxu0 %v273_v8  ;;  %738 = vmatmul.f32.gmra.mxu1 %v273_v8  ;;  %v1752_v61 = vadd.f32 %v1751_v33, %v1617_v49  ;;  %v1821_v38 = vadd.f32 %v1820_v10, %v1618_v39  ;;  %v145_v29 = vmul.f32 %v2885_v58, %v77_v5 }
 0x1e3   :  { %947 = vmatmul.f32.gmra.mxu2 %v273_v8  ;;  %1156 = vmatmul.f32.gmra.mxu3 %v273_v8 }
 0x1e6   :  { %v900_v19 = vpop.f32.mrf.mxu2  ;;  %v1109_v44 = vpop.f32.mrf.mxu3 }
 0x1e7   :  { %v1358_v20 = vadd.f32 %v1357_v31, %v900_v19  ;;  %v1619_v21 = vmul.f32 %v900_v19, %v900_v19  ;;  %v1427_v36 = vadd.f32 %v1426_v6, %v1109_v44  ;;  %v1620_v17 = vmul.f32 %v1109_v44, %v1109_v44  ;;  %v485_v45 = vpop.f32.mrf.mxu0  ;;  %v694_v0 = vpop.f32.mrf.mxu1 }
 0x1e8   :  { %v1221_v9 = vadd.f32 %v1220_v18, %v485_v45  ;;  %v1621_v13 = vmul.f32 %v485_v45, %v485_v45  ;;  %v1290_v62 = vadd.f32 %v1289_v56, %v694_v0  ;;  %v1622_v41 = vmul.f32 %v694_v0, %v694_v0 }
 0x1e9   :  { %v1890_v2 = vadd.f32 %v1889_v26, %v1619_v21  ;;  %v1959_v3 = vadd.f32 %v1958_v12, %v1620_v17  ;;  %v212_v6 = vadd.f32 %v2903_v1, %v144_v52 }
 0x1ea   :  { %v1753_v34 = vadd.f32 %v1752_v61, %v1621_v13  ;;  %v1822_v51 = vadd.f32 %v1821_v38, %v1622_v41  ;;  %532 = vmatmul.f32.gmra.mxu0 %v274_v11  ;;  %741 = vmatmul.f32.gmra.mxu1 %v274_v11  ;;  %v146_v38 = vmul.f32 %v2885_v58, %v78_v37 }
 0x1eb   :  { %950 = vmatmul.f32.gmra.mxu2 %v274_v11  ;;  %1159 = vmatmul.f32.gmra.mxu3 %v274_v11  ;;  %v276_v28 = vmax.f32 %v212_v6, 0.0  ;;  %v213_v11 = vadd.f32 %v2903_v1, %v145_v29 }
 0x1ed   :  { %v277_v56 = vmax.f32 %v213_v11, 0.0 }
 0x1ee   :  { %v903_v23 = vpop.f32.mrf.mxu2  ;;  %v1112_v48 = vpop.f32.mrf.mxu3 }
 0x1ef   :  { %v1359_v32 = vadd.f32 %v1358_v20, %v903_v23  ;;  %v1623_v54 = vmul.f32 %v903_v23, %v903_v23  ;;  %v1428_v15 = vadd.f32 %v1427_v36, %v1112_v48  ;;  %v1624_v43 = vmul.f32 %v1112_v48, %v1112_v48  ;;  %v488_v35 = vpop.f32.mrf.mxu0  ;;  %v697_v8 = vpop.f32.mrf.mxu1 }
 0x1f0   :  { %v1222_v22 = vadd.f32 %v1221_v9, %v488_v35  ;;  %v1625_v40 = vmul.f32 %v488_v35, %v488_v35  ;;  %v1291_v24 = vadd.f32 %v1290_v62, %v697_v8  ;;  %v1626_v59 = vmul.f32 %v697_v8, %v697_v8 }
 0x1f1   :  { %v1891_v4 = vadd.f32 %v1890_v2, %v1623_v54  ;;  %v1960_v25 = vadd.f32 %v1959_v3, %v1624_v43 }
 0x1f2   :  { %v1754_v31 = vadd.f32 %v1753_v34, %v1625_v40  ;;  %v1823_v30 = vadd.f32 %v1822_v51, %v1626_v59  ;;  %535 = vmatmul.f32.gmra.mxu0 %v275_v14  ;;  %744 = vmatmul.f32.gmra.mxu1 %v275_v14  ;;  %v214_v34 = vadd.f32 %v2903_v1, %v146_v38  ;;  %v79_v51 = vld [vmem:[%s3074_s0 + $0x1f0] sm:$0xff] }
 0x1f3   :  { %953 = vmatmul.f32.gmra.mxu2 %v275_v14  ;;  %1162 = vmatmul.f32.gmra.mxu3 %v275_v14  ;;  %v147_v48 = vmul.f32 %v2885_v58, %v79_v51 }
 0x1f4   :  { %v278_v23 = vmax.f32 %v214_v34, 0.0 }
 0x1f6   :  { %v906_v46 = vpop.f32.mrf.mxu2  ;;  %v1115_v63 = vpop.f32.mrf.mxu3 }
 0x1f7   :  { %v1360_v47 = vadd.f32 %v1359_v32, %v906_v46  ;;  %v1627_v16 = vmul.f32 %v906_v46, %v906_v46  ;;  %v1429_v42 = vadd.f32 %v1428_v15, %v1115_v63  ;;  %v1628_v27 = vmul.f32 %v1115_v63, %v1115_v63  ;;  %v491_v26 = vpop.f32.mrf.mxu0  ;;  %v700_v12 = vpop.f32.mrf.mxu1 }
 0x1f8   :  { %v1223_v50 = vadd.f32 %v1222_v22, %v491_v26  ;;  %v1629_v49 = vmul.f32 %v491_v26, %v491_v26  ;;  %v1292_v39 = vadd.f32 %v1291_v24, %v700_v12  ;;  %v1630_v55 = vmul.f32 %v700_v12, %v700_v12 }
 0x1f9   :  { %v1892_v60 = vadd.f32 %v1891_v4, %v1627_v16  ;;  %v1961_v33 = vadd.f32 %v1960_v25, %v1628_v27 }
 0x1fa   :  { %v1755_v57 = vadd.f32 %v1754_v31, %v1629_v49  ;;  %v1824_v10 = vadd.f32 %v1823_v30, %v1630_v55  ;;  %538 = vmatmul.f32.gmra.mxu0 %v276_v28  ;;  %747 = vmatmul.f32.gmra.mxu1 %v276_v28  ;;  %v215_v31 = vadd.f32 %v2903_v1, %v147_v48  ;;  %v80_v30 = vld [vmem:[%s3074_s0 + $0x1f8] sm:$0xff] }
 0x1fb   :  { %956 = vmatmul.f32.gmra.mxu2 %v276_v28  ;;  %1165 = vmatmul.f32.gmra.mxu3 %v276_v28  ;;  %v148_v63 = vmul.f32 %v2885_v58, %v80_v30 }
 0x1fc   :  { %v279_v46 = vmax.f32 %v215_v31, 0.0 }
 0x1fe   :  { %v909_v18 = vpop.f32.mrf.mxu2  ;;  %v1118_v61 = vpop.f32.mrf.mxu3 }
 0x1ff   :  { %v1361_v19 = vadd.f32 %v1360_v47, %v909_v18  ;;  %v1631_v44 = vmul.f32 %v909_v18, %v909_v18  ;;  %v1430_v20 = vadd.f32 %v1429_v42, %v1118_v61  ;;  %v1632_v21 = vmul.f32 %v1118_v61, %v1118_v61  ;;  %v494_v36 = vpop.f32.mrf.mxu0  ;;  %v703_v17 = vpop.f32.mrf.mxu1 }
 0x200   :  { %v1224_v45 = vadd.f32 %v1223_v50, %v494_v36  ;;  %v1633_v0 = vmul.f32 %v494_v36, %v494_v36  ;;  %v1293_v9 = vadd.f32 %v1292_v39, %v703_v17  ;;  %v1634_v13 = vmul.f32 %v703_v17, %v703_v17 }
 0x201   :  { %v1893_v62 = vadd.f32 %v1892_v60, %v1631_v44  ;;  %v1962_v41 = vadd.f32 %v1961_v33, %v1632_v21 }
 0x202   :  { %v1756_v2 = vadd.f32 %v1755_v57, %v1633_v0  ;;  %v1825_v3 = vadd.f32 %v1824_v10, %v1634_v13  ;;  %541 = vmatmul.f32.gmra.mxu0 %v277_v56  ;;  %750 = vmatmul.f32.gmra.mxu1 %v277_v56  ;;  %v216_v57 = vadd.f32 %v2903_v1, %v148_v63 }
 0x203   :  { %959 = vmatmul.f32.gmra.mxu2 %v277_v56  ;;  %1168 = vmatmul.f32.gmra.mxu3 %v277_v56 }
 0x204   :  { %v280_v11 = vmax.f32 %v216_v57, 0.0 }
 0x206   :  { %v912_v7 = vpop.f32.mrf.mxu2  ;;  %v1121_v53 = vpop.f32.mrf.mxu3 }
 0x207   :  { %v1362_v14 = vadd.f32 %v1361_v19, %v912_v7  ;;  %v1635_v52 = vmul.f32 %v912_v7, %v912_v7  ;;  %v1431_v32 = vadd.f32 %v1430_v20, %v1121_v53  ;;  %v1636_v54 = vmul.f32 %v1121_v53, %v1121_v53  ;;  %v497_v15 = vpop.f32.mrf.mxu0  ;;  %v706_v43 = vpop.f32.mrf.mxu1 }
 0x208   :  { %v1225_v35 = vadd.f32 %v1224_v45, %v497_v15  ;;  %v1637_v8 = vmul.f32 %v497_v15, %v497_v15  ;;  %v1294_v22 = vadd.f32 %v1293_v9, %v706_v43  ;;  %v1638_v40 = vmul.f32 %v706_v43, %v706_v43 }
 0x209   :  { %v1894_v24 = vadd.f32 %v1893_v62, %v1635_v52  ;;  %v1963_v59 = vadd.f32 %v1962_v41, %v1636_v54 }
 0x20a   :  { %v1757_v4 = vadd.f32 %v1756_v2, %v1637_v8  ;;  %v1826_v25 = vadd.f32 %v1825_v3, %v1638_v40  ;;  %544 = vmatmul.f32.gmra.mxu0 %v278_v23  ;;  %753 = vmatmul.f32.gmra.mxu1 %v278_v23 }
 0x20b   :  { %962 = vmatmul.f32.gmra.mxu2 %v278_v23  ;;  %1171 = vmatmul.f32.gmra.mxu3 %v278_v23 }
 0x20e   :  { %v915_v6 = vpop.f32.mrf.mxu2  ;;  %v1124_v5 = vpop.f32.mrf.mxu3 }
 0x20f   :  { %v1363_v28 = vadd.f32 %v1362_v14, %v915_v6  ;;  %v1639_v29 = vmul.f32 %v915_v6, %v915_v6  ;;  %v1432_v47 = vadd.f32 %v1431_v32, %v1124_v5  ;;  %v1640_v16 = vmul.f32 %v1124_v5, %v1124_v5  ;;  %v500_v42 = vpop.f32.mrf.mxu0  ;;  %v709_v27 = vpop.f32.mrf.mxu1 }
 0x210   :  { %v1226_v26 = vadd.f32 %v1225_v35, %v500_v42  ;;  %v1641_v12 = vmul.f32 %v500_v42, %v500_v42  ;;  %v1295_v50 = vadd.f32 %v1294_v22, %v709_v27  ;;  %v1642_v49 = vmul.f32 %v709_v27, %v709_v27 }
 0x211   :  { %v1895_v39 = vadd.f32 %v1894_v24, %v1639_v29  ;;  %v1964_v55 = vadd.f32 %v1963_v59, %v1640_v16 }
 0x212   :  { %v1758_v60 = vadd.f32 %v1757_v4, %v1641_v12  ;;  %v1827_v33 = vadd.f32 %v1826_v25, %v1642_v49  ;;  %547 = vmatmul.f32.gmra.mxu0 %v279_v46  ;;  %756 = vmatmul.f32.gmra.mxu1 %v279_v46 }
 0x213   :  { %965 = vmatmul.f32.gmra.mxu2 %v279_v46  ;;  %1174 = vmatmul.f32.gmra.mxu3 %v279_v46 }
 0x216   :  { %v918_v58 = vpop.f32.mrf.mxu2  ;;  %v1127_v10 = vpop.f32.mrf.mxu3 }
 0x217   :  { %v1364_v37 = vadd.f32 %v1363_v28, %v918_v58  ;;  %v1643_v18 = vmul.f32 %v918_v58, %v918_v58  ;;  %v1433_v61 = vadd.f32 %v1432_v47, %v1127_v10  ;;  %v1644_v56 = vmul.f32 %v1127_v10, %v1127_v10  ;;  %v503_v38 = vpop.f32.mrf.mxu0  ;;  %v712_v19 = vpop.f32.mrf.mxu1 }
 0x218   :  { %v1227_v44 = vadd.f32 %v1226_v26, %v503_v38  ;;  %v1645_v20 = vmul.f32 %v503_v38, %v503_v38  ;;  %v1296_v21 = vadd.f32 %v1295_v50, %v712_v19  ;;  %v1646_v36 = vmul.f32 %v712_v19, %v712_v19 }
 0x219   :  { %v1896_v17 = vadd.f32 %v1895_v39, %v1643_v18  ;;  %v1965_v45 = vadd.f32 %v1964_v55, %v1644_v56 }
 0x21a   :  { %v1759_v0 = vadd.f32 %v1758_v60, %v1645_v20  ;;  %v1828_v9 = vadd.f32 %v1827_v33, %v1646_v36  ;;  %550 = vmatmul.f32.gmra.mxu0 %v280_v11  ;;  %759 = vmatmul.f32.gmra.mxu1 %v280_v11 }
 0x21b   :  { %968 = vmatmul.f32.gmra.mxu2 %v280_v11  ;;  %1177 = vmatmul.f32.gmra.mxu3 %v280_v11 }
 0x21e   :  { %v921_v1 = vpop.f32.mrf.mxu2  ;;  %v1130_v13 = vpop.f32.mrf.mxu3 }
 0x21f   :  { %v1365_v62 = vadd.f32 %v1364_v37, %v921_v1  ;;  %v1647_v41 = vmul.f32 %v921_v1, %v921_v1  ;;  %v1434_v2 = vadd.f32 %v1433_v61, %v1130_v13  ;;  %v1648_v3 = vmul.f32 %v1130_v13, %v1130_v13  ;;  %v506_v34 = vpop.f32.mrf.mxu0  ;;  %v715_v51 = vpop.f32.mrf.mxu1 }
 0x220   :  { %v1228_v7 = vadd.f32 %v1227_v44, %v506_v34  ;;  %v1649_v53 = vmul.f32 %v506_v34, %v506_v34  ;;  %v1297_v23 = vadd.f32 %v1296_v21, %v715_v51  ;;  %v1650_v48 = vmul.f32 %v715_v51, %v715_v51 }
 0x221   :  { %v1897_v14 = vadd.f32 %v1896_v17, %v1647_v41  ;;  %v1966_v52 = vadd.f32 %v1965_v45, %v1648_v3 }
 0x222   :  { %v1760_v32 = vadd.f32 %v1759_v0, %v1649_v53  ;;  %v1829_v54 = vadd.f32 %v1828_v9, %v1650_v48 }
 0x226   :  { %v924_v15 = vpop.f32.mrf.mxu2  ;;  %v1133_v43 = vpop.f32.mrf.mxu3 }
 0x227   :  { %v1366_v35 = vadd.f32 %v1365_v62, %v924_v15  ;;  %v1651_v8 = vmul.f32 %v924_v15, %v924_v15  ;;  %v1435_v22 = vadd.f32 %v1434_v2, %v1133_v43  ;;  %v1652_v40 = vmul.f32 %v1133_v43, %v1133_v43  ;;  %v509_v24 = vpop.f32.mrf.mxu0  ;;  %v718_v59 = vpop.f32.mrf.mxu1 }
 0x228   :  { %v1229_v4 = vadd.f32 %v1228_v7, %v509_v24  ;;  %v1653_v25 = vmul.f32 %v509_v24, %v509_v24  ;;  %v1298_v31 = vadd.f32 %v1297_v23, %v718_v59  ;;  %v1654_v30 = vmul.f32 %v718_v59, %v718_v59 }
 0x229   :  { %v1898_v6 = vadd.f32 %v1897_v14, %v1651_v8  ;;  %v1967_v5 = vadd.f32 %v1966_v52, %v1652_v40 }
 0x22a   :  { %v1761_v46 = vadd.f32 %v1760_v32, %v1653_v25  ;;  %v1830_v63 = vadd.f32 %v1829_v54, %v1654_v30 }
 0x22e   :  { %v927_v28 = vpop.f32.mrf.mxu2  ;;  %v1136_v29 = vpop.f32.mrf.mxu3 }
 0x22f   :  { %v1367_v47 = vadd.f32 %v1366_v35, %v927_v28  ;;  %v1655_v16 = vmul.f32 %v927_v28, %v927_v28  ;;  %v1436_v42 = vadd.f32 %v1435_v22, %v1136_v29  ;;  %v1656_v27 = vmul.f32 %v1136_v29, %v1136_v29  ;;  %v512_v26 = vpop.f32.mrf.mxu0  ;;  %v721_v12 = vpop.f32.mrf.mxu1 }
 0x230   :  { %v1230_v50 = vadd.f32 %v1229_v4, %v512_v26  ;;  %v1657_v49 = vmul.f32 %v512_v26, %v512_v26  ;;  %v1299_v39 = vadd.f32 %v1298_v31, %v721_v12  ;;  %v1658_v55 = vmul.f32 %v721_v12, %v721_v12 }
 0x231   :  { %v1899_v60 = vadd.f32 %v1898_v6, %v1655_v16  ;;  %v1968_v33 = vadd.f32 %v1967_v5, %v1656_v27 }
 0x232   :  { %v1762_v57 = vadd.f32 %v1761_v46, %v1657_v49  ;;  %v1831_v58 = vadd.f32 %v1830_v63, %v1658_v55 }
 0x236   :  { %v930_v10 = vpop.f32.mrf.mxu2  ;;  %v1139_v11 = vpop.f32.mrf.mxu3 }
 0x237   :  { %v1368_v37 = vadd.f32 %v1367_v47, %v930_v10  ;;  %v1659_v18 = vmul.f32 %v930_v10, %v930_v10  ;;  %v1437_v61 = vadd.f32 %v1436_v42, %v1139_v11  ;;  %v1660_v56 = vmul.f32 %v1139_v11, %v1139_v11  ;;  %v515_v38 = vpop.f32.mrf.mxu0  ;;  %v724_v19 = vpop.f32.mrf.mxu1 }
 0x238   :  { %v1231_v44 = vadd.f32 %v1230_v50, %v515_v38  ;;  %v1661_v20 = vmul.f32 %v515_v38, %v515_v38  ;;  %v1300_v21 = vadd.f32 %v1299_v39, %v724_v19  ;;  %v1662_v36 = vmul.f32 %v724_v19, %v724_v19 }
 0x239   :  { %v1900_v17 = vadd.f32 %v1899_v60, %v1659_v18  ;;  %v1969_v45 = vadd.f32 %v1968_v33, %v1660_v56 }
 0x23a   :  { %v1763_v0 = vadd.f32 %v1762_v57, %v1661_v20  ;;  %v1832_v9 = vadd.f32 %v1831_v58, %v1662_v36 }
 0x23e   :  { %v933_v1 = vpop.f32.mrf.mxu2  ;;  %v1142_v13 = vpop.f32.mrf.mxu3 }
 0x23f   :  { %v1369_v62 = vadd.f32 %v1368_v37, %v933_v1  ;;  %v1663_v41 = vmul.f32 %v933_v1, %v933_v1  ;;  %v1438_v2 = vadd.f32 %v1437_v61, %v1142_v13  ;;  %v1664_v3 = vmul.f32 %v1142_v13, %v1142_v13  ;;  %v518_v34 = vpop.f32.mrf.mxu0  ;;  %v727_v51 = vpop.f32.mrf.mxu1 }
 0x240   :  { %v1232_v7 = vadd.f32 %v1231_v44, %v518_v34  ;;  %v1665_v53 = vmul.f32 %v518_v34, %v518_v34  ;;  %v1301_v23 = vadd.f32 %v1300_v21, %v727_v51  ;;  %v1666_v48 = vmul.f32 %v727_v51, %v727_v51 }
 0x241   :  { %v1901_v14 = vadd.f32 %v1900_v17, %v1663_v41  ;;  %v1970_v52 = vadd.f32 %v1969_v45, %v1664_v3 }
 0x242   :  { %v1764_v32 = vadd.f32 %v1763_v0, %v1665_v53  ;;  %v1833_v54 = vadd.f32 %v1832_v9, %v1666_v48 }
 0x246   :  { %v936_v15 = vpop.f32.mrf.mxu2  ;;  %v1145_v43 = vpop.f32.mrf.mxu3 }
 0x247   :  { %v1370_v35 = vadd.f32 %v1369_v62, %v936_v15  ;;  %v1667_v8 = vmul.f32 %v936_v15, %v936_v15  ;;  %v1439_v22 = vadd.f32 %v1438_v2, %v1145_v43  ;;  %v1668_v40 = vmul.f32 %v1145_v43, %v1145_v43  ;;  %v521_v24 = vpop.f32.mrf.mxu0  ;;  %v730_v59 = vpop.f32.mrf.mxu1 }
 0x248   :  { %v1669_v37 = vmul.f32 %v521_v24, %v521_v24  ;;  %v1670_v18 = vmul.f32 %v730_v59, %v730_v59  ;;  %v1233_v38 = vadd.f32 %v1232_v7, %v521_v24  ;;  %v1302_v19 = vadd.f32 %v1301_v23, %v730_v59 }
 0x249   :  { %v1902_v4 = vadd.f32 %v1901_v14, %v1667_v8  ;;  %v1971_v25 = vadd.f32 %v1970_v52, %v1668_v40 }
 0x24a   :  { %v1765_v17 = vadd.f32 %v1764_v32, %v1669_v37  ;;  %v1834_v45 = vadd.f32 %v1833_v54, %v1670_v18 }
 0x24e   :  { %v939_v31 = vpop.f32.mrf.mxu2  ;;  %v1148_v30 = vpop.f32.mrf.mxu3 }
 0x24f   :  { %v524_v6 = vpop.f32.mrf.mxu0  ;;  %v733_v5 = vpop.f32.mrf.mxu1  ;;  %v1671_v61 = vmul.f32 %v939_v31, %v939_v31  ;;  %v1672_v56 = vmul.f32 %v1148_v30, %v1148_v30  ;;  %v1371_v0 = vadd.f32 %v1370_v35, %v939_v31  ;;  %v1440_v9 = vadd.f32 %v1439_v22, %v1148_v30 }
 0x250   :  { %v1673_v44 = vmul.f32 %v524_v6, %v524_v6  ;;  %v1674_v20 = vmul.f32 %v733_v5, %v733_v5  ;;  %v1234_v62 = vadd.f32 %v1233_v38, %v524_v6  ;;  %v1303_v41 = vadd.f32 %v1302_v19, %v733_v5 }
 0x251   :  { %v1903_v34 = vadd.f32 %v1902_v4, %v1671_v61  ;;  %v1972_v51 = vadd.f32 %v1971_v25, %v1672_v56 }
 0x252   :  { %v1766_v23 = vadd.f32 %v1765_v17, %v1673_v44  ;;  %v1835_v48 = vadd.f32 %v1834_v45, %v1674_v20 }
 0x256   :  { %v942_v46 = vpop.f32.mrf.mxu2  ;;  %v1151_v63 = vpop.f32.mrf.mxu3 }
 0x257   :  { %v527_v28 = vpop.f32.mrf.mxu0  ;;  %v736_v29 = vpop.f32.mrf.mxu1  ;;  %v1675_v2 = vmul.f32 %v942_v46, %v942_v46  ;;  %v1676_v3 = vmul.f32 %v1151_v63, %v1151_v63  ;;  %v1372_v14 = vadd.f32 %v1371_v0, %v942_v46  ;;  %v1441_v52 = vadd.f32 %v1440_v9, %v1151_v63 }
 0x258   :  { %v1677_v7 = vmul.f32 %v527_v28, %v527_v28  ;;  %v1678_v53 = vmul.f32 %v736_v29, %v736_v29  ;;  %v1235_v32 = vadd.f32 %v1234_v62, %v527_v28  ;;  %v1304_v54 = vadd.f32 %v1303_v41, %v736_v29 }
 0x259   :  { %v1904_v35 = vadd.f32 %v1903_v34, %v1675_v2  ;;  %v1973_v8 = vadd.f32 %v1972_v51, %v1676_v3 }
 0x25a   :  { %v1767_v24 = vadd.f32 %v1766_v23, %v1677_v7  ;;  %v1836_v59 = vadd.f32 %v1835_v48, %v1678_v53 }
 0x25e   :  { %v945_v47 = vpop.f32.mrf.mxu2  ;;  %v1154_v16 = vpop.f32.mrf.mxu3 }
 0x25f   :  { %v530_v42 = vpop.f32.mrf.mxu0  ;;  %v739_v27 = vpop.f32.mrf.mxu1  ;;  %v1679_v15 = vmul.f32 %v945_v47, %v945_v47  ;;  %v1680_v43 = vmul.f32 %v1154_v16, %v1154_v16  ;;  %v1373_v31 = vadd.f32 %v1372_v14, %v945_v47  ;;  %v1442_v30 = vadd.f32 %v1441_v52, %v1154_v16 }
 0x260   :  { %v1681_v22 = vmul.f32 %v530_v42, %v530_v42  ;;  %v1682_v40 = vmul.f32 %v739_v27, %v739_v27  ;;  %v1236_v4 = vadd.f32 %v1235_v32, %v530_v42  ;;  %v1305_v25 = vadd.f32 %v1304_v54, %v739_v27 }
 0x261   :  { %v1905_v28 = vadd.f32 %v1904_v35, %v1679_v15  ;;  %v1974_v29 = vadd.f32 %v1973_v8, %v1680_v43 }
 0x262   :  { %v1768_v27 = vadd.f32 %v1767_v24, %v1681_v22  ;;  %v1837_v18 = vadd.f32 %v1836_v59, %v1682_v40 }
 0x266   :  { %v2976_v26 = vpop.f32.mrf.mxu2  ;;  %v2978_v12 = vpop.f32.mrf.mxu3 }
 0x267   :  { %v2980_v50 = vpop.f32.mrf.mxu0  ;;  %v2982_v49 = vpop.f32.mrf.mxu1  ;;  %v1683_v6 = vmul.f32 %v2976_v26, %v2976_v26  ;;  %v1684_v5 = vmul.f32 %v2978_v12, %v2978_v12  ;;  %v1374_v61 = vadd.f32 %v1373_v31, %v2976_v26  ;;  %v1443_v56 = vadd.f32 %v1442_v30, %v2978_v12 }
 0x268   :  { %v1685_v37 = vmul.f32 %v2980_v50, %v2980_v50  ;;  %v1686_v47 = vmul.f32 %v2982_v49, %v2982_v49  ;;  %v1237_v38 = vadd.f32 %v1236_v4, %v2980_v50  ;;  %v1306_v19 = vadd.f32 %v1305_v25, %v2982_v49 }
 0x269   :  { %v1906_v17 = vadd.f32 %v1905_v28, %v1683_v6  ;;  %v1975_v45 = vadd.f32 %v1974_v29, %v1684_v5 }
 0x26a   :  { %v1769_v9 = vadd.f32 %v1768_v27, %v1685_v37  ;;  %v1838_v12 = vadd.f32 %v1837_v18, %v1686_v47 }
 0x26e   :  { %v2984_v39 = vpop.f32.mrf.mxu2  ;;  %v2986_v55 = vpop.f32.mrf.mxu3 }
 0x26f   :  { %v2988_v60 = vpop.f32.mrf.mxu0  ;;  %v2990_v33 = vpop.f32.mrf.mxu1  ;;  %v1687_v44 = vmul.f32 %v2984_v39, %v2984_v39  ;;  %v1688_v20 = vmul.f32 %v2986_v55, %v2986_v55  ;;  %v1375_v50 = vadd.f32 %v1374_v61, %v2984_v39  ;;  %v1444_v49 = vadd.f32 %v1443_v56, %v2986_v55 }
 0x270   :  { %v1689_v0 = vmul.f32 %v2988_v60, %v2988_v60  ;;  %v1690_v26 = vmul.f32 %v2990_v33, %v2990_v33  ;;  %v1238_v62 = vadd.f32 %v1237_v38, %v2988_v60  ;;  %v1307_v41 = vadd.f32 %v1306_v19, %v2990_v33 }
 0x271   :  { %v1907_v34 = vadd.f32 %v1906_v17, %v1687_v44  ;;  %v1976_v51 = vadd.f32 %v1975_v45, %v1688_v20 }
 0x272   :  { %v1770_v53 = vadd.f32 %v1769_v9, %v1689_v0  ;;  %v1839_v55 = vadd.f32 %v1838_v12, %v1690_v26 }
 0x276   :  { %v2992_v57 = vpop.f32.mrf.mxu2  ;;  %v2994_v58 = vpop.f32.mrf.mxu3 }
 0x277   :  { %v2996_v10 = vpop.f32.mrf.mxu0  ;;  %v2998_v11 = vpop.f32.mrf.mxu1  ;;  %v1691_v2 = vmul.f32 %v2992_v57, %v2992_v57  ;;  %v1692_v3 = vmul.f32 %v2994_v58, %v2994_v58  ;;  %v1376_v60 = vadd.f32 %v1375_v50, %v2992_v57  ;;  %v1445_v33 = vadd.f32 %v1444_v49, %v2994_v58 }
 0x278   :  { %v1693_v7 = vmul.f32 %v2996_v10, %v2996_v10  ;;  %v1694_v39 = vmul.f32 %v2998_v11, %v2998_v11  ;;  %v1239_v14 = vadd.f32 %v1238_v62, %v2996_v10  ;;  %v1308_v52 = vadd.f32 %v1307_v41, %v2998_v11 }
 0x279   :  { %v1908_v35 = vadd.f32 %v1907_v34, %v1691_v2  ;;  %v1977_v8 = vadd.f32 %v1976_v51, %v1692_v3 }
 0x27a   :  { %v1771_v22 = vadd.f32 %v1770_v53, %v1693_v7  ;;  %v1840_v10 = vadd.f32 %v1839_v55, %v1694_v39 }
 0x27e   :  { %v3000_v21 = vpop.f32.mrf.mxu2  ;;  %v3002_v36 = vpop.f32.mrf.mxu3 }
 0x27f   :  { %v3004_v1 = vpop.f32.mrf.mxu0  ;;  %v3006_v13 = vpop.f32.mrf.mxu1  ;;  %v1695_v57 = vmul.f32 %v3000_v21, %v3000_v21  ;;  %v1696_v58 = vmul.f32 %v3002_v36, %v3002_v36  ;;  %v1377_v24 = vadd.f32 %v1376_v60, %v3000_v21  ;;  %v1446_v59 = vadd.f32 %v1445_v33, %v3002_v36 }
 0x280   :  { %v1697_v32 = vmul.f32 %v3004_v1, %v3004_v1  ;;  %v1698_v54 = vmul.f32 %v3006_v13, %v3006_v13  ;;  %v1240_v31 = vadd.f32 %v1239_v14, %v3004_v1  ;;  %v1309_v30 = vadd.f32 %v1308_v52, %v3006_v13 }
 0x281   :  { %v1909_v28 = vadd.f32 %v1908_v35, %v1695_v57  ;;  %v1978_v29 = vadd.f32 %v1977_v8, %v1696_v58 }
 0x282   :  { %v1772_v4 = vadd.f32 %v1771_v22, %v1697_v32  ;;  %v1841_v25 = vadd.f32 %v1840_v10, %v1698_v54 }
 0x286   :  { %v3012_v46 = vpop.f32.mrf.mxu2  ;;  %v3014_v63 = vpop.f32.mrf.mxu3 }
 0x287   :  { %v545_v16 = vpop.f32.mrf.mxu0  ;;  %v754_v42 = vpop.f32.mrf.mxu1  ;;  %v1699_v27 = vmul.f32 %v3012_v46, %v3012_v46  ;;  %v1700_v21 = vmul.f32 %v3014_v63, %v3014_v63  ;;  %v1378_v1 = vadd.f32 %v1377_v24, %v3012_v46  ;;  %v1447_v13 = vadd.f32 %v1446_v59, %v3014_v63 }
 0x288   :  { %v1701_v40 = vmul.f32 %v545_v16, %v545_v16  ;;  %v1702_v11 = vmul.f32 %v754_v42, %v754_v42  ;;  %v1241_v37 = vadd.f32 %v1240_v31, %v545_v16  ;;  %v1310_v47 = vadd.f32 %v1309_v30, %v754_v42 }
 0x289   :  { %v1910_v50 = vadd.f32 %v1909_v28, %v1699_v27  ;;  %v1979_v49 = vadd.f32 %v1978_v29, %v1700_v21 }
 0x28a   :  { %v1773_v18 = vadd.f32 %v1772_v4, %v1701_v40  ;;  %v1842_v36 = vadd.f32 %v1841_v25, %v1702_v11 }
 0x28e   :  { %v963_v23 = vpop.f32.mrf.mxu2  ;;  %v1172_v48 = vpop.f32.mrf.mxu3 }
 0x28f   :  { %v548_v15 = vpop.f32.mrf.mxu0  ;;  %v757_v43 = vpop.f32.mrf.mxu1  ;;  %v1703_v44 = vmul.f32 %v963_v23, %v963_v23  ;;  %v1704_v20 = vmul.f32 %v1172_v48, %v1172_v48  ;;  %v1379_v34 = vadd.f32 %v1378_v1, %v963_v23  ;;  %v1448_v7 = vadd.f32 %v1447_v13, %v1172_v48 }
 0x290   :  { %v1705_v6 = vmul.f32 %v548_v15, %v548_v15  ;;  %v1706_v5 = vmul.f32 %v757_v43, %v757_v43  ;;  %v1242_v61 = vadd.f32 %v1241_v37, %v548_v15  ;;  %v1311_v56 = vadd.f32 %v1310_v47, %v757_v43 }
 0x291   :  { %v1911_v51 = vadd.f32 %v1910_v50, %v1703_v44  ;;  %v1980_v39 = vadd.f32 %v1979_v49, %v1704_v20 }
 0x292   :  { %v1774_v16 = vadd.f32 %v1773_v18, %v1705_v6  ;;  %v1843_v42 = vadd.f32 %v1842_v36, %v1706_v5 }
 0x296   :  { %v966_v38 = vpop.f32.mrf.mxu2  ;;  %v1175_v19 = vpop.f32.mrf.mxu3 }
 0x297   :  { %v551_v17 = vpop.f32.mrf.mxu0  ;;  %v760_v45 = vpop.f32.mrf.mxu1  ;;  %v1707_v62 = vmul.f32 %v966_v38, %v966_v38  ;;  %v1708_v46 = vmul.f32 %v1175_v19, %v1175_v19  ;;  %v1380_v14 = vadd.f32 %v1379_v34, %v966_v38  ;;  %v1449_v32 = vadd.f32 %v1448_v7, %v1175_v19 }
 0x298   :  { %v1243_v0 = vadd.f32 %v1242_v61, %v551_v17  ;;  %v1709_v26 = vmul.f32 %v551_v17, %v551_v17  ;;  %v1312_v9 = vadd.f32 %v1311_v56, %v760_v45  ;;  %v1710_v12 = vmul.f32 %v760_v45, %v760_v45 }
 0x299   :  { %v1912_v52 = vadd.f32 %v1911_v51, %v1707_v62  ;;  %v1981_v54 = vadd.f32 %v1980_v39, %v1708_v46 }
 0x29a   :  { %v1244_v41 = vrot.slane %v1243_v0, 4  ;;  %v1775_v63 = vadd.f32 %v1774_v16, %v1709_v26  ;;  %v1313_v2 = vrot.slane %v1312_v9, 4  ;;  %v1844_v3 = vadd.f32 %v1843_v42, %v1710_v12 }
 0x29c   :  { %v1245_v53 = vadd.f32 %v1244_v41, %v1243_v0  ;;  %v1776_v55 = vrot.slane %v1775_v63, 4  ;;  %v1314_v60 = vadd.f32 %v1313_v2, %v1312_v9  ;;  %v1845_v33 = vrot.slane %v1844_v3, 4 }
 0x29e   :  { %v1246_v15 = vrot.slane %v1245_v53, 2  ;;  %v1777_v43 = vadd.f32 %v1776_v55, %v1775_v63  ;;  %v1315_v35 = vrot.slane %v1314_v60, 2  ;;  %v1846_v8 = vadd.f32 %v1845_v33, %v1844_v3  ;;  %v969_v57 = vpop.f32.mrf.mxu2  ;;  %v1178_v58 = vpop.f32.mrf.mxu3 }
 0x29f   :  { %v1381_v22 = vadd.f32 %v1380_v14, %v969_v57  ;;  %v1711_v10 = vmul.f32 %v969_v57, %v969_v57  ;;  %v1450_v23 = vadd.f32 %v1449_v32, %v1178_v58  ;;  %v1712_v40 = vmul.f32 %v1178_v58, %v1178_v58 }
 0x2a0   :  { %v1247_v48 = vadd.f32 %v1246_v15, %v1245_v53  ;;  %v1778_v11 = vrot.slane %v1777_v43, 2  ;;  %v1316_v24 = vadd.f32 %v1315_v35, %v1314_v60  ;;  %v1847_v59 = vrot.slane %v1846_v8, 2 }
 0x2a1   :  { %v1382_v31 = vrot.slane %v1381_v22, 4  ;;  %v1913_v30 = vadd.f32 %v1912_v52, %v1711_v10  ;;  %v1451_v4 = vrot.slane %v1450_v23, 4  ;;  %v1982_v25 = vadd.f32 %v1981_v54, %v1712_v40 }
 0x2a2   :  { %v1248_v6 = vrot.slane %v1247_v48, 1  ;;  %v1779_v5 = vadd.f32 %v1778_v11, %v1777_v43  ;;  %v1317_v28 = vrot.slane %v1316_v24, 1  ;;  %v1848_v29 = vadd.f32 %v1847_v59, %v1846_v8 }
 0x2a3   :  { %v1383_v37 = vadd.f32 %v1382_v31, %v1381_v22  ;;  %v1914_v47 = vrot.slane %v1913_v30, 4  ;;  %v1452_v27 = vadd.f32 %v1451_v4, %v1450_v23  ;;  %v1983_v21 = vrot.slane %v1982_v25, 4 }
 0x2a4   :  { %v1780_v18 = vrot.slane %v1779_v5, 1  ;;  %v1849_v36 = vrot.slane %v1848_v29, 1  ;;  %v1249_v38 = vadd.f32 %v1248_v6, %v1247_v48  ;;  %v1318_v44 = vadd.f32 %v1317_v28, %v1316_v24 }
 0x2a5   :  { %v1384_v1 = vrot.slane %v1383_v37, 2  ;;  %v1915_v13 = vadd.f32 %v1914_v47, %v1913_v30  ;;  %v1453_v61 = vrot.slane %v1452_v27, 2  ;;  %v1984_v56 = vadd.f32 %v1983_v21, %v1982_v25 }
 0x2a6   :  { %v1781_v19 = vadd.f32 %v1780_v18, %v1779_v5  ;;  %v1850_v20 = vadd.f32 %v1849_v36, %v1848_v29 }
 0x2a7   :  { %v1385_v16 = vadd.f32 %v1384_v1, %v1383_v37  ;;  %v1916_v42 = vrot.slane %v1915_v13, 2  ;;  %v1454_v17 = vadd.f32 %v1453_v61, %v1452_v27  ;;  %v1985_v45 = vrot.slane %v1984_v56, 2 }
 0x2a8   :  { %v1990_v0 = vsel %vm1989_vm0, %v1249_v38, %v1781_v19  ;;  %v1991_v26 = vsel %vm1989_vm0, %v1318_v44, %v1850_v20 }
 0x2a9   :  { %v1998_v9 = vrot.slane %v1991_v26, 6  ;;  %v1386_v12 = vrot.slane %v1385_v16, 1  ;;  %v1917_v50 = vadd.f32 %v1916_v42, %v1915_v13  ;;  %v1455_v49 = vrot.slane %v1454_v17, 1 }
 0x2aa   :  { %v1986_v62 = vadd.f32 %v1985_v45, %v1984_v56 }
 0x2ab   :  { %v2002_v46 = vsel %vm2001_vm1, %v1990_v0, %v1998_v9  ;;  %v1918_v41 = vrot.slane %v1917_v50, 1  ;;  %v1387_v2 = vadd.f32 %v1386_v12, %v1385_v16  ;;  %v1456_v34 = vadd.f32 %v1455_v49, %v1454_v17 }
 0x2ac   :  { %v1987_v63 = vrot.slane %v1986_v62, 1 }
 0x2ad   :  { %v1919_v3 = vadd.f32 %v1918_v41, %v1917_v50 }
 0x2ae   :  { %v1988_v51 = vadd.f32 %v1987_v63, %v1986_v62 }
 0x2af   :  { %v1992_v7 = vsel %vm1989_vm0, %v1387_v2, %v1919_v3 }
 0x2b0   :  { %v1999_v39 = vrot.slane %v1992_v7, 4  ;;  %v1993_v53 = vsel %vm1989_vm0, %v1456_v34, %v1988_v51 }
 0x2b1   :  { %v2000_v55 = vrot.slane %v1993_v53, 2 }
 0x2b3   :  { %v2004_v60 = vsel %vm2003_vm2, %v1999_v39, %v2000_v55 }
 0x2b4   :  { %v2006_v33 = vsel %vm2005_vm3, %v2002_v46, %v2004_v60 }
 0x2b5   :  { %2008 = vst [vmem:[%s3077_s4] sm:$0xff] %v2006_v33 }

// kernel: bottleneck_forward.5
= control target key start
LH: loop header
LB: loop body
LE: loop exit
PB: predicated region body
PF: predicated region fallthrough
CT: control target
= control target key end

     0   :  { %s3316_s18 = smov 0   ;;  %s4359_s0 = inlined_call_operand.vmem [shape: f32[2,16,16,128], index: 0, kind: input, shape index: {}]   ;;  %s4360_s1 = inlined_call_operand.vmem [shape: f32[1,128], index: 1, kind: input, shape index: {}]   ;;  %s4361_s2 = inlined_call_operand.vmem [shape: f32[1,128], index: 2, kind: input, shape index: {}]   ;;  %s4362_s3 = inlined_call_operand.vmem [shape: f32[3,3,128,128], index: 3, kind: input, shape index: {}]   ;;  %s4363_s4 = inlined_call_operand.vmem [shape: f32[2,16,16,128], index: 4, kind: output, shape index: {0}]   ;;  %s4364_s5 = inlined_call_operand.vmem [shape: f32[2,2,128], index: 5, kind: output, shape index: {1}]  }
   0x1 LB: > { %s3072_s19 = sadd.s32 4294967295, %s3283_s18   ;;  %p3076_p0 = scmp.ge.s32.totalorder %s3283_s18, 1  ;;  %s3283_s18 = sphi %s3316_s18, %s16_s18  }
   0x2   : > { %p190_p1 = scmp.lt.s32.totalorder %s3283_s18, 3 }
   0x4   : > { %p191_p2 = pnand %p3076_p0, %p190_p1 }
   0x5   : > { %p222_p3 = scmp.lt.s32.totalorder (!%p191_p2), %s3072_s19, 1 }
   0x6   : > { %194 = sbr.rel (%p191_p2) target bundleno = 799 (0x31f), region = 36 }
   0xb   : > { %v570_v0 = vld [vmem:[%s4362_s3 + $0x78] sm:$0xff]  ;;  %v569_v1 = vld [vmem:[%s4362_s3 + $0x70] sm:$0xff]  ;;  %v3285_v2 = vmov 0.0   ;;  %v568_v3 = vld [vmem:[%s4362_s3 + $0x68] sm:$0xff]  ;;  %s4366_s19 = smov (!%p222_p3, %s3072_s19), 1  ;;  %vm2983_vm0 = vcmask 1040384  }
   0xc   : > { %3214 = vmatpush.msra.mxu1 %v570_v0  ;;  %3215 = vmatpush.msra.mxu2 %v570_v0  ;;  %384 = vst [vmem:[#allocation2 + $0x60] sm:$0xff] %v3285_v2  ;;  %v567_v4 = vld [vmem:[%s4362_s3 + $0x60] sm:$0xff]  ;;  %s3212_s28 = sshll.u32 %s4366_s19, 8  ;;  %v566_v5 = vld [vmem:[%s4362_s3 + $0x58] sm:$0xff]  ;;  %v565_v10 = vld [vmem:[%s4362_s3 + $0x50] sm:$0xff] }
   0xd   : > { %3216 = vmatpush.msra.mxu3 %v570_v0  ;;  %571 = vmatpush.msra.mxu0 %v570_v0  ;;  %385 = vst [vmem:[#allocation2 + $0x68] sm:$0xff] %v3285_v2  ;;  %s3351_s8 = scalar_lea.vmem %s4359_s0, %s3212_s28  ;;  %v3356_v6 = vld [vmem:[%s4360_s1] ss:$0 sm:$0xff]  ;;  %v564_v12 = vld [vmem:[%s4362_s3 + $0x48] sm:$0xff]  ;;  %v562_v15 = vld [vmem:[%s4362_s3 + $0x38] sm:$0xff]  ;;  %s4287_s25 = scalar_lea.vmem %s4363_s4, %s3212_s28 }
   0xe   : > { %3217 = vmatpush.msra.mxu1 %v569_v1  ;;  %3218 = vmatpush.msra.mxu2 %v569_v1  ;;  %372 = vst [vmem:[#allocation2] sm:$0xff] %v3285_v2  ;;  %v242_v7 = vld [vmem:[%s3351_s8 + $0x30] sm:$0xff]  ;;  %v3363_v8 = vld [vmem:[%s4361_s2] ss:$0 sm:$0xff]  ;;  %v560_v17 = vld [vmem:[%s4362_s3 + $0x28] sm:$0xff]  ;;  %s3081_s28 = sshll.u32 %s4366_s19, 1 }
   0xf   : > { %3219 = vmatpush.msra.mxu3 %v569_v1  ;;  %572 = vmatpush.msra.mxu0 %v569_v1  ;;  %373 = vst [vmem:[#allocation2 + $0x8] sm:$0xff] %v3285_v2  ;;  %v278_v9 = vmul.f32 %v3356_v6, %v242_v7  ;;  %v563_v14 = vld [vmem:[%s4362_s3 + $0x40] sm:$0xff]  ;;  %v561_v16 = vld [vmem:[%s4362_s3 + $0x30] sm:$0xff]  ;;  %v558_v19 = vld [vmem:[%s4362_s3 + $0x18] sm:$0xff]  ;;  %s235_s29 = scalar_lea.vmem %s4364_s5, %s3081_s28 }
  0x10   : > { %3220 = vmatpush.msra.mxu1 %v568_v3  ;;  %3221 = vmatpush.msra.mxu2 %v568_v3  ;;  %375 = vst [vmem:[#allocation2 + $0x18] sm:$0xff] %v3285_v2  ;;  %v559_v18 = vld [vmem:[%s4362_s3 + $0x20] sm:$0xff]  ;;  %v557_v20 = vld [vmem:[%s4362_s3 + $0x10] sm:$0xff]  ;;  %v556_v21 = vld [vmem:[%s4362_s3 + $0x8] sm:$0xff] }
  0x11   : > { %3222 = vmatpush.msra.mxu3 %v568_v3  ;;  %573 = vmatpush.msra.mxu0 %v568_v3  ;;  %376 = vst [vmem:[#allocation2 + $0x20] sm:$0xff] %v3285_v2  ;;  %v3373_v11 = vadd.f32 %v3363_v8, %v278_v9  ;;  %v555_v22 = vld [vmem:[%s4362_s3] sm:$0xff]  ;;  %v3113_v24 = vld [vmem:[%s4362_s3 + $0x178] sm:$0xff]  ;;  %v3112_v27 = vld [vmem:[%s4362_s3 + $0x170] sm:$0xff] }
  0x12   : > { %3223 = vmatpush.msra.mxu1 %v567_v4  ;;  %3224 = vmatpush.msra.mxu2 %v567_v4  ;;  %374 = vst [vmem:[#allocation2 + $0x10] sm:$0x3] %v3285_v2  ;;  %v3129_v25 = vld [vmem:[%s4362_s3 + $0x1f8] sm:$0xff]  ;;  %v3128_v28 = vld [vmem:[%s4362_s3 + $0x1f0] sm:$0xff]  ;;  %v3111_v32 = vld [vmem:[%s4362_s3 + $0x168] sm:$0xff] }
  0x13   : > { %3225 = vmatpush.msra.mxu3 %v567_v4  ;;  %574 = vmatpush.msra.mxu0 %v567_v4  ;;  %377 = vst [vmem:[#allocation2 + $0x28] sm:$0x3] %v3285_v2  ;;  %v346_v13 = vmax.f32 %v3373_v11, 0.0  ;;  %v3097_v26 = vld [vmem:[%s4362_s3 + $0xf8] sm:$0xff]  ;;  %v250_v29 = vld [vmem:[%s3351_s8 + $0x70] sm:$0xff]  ;;  %v3127_v33 = vld [vmem:[%s4362_s3 + $0x1e8] sm:$0xff] }
  0x14   : > { %3226 = vmatpush.msra.mxu1 %v566_v5  ;;  %3227 = vmatpush.msra.mxu2 %v566_v5  ;;  %378 = vst [vmem:[#allocation2 + $0x30] sm:$0xff] %v3285_v2  ;;  %v258_v30 = vld [vmem:[%s3351_s8 + $0xb0] sm:$0xff]  ;;  %v3145_v34 = vld [vmem:[%s4362_s3 + $0x278] sm:$0xff]  ;;  %v3095_v35 = vld [vmem:[%s4362_s3 + $0xe8] sm:$0xff]  ;;  %v286_v40 = vmul.f32 %v3356_v6, %v250_v29 }
  0x15   : > { %3228 = vmatpush.msra.mxu3 %v566_v5  ;;  %575 = vmatpush.msra.mxu0 %v566_v5  ;;  %379 = vst [vmem:[#allocation2 + $0x38] sm:$0xff] %v3285_v2  ;;  %v3096_v31 = vld [vmem:[%s4362_s3 + $0xf0] sm:$0xff]  ;;  %v3110_v36 = vld [vmem:[%s4362_s3 + $0x160] sm:$0xff]  ;;  %v243_v39 = vld [vmem:[%s3351_s8 + $0x38] sm:$0xff]  ;;  %v294_v42 = vmul.f32 %v3356_v6, %v258_v30 }
  0x16   : > { %3229 = vmatpush.msra.mxu1 %v565_v10  ;;  %3230 = vmatpush.msra.mxu2 %v565_v10  ;;  %380 = vst [vmem:[#allocation2 + $0x40] sm:$0x3] %v3285_v2  ;;  %v3126_v37 = vld [vmem:[%s4362_s3 + $0x1e0] sm:$0xff]  ;;  %v3144_v38 = vld [vmem:[%s4362_s3 + $0x270] sm:$0xff]  ;;  %v251_v41 = vld [vmem:[%s3351_s8 + $0x78] sm:$0xff]  ;;  %v279_v44 = vmul.f32 %v3356_v6, %v243_v39  ;;  %v322_v50 = vadd.f32 %v3363_v8, %v286_v40 }
  0x17   : > { %3231 = vmatpush.msra.mxu3 %v565_v10  ;;  %576 = vmatpush.msra.mxu0 %v565_v10  ;;  %381 = vst [vmem:[#allocation2 + $0x48] sm:$0xff] %v3285_v2  ;;  %v259_v43 = vld [vmem:[%s3351_s8 + $0xb8] sm:$0xff]  ;;  %v244_v45 = vld [vmem:[%s3351_s8 + $0x40] sm:$0xff]  ;;  %v287_v46 = vmul.f32 %v3356_v6, %v251_v41  ;;  %v245_v49 = vld [vmem:[%s3351_s8 + $0x48] sm:$0xff]  ;;  %v330_v55 = vadd.f32 %v3363_v8, %v294_v42 }
  0x18   : > { %3232 = vmatpush.msra.mxu1 %v564_v12  ;;  %3233 = vmatpush.msra.mxu2 %v564_v12  ;;  %433 = vst [vmem:[#allocation2 + $0x61] sm:$0xff] %v346_v13  ;;  %v252_v47 = vld [vmem:[%s3351_s8 + $0x80] sm:$0xff]  ;;  %v295_v51 = vmul.f32 %v3356_v6, %v259_v43  ;;  %v3109_v53 = vld [vmem:[%s4362_s3 + $0x158] sm:$0xff]  ;;  %v253_v54 = vld [vmem:[%s3351_s8 + $0x88] sm:$0xff]  ;;  %v280_v56 = vmul.f32 %v3356_v6, %v244_v45  ;;  %v354_v5 = vmax.f32 %v322_v50, 0.0 }
  0x19   : > { %3234 = vmatpush.msra.mxu3 %v564_v12  ;;  %577 = vmatpush.msra.mxu0 %v564_v12  ;;  %382 = vst [vmem:[#allocation2 + $0x50] sm:$0xff] %v3285_v2  ;;  %v260_v48 = vld [vmem:[%s3351_s8 + $0xc0] sm:$0xff]  ;;  %v3125_v57 = vld [vmem:[%s4362_s3 + $0x1d8] sm:$0xff]  ;;  %v3143_v58 = vld [vmem:[%s4362_s3 + $0x268] sm:$0xff]  ;;  %v315_v60 = vadd.f32 %v3363_v8, %v279_v44  ;;  %v288_v61 = vmul.f32 %v3356_v6, %v252_v47  ;;  %v362_v12 = vmax.f32 %v330_v55, 0.0 }
  0x1a   : > { %3235 = vmatpush.msra.mxu1 %v563_v14  ;;  %3236 = vmatpush.msra.mxu2 %v563_v14  ;;  %383 = vst [vmem:[#allocation2 + $0x58] sm:$0x3] %v3285_v2  ;;  %v3094_v52 = vld [vmem:[%s4362_s3 + $0xe0] sm:$0xff]  ;;  %v3093_v59 = vld [vmem:[%s4362_s3 + $0xd8] sm:$0xff]  ;;  %v3108_v62 = vld [vmem:[%s4362_s3 + $0x150] sm:$0xff]  ;;  %v323_v1 = vadd.f32 %v3363_v8, %v287_v46  ;;  %v296_v3 = vmul.f32 %v3356_v6, %v260_v48 }
  0x1b   : > { %3237 = vmatpush.msra.mxu3 %v563_v14  ;;  %578 = vmatpush.msra.mxu0 %v563_v14  ;;  %386 = vst [vmem:[#allocation2 + $0x70] sm:$0x3] %v3285_v2  ;;  %v3124_v63 = vld [vmem:[%s4362_s3 + $0x1d0] sm:$0xff]  ;;  %v3142_v0 = vld [vmem:[%s4362_s3 + $0x260] sm:$0xff]  ;;  %v331_v7 = vadd.f32 %v3363_v8, %v295_v51  ;;  %v281_v9 = vmul.f32 %v3356_v6, %v245_v49  ;;  %v261_v10 = vld [vmem:[%s3351_s8 + $0xc8] sm:$0xff] }
  0x1c   : > { %3238 = vmatpush.msra.mxu1 %v562_v15  ;;  %3239 = vmatpush.msra.mxu2 %v562_v15  ;;  %387 = vst [vmem:[#allocation2 + $0x78] sm:$0xff] %v3285_v2  ;;  %v236_v4 = vld [vmem:[%s3351_s8] sm:$0xff]  ;;  %v316_v14 = vadd.f32 %v3363_v8, %v280_v56  ;;  %v3107_v29 = vld [vmem:[%s4362_s3 + $0x148] sm:$0xff]  ;;  %v262_v30 = vld [vmem:[%s3351_s8 + $0xd0] sm:$0xff] }
  0x1d   : > { %3240 = vmatpush.msra.mxu3 %v562_v15  ;;  %579 = vmatpush.msra.mxu0 %v562_v15  ;;  %388 = vst [vmem:[#allocation2 + $0x80] sm:$0xff] %v3285_v2  ;;  %v289_v15 = vmul.f32 %v3356_v6, %v253_v54  ;;  %v3106_v39 = vld [vmem:[%s4362_s3 + $0x140] sm:$0xff]  ;;  %v3140_v41 = vld [vmem:[%s4362_s3 + $0x250] sm:$0xff]  ;;  %v298_v45 = vmul.f32 %v3356_v6, %v262_v30  ;;  %v247_v46 = vld [vmem:[%s3351_s8 + $0x58] sm:$0xff] }
  0x1e   : > { %3241 = vmatpush.msra.mxu1 %v561_v16  ;;  %3242 = vmatpush.msra.mxu2 %v561_v16  ;;  %389 = vst [vmem:[#allocation2 + $0x88] sm:$0x3] %v3285_v2  ;;  %v3122_v40 = vld [vmem:[%s4362_s3 + $0x1c0] sm:$0xff]  ;;  %v255_v47 = vld [vmem:[%s3351_s8 + $0x98] sm:$0xff]  ;;  %v238_v48 = vld [vmem:[%s3351_s8 + $0x10] sm:$0xff]  ;;  %v283_v51 = vmul.f32 %v3356_v6, %v247_v46 }
  0x1f   : > { %3243 = vmatpush.msra.mxu3 %v561_v16  ;;  %580 = vmatpush.msra.mxu0 %v561_v16  ;;  %390 = vst [vmem:[#allocation2 + $0x90] sm:$0xff] %v3285_v2  ;;  %v3427_v23 = vld [vmem:[#allocation2 + $0x60] sm:$0xff]  ;;  %v246_v16 = vld [vmem:[%s3351_s8 + $0x50] sm:$0xff]  ;;  %v291_v55 = vmul.f32 %v3356_v6, %v255_v47  ;;  %v239_v30 = vld [vmem:[%s3351_s8 + $0x18] sm:$0xff] }
  0x20   : > { %3244 = vmatpush.msra.mxu1 %v560_v17  ;;  %3245 = vmatpush.msra.mxu2 %v560_v17  ;;  %391 = vst [vmem:[#allocation2 + $0x98] sm:$0xff] %v3285_v2  ;;  %v3119_v46 = vld [vmem:[%s4362_s3 + $0x1a8] sm:$0xff]  ;;  %v3137_v47 = vld [vmem:[%s4362_s3 + $0x238] sm:$0xff] }
  0x21   : > { %3246 = vmatpush.msra.mxu3 %v560_v17  ;;  %581 = vmatpush.msra.mxu0 %v560_v17  ;;  %392 = vst [vmem:[#allocation2 + $0xa0] sm:$0x3] %v3285_v2  ;;  %v3550_v17 = vmax.f32 %v315_v60, 0.0 }
  0x22   : > { %3247 = vmatpush.msra.mxu1 %v559_v18  ;;  %3248 = vmatpush.msra.mxu2 %v559_v18  ;;  %393 = vst [vmem:[#allocation2 + $0xa8] sm:$0xff] %v3285_v2 }
  0x23   : > { %3249 = vmatpush.msra.mxu3 %v559_v18  ;;  %394 = vst [vmem:[#allocation2 + $0xb0] sm:$0xff] %v3285_v2  ;;  %582 = vmatpush.msra.mxu0 %v559_v18  ;;  %v324_v18 = vadd.f32 %v3363_v8, %v288_v61  ;;  %v334_v61 = vadd.f32 %v3363_v8, %v298_v45 }
  0x24   : > { %3250 = vmatpush.msra.mxu1 %v558_v19  ;;  %3251 = vmatpush.msra.mxu2 %v558_v19  ;;  %395 = vst [vmem:[#allocation2 + $0xb8] sm:$0x3] %v3285_v2 }
  0x25   : > { %3252 = vmatpush.msra.mxu3 %v558_v19  ;;  %396 = vst [vmem:[#allocation2 + $0xc0] sm:$0xff] %v3285_v2  ;;  %583 = vmatpush.msra.mxu0 %v558_v19  ;;  %v272_v19 = vmul.f32 %v3356_v6, %v236_v4  ;;  %v319_v4 = vadd.f32 %v3363_v8, %v283_v51  ;;  %v3087_v51 = vld [vmem:[%s4362_s3 + $0xa8] sm:$0xff] }
  0x26   : > { %3253 = vmatpush.msra.mxu1 %v557_v20  ;;  %3254 = vmatpush.msra.mxu2 %v557_v20  ;;  %397 = vst [vmem:[#allocation2 + $0xc8] sm:$0xff] %v3285_v2 }
  0x27   : > { %3255 = vmatpush.msra.mxu3 %v557_v20  ;;  %398 = vst [vmem:[#allocation2 + $0xd0] sm:$0x3] %v3285_v2  ;;  %584 = vmatpush.msra.mxu0 %v557_v20  ;;  %v254_v20 = vld [vmem:[%s3351_s8 + $0x90] sm:$0xff] }
  0x28   : > { %3256 = vmatpush.msra.mxu1 %v556_v21  ;;  %3257 = vmatpush.msra.mxu2 %v556_v21  ;;  %399 = vst [vmem:[#allocation2 + $0xd8] sm:$0xff] %v3285_v2 }
  0x29   : > { %3258 = vmatpush.msra.mxu3 %v556_v21  ;;  %400 = vst [vmem:[#allocation2 + $0xe0] sm:$0xff] %v3285_v2  ;;  %585 = vmatpush.msra.mxu0 %v556_v21  ;;  %v355_v21 = vmax.f32 %v323_v1, 0.0  ;;  %v3090_v1 = vld [vmem:[%s4362_s3 + $0xc0] sm:$0xff] }
  0x2a   : > { %3259 = vmatpush.msra.mxu1 %v555_v22  ;;  %3260 = vmatpush.msra.mxu2 %v555_v22  ;;  %401 = vst [vmem:[#allocation2 + $0xe8] sm:$0x3] %v3285_v2 }
  0x2b   : > { %611 = vmatmul.f32.vlgmr.msra.gmra.mxu1 %v3427_v23  ;;  %402 = vst [vmem:[#allocation2 + $0xf0] sm:$0xff] %v3285_v2  ;;  %3261 = vmatpush.msra.mxu3 %v555_v22 }
  0x2c   : > { %403 = vst [vmem:[#allocation2 + $0xf8] sm:$0xff] %v3285_v2  ;;  %1087 = vmatpush.msrb.mxu2 %v3113_v24  ;;  %586 = vmatpush.msra.mxu0 %v555_v22  ;;  %v332_v22 = vadd.f32 %v3363_v8, %v296_v3  ;;  %v297_v24 = vmul.f32 %v3356_v6, %v261_v10  ;;  %v3105_v3 = vld [vmem:[%s4362_s3 + $0x138] sm:$0xff]  ;;  %v3139_v10 = vld [vmem:[%s4362_s3 + $0x248] sm:$0xff] }
  0x2d   : > { %404 = vst [vmem:[#allocation2 + $0x100] sm:$0x3] %v3285_v2  ;;  %1345 = vmatpush.msrb.mxu3 %v3129_v25  ;;  %829 = vmatpush.msrb.mxu1 %v3097_v26  ;;  %v237_v25 = vld [vmem:[%s3351_s8 + $0x8] sm:$0xff]  ;;  %v363_v26 = vmax.f32 %v331_v7, 0.0 }
  0x2e   : > { %405 = vst [vmem:[#allocation2 + $0x108] sm:$0xff] %v3285_v2  ;;  %1088 = vmatpush.msrb.mxu2 %v3112_v27  ;;  %587 = vmatmul.f32.vlgmr.msra.gmra.mxu0 %v3285_v2  ;;  %v317_v27 = vadd.f32 %v3363_v8, %v281_v9  ;;  %v273_v42 = vmul.f32 %v3356_v6, %v237_v25  ;;  %v364_v43 = vmax.f32 %v332_v22, 0.0  ;;  %v3121_v9 = vld [vmem:[%s4362_s3 + $0x1b8] sm:$0xff]  ;;  %v248_v25 = vld [vmem:[%s3351_s8 + $0x60] sm:$0xff] }
  0x2f   : > { %406 = vst [vmem:[#allocation2 + $0x110] sm:$0xff] %v3285_v2  ;;  %1346 = vmatpush.msrb.mxu3 %v3128_v28  ;;  %830 = vmatpush.msrb.mxu1 %v3096_v31  ;;  %v3092_v28 = vld [vmem:[%s4362_s3 + $0xd0] sm:$0xff]  ;;  %v3568_v31 = vmax.f32 %v316_v14, 0.0  ;;  %v333_v44 = vadd.f32 %v3363_v8, %v297_v24  ;;  %v3655_v24 = vmax.f32 %v319_v4, 0.0 }
  0x30   : > { %407 = vst [vmem:[#allocation2 + $0x118] sm:$0x3] %v3285_v2  ;;  %1089 = vmatpush.msrb.mxu2 %v3111_v32  ;;  %1603 = vmatpush.msrb.mxu0 %v3145_v34  ;;  %v325_v32 = vadd.f32 %v3363_v8, %v289_v15  ;;  %v3141_v34 = vld [vmem:[%s4362_s3 + $0x258] sm:$0xff]  ;;  %v3598_v49 = vmax.f32 %v317_v27, 0.0 }
  0x31   : > { %408 = vst [vmem:[#allocation2 + $0x120] sm:$0xff] %v3285_v2  ;;  %1347 = vmatpush.msrb.mxu3 %v3127_v33  ;;  %831 = vmatpush.msrb.mxu1 %v3095_v35  ;;  %v3123_v33 = vld [vmem:[%s4362_s3 + $0x1c8] sm:$0xff]  ;;  %v365_v60 = vmax.f32 %v333_v44, 0.0  ;;  %v3089_v15 = vld [vmem:[%s4362_s3 + $0xb8] sm:$0xff] }
  0x32   : > { %409 = vst [vmem:[#allocation2 + $0x128] sm:$0xff] %v3285_v2  ;;  %1090 = vmatpush.msrb.mxu2 %v3110_v36  ;;  %1604 = vmatpush.msrb.mxu0 %v3144_v38  ;;  %v3091_v35 = vld [vmem:[%s4362_s3 + $0xc8] sm:$0xff]  ;;  %v290_v36 = vmul.f32 %v3356_v6, %v254_v20  ;;  %v308_v38 = vadd.f32 %v3363_v8, %v272_v19  ;;  %v366_v19 = vmax.f32 %v334_v61, 0.0  ;;  %v3120_v20 = vld [vmem:[%s4362_s3 + $0x1b0] sm:$0xff] }
  0x33   : > { %410 = vst [vmem:[#allocation2 + $0x130] sm:$0x3] %v3285_v2  ;;  %1348 = vmatpush.msrb.mxu3 %v3126_v37  ;;  %832 = vmatpush.msrb.mxu1 %v3094_v52  ;;  %v356_v37 = vmax.f32 %v324_v18, 0.0  ;;  %v263_v52 = vld [vmem:[%s3351_s8 + $0xd8] sm:$0xff] }
  0x34   : > { %411 = vst [vmem:[#allocation2 + $0x138] sm:$0xff] %v3285_v2  ;;  %1091 = vmatpush.msrb.mxu2 %v3109_v53  ;;  %1605 = vmatpush.msrb.mxu0 %v3143_v58  ;;  %v3604_v53 = vmax.f32 %v325_v32, 0.0  ;;  %v326_v54 = vadd.f32 %v3363_v8, %v290_v36  ;;  %v3608_v56 = vmax.f32 %v308_v38, 0.0  ;;  %v274_v58 = vmul.f32 %v3356_v6, %v238_v48  ;;  %v264_v32 = vld [vmem:[%s3351_s8 + $0xe0] sm:$0xff] }
  0x35   : > { %412 = vst [vmem:[#allocation2 + $0x140] sm:$0xff] %v3285_v2  ;;  %1349 = vmatpush.msrb.mxu3 %v3125_v57  ;;  %833 = vmatpush.msrb.mxu1 %v3093_v59  ;;  %v309_v57 = vadd.f32 %v3363_v8, %v273_v42  ;;  %v300_v36 = vmul.f32 %v3356_v6, %v264_v32  ;;  %v3103_v42 = vld [vmem:[%s4362_s3 + $0x128] sm:$0xff] }
  0x36   : > { %413 = vst [vmem:[#allocation2 + $0x148] sm:$0x3] %v3285_v2  ;;  %590 = vmatmul.f32.gmra.mxu0 %v3285_v2  ;;  %1092 = vmatpush.msrb.mxu2 %v3108_v62  ;;  %v299_v62 = vmul.f32 %v3356_v6, %v263_v52  ;;  %v3627_v7 = vmax.f32 %v326_v54, 0.0  ;;  %v310_v18 = vadd.f32 %v3363_v8, %v274_v58  ;;  %v3102_v52 = vld [vmem:[%s4362_s3 + $0x120] sm:$0xff] }
  0x37   : > { %414 = vst [vmem:[#allocation2 + $0x150] sm:$0xff] %v3285_v2  ;;  %1350 = vmatpush.msrb.mxu3 %v3124_v63  ;;  %1606 = vmatpush.msrb.mxu0 %v3142_v0  ;;  %v3638_v14 = vmax.f32 %v309_v57, 0.0  ;;  %v336_v44 = vadd.f32 %v3363_v8, %v300_v36  ;;  %v3136_v57 = vld [vmem:[%s4362_s3 + $0x230] sm:$0xff]  ;;  %v3134_v36 = vld [vmem:[%s4362_s3 + $0x220] sm:$0xff] }
  0x38   : > { %415 = vst [vmem:[#allocation2 + $0x158] sm:$0xff] %v3285_v2  ;;  %834 = vmatpush.msrb.mxu1 %v3092_v28  ;;  %1093 = vmatpush.msrb.mxu2 %v3107_v29  ;;  %v335_v22 = vadd.f32 %v3363_v8, %v299_v62  ;;  %v284_v29 = vmul.f32 %v3356_v6, %v248_v25  ;;  %v3117_v25 = vld [vmem:[%s4362_s3 + $0x198] sm:$0xff] }
  0x39   : > { %416 = vst [vmem:[#allocation2 + $0x160] sm:$0x3] %v3285_v2  ;;  %1351 = vmatpush.msrb.mxu3 %v3123_v33  ;;  %1607 = vmatpush.msrb.mxu0 %v3141_v34  ;;  %v3667_v34 = vmax.f32 %v310_v18, 0.0  ;;  %v368_v58 = vmax.f32 %v336_v44, 0.0 }
  0x3a   : > { %417 = vst [vmem:[#allocation2 + $0x168] sm:$0xff] %v3285_v2  ;;  %835 = vmatpush.msrb.mxu1 %v3091_v35  ;;  %1094 = vmatpush.msrb.mxu2 %v3106_v39  ;;  %v275_v35 = vmul.f32 %v3356_v6, %v239_v30  ;;  %v367_v38 = vmax.f32 %v335_v22, 0.0  ;;  %v320_v39 = vadd.f32 %v3363_v8, %v284_v29  ;;  %v3100_v30 = vld [vmem:[%s4362_s3 + $0x110] sm:$0xff] }
  0x3b   : > { %418 = vst [vmem:[#allocation2 + $0x170] sm:$0xff] %v3285_v2  ;;  %1352 = vmatpush.msrb.mxu3 %v3122_v40  ;;  %1608 = vmatpush.msrb.mxu0 %v3140_v41  ;;  %v3088_v41 = vld [vmem:[%s4362_s3 + $0xb0] sm:$0xff] }
  0x3c   : > { %419 = vst [vmem:[#allocation2 + $0x178] sm:$0x3] %v3285_v2  ;;  %836 = vmatpush.msrb.mxu1 %v3090_v1  ;;  %1095 = vmatpush.msrb.mxu2 %v3105_v3  ;;  %v3693_v48 = vmax.f32 %v320_v39, 0.0  ;;  %v240_v1 = vld [vmem:[%s3351_s8 + $0x20] sm:$0xff]  ;;  %v265_v3 = vld [vmem:[%s3351_s8 + $0xe8] sm:$0xff] }
  0x3d   : > { %420 = vst [vmem:[#allocation2 + $0x180] sm:$0xff] %v3285_v2  ;;  %1353 = vmatpush.msrb.mxu3 %v3121_v9  ;;  %1609 = vmatpush.msrb.mxu0 %v3139_v10  ;;  %v276_v9 = vmul.f32 %v3356_v6, %v240_v1  ;;  %v301_v10 = vmul.f32 %v3356_v6, %v265_v3  ;;  %v3177_v3 = vld [vmem:[%s4362_s3 + $0x378] sm:$0xff] }
  0x3e   : > { %421 = vst [vmem:[#allocation2 + $0x188] sm:$0xff] %v3285_v2  ;;  %837 = vmatpush.msrb.mxu1 %v3089_v15 }
  0x3f   : > { %422 = vst [vmem:[#allocation2 + $0x190] sm:$0x3] %v3285_v2  ;;  %1354 = vmatpush.msrb.mxu3 %v3120_v20  ;;  %v3101_v20 = vld [vmem:[%s4362_s3 + $0x118] sm:$0xff]  ;;  %v337_v22 = vadd.f32 %v3363_v8, %v301_v10 }
  0x40   : > { %423 = vst [vmem:[#allocation2 + $0x198] sm:$0xff] %v3285_v2  ;;  %838 = vmatpush.msrb.mxu1 %v3088_v41  ;;  %v3161_v10 = vld [vmem:[%s4362_s3 + $0x2f8] sm:$0xff] }
  0x41   : > { %424 = vst [vmem:[#allocation2 + $0x1a0] sm:$0xff] %v3285_v2  ;;  %1355 = vmatpush.msrb.mxu3 %v3119_v46  ;;  %v3084_v46 = vld [vmem:[%s4362_s3 + $0x90] sm:$0xff] }
  0x42   : > { %425 = vst [vmem:[#allocation2 + $0x1a8] sm:$0x3] %v3285_v2  ;;  %v282_v2 = vmul.f32 %v3356_v6, %v246_v16  ;;  %v3104_v16 = vld [vmem:[%s4362_s3 + $0x130] sm:$0xff]  ;;  %839 = vmatpush.msrb.mxu1 %v3087_v51  ;;  %v3083_v51 = vld [vmem:[%s4362_s3 + $0x88] sm:$0xff] }
  0x43   : > { %441 = vst [vmem:[#allocation2 + $0xc1] sm:$0xff] %v354_v5  ;;  %1096 = vmatpush.msrb.mxu2 %v3104_v16 }
  0x44   : > { %449 = vst [vmem:[#allocation2 + $0x121] sm:$0xff] %v362_v12  ;;  %v318_v50 = vadd.f32 %v3363_v8, %v282_v2  ;;  %v327_v12 = vadd.f32 %v3363_v8, %v291_v55  ;;  %v3118_v55 = vld [vmem:[%s4362_s3 + $0x1a0] sm:$0xff] }
  0x45   : > { %434 = vst [vmem:[#allocation2 + $0x69] sm:$0xff] %v3550_v17  ;;  %1097 = vmatpush.msrb.mxu2 %v3103_v42  ;;  %1356 = vmatpush.msrb.mxu3 %v3118_v55  ;;  %v3098_v55 = vld [vmem:[%s4362_s3 + $0x100] sm:$0xff] }
  0x46   : > { %442 = vst [vmem:[#allocation2 + $0xc9] sm:$0xff] %v355_v21  ;;  %v3615_v0 = vmax.f32 %v318_v50, 0.0  ;;  %v3138_v21 = vld [vmem:[%s4362_s3 + $0x240] sm:$0xff]  ;;  %v3660_v28 = vmax.f32 %v327_v12, 0.0 }
  0x47   : > { %450 = vst [vmem:[#allocation2 + $0x129] sm:$0xff] %v363_v26  ;;  %v256_v26 = vld [vmem:[%s3351_s8 + $0xa0] sm:$0xff]  ;;  %1610 = vmatpush.msrb.mxu0 %v3138_v21  ;;  %1098 = vmatpush.msrb.mxu2 %v3102_v52  ;;  %v312_v21 = vadd.f32 %v3363_v8, %v276_v9  ;;  %v3193_v9 = vld [vmem:[%s4362_s3 + $0x3f8] sm:$0xff] }
  0x48   : > { %435 = vst [vmem:[#allocation2 + $0x79] sm:$0xff] %v3568_v31  ;;  %v292_v2 = vmul.f32 %v3356_v6, %v256_v26  ;;  %v3135_v26 = vld [vmem:[%s4362_s3 + $0x228] sm:$0xff]  ;;  %1357 = vmatpush.msrb.mxu3 %v3117_v25 }
  0x49   : > { %443 = vst [vmem:[#allocation2 + $0xd9] sm:$0xff] %v356_v37  ;;  %1611 = vmatpush.msrb.mxu0 %v3137_v47  ;;  %v3760_v32 = vmax.f32 %v312_v21, 0.0  ;;  %1099 = vmatpush.msrb.mxu2 %v3101_v20  ;;  %v3099_v47 = vld [vmem:[%s4362_s3 + $0x108] sm:$0xff] }
  0x4a   : > { %v507_v59 = vld [vmem:[#allocation2 + $0xc0] sm:$0xff]  ;;  %451 = vst [vmem:[#allocation2 + $0x139] sm:$0xff] %v364_v43  ;;  %v328_v40 = vadd.f32 %v3363_v8, %v292_v2  ;;  %v311_v43 = vadd.f32 %v3363_v8, %v275_v35  ;;  %v3085_v2 = vld [vmem:[%s4362_s3 + $0x98] sm:$0xff]  ;;  %v3116_v35 = vld [vmem:[%s4362_s3 + $0x190] sm:$0xff] }
  0x4b   : > { %635 = vmatmul.f32.vlgmr.msra.gmra.mxu2 %v507_v59  ;;  %v515_v63 = vld [vmem:[#allocation2 + $0x120] sm:$0xff]  ;;  %436 = vst [vmem:[#allocation2 + $0x81] sm:$0xff] %v3598_v49  ;;  %v249_v59 = vld [vmem:[%s3351_s8 + $0x68] sm:$0xff]  ;;  %1612 = vmatpush.msrb.mxu0 %v3136_v57 }
  0x4c   : > { %659 = vmatmul.f32.vlgmr.msra.gmra.mxu3 %v515_v63  ;;  %v3624_v5 = vld [vmem:[#allocation2 + $0x68] sm:$0xff]  ;;  %444 = vst [vmem:[#allocation2 + $0xe1] sm:$0xff] %v3604_v53  ;;  %v3695_v50 = vmax.f32 %v328_v40, 0.0  ;;  %v3706_v54 = vmax.f32 %v311_v43, 0.0  ;;  %v285_v62 = vmul.f32 %v3356_v6, %v249_v59  ;;  %1100 = vmatpush.msrb.mxu2 %v3100_v30  ;;  %v3114_v57 = vld [vmem:[%s4362_s3 + $0x180] sm:$0xff] }
  0x4d   : > { %614 = vmatmul.f32.gmra.mxu1 %v3624_v5  ;;  %427 = vst [vmem:[#allocation2 + $0x19] sm:$0xff] %v3608_v56  ;;  %v508_v27 = vld [vmem:[#allocation2 + $0xc8] sm:$0xff]  ;;  %1613 = vmatpush.msrb.mxu0 %v3135_v26  ;;  %v3082_v59 = vld [vmem:[%s4362_s3 + $0x80] sm:$0xff] }
  0x4e   : > { %452 = vst [vmem:[#allocation2 + $0x141] sm:$0xff] %v365_v60  ;;  %v516_v33 = vld [vmem:[#allocation2 + $0x128] sm:$0xff]  ;;  %v321_v16 = vadd.f32 %v3363_v8, %v285_v62  ;;  %1358 = vmatpush.msrb.mxu3 %v3116_v35  ;;  %1101 = vmatpush.msrb.mxu2 %v3099_v47  ;;  %v3192_v35 = vld [vmem:[%s4362_s3 + $0x3f0] sm:$0xff] }
  0x4f   : > { %437 = vst [vmem:[#allocation2 + $0x91] sm:$0xff] %v3615_v0  ;;  %v3671_v37 = vld [vmem:[#allocation2 + $0x78] sm:$0xff]  ;;  %v257_v60 = vld [vmem:[%s3351_s8 + $0xa8] sm:$0xff]  ;;  %1614 = vmatpush.msrb.mxu0 %v3134_v36  ;;  %v3160_v36 = vld [vmem:[%s4362_s3 + $0x2f0] sm:$0xff] }
  0x50   : > { %445 = vst [vmem:[#allocation2 + $0xf1] sm:$0xff] %v3627_v7  ;;  %v3717_v61 = vld [vmem:[#allocation2 + $0xd8] sm:$0xff]  ;;  %v293_v63 = vmul.f32 %v3356_v6, %v257_v60  ;;  %1102 = vmatpush.msrb.mxu2 %v3098_v55  ;;  %v749_v47 = vld [vmem:[#allocation2 + $0x9] sm:$0xff] }
  0x51   : > { %428 = vst [vmem:[#allocation2 + $0x21] sm:$0xff] %v3638_v14  ;;  %v517_v4 = vld [vmem:[#allocation2 + $0x138] sm:$0xff]  ;;  %v1007_v55 = vld [vmem:[#allocation2 + $0xa] sm:$0xff] }
  0x52   : > { %453 = vst [vmem:[#allocation2 + $0x151] sm:$0xff] %v366_v19  ;;  %v3727_v12 = vld [vmem:[#allocation2 + $0x80] sm:$0xff]  ;;  %v329_v18 = vadd.f32 %v3363_v8, %v293_v63  ;;  %2120 = vmatpush.msra.mxu2 %v3177_v3 }
  0x53   : > { %638 = vmatmul.f32.gmra.mxu2 %v508_v27  ;;  %438 = vst [vmem:[#allocation2 + $0x99] sm:$0xff] %v3655_v24  ;;  %v3086_v19 = vld [vmem:[%s4362_s3 + $0xa0] sm:$0xff]  ;;  %v3748_v27 = vmax.f32 %v321_v16, 0.0 }
  0x54   : > { %662 = vmatmul.f32.gmra.mxu3 %v516_v33  ;;  %v3684_v45 = vld [vmem:[#allocation2 + $0x18] sm:$0xff]  ;;  %446 = vst [vmem:[#allocation2 + $0xf9] sm:$0xff] %v3660_v28  ;;  %840 = vmatpush.msrb.mxu1 %v3086_v19  ;;  %v3750_v29 = vmax.f32 %v329_v18, 0.0  ;;  %v369_v33 = vmax.f32 %v337_v22, 0.0  ;;  %v3771_v39 = vld [vmem:[#allocation2 + $0xe0] sm:$0xff] }
  0x55   : > { %617 = vmatmul.f32.gmra.mxu1 %v3671_v37  ;;  %593 = vmatmul.f32.gmra.mxu0 %v3684_v45  ;;  %429 = vst [vmem:[#allocation2 + $0x31] sm:$0xff] %v3667_v34  ;;  %v518_v41 = vld [vmem:[#allocation2 + $0x140] sm:$0xff]  ;;  %v3209_v22 = vld [vmem:[%s4362_s3 + $0x478] sm:$0xff] }
  0x56   : > { %454 = vst [vmem:[#allocation2 + $0x159] sm:$0xff] %v367_v38  ;;  %841 = vmatpush.msrb.mxu1 %v3085_v2  ;;  %v241_v38 = vld [vmem:[%s3351_s8 + $0x28] sm:$0xff]  ;;  %v3775_v42 = vld [vmem:[#allocation2 + $0x90] sm:$0xff]  ;;  %v3130_v16 = vld [vmem:[%s4362_s3 + $0x200] sm:$0xff] }
  0x57   : > { %439 = vst [vmem:[#allocation2 + $0xa9] sm:$0xff] %v3693_v48  ;;  %v277_v40 = vmul.f32 %v3356_v6, %v241_v38  ;;  %v3115_v6 = vld [vmem:[%s4362_s3 + $0x188] sm:$0xff]  ;;  %v3813_v60 = vld [vmem:[#allocation2 + $0xf0] sm:$0xff] }
  0x58   : > { %447 = vst [vmem:[#allocation2 + $0x109] sm:$0xff] %v3695_v50  ;;  %v3729_v15 = vld [vmem:[#allocation2 + $0x20] sm:$0xff]  ;;  %842 = vmatpush.msrb.mxu1 %v3084_v46  ;;  %1359 = vmatpush.msrb.mxu3 %v3115_v6  ;;  %v3175_v6 = vld [vmem:[%s4362_s3 + $0x368] sm:$0xff] }
  0x59   : > { %430 = vst [vmem:[#allocation2 + $0x39] sm:$0xff] %v3706_v54  ;;  %v313_v44 = vadd.f32 %v3363_v8, %v277_v40  ;;  %v3133_v8 = vld [vmem:[%s4362_s3 + $0x218] sm:$0xff]  ;;  %v519_v62 = vld [vmem:[#allocation2 + $0x150] sm:$0xff]  ;;  %v1006_v46 = vld [vmem:[#allocation2 + $0x2] sm:$0xff] }
  0x5a   : > { %455 = vst [vmem:[#allocation2 + $0x169] sm:$0xff] %v368_v58  ;;  %v3132_v58 = vld [vmem:[%s4362_s3 + $0x210] sm:$0xff]  ;;  %1615 = vmatpush.msrb.mxu0 %v3133_v8  ;;  %843 = vmatpush.msrb.mxu1 %v3083_v51  ;;  %v3815_v63 = vld [vmem:[#allocation2 + $0x98] sm:$0xff]  ;;  %v3191_v8 = vld [vmem:[%s4362_s3 + $0x3e8] sm:$0xff] }
  0x5b   : > { %641 = vmatmul.f32.gmra.mxu2 %v3717_v61  ;;  %440 = vst [vmem:[#allocation2 + $0xb1] sm:$0xff] %v3748_v27  ;;  %v3796_v52 = vmax.f32 %v313_v44, 0.0  ;;  %1360 = vmatpush.msrb.mxu3 %v3114_v57  ;;  %v3837_v18 = vld [vmem:[#allocation2 + $0xf8] sm:$0xff]  ;;  %v3208_v44 = vld [vmem:[%s4362_s3 + $0x470] sm:$0xff]  ;;  %v3159_v51 = vld [vmem:[%s4362_s3 + $0x2e8] sm:$0xff] }
  0x5c   : > { %665 = vmatmul.f32.gmra.mxu3 %v517_v4  ;;  %448 = vst [vmem:[#allocation2 + $0x111] sm:$0xff] %v3750_v29  ;;  %v3777_v43 = vld [vmem:[#allocation2 + $0x30] sm:$0xff]  ;;  %1616 = vmatpush.msrb.mxu0 %v3132_v58  ;;  %v3131_v4 = vld [vmem:[%s4362_s3 + $0x208] sm:$0xff]  ;;  %v1008_v57 = vld [vmem:[#allocation2 + $0x1a] sm:$0xff] }
  0x5d   : > { %620 = vmatmul.f32.gmra.mxu1 %v3727_v12  ;;  %596 = vmatmul.f32.gmra.mxu0 %v3729_v15  ;;  %431 = vst [vmem:[#allocation2 + $0x49] sm:$0xff] %v3760_v32  ;;  %v520_v19 = vld [vmem:[#allocation2 + $0x158] sm:$0xff]  ;;  %v3174_v58 = vld [vmem:[%s4362_s3 + $0x360] sm:$0xff] }
  0x5e   : > { %456 = vst [vmem:[#allocation2 + $0x171] sm:$0xff] %v369_v33  ;;  %844 = vmatpush.msrb.mxu1 %v3082_v59  ;;  %1617 = vmatpush.msrb.mxu0 %v3131_v4  ;;  %v3839_v20 = vld [vmem:[#allocation2 + $0xa8] sm:$0xff]  ;;  %v3176_v33 = vld [vmem:[%s4362_s3 + $0x370] sm:$0xff]  ;;  %v3205_v4 = vld [vmem:[%s4362_s3 + $0x458] sm:$0xff] }
  0x5f   : > { %432 = vst [vmem:[#allocation2 + $0x51] sm:$0xff] %v3796_v52  ;;  %2378 = vmatpush.msra.mxu3 %v3193_v9  ;;  %v3849_v25 = vld [vmem:[#allocation2 + $0x108] sm:$0xff]  ;;  %2121 = vmatpush.msra.mxu2 %v3176_v33  ;;  %v3172_v9 = vld [vmem:[%s4362_s3 + $0x350] sm:$0xff] }
  0x60   : > { %v3817_v1 = vld [vmem:[#allocation2 + $0x38] sm:$0xff]  ;;  %1861 = vmatpush.msra.mxu1 %v3161_v10  ;;  %1618 = vmatpush.msrb.mxu0 %v3130_v16  ;;  %v1009_v59 = vld [vmem:[#allocation2 + $0x22] sm:$0xff]  ;;  %v3188_v10 = vld [vmem:[%s4362_s3 + $0x3d0] sm:$0xff] }
  0x61   : > { %v521_v26 = vld [vmem:[#allocation2 + $0x168] sm:$0xff]  ;;  %2379 = vmatpush.msra.mxu3 %v3192_v35  ;;  %2122 = vmatpush.msra.mxu2 %v3175_v6  ;;  %v1011_v3 = vld [vmem:[#allocation2 + $0x3a] sm:$0xff] }
  0x62   : > { %2636 = vmatpush.msra.mxu0 %v3209_v22  ;;  %v3851_v2 = vld [vmem:[#allocation2 + $0xb0] sm:$0xff]  ;;  %1862 = vmatpush.msra.mxu1 %v3160_v36  ;;  %v3155_v33 = vld [vmem:[%s4362_s3 + $0x2c8] sm:$0xff] }
  0x63   : > { %644 = vmatmul.f32.gmra.mxu2 %v3771_v39  ;;  %v3867_v38 = vld [vmem:[#allocation2 + $0x110] sm:$0xff]  ;;  %2380 = vmatpush.msra.mxu3 %v3191_v8 }
  0x64   : > { %668 = vmatmul.f32.gmra.mxu3 %v518_v41  ;;  %v3841_v21 = vld [vmem:[#allocation2 + $0x48] sm:$0xff]  ;;  %2637 = vmatpush.msra.mxu0 %v3208_v44 }
  0x65   : > { %623 = vmatmul.f32.gmra.mxu1 %v3775_v42  ;;  %599 = vmatmul.f32.gmra.mxu0 %v3777_v43  ;;  %v522_v40 = vld [vmem:[#allocation2 + $0x170] sm:$0xff]  ;;  %v748_v41 = vld [vmem:[#allocation2 + $0x1] sm:$0xff] }
  0x66   : > { %v3853_v30 = vld [vmem:[#allocation2 + $0x50] sm:$0xff]  ;;  %1863 = vmatpush.msra.mxu1 %v3159_v51  ;;  %2123 = vmatpush.msra.mxu2 %v3174_v58  ;;  %v3154_v51 = vld [vmem:[%s4362_s3 + $0x2c0] sm:$0xff] }
  0x6b   : > { %647 = vmatmul.f32.gmra.mxu2 %v3813_v60 }
  0x6c   : > { %671 = vmatmul.f32.gmra.mxu3 %v519_v62  ;;  %v1010_v62 = vld [vmem:[#allocation2 + $0x32] sm:$0xff] }
  0x6d   : > { %626 = vmatmul.f32.gmra.mxu1 %v3815_v63  ;;  %602 = vmatmul.f32.gmra.mxu0 %v3817_v1 }
  0x73   : > { %650 = vmatmul.f32.gmra.mxu2 %v3837_v18 }
  0x74   : > { %674 = vmatmul.f32.gmra.mxu3 %v520_v19  ;;  %v1014_v19 = vld [vmem:[#allocation2 + $0x62] sm:$0xff] }
  0x75   : > { %629 = vmatmul.f32.gmra.mxu1 %v3839_v20  ;;  %605 = vmatmul.f32.gmra.mxu0 %v3841_v21 }
  0x7b   : > { %653 = vmatmul.f32.gmra.mxu2 %v3849_v25 }
  0x7c   : > { %677 = vmatmul.f32.gmra.mxu3 %v521_v26  ;;  %v3171_v26 = vld [vmem:[%s4362_s3 + $0x348] sm:$0xff] }
  0x7d   : > { %632 = vmatmul.f32.gmra.mxu1 %v3851_v2  ;;  %608 = vmatmul.f32.gmra.mxu0 %v3853_v30 }
  0x83   : > { %656 = vmatmul.f32.gmra.mxu2 %v3867_v38 }
  0x84   : > { %680 = vmatmul.f32.gmra.mxu3 %v522_v40 }
  0x85   : > { %845 = vmatmul.f32.vlgmr.msrb.gmra.mxu1 %v748_v41  ;;  %1619 = vmatmul.f32.vlgmr.msrb.gmra.mxu0 %v3608_v56 }
  0x8b   : > { %1103 = vmatmul.f32.vlgmr.msrb.gmra.mxu2 %v1006_v46  ;;  %v1016_v46 = vld [vmem:[#allocation2 + $0x7a] sm:$0xff] }
  0x8c   : > { %1361 = vmatmul.f32.vlgmr.msrb.gmra.mxu3 %v3684_v45  ;;  %v3207_v45 = vld [vmem:[%s4362_s3 + $0x468] sm:$0xff] }
  0x8d   : > { %848 = vmatmul.f32.gmra.mxu1 %v749_v47  ;;  %1622 = vmatmul.f32.gmra.mxu0 %v3638_v14 }
  0x8e   : > { %2638 = vmatpush.msra.mxu0 %v3207_v45 }
  0x93   : > { %1106 = vmatmul.f32.gmra.mxu2 %v1007_v55 }
  0x94   : > { %1364 = vmatmul.f32.gmra.mxu3 %v3729_v15  ;;  %v3190_v15 = vld [vmem:[%s4362_s3 + $0x3e0] sm:$0xff] }
  0x95   : > { %851 = vmatmul.f32.gmra.mxu1 %v3608_v56  ;;  %1625 = vmatmul.f32.gmra.mxu0 %v3667_v34  ;;  %v3158_v56 = vld [vmem:[%s4362_s3 + $0x2e0] sm:$0xff] }
  0x96   : > { %2381 = vmatpush.msra.mxu3 %v3190_v15  ;;  %1864 = vmatpush.msra.mxu1 %v3158_v56  ;;  %v1018_v56 = vld [vmem:[#allocation2 + $0x92] sm:$0xff] }
  0x9b   : > { %1109 = vmatmul.f32.gmra.mxu2 %v1008_v57 }
  0x9c   : > { %1367 = vmatmul.f32.gmra.mxu3 %v3777_v43  ;;  %v3206_v43 = vld [vmem:[%s4362_s3 + $0x460] sm:$0xff] }
  0x9d   : > { %854 = vmatmul.f32.gmra.mxu1 %v3638_v14  ;;  %1628 = vmatmul.f32.gmra.mxu0 %v3706_v54  ;;  %v3173_v14 = vld [vmem:[%s4362_s3 + $0x358] sm:$0xff] }
  0x9e   : > { %2639 = vmatpush.msra.mxu0 %v3206_v43  ;;  %2124 = vmatpush.msra.mxu2 %v3173_v14 }
  0xa0   : > { %2640 = vmatpush.msra.mxu0 %v3205_v4  ;;  %2125 = vmatpush.msra.mxu2 %v3172_v9  ;;  %v1536_v4 = vld [vmem:[#allocation2 + $0xc1] sm:$0xff] }
  0xa2   : > { %2126 = vmatpush.msra.mxu2 %v3171_v26 }
  0xa3   : > { %1112 = vmatmul.f32.gmra.mxu2 %v1009_v59 }
  0xa4   : > { %1370 = vmatmul.f32.gmra.mxu3 %v3817_v1  ;;  %v3189_v1 = vld [vmem:[%s4362_s3 + $0x3d8] sm:$0xff] }
  0xa5   : > { %857 = vmatmul.f32.gmra.mxu1 %v3667_v34  ;;  %1631 = vmatmul.f32.gmra.mxu0 %v3760_v32  ;;  %v3157_v34 = vld [vmem:[%s4362_s3 + $0x2d8] sm:$0xff] }
  0xa6   : > { %2382 = vmatpush.msra.mxu3 %v3189_v1  ;;  %1865 = vmatpush.msra.mxu1 %v3157_v34  ;;  %v3153_v1 = vld [vmem:[%s4362_s3 + $0x2b8] sm:$0xff] }
  0xa7   : > { %v1019_v34 = vld [vmem:[#allocation2 + $0x9a] sm:$0xff] }
  0xa8   : > { %2383 = vmatpush.msra.mxu3 %v3188_v10  ;;  %v3942_v16 = vpop.f32.mrf.mxu1  ;;  %v1020_v10 = vld [vmem:[#allocation2 + $0xaa] sm:$0xff] }
  0xab   : > { %1115 = vmatmul.f32.gmra.mxu2 %v1010_v62  ;;  %v3937_v11 = vpop.f32.mrf.mxu0 }
  0xac   : > { %1373 = vmatmul.f32.gmra.mxu3 %v3841_v21 }
  0xad   : > { %860 = vmatmul.f32.gmra.mxu1 %v3706_v54  ;;  %1634 = vmatmul.f32.gmra.mxu0 %v3796_v52  ;;  %v1012_v54 = vld [vmem:[#allocation2 + $0x4a] sm:$0xff] }
  0xb3   : > { %1118 = vmatmul.f32.gmra.mxu2 %v1011_v3  ;;  %v3949_v21 = vpop.f32.mrf.mxu0 }
  0xb4   : > { %1376 = vmatmul.f32.gmra.mxu3 %v3853_v30 }
  0xb5   : > { %863 = vmatmul.f32.gmra.mxu1 %v3760_v32  ;;  %1637 = vmatmul.f32.gmra.mxu0 %v346_v13  ;;  %v3156_v13 = vld [vmem:[%s4362_s3 + $0x2d0] sm:$0xff] }
  0xb6   : > { %1866 = vmatpush.msra.mxu1 %v3156_v13  ;;  %v1013_v32 = vld [vmem:[#allocation2 + $0x52] sm:$0xff]  ;;  %v1278_v13 = vld [vmem:[#allocation2 + $0xc0] sm:$0xff] }
  0xb8   : > { %1867 = vmatpush.msra.mxu1 %v3155_v33  ;;  %v1021_v33 = vld [vmem:[#allocation2 + $0xb2] sm:$0xff] }
  0xba   : > { %1868 = vmatpush.msra.mxu1 %v3154_v51 }
  0xbb   : > { %1121 = vmatmul.f32.gmra.mxu2 %v1012_v54 }
  0xbc   : > { %1379 = vmatmul.f32.gmra.mxu3 %v3427_v23  ;;  %v3204_v23 = vld [vmem:[%s4362_s3 + $0x450] sm:$0xff]  ;;  %1869 = vmatpush.msra.mxu1 %v3153_v1 }
  0xbd   : > { %866 = vmatmul.f32.gmra.mxu1 %v3796_v52  ;;  %1640 = vmatmul.f32.gmra.mxu0 %v3550_v17  ;;  %v3273_v52 = vld [vmem:[#allocation2 + $0x61] sm:$0xff] }
  0xbe   : > { %2641 = vmatpush.msra.mxu0 %v3204_v23 }
  0xc3   : > { %1124 = vmatmul.f32.gmra.mxu2 %v1013_v32 }
  0xc4   : > { %1382 = vmatmul.f32.gmra.mxu3 %v3624_v5  ;;  %v3187_v5 = vld [vmem:[%s4362_s3 + $0x3c8] sm:$0xff] }
  0xc5   : > { %869 = vmatmul.f32.gmra.mxu1 %v3273_v52  ;;  %1643 = vmatmul.f32.gmra.mxu0 %v3568_v31  ;;  %v1537_v52 = vld [vmem:[#allocation2 + $0xc9] sm:$0xff] }
  0xc6   : > { %2384 = vmatpush.msra.mxu3 %v3187_v5  ;;  %v3152_v5 = vld [vmem:[%s4362_s3 + $0x2b0] sm:$0xff] }
  0xc7   : > { %1870 = vmatpush.msra.mxu1 %v3152_v5 }
  0xca   : > { %v3951_v22 = vpop.f32.mrf.mxu1 }
  0xcb   : > { %1127 = vmatmul.f32.gmra.mxu2 %v1014_v19 }
  0xcc   : > { %1385 = vmatmul.f32.gmra.mxu3 %v3671_v37  ;;  %v1015_v37 = vld [vmem:[#allocation2 + $0x6a] sm:$0xff] }
  0xcd   : > { %872 = vmatmul.f32.gmra.mxu1 %v3550_v17  ;;  %1646 = vmatmul.f32.gmra.mxu0 %v3598_v49  ;;  %v3203_v17 = vld [vmem:[%s4362_s3 + $0x448] sm:$0xff] }
  0xce   : > { %v3962_v30 = vpop.f32.mrf.mxu2  ;;  %2642 = vmatpush.msra.mxu0 %v3203_v17 }
  0xcf   : > { %v3967_v35 = vpop.f32.mrf.mxu3 }
  0xd2   : > { %v3969_v36 = vpop.f32.mrf.mxu1  ;;  %v3971_v40 = vpop.f32.mrf.mxu0 }
  0xd3   : > { %1130 = vmatmul.f32.gmra.mxu2 %v1015_v37  ;;  %v1279_v37 = vld [vmem:[#allocation2 + $0xc8] sm:$0xff] }
  0xd4   : > { %1388 = vmatmul.f32.gmra.mxu3 %v3727_v12  ;;  %v3170_v12 = vld [vmem:[%s4362_s3 + $0x340] sm:$0xff] }
  0xd5   : > { %875 = vmatmul.f32.gmra.mxu1 %v3568_v31  ;;  %1649 = vmatmul.f32.gmra.mxu0 %v3615_v0  ;;  %v3186_v31 = vld [vmem:[%s4362_s3 + $0x3c0] sm:$0xff] }
  0xd6   : > { %v3979_v41 = vpop.f32.mrf.mxu2  ;;  %2127 = vmatpush.msra.mxu2 %v3170_v12  ;;  %2385 = vmatpush.msra.mxu3 %v3186_v31  ;;  %v1538_v12 = vld [vmem:[#allocation2 + $0xd9] sm:$0xff] }
  0xd7   : > { %v3981_v44 = vpop.f32.mrf.mxu3 }
  0xda   : > { %v3983_v47 = vpop.f32.mrf.mxu1  ;;  %v3985_v6 = vpop.f32.mrf.mxu0 }
  0xdb   : > { %1133 = vmatmul.f32.gmra.mxu2 %v1016_v46 }
  0xdc   : > { %1391 = vmatmul.f32.gmra.mxu3 %v3775_v42  ;;  %v1017_v42 = vld [vmem:[#allocation2 + $0x82] sm:$0xff] }
  0xdd   : > { %878 = vmatmul.f32.gmra.mxu1 %v3598_v49  ;;  %1652 = vmatmul.f32.gmra.mxu0 %v3655_v24  ;;  %v3202_v49 = vld [vmem:[%s4362_s3 + $0x440] sm:$0xff] }
  0xde   : > { %v3996_v8 = vpop.f32.mrf.mxu2  ;;  %2643 = vmatpush.msra.mxu0 %v3202_v49 }
  0xdf   : > { %v4001_v55 = vpop.f32.mrf.mxu3 }
  0xe2   : > { %v4003_v45 = vpop.f32.mrf.mxu1  ;;  %v4005_v57 = vpop.f32.mrf.mxu0 }
  0xe3   : > { %1136 = vmatmul.f32.gmra.mxu2 %v1017_v42  ;;  %v1022_v42 = vld [vmem:[#allocation2 + $0xc2] sm:$0xff] }
  0xe4   : > { %1394 = vmatmul.f32.gmra.mxu3 %v3815_v63  ;;  %v3169_v63 = vld [vmem:[%s4362_s3 + $0x338] sm:$0xff] }
  0xe5   : > { %881 = vmatmul.f32.gmra.mxu1 %v3615_v0  ;;  %1655 = vmatmul.f32.gmra.mxu0 %v3693_v48  ;;  %v3185_v0 = vld [vmem:[%s4362_s3 + $0x3b8] sm:$0xff] }
  0xe6   : > { %v4013_v58 = vpop.f32.mrf.mxu2  ;;  %2128 = vmatpush.msra.mxu2 %v3169_v63  ;;  %2386 = vmatpush.msra.mxu3 %v3185_v0  ;;  %v3167_v63 = vld [vmem:[%s4362_s3 + $0x328] sm:$0xff] }
  0xe7   : > { %v4015_v15 = vpop.f32.mrf.mxu3  ;;  %v3183_v0 = vld [vmem:[%s4362_s3 + $0x3a8] sm:$0xff] }
  0xea   : > { %v4017_v59 = vpop.f32.mrf.mxu1  ;;  %v4019_v43 = vpop.f32.mrf.mxu0 }
  0xeb   : > { %1139 = vmatmul.f32.gmra.mxu2 %v1018_v56 }
  0xec   : > { %1397 = vmatmul.f32.gmra.mxu3 %v3839_v20 }
  0xed   : > { %884 = vmatmul.f32.gmra.mxu1 %v3655_v24  ;;  %1658 = vmatmul.f32.gmra.mxu0 %v3748_v27  ;;  %v3201_v24 = vld [vmem:[%s4362_s3 + $0x438] sm:$0xff] }
  0xee   : > { %v4030_v62 = vpop.f32.mrf.mxu2  ;;  %2644 = vmatpush.msra.mxu0 %v3201_v24 }
  0xef   : > { %v4032_v14 = vpop.f32.mrf.mxu3 }
  0xf2   : > { %v4037_v20 = vpop.f32.mrf.mxu1  ;;  %v4039_v3 = vpop.f32.mrf.mxu0 }
  0xf3   : > { %1142 = vmatmul.f32.gmra.mxu2 %v1019_v34 }
  0xf4   : > { %1400 = vmatmul.f32.gmra.mxu3 %v3851_v2  ;;  %v3168_v2 = vld [vmem:[%s4362_s3 + $0x330] sm:$0xff] }
  0xf5   : > { %887 = vmatmul.f32.gmra.mxu1 %v3693_v48  ;;  %1661 = vmatmul.f32.gmra.mxu0 %v1536_v4  ;;  %v3184_v48 = vld [vmem:[%s4362_s3 + $0x3b0] sm:$0xff] }
  0xf6   : > { %v4046_v54 = vpop.f32.mrf.mxu2  ;;  %2129 = vmatpush.msra.mxu2 %v3168_v2  ;;  %2387 = vmatpush.msra.mxu3 %v3184_v48 }
  0xf7   : > { %v4048_v9 = vpop.f32.mrf.mxu3 }
  0xf8   : > { %2130 = vmatpush.msra.mxu2 %v3167_v63  ;;  %2388 = vmatpush.msra.mxu3 %v3183_v0 }
  0xfa   : > { %v4050_v32 = vpop.f32.mrf.mxu1  ;;  %v4052_v23 = vpop.f32.mrf.mxu0 }
  0xfb   : > { %1145 = vmatmul.f32.gmra.mxu2 %v1020_v10  ;;  %v3151_v10 = vld [vmem:[%s4362_s3 + $0x2a8] sm:$0xff] }
  0xfc   : > { %1403 = vmatmul.f32.gmra.mxu3 %v1278_v13  ;;  %v1023_v13 = vld [vmem:[#allocation2 + $0xca] sm:$0xff]  ;;  %1871 = vmatpush.msra.mxu1 %v3151_v10 }
  0xfd   : > { %890 = vmatmul.f32.gmra.mxu1 %v3748_v27  ;;  %1664 = vmatmul.f32.gmra.mxu0 %v1537_v52  ;;  %v3200_v27 = vld [vmem:[%s4362_s3 + $0x430] sm:$0xff] }
  0xfe   : > { %v4061_v19 = vpop.f32.mrf.mxu2  ;;  %2645 = vmatpush.msra.mxu0 %v3200_v27  ;;  %v1024_v27 = vld [vmem:[#allocation2 + $0xda] sm:$0xff] }
  0xff   : > { %v4063_v26 = vpop.f32.mrf.mxu3 }
 0x102   : > { %v846_v17 = vpop.f32.mrf.mxu1  ;;  %v1620_v46 = vpop.f32.mrf.mxu0 }
 0x103   : > { %1148 = vmatmul.f32.gmra.mxu2 %v1021_v33  ;;  %v942_v1 = vadd.f32 %v846_v17, %v3937_v11  ;;  %v3199_v11 = vld [vmem:[%s4362_s3 + $0x428] sm:$0xff] }
 0x104   : > { %1406 = vmatmul.f32.gmra.mxu3 %v1279_v37  ;;  %2646 = vmatpush.msra.mxu0 %v3199_v11 }
 0x105   : > { %893 = vmatmul.f32.gmra.mxu1 %v1536_v4  ;;  %1667 = vmatmul.f32.gmra.mxu0 %v1538_v12 }
 0x106   : > { %v4071_v31 = vpop.f32.mrf.mxu2 }
 0x107   : > { %v4073_v51 = vpop.f32.mrf.mxu3 }
 0x10a   : > { %v849_v49 = vpop.f32.mrf.mxu1  ;;  %v1623_v56 = vpop.f32.mrf.mxu0 }
 0x10b   : > { %1151 = vmatmul.f32.gmra.mxu2 %v1022_v42 }
 0x10c   : > { %1409 = vmatmul.f32.gmra.mxu3 %v3717_v61 }
 0x10d   : > { %896 = vmatmul.f32.gmra.mxu1 %v1537_v52  ;;  %1670 = vmatmul.f32.gmra.mxu0 %v3604_v53  ;;  %v943_v52 = vadd.f32 %v849_v49, %v3949_v21  ;;  %v3182_v21 = vld [vmem:[%s4362_s3 + $0x3a0] sm:$0xff] }
 0x10e   : > { %v1104_v34 = vpop.f32.mrf.mxu2  ;;  %2389 = vmatpush.msra.mxu3 %v3182_v21 }
 0x10f   : > { %v1200_v4 = vadd.f32 %v1104_v34, %v942_v1  ;;  %v1362_v24 = vpop.f32.mrf.mxu3  ;;  %v3150_v34 = vld [vmem:[%s4362_s3 + $0x2a0] sm:$0xff] }
 0x110   : > { %1872 = vmatpush.msra.mxu1 %v3150_v34 }
 0x111   : > { %v1458_v61 = vadd.f32 %v1362_v24, %v1200_v4 }
 0x112   : > { %v852_v2 = vpop.f32.mrf.mxu1  ;;  %v1626_v48 = vpop.f32.mrf.mxu0 }
 0x113   : > { %v4087_v5 = vadd.f32 %v1620_v46, %v1458_v61  ;;  %1154 = vmatmul.f32.gmra.mxu2 %v1023_v13 }
 0x114   : > { %1412 = vmatmul.f32.gmra.mxu3 %v3771_v39  ;;  %v3166_v39 = vld [vmem:[%s4362_s3 + $0x320] sm:$0xff] }
 0x115   : > { %899 = vmatmul.f32.gmra.mxu1 %v1538_v12  ;;  %1673 = vmatmul.f32.gmra.mxu0 %v3627_v7  ;;  %v944_v12 = vadd.f32 %v852_v2, %v3971_v40 }
 0x116   : > { %v1107_v33 = vpop.f32.mrf.mxu2  ;;  %2131 = vmatpush.msra.mxu2 %v3166_v39 }
 0x117   : > { %v1201_v37 = vadd.f32 %v1107_v33, %v943_v52  ;;  %v1365_v17 = vpop.f32.mrf.mxu3  ;;  %v1026_v52 = vld [vmem:[#allocation2 + $0xf2] sm:$0xff] }
 0x119   : > { %v1459_v42 = vadd.f32 %v1365_v17, %v1201_v37 }
 0x11a   : > { %v855_v46 = vpop.f32.mrf.mxu1  ;;  %v1629_v63 = vpop.f32.mrf.mxu0 }
 0x11b   : > { %v4095_v0 = vadd.f32 %v1623_v56, %v1459_v42  ;;  %1157 = vmatmul.f32.gmra.mxu2 %v1024_v27  ;;  %v945_v40 = vadd.f32 %v855_v46, %v3985_v6 }
 0x11c   : > { %1415 = vmatmul.f32.gmra.mxu3 %v3813_v60  ;;  %v1025_v60 = vld [vmem:[#allocation2 + $0xe2] sm:$0xff] }
 0x11d   : > { %902 = vmatmul.f32.gmra.mxu1 %v3604_v53  ;;  %1676 = vmatmul.f32.gmra.mxu0 %v3660_v28  ;;  %v3198_v53 = vld [vmem:[%s4362_s3 + $0x420] sm:$0xff] }
 0x11e   : > { %v1110_v49 = vpop.f32.mrf.mxu2  ;;  %2647 = vmatpush.msra.mxu0 %v3198_v53 }
 0x11f   : > { %v1202_v56 = vadd.f32 %v1110_v49, %v944_v12  ;;  %v1368_v1 = vpop.f32.mrf.mxu3  ;;  %v1544_v49 = vld [vmem:[#allocation2 + $0x121] sm:$0xff] }
 0x121   : > { %v1460_v4 = vadd.f32 %v1368_v1, %v1202_v56 }
 0x122   : > { %v858_v24 = vpop.f32.mrf.mxu1  ;;  %v1632_v10 = vpop.f32.mrf.mxu0 }
 0x123   : > { %v4110_v13 = vadd.f32 %v1626_v48, %v1460_v4  ;;  %1160 = vmatmul.f32.gmra.mxu2 %v1025_v60  ;;  %v946_v6 = vadd.f32 %v858_v24, %v4005_v57  ;;  %v1028_v4 = vld [vmem:[#allocation2 + $0x10a] sm:$0xff] }
 0x124   : > { %1418 = vmatmul.f32.gmra.mxu3 %v3837_v18  ;;  %v3165_v18 = vld [vmem:[%s4362_s3 + $0x318] sm:$0xff] }
 0x125   : > { %905 = vmatmul.f32.gmra.mxu1 %v3627_v7  ;;  %1679 = vmatmul.f32.gmra.mxu0 %v3695_v50  ;;  %v3181_v7 = vld [vmem:[%s4362_s3 + $0x398] sm:$0xff] }
 0x126   : > { %v1113_v61 = vpop.f32.mrf.mxu2  ;;  %2132 = vmatpush.msra.mxu2 %v3165_v18  ;;  %2390 = vmatpush.msra.mxu3 %v3181_v7  ;;  %v1287_v7 = vld [vmem:[#allocation2 + $0x128] sm:$0xff] }
 0x127   : > { %v1203_v2 = vadd.f32 %v1113_v61, %v945_v40  ;;  %v1371_v11 = vpop.f32.mrf.mxu3  ;;  %v1545_v61 = vld [vmem:[#allocation2 + $0x129] sm:$0xff] }
 0x129   : > { %v1461_v48 = vadd.f32 %v1371_v11, %v1203_v2 }
 0x12a   : > { %v861_v33 = vpop.f32.mrf.mxu1  ;;  %v1635_v37 = vpop.f32.mrf.mxu0 }
 0x12b   : > { %v4119_v17 = vadd.f32 %v1629_v63, %v1461_v48  ;;  %1163 = vmatmul.f32.gmra.mxu2 %v1026_v52  ;;  %v3149_v63 = vld [vmem:[%s4362_s3 + $0x298] sm:$0xff]  ;;  %v947_v57 = vadd.f32 %v861_v33, %v4019_v43  ;;  %v3164_v43 = vld [vmem:[%s4362_s3 + $0x310] sm:$0xff] }
 0x12c   : > { %1421 = vmatmul.f32.gmra.mxu3 %v3849_v25  ;;  %v1027_v25 = vld [vmem:[#allocation2 + $0xfa] sm:$0xff]  ;;  %1873 = vmatpush.msra.mxu1 %v3149_v63  ;;  %v3148_v33 = vld [vmem:[%s4362_s3 + $0x290] sm:$0xff] }
 0x12d   : > { %908 = vmatmul.f32.gmra.mxu1 %v3660_v28  ;;  %1682 = vmatmul.f32.gmra.mxu0 %v3750_v29  ;;  %v3197_v28 = vld [vmem:[%s4362_s3 + $0x418] sm:$0xff] }
 0x12e   : > { %v1116_v27 = vpop.f32.mrf.mxu2  ;;  %2648 = vmatpush.msra.mxu0 %v3197_v28  ;;  %2133 = vmatpush.msra.mxu2 %v3164_v43  ;;  %v3147_v43 = vld [vmem:[%s4362_s3 + $0x288] sm:$0xff] }
 0x12f   : > { %v1204_v42 = vadd.f32 %v1116_v27, %v946_v6  ;;  %v1374_v46 = vpop.f32.mrf.mxu3  ;;  %1874 = vmatpush.msra.mxu1 %v3148_v33 }
 0x131   : > { %v1462_v39 = vadd.f32 %v1374_v46, %v1204_v42  ;;  %v1546_v42 = vld [vmem:[#allocation2 + $0x139] sm:$0xff]  ;;  %1875 = vmatpush.msra.mxu1 %v3147_v43 }
 0x132   : > { %v864_v21 = vpop.f32.mrf.mxu1  ;;  %v1638_v12 = vpop.f32.mrf.mxu0 }
 0x133   : > { %v4134_v56 = vadd.f32 %v1632_v10, %v1462_v39  ;;  %1166 = vmatmul.f32.gmra.mxu2 %v1027_v25  ;;  %v1286_v10 = vld [vmem:[#allocation2 + $0x120] sm:$0xff]  ;;  %v948_v2 = vadd.f32 %v864_v21, %v4039_v3 }
 0x134   : > { %1424 = vmatmul.f32.gmra.mxu3 %v3867_v38  ;;  %v1030_v21 = vld [vmem:[#allocation2 + $0x122] sm:$0xff] }
 0x135   : > { %911 = vmatmul.f32.gmra.mxu1 %v3695_v50  ;;  %1685 = vmatmul.f32.gmra.mxu0 %v1544_v49  ;;  %v3180_v50 = vld [vmem:[%s4362_s3 + $0x390] sm:$0xff] }
 0x136   : > { %v1119_v1 = vpop.f32.mrf.mxu2  ;;  %2391 = vmatpush.msra.mxu3 %v3180_v50  ;;  %v3274_v50 = vld [vmem:[%s4360_s1] ss:$0 sm:$0xff] }
 0x137   : > { %v1205_v34 = vadd.f32 %v1119_v1, %v947_v57  ;;  %v1377_v60 = vpop.f32.mrf.mxu3  ;;  %v1288_v57 = vld [vmem:[#allocation2 + $0x138] sm:$0xff] }
 0x139   : > { %v1463_v24 = vadd.f32 %v1377_v60, %v1205_v34  ;;  %v1547_v34 = vld [vmem:[#allocation2 + $0x141] sm:$0xff] }
 0x13a   : > { %v867_v53 = vpop.f32.mrf.mxu1  ;;  %v1641_v40 = vpop.f32.mrf.mxu0 }
 0x13b   : > { %v4142_v38 = vadd.f32 %v1635_v37, %v1463_v24  ;;  %1169 = vmatmul.f32.gmra.mxu2 %v1028_v4  ;;  %v1029_v37 = vld [vmem:[#allocation2 + $0x112] sm:$0xff]  ;;  %v949_v3 = vadd.f32 %v867_v53, %v4052_v23  ;;  %v3163_v23 = vld [vmem:[%s4362_s3 + $0x308] sm:$0xff] }
 0x13c   : > { %1427 = vmatmul.f32.gmra.mxu3 %v1286_v10  ;;  %2134 = vmatpush.msra.mxu2 %v3163_v23  ;;  %v266_v10 = vld [vmem:[%s3351_s8 + $0xf0] sm:$0xff] }
 0x13d   : > { %914 = vmatmul.f32.gmra.mxu1 %v3750_v29  ;;  %1688 = vmatmul.f32.gmra.mxu0 %v1545_v61  ;;  %v3196_v29 = vld [vmem:[%s4362_s3 + $0x410] sm:$0xff] }
 0x13e   : > { %v1122_v11 = vpop.f32.mrf.mxu2  ;;  %2649 = vmatpush.msra.mxu0 %v3196_v29  ;;  %v3195_v29 = vld [vmem:[%s4362_s3 + $0x408] sm:$0xff]  ;;  %v1290_v23 = vld [vmem:[#allocation2 + $0x150] sm:$0xff] }
 0x13f   : > { %v1206_v52 = vadd.f32 %v1122_v11, %v948_v2  ;;  %v1380_v48 = vpop.f32.mrf.mxu3  ;;  %v302_v2 = vmul.f32 %v3274_v50, %v266_v10  ;;  %v1031_v11 = vld [vmem:[#allocation2 + $0x12a] sm:$0xff]  ;;  %v1549_v10 = vld [vmem:[#allocation2 + $0x159] sm:$0xff] }
 0x140   : > { %2650 = vmatpush.msra.mxu0 %v3195_v29 }
 0x141   : > { %v1464_v18 = vadd.f32 %v1380_v48, %v1206_v52 }
 0x142   : > { %v870_v6 = vpop.f32.mrf.mxu1  ;;  %v1644_v27 = vpop.f32.mrf.mxu0 }
 0x143   : > { %v4155_v46 = vadd.f32 %v1638_v12, %v1464_v18  ;;  %1172 = vmatmul.f32.gmra.mxu2 %v1029_v37  ;;  %v950_v4 = vadd.f32 %v870_v6, %v3942_v16  ;;  %v1289_v16 = vld [vmem:[#allocation2 + $0x140] sm:$0xff]  ;;  %v1548_v18 = vld [vmem:[#allocation2 + $0x151] sm:$0xff] }
 0x144   : > { %1430 = vmatmul.f32.gmra.mxu3 %v1287_v7 }
 0x145   : > { %917 = vmatmul.f32.gmra.mxu1 %v1544_v49  ;;  %1691 = vmatmul.f32.gmra.mxu0 %v1546_v42  ;;  %v3179_v49 = vld [vmem:[%s4362_s3 + $0x388] sm:$0xff] }
 0x146   : > { %v1125_v63 = vpop.f32.mrf.mxu2  ;;  %2392 = vmatpush.msra.mxu3 %v3179_v49 }
 0x147   : > { %v1207_v25 = vadd.f32 %v1125_v63, %v949_v3  ;;  %v1383_v39 = vpop.f32.mrf.mxu3 }
 0x149   : > { %v1465_v28 = vadd.f32 %v1383_v39, %v1207_v25  ;;  %v267_v25 = vld [vmem:[%s3351_s8 + $0xf8] sm:$0xff] }
 0x14a   : > { %v873_v12 = vpop.f32.mrf.mxu1  ;;  %v1647_v1 = vpop.f32.mrf.mxu0 }
 0x14b   : > { %v4161_v60 = vadd.f32 %v1641_v40, %v1465_v28  ;;  %1175 = vmatmul.f32.gmra.mxu2 %v1030_v21  ;;  %v951_v3 = vadd.f32 %v873_v12, %v3951_v22  ;;  %v303_v21 = vmul.f32 %v3274_v50, %v267_v25  ;;  %v1032_v28 = vld [vmem:[#allocation2 + $0x13a] sm:$0xff] }
 0x14c   : > { %1433 = vmatmul.f32.gmra.mxu3 %v1288_v57 }
 0x14d   : > { %920 = vmatmul.f32.gmra.mxu1 %v1545_v61  ;;  %1694 = vmatmul.f32.gmra.mxu0 %v1547_v34  ;;  %v3275_v61 = vld [vmem:[%s4361_s2] ss:$0 sm:$0xff] }
 0x14e   : > { %v1128_v24 = vpop.f32.mrf.mxu2  ;;  %v4180_v48 = vadd.f32 %v3275_v61, %v302_v2  ;;  %v4192_v49 = vadd.f32 %v3275_v61, %v303_v21  ;;  %v3146_v2 = vld [vmem:[%s4362_s3 + $0x280] sm:$0xff] }
 0x14f   : > { %v1208_v53 = vadd.f32 %v1128_v24, %v950_v4  ;;  %v1386_v40 = vpop.f32.mrf.mxu3  ;;  %1876 = vmatpush.msra.mxu1 %v3146_v2 }
 0x150   : > { %v370_v6 = vmax.f32 %v4180_v48, 0.0  ;;  %v371_v12 = vmax.f32 %v4192_v49, 0.0 }
 0x151   : > { %v1466_v52 = vadd.f32 %v1386_v40, %v1208_v53  ;;  %v3178_v53 = vld [vmem:[%s4362_s3 + $0x380] sm:$0xff] }
 0x152   : > { %v876_v33 = vpop.f32.mrf.mxu1  ;;  %v1650_v37 = vpop.f32.mrf.mxu0  ;;  %457 = vst [vmem:[#allocation2 + $0x181] sm:$0xff] %v370_v6  ;;  %2393 = vmatpush.msra.mxu3 %v3178_v53 }
 0x153   : > { %v4182_v7 = vadd.f32 %v1644_v27, %v1466_v52  ;;  %1178 = vmatmul.f32.gmra.mxu2 %v1031_v11  ;;  %v952_v40 = vadd.f32 %v876_v33, %v3969_v36  ;;  %458 = vst [vmem:[#allocation2 + $0x189] sm:$0xff] %v371_v12  ;;  %v1033_v11 = vld [vmem:[#allocation2 + $0x142] sm:$0xff] }
 0x154   : > { %1436 = vmatmul.f32.gmra.mxu3 %v1289_v16  ;;  %v1291_v16 = vld [vmem:[#allocation2 + $0x158] sm:$0xff]  ;;  %v1550_v36 = vld [vmem:[#allocation2 + $0x169] sm:$0xff]  ;;  %v3194_v33 = vld [vmem:[%s4362_s3 + $0x400] sm:$0xff] }
 0x155   : > { %923 = vmatmul.f32.gmra.mxu1 %v1546_v42  ;;  %1697 = vmatmul.f32.gmra.mxu0 %v1548_v18  ;;  %v3162_v42 = vld [vmem:[%s4362_s3 + $0x300] sm:$0xff] }
 0x156   : > { %v1131_v63 = vpop.f32.mrf.mxu2  ;;  %2135 = vmatpush.msra.mxu2 %v3162_v42  ;;  %2651 = vmatpush.msra.mxu0 %v3194_v33 }
 0x157   : > { %v1209_v27 = vadd.f32 %v1131_v63, %v951_v3  ;;  %v1389_v39 = vpop.f32.mrf.mxu3 }
 0x159   : > { %v1467_v57 = vadd.f32 %v1389_v39, %v1209_v27  ;;  %v1034_v39 = vld [vmem:[#allocation2 + $0x152] sm:$0xff]  ;;  %v1294_v33 = vld [vmem:[#allocation2 + $0x180] sm:$0xff] }
 0x15a   : > { %v879_v4 = vpop.f32.mrf.mxu1  ;;  %v1653_v24 = vpop.f32.mrf.mxu0 }
 0x15b   : > { %v4194_v22 = vadd.f32 %v1647_v1, %v1467_v57  ;;  %1181 = vmatmul.f32.gmra.mxu2 %v1032_v28  ;;  %v953_v3 = vadd.f32 %v879_v4, %v3983_v47  ;;  %v1292_v28 = vld [vmem:[#allocation2 + $0x168] sm:$0xff] }
 0x15c   : > { %1439 = vmatmul.f32.gmra.mxu3 %v1290_v23  ;;  %v1551_v23 = vld [vmem:[#allocation2 + $0x171] sm:$0xff] }
 0x15d   : > { %926 = vmatmul.f32.gmra.mxu1 %v1547_v34  ;;  %1700 = vmatmul.f32.gmra.mxu0 %v1549_v10 }
 0x15e   : > { %v1134_v1 = vpop.f32.mrf.mxu2 }
 0x15f   : > { %v1210_v43 = vadd.f32 %v1134_v1, %v952_v40  ;;  %v1392_v50 = vpop.f32.mrf.mxu3  ;;  %v1035_v40 = vld [vmem:[#allocation2 + $0x15a] sm:$0xff] }
 0x161   : > { %v1468_v52 = vadd.f32 %v1392_v50, %v1210_v43  ;;  %v1293_v43 = vld [vmem:[#allocation2 + $0x170] sm:$0xff] }
 0x162   : > { %v882_v61 = vpop.f32.mrf.mxu1  ;;  %v1656_v29 = vpop.f32.mrf.mxu0 }
 0x163   : > { %v4209_v34 = vadd.f32 %v1650_v37, %v1468_v52  ;;  %1184 = vmatmul.f32.gmra.mxu2 %v1033_v11  ;;  %v954_v53 = vadd.f32 %v882_v61, %v4003_v45 }
 0x164   : > { %1442 = vmatmul.f32.gmra.mxu3 %v1291_v16  ;;  %v1036_v16 = vld [vmem:[#allocation2 + $0x16a] sm:$0xff] }
 0x165   : > { %929 = vmatmul.f32.gmra.mxu1 %v1548_v18  ;;  %1703 = vmatmul.f32.gmra.mxu0 %v1550_v36 }
 0x166   : > { %v1137_v63 = vpop.f32.mrf.mxu2 }
 0x167   : > { %v1211_v25 = vadd.f32 %v1137_v63, %v953_v3  ;;  %v1395_v27 = vpop.f32.mrf.mxu3 }
 0x169   : > { %v1469_v21 = vadd.f32 %v1395_v27, %v1211_v25 }
 0x16a   : > { %v885_v57 = vpop.f32.mrf.mxu1  ;;  %v1659_v37 = vpop.f32.mrf.mxu0 }
 0x16b   : > { %v4215_v42 = vadd.f32 %v1653_v24, %v1469_v21  ;;  %1187 = vmatmul.f32.gmra.mxu2 %v1034_v39  ;;  %v955_v24 = vadd.f32 %v885_v57, %v4017_v59  ;;  %v1295_v39 = vld [vmem:[#allocation2 + $0x188] sm:$0xff] }
 0x16c   : > { %1445 = vmatmul.f32.gmra.mxu3 %v1292_v28  ;;  %v1780_v28 = vld [vmem:[#allocation2 + $0x1a] sm:$0xff] }
 0x16d   : > { %932 = vmatmul.f32.gmra.mxu1 %v1549_v10  ;;  %1706 = vmatmul.f32.gmra.mxu0 %v1551_v23 }
 0x16e   : > { %v1140_v47 = vpop.f32.mrf.mxu2 }
 0x16f   : > { %v1212_v18 = vadd.f32 %v1140_v47, %v954_v53  ;;  %v1398_v4 = vpop.f32.mrf.mxu3  ;;  %v2555_v53 = vld [vmem:[#allocation2 + $0x32] sm:$0xff] }
 0x170   : > { %v2039_v47 = vld [vmem:[#allocation2 + $0x30] sm:$0xff] }
 0x171   : > { %v1470_v1 = vadd.f32 %v1398_v4, %v1212_v18  ;;  %v2297_v4 = vld [vmem:[#allocation2 + $0x31] sm:$0xff] }
 0x172   : > { %v888_v50 = vpop.f32.mrf.mxu1  ;;  %v1662_v2 = vpop.f32.mrf.mxu0 }
 0x173   : > { %v4218_v11 = vadd.f32 %v1656_v29, %v1470_v1  ;;  %1190 = vmatmul.f32.gmra.mxu2 %v1035_v40  ;;  %v956_v29 = vadd.f32 %v888_v50, %v4037_v20  ;;  %v1781_v1 = vld [vmem:[#allocation2 + $0x22] sm:$0xff]  ;;  %v2556_v50 = vld [vmem:[#allocation2 + $0x3a] sm:$0xff] }
 0x174   : > { %1448 = vmatmul.f32.gmra.mxu3 %v1293_v43 }
 0x175   : > { %935 = vmatmul.f32.gmra.mxu1 %v1550_v36  ;;  %1709 = vmatmul.f32.gmra.mxu0 %v370_v6  ;;  %v1037_v36 = vld [vmem:[#allocation2 + $0x172] sm:$0xff] }
 0x176   : > { %v1143_v45 = vpop.f32.mrf.mxu2 }
 0x177   : > { %v1213_v10 = vadd.f32 %v1143_v45, %v955_v24  ;;  %v1401_v52 = vpop.f32.mrf.mxu3 }
 0x179   : > { %v1471_v61 = vadd.f32 %v1401_v52, %v1213_v10  ;;  %v2040_v52 = vld [vmem:[#allocation2 + $0x38] sm:$0xff] }
 0x17a   : > { %v891_v3 = vpop.f32.mrf.mxu1  ;;  %v1665_v63 = vpop.f32.mrf.mxu0 }
 0x17b   : > { %v4223_v25 = vadd.f32 %v1659_v37, %v1471_v61  ;;  %1193 = vmatmul.f32.gmra.mxu2 %v1036_v16  ;;  %v957_v20 = vadd.f32 %v891_v3, %v4050_v32  ;;  %v2298_v61 = vld [vmem:[#allocation2 + $0x39] sm:$0xff] }
 0x17c   : > { %1451 = vmatmul.f32.gmra.mxu3 %v1294_v33 }
 0x17d   : > { %938 = vmatmul.f32.gmra.mxu1 %v1551_v23  ;;  %1712 = vmatmul.f32.gmra.mxu0 %v371_v12 }
 0x17e   : > { %v1146_v59 = vpop.f32.mrf.mxu2 }
 0x17f   : > { %v1214_v48 = vadd.f32 %v1146_v59, %v956_v29  ;;  %v1404_v6 = vpop.f32.mrf.mxu3  ;;  %v2557_v29 = vld [vmem:[#allocation2 + $0x4a] sm:$0xff] }
 0x181   : > { %v1472_v27 = vadd.f32 %v1404_v6, %v1214_v48 }
 0x182   : > { %v894_v21 = vpop.f32.mrf.mxu1  ;;  %v1668_v57 = vpop.f32.mrf.mxu0 }
 0x183   : > { %v4228_v37 = vadd.f32 %v1662_v2, %v1472_v27  ;;  %1196 = vmatmul.f32.gmra.mxu2 %v1037_v36  ;;  %v958_v2 = vadd.f32 %v894_v21, %v3962_v30  ;;  %v2041_v36 = vld [vmem:[#allocation2 + $0x48] sm:$0xff] }
 0x184   : > { %1454 = vmatmul.f32.gmra.mxu3 %v1295_v39  ;;  %v2299_v39 = vld [vmem:[#allocation2 + $0x49] sm:$0xff] }
 0x185   : > { %1877 = vmatmul.f32.vlgmr.msra.gmra.mxu1 %v1780_v28  ;;  %2652 = vmatmul.f32.vlgmr.msra.gmra.mxu0 %v2555_v53 }
 0x186   : > { %v1149_v49 = vpop.f32.mrf.mxu2 }
 0x187   : > { %v1215_v12 = vadd.f32 %v1149_v49, %v957_v20  ;;  %v1407_v23 = vpop.f32.mrf.mxu3  ;;  %v2558_v20 = vld [vmem:[#allocation2 + $0x52] sm:$0xff] }
 0x189   : > { %v1473_v18 = vadd.f32 %v1407_v23, %v1215_v12  ;;  %v2042_v23 = vld [vmem:[#allocation2 + $0x50] sm:$0xff] }
 0x18a   : > { %v897_v40 = vpop.f32.mrf.mxu1  ;;  %v1671_v43 = vpop.f32.mrf.mxu0 }
 0x18b   : > { %v4231_v24 = vadd.f32 %v1665_v63, %v1473_v18  ;;  %2136 = vmatmul.f32.vlgmr.msra.gmra.mxu2 %v2039_v47  ;;  %v959_v63 = vadd.f32 %v897_v40, %v3979_v41  ;;  %v2300_v18 = vld [vmem:[#allocation2 + $0x51] sm:$0xff] }
 0x18c   : > { %2394 = vmatmul.f32.vlgmr.msra.gmra.mxu3 %v2297_v4 }
 0x18d   : > { %1880 = vmatmul.f32.gmra.mxu1 %v1781_v1  ;;  %2655 = vmatmul.f32.gmra.mxu0 %v2556_v50  ;;  %v2559_v1 = vld [vmem:[#allocation2 + $0x62] sm:$0xff] }
 0x18e   : > { %v1152_v32 = vpop.f32.mrf.mxu2 }
 0x18f   : > { %v1216_v45 = vadd.f32 %v1152_v32, %v958_v2  ;;  %v1410_v10 = vpop.f32.mrf.mxu3 }
 0x191   : > { %v1474_v16 = vadd.f32 %v1410_v10, %v1216_v45  ;;  %v2043_v45 = vld [vmem:[#allocation2 + $0x60] sm:$0xff] }
 0x192   : > { %v900_v33 = vpop.f32.mrf.mxu1  ;;  %v1674_v3 = vpop.f32.mrf.mxu0 }
 0x193   : > { %v4234_v59 = vadd.f32 %v1668_v57, %v1474_v16  ;;  %2139 = vmatmul.f32.gmra.mxu2 %v2040_v52  ;;  %v960_v57 = vadd.f32 %v900_v33, %v3996_v8  ;;  %v2301_v52 = vld [vmem:[#allocation2 + $0x61] sm:$0xff]  ;;  %v2560_v33 = vld [vmem:[#allocation2 + $0x6a] sm:$0xff] }
 0x194   : > { %2397 = vmatmul.f32.gmra.mxu3 %v2298_v61 }
 0x195   : > { %1883 = vmatmul.f32.gmra.mxu1 %v2555_v53  ;;  %2658 = vmatmul.f32.gmra.mxu0 %v2557_v29 }
 0x196   : > { %v1155_v30 = vpop.f32.mrf.mxu2 }
 0x197   : > { %v1217_v48 = vadd.f32 %v1155_v30, %v959_v63  ;;  %v1413_v6 = vpop.f32.mrf.mxu3 }
 0x199   : > { %v1475_v27 = vadd.f32 %v1413_v6, %v1217_v48  ;;  %v2044_v48 = vld [vmem:[#allocation2 + $0x68] sm:$0xff] }
 0x19a   : > { %v903_v21 = vpop.f32.mrf.mxu1  ;;  %v1677_v28 = vpop.f32.mrf.mxu0 }
 0x19b   : > { %v4237_v49 = vadd.f32 %v1671_v43, %v1475_v27  ;;  %2142 = vmatmul.f32.gmra.mxu2 %v2041_v36  ;;  %v961_v43 = vadd.f32 %v903_v21, %v4013_v58  ;;  %v2302_v36 = vld [vmem:[#allocation2 + $0x69] sm:$0xff]  ;;  %v2561_v21 = vld [vmem:[#allocation2 + $0x7a] sm:$0xff] }
 0x19c   : > { %2400 = vmatmul.f32.gmra.mxu3 %v2299_v39 }
 0x19d   : > { %1886 = vmatmul.f32.gmra.mxu1 %v2556_v50  ;;  %2661 = vmatmul.f32.gmra.mxu0 %v2558_v20 }
 0x19e   : > { %v1158_v41 = vpop.f32.mrf.mxu2 }
 0x19f   : > { %v1218_v53 = vadd.f32 %v1158_v41, %v960_v57  ;;  %v1416_v12 = vpop.f32.mrf.mxu3 }
 0x1a1   : > { %v1476_v47 = vadd.f32 %v1416_v12, %v1218_v53  ;;  %v2045_v53 = vld [vmem:[#allocation2 + $0x78] sm:$0xff] }
 0x1a2   : > { %v906_v4 = vpop.f32.mrf.mxu1  ;;  %v1680_v40 = vpop.f32.mrf.mxu0 }
 0x1a3   : > { %v4240_v2 = vadd.f32 %v1674_v3, %v1476_v47  ;;  %2145 = vmatmul.f32.gmra.mxu2 %v2042_v23  ;;  %v962_v3 = vadd.f32 %v906_v4, %v4030_v62  ;;  %v2303_v23 = vld [vmem:[#allocation2 + $0x79] sm:$0xff]  ;;  %v2562_v4 = vld [vmem:[#allocation2 + $0x82] sm:$0xff] }
 0x1a4   : > { %2403 = vmatmul.f32.gmra.mxu3 %v2300_v18 }
 0x1a5   : > { %1889 = vmatmul.f32.gmra.mxu1 %v2557_v29  ;;  %2664 = vmatmul.f32.gmra.mxu0 %v2559_v1 }
 0x1a6   : > { %v1161_v8 = vpop.f32.mrf.mxu2 }
 0x1a7   : > { %v1219_v50 = vadd.f32 %v1161_v8, %v961_v43  ;;  %v1419_v32 = vpop.f32.mrf.mxu3 }
 0x1a9   : > { %v1477_v10 = vadd.f32 %v1419_v32, %v1219_v50  ;;  %v2046_v50 = vld [vmem:[#allocation2 + $0x80] sm:$0xff] }
 0x1aa   : > { %v909_v16 = vpop.f32.mrf.mxu1  ;;  %v1683_v61 = vpop.f32.mrf.mxu0 }
 0x1ab   : > { %v4243_v63 = vadd.f32 %v1677_v28, %v1477_v10  ;;  %2148 = vmatmul.f32.gmra.mxu2 %v2043_v45  ;;  %v963_v28 = vadd.f32 %v909_v16, %v4046_v54  ;;  %v2304_v45 = vld [vmem:[#allocation2 + $0x81] sm:$0xff]  ;;  %v2563_v16 = vld [vmem:[#allocation2 + $0x92] sm:$0xff] }
 0x1ac   : > { %2406 = vmatmul.f32.gmra.mxu3 %v2301_v52 }
 0x1ad   : > { %1892 = vmatmul.f32.gmra.mxu1 %v2558_v20  ;;  %2667 = vmatmul.f32.gmra.mxu0 %v2560_v33 }
 0x1ae   : > { %v1164_v58 = vpop.f32.mrf.mxu2 }
 0x1af   : > { %v1220_v29 = vadd.f32 %v1164_v58, %v962_v3  ;;  %v1422_v30 = vpop.f32.mrf.mxu3 }
 0x1b1   : > { %v1478_v6 = vadd.f32 %v1422_v30, %v1220_v29  ;;  %v2047_v29 = vld [vmem:[#allocation2 + $0x90] sm:$0xff] }
 0x1b2   : > { %v912_v27 = vpop.f32.mrf.mxu1  ;;  %v1686_v39 = vpop.f32.mrf.mxu0 }
 0x1b3   : > { %v4246_v57 = vadd.f32 %v1680_v40, %v1478_v6  ;;  %2151 = vmatmul.f32.gmra.mxu2 %v2044_v48  ;;  %v964_v40 = vadd.f32 %v912_v27, %v4061_v19  ;;  %v2305_v48 = vld [vmem:[#allocation2 + $0x91] sm:$0xff]  ;;  %v2564_v27 = vld [vmem:[#allocation2 + $0x9a] sm:$0xff] }
 0x1b4   : > { %2409 = vmatmul.f32.gmra.mxu3 %v2302_v36 }
 0x1b5   : > { %1895 = vmatmul.f32.gmra.mxu1 %v2559_v1  ;;  %2670 = vmatmul.f32.gmra.mxu0 %v2561_v21 }
 0x1b6   : > { %v1167_v62 = vpop.f32.mrf.mxu2 }
 0x1b7   : > { %v1221_v20 = vadd.f32 %v1167_v62, %v963_v28  ;;  %v1425_v41 = vpop.f32.mrf.mxu3 }
 0x1b9   : > { %v1479_v12 = vadd.f32 %v1425_v41, %v1221_v20  ;;  %v2048_v20 = vld [vmem:[#allocation2 + $0x98] sm:$0xff] }
 0x1ba   : > { %v915_v47 = vpop.f32.mrf.mxu1  ;;  %v1689_v18 = vpop.f32.mrf.mxu0 }
 0x1bb   : > { %v4249_v43 = vadd.f32 %v1683_v61, %v1479_v12  ;;  %2154 = vmatmul.f32.gmra.mxu2 %v2045_v53  ;;  %v965_v61 = vadd.f32 %v915_v47, %v4071_v31  ;;  %v2306_v53 = vld [vmem:[#allocation2 + $0x99] sm:$0xff]  ;;  %v2565_v47 = vld [vmem:[#allocation2 + $0xaa] sm:$0xff] }
 0x1bc   : > { %2412 = vmatmul.f32.gmra.mxu3 %v2303_v23 }
 0x1bd   : > { %1898 = vmatmul.f32.gmra.mxu1 %v2560_v33  ;;  %2673 = vmatmul.f32.gmra.mxu0 %v2562_v4 }
 0x1be   : > { %v1170_v54 = vpop.f32.mrf.mxu2 }
 0x1bf   : > { %v1222_v1 = vadd.f32 %v1170_v54, %v964_v40  ;;  %v1428_v8 = vpop.f32.mrf.mxu3 }
 0x1c1   : > { %v1480_v32 = vadd.f32 %v1428_v8, %v1222_v1  ;;  %v2049_v1 = vld [vmem:[#allocation2 + $0xa8] sm:$0xff] }
 0x1c2   : > { %v918_v10 = vpop.f32.mrf.mxu1  ;;  %v1692_v52 = vpop.f32.mrf.mxu0 }
 0x1c3   : > { %v4252_v3 = vadd.f32 %v1686_v39, %v1480_v32  ;;  %2157 = vmatmul.f32.gmra.mxu2 %v2046_v50  ;;  %v966_v39 = vadd.f32 %v918_v10, %v3967_v35  ;;  %v2307_v50 = vld [vmem:[#allocation2 + $0xa9] sm:$0xff]  ;;  %v2566_v10 = vld [vmem:[#allocation2 + $0xb2] sm:$0xff] }
 0x1c4   : > { %2415 = vmatmul.f32.gmra.mxu3 %v2304_v45 }
 0x1c5   : > { %1901 = vmatmul.f32.gmra.mxu1 %v2561_v21  ;;  %2676 = vmatmul.f32.gmra.mxu0 %v2563_v16 }
 0x1c6   : > { %v1173_v19 = vpop.f32.mrf.mxu2 }
 0x1c7   : > { %v1223_v33 = vadd.f32 %v1173_v19, %v965_v61  ;;  %v1431_v58 = vpop.f32.mrf.mxu3 }
 0x1c9   : > { %v1481_v30 = vadd.f32 %v1431_v58, %v1223_v33  ;;  %v2050_v33 = vld [vmem:[#allocation2 + $0xb0] sm:$0xff] }
 0x1ca   : > { %v921_v6 = vpop.f32.mrf.mxu1  ;;  %v1695_v36 = vpop.f32.mrf.mxu0 }
 0x1cb   : > { %v4255_v28 = vadd.f32 %v1689_v18, %v1481_v30  ;;  %2160 = vmatmul.f32.gmra.mxu2 %v2047_v29  ;;  %v967_v18 = vadd.f32 %v921_v6, %v3981_v44  ;;  %v2308_v29 = vld [vmem:[#allocation2 + $0xb1] sm:$0xff]  ;;  %v2567_v6 = vld [vmem:[#allocation2 + $0xc2] sm:$0xff] }
 0x1cc   : > { %2418 = vmatmul.f32.gmra.mxu3 %v2305_v48 }
 0x1cd   : > { %1904 = vmatmul.f32.gmra.mxu1 %v2562_v4  ;;  %2679 = vmatmul.f32.gmra.mxu0 %v2564_v27 }
 0x1ce   : > { %v1176_v31 = vpop.f32.mrf.mxu2 }
 0x1cf   : > { %v1224_v21 = vadd.f32 %v1176_v31, %v966_v39  ;;  %v1434_v62 = vpop.f32.mrf.mxu3 }
 0x1d1   : > { %v1482_v41 = vadd.f32 %v1434_v62, %v1224_v21  ;;  %v2051_v21 = vld [vmem:[#allocation2 + $0xc0] sm:$0xff] }
 0x1d2   : > { %v924_v12 = vpop.f32.mrf.mxu1  ;;  %v1698_v23 = vpop.f32.mrf.mxu0 }
 0x1d3   : > { %v4258_v40 = vadd.f32 %v1692_v52, %v1482_v41  ;;  %2163 = vmatmul.f32.gmra.mxu2 %v2048_v20  ;;  %v968_v52 = vadd.f32 %v924_v12, %v4001_v55  ;;  %v2309_v20 = vld [vmem:[#allocation2 + $0xc1] sm:$0xff]  ;;  %v2568_v12 = vld [vmem:[#allocation2 + $0xca] sm:$0xff] }
 0x1d4   : > { %2421 = vmatmul.f32.gmra.mxu3 %v2306_v53 }
 0x1d5   : > { %1907 = vmatmul.f32.gmra.mxu1 %v2563_v16  ;;  %2682 = vmatmul.f32.gmra.mxu0 %v2565_v47 }
 0x1d6   : > { %v1179_v35 = vpop.f32.mrf.mxu2 }
 0x1d7   : > { %v1225_v4 = vadd.f32 %v1179_v35, %v967_v18  ;;  %v1437_v54 = vpop.f32.mrf.mxu3 }
 0x1d9   : > { %v1483_v8 = vadd.f32 %v1437_v54, %v1225_v4  ;;  %v2052_v4 = vld [vmem:[#allocation2 + $0xc8] sm:$0xff] }
 0x1da   : > { %v927_v32 = vpop.f32.mrf.mxu1  ;;  %v1701_v45 = vpop.f32.mrf.mxu0 }
 0x1db   : > { %v4261_v61 = vadd.f32 %v1695_v36, %v1483_v8  ;;  %2166 = vmatmul.f32.gmra.mxu2 %v2049_v1  ;;  %v969_v36 = vadd.f32 %v927_v32, %v4015_v15  ;;  %v2310_v1 = vld [vmem:[#allocation2 + $0xc9] sm:$0xff]  ;;  %v2569_v32 = vld [vmem:[#allocation2 + $0xda] sm:$0xff] }
 0x1dc   : > { %2424 = vmatmul.f32.gmra.mxu3 %v2307_v50 }
 0x1dd   : > { %1910 = vmatmul.f32.gmra.mxu1 %v2564_v27  ;;  %2685 = vmatmul.f32.gmra.mxu0 %v2566_v10 }
 0x1de   : > { %v1182_v44 = vpop.f32.mrf.mxu2 }
 0x1df   : > { %v1226_v16 = vadd.f32 %v1182_v44, %v968_v52  ;;  %v1440_v19 = vpop.f32.mrf.mxu3 }
 0x1e1   : > { %v1484_v58 = vadd.f32 %v1440_v19, %v1226_v16  ;;  %v2053_v16 = vld [vmem:[#allocation2 + $0xd8] sm:$0xff] }
 0x1e2   : > { %v930_v30 = vpop.f32.mrf.mxu1  ;;  %v1704_v48 = vpop.f32.mrf.mxu0 }
 0x1e3   : > { %v4264_v39 = vadd.f32 %v1698_v23, %v1484_v58  ;;  %2169 = vmatmul.f32.gmra.mxu2 %v2050_v33  ;;  %v970_v23 = vadd.f32 %v930_v30, %v4032_v14  ;;  %v2311_v33 = vld [vmem:[#allocation2 + $0xd9] sm:$0xff]  ;;  %v2570_v30 = vld [vmem:[#allocation2 + $0xe2] sm:$0xff] }
 0x1e4   : > { %2427 = vmatmul.f32.gmra.mxu3 %v2308_v29 }
 0x1e5   : > { %1913 = vmatmul.f32.gmra.mxu1 %v2565_v47  ;;  %2688 = vmatmul.f32.gmra.mxu0 %v2567_v6 }
 0x1e6   : > { %v1185_v55 = vpop.f32.mrf.mxu2 }
 0x1e7   : > { %v1227_v27 = vadd.f32 %v1185_v55, %v969_v36  ;;  %v1443_v31 = vpop.f32.mrf.mxu3 }
 0x1e9   : > { %v1485_v62 = vadd.f32 %v1443_v31, %v1227_v27  ;;  %v2054_v27 = vld [vmem:[#allocation2 + $0xe0] sm:$0xff] }
 0x1ea   : > { %v933_v41 = vpop.f32.mrf.mxu1  ;;  %v1707_v53 = vpop.f32.mrf.mxu0 }
 0x1eb   : > { %v4267_v18 = vadd.f32 %v1701_v45, %v1485_v62  ;;  %2172 = vmatmul.f32.gmra.mxu2 %v2051_v21  ;;  %v971_v45 = vadd.f32 %v933_v41, %v4048_v9  ;;  %v2312_v21 = vld [vmem:[#allocation2 + $0xe1] sm:$0xff]  ;;  %v2571_v41 = vld [vmem:[#allocation2 + $0xf2] sm:$0xff] }
 0x1ec   : > { %2430 = vmatmul.f32.gmra.mxu3 %v2309_v20 }
 0x1ed   : > { %1916 = vmatmul.f32.gmra.mxu1 %v2566_v10  ;;  %2691 = vmatmul.f32.gmra.mxu0 %v2568_v12 }
 0x1ee   : > { %v1188_v15 = vpop.f32.mrf.mxu2 }
 0x1ef   : > { %v1228_v47 = vadd.f32 %v1188_v15, %v970_v23  ;;  %v1446_v35 = vpop.f32.mrf.mxu3 }
 0x1f1   : > { %v1486_v54 = vadd.f32 %v1446_v35, %v1228_v47  ;;  %v2055_v47 = vld [vmem:[#allocation2 + $0xf0] sm:$0xff] }
 0x1f2   : > { %v936_v8 = vpop.f32.mrf.mxu1  ;;  %v1710_v50 = vpop.f32.mrf.mxu0 }
 0x1f3   : > { %v4270_v52 = vadd.f32 %v1704_v48, %v1486_v54  ;;  %2175 = vmatmul.f32.gmra.mxu2 %v2052_v4  ;;  %v972_v48 = vadd.f32 %v936_v8, %v4063_v26  ;;  %v2313_v4 = vld [vmem:[#allocation2 + $0xf1] sm:$0xff]  ;;  %v2572_v8 = vld [vmem:[#allocation2 + $0xfa] sm:$0xff] }
 0x1f4   : > { %2433 = vmatmul.f32.gmra.mxu3 %v2310_v1 }
 0x1f5   : > { %1919 = vmatmul.f32.gmra.mxu1 %v2567_v6  ;;  %2694 = vmatmul.f32.gmra.mxu0 %v2569_v32 }
 0x1f6   : > { %v1191_v14 = vpop.f32.mrf.mxu2 }
 0x1f7   : > { %v1229_v10 = vadd.f32 %v1191_v14, %v971_v45  ;;  %v1449_v44 = vpop.f32.mrf.mxu3 }
 0x1f9   : > { %v1487_v19 = vadd.f32 %v1449_v44, %v1229_v10  ;;  %v2056_v10 = vld [vmem:[#allocation2 + $0xf8] sm:$0xff] }
 0x1fa   : > { %v939_v58 = vpop.f32.mrf.mxu1  ;;  %v1713_v29 = vpop.f32.mrf.mxu0 }
 0x1fb   : > { %v4273_v36 = vadd.f32 %v1707_v53, %v1487_v19  ;;  %2178 = vmatmul.f32.gmra.mxu2 %v2053_v16  ;;  %v973_v53 = vadd.f32 %v939_v58, %v4073_v51  ;;  %v2314_v16 = vld [vmem:[#allocation2 + $0xf9] sm:$0xff]  ;;  %v2573_v58 = vld [vmem:[#allocation2 + $0x10a] sm:$0xff] }
 0x1fc   : > { %2436 = vmatmul.f32.gmra.mxu3 %v2311_v33 }
 0x1fd   : > { %1922 = vmatmul.f32.gmra.mxu1 %v2568_v12  ;;  %2697 = vmatmul.f32.gmra.mxu0 %v2570_v30 }
 0x1fe   : > { %v1194_v9 = vpop.f32.mrf.mxu2 }
 0x1ff   : > { %v1230_v6 = vadd.f32 %v1194_v9, %v972_v48  ;;  %v1452_v55 = vpop.f32.mrf.mxu3 }
 0x201   : > { %v1488_v31 = vadd.f32 %v1452_v55, %v1230_v6  ;;  %v2057_v6 = vld [vmem:[#allocation2 + $0x108] sm:$0xff] }
 0x202   : > { %v1878_v62 = vpop.f32.mrf.mxu1  ;;  %v2653_v20 = vpop.f32.mrf.mxu0 }
 0x203   : > { %v4276_v23 = vadd.f32 %v1710_v50, %v1488_v31  ;;  %2181 = vmatmul.f32.gmra.mxu2 %v2054_v27  ;;  %v1974_v50 = vadd.f32 %v1878_v62, %v4087_v5  ;;  %v2315_v27 = vld [vmem:[#allocation2 + $0x109] sm:$0xff]  ;;  %v2574_v62 = vld [vmem:[#allocation2 + $0x112] sm:$0xff] }
 0x204   : > { %2439 = vmatmul.f32.gmra.mxu3 %v2312_v21 }
 0x205   : > { %1925 = vmatmul.f32.gmra.mxu1 %v2569_v32  ;;  %2700 = vmatmul.f32.gmra.mxu0 %v2571_v41 }
 0x206   : > { %v1197_v26 = vpop.f32.mrf.mxu2 }
 0x207   : > { %v1231_v12 = vadd.f32 %v1197_v26, %v973_v53  ;;  %v1455_v15 = vpop.f32.mrf.mxu3 }
 0x209   : > { %v1489_v35 = vadd.f32 %v1455_v15, %v1231_v12 }
 0x20a   : > { %v1881_v54 = vpop.f32.mrf.mxu1  ;;  %v2656_v1 = vpop.f32.mrf.mxu0 }
 0x20b   : > { %v4279_v45 = vadd.f32 %v1713_v29, %v1489_v35  ;;  %2184 = vmatmul.f32.gmra.mxu2 %v2055_v47  ;;  %v1975_v5 = vadd.f32 %v1881_v54, %v4095_v0 }
 0x20c   : > { %2442 = vmatmul.f32.gmra.mxu3 %v2313_v4  ;;  %v2058_v4 = vld [vmem:[#allocation2 + $0x110] sm:$0xff] }
 0x20d   : > { %1928 = vmatmul.f32.gmra.mxu1 %v2570_v30  ;;  %2703 = vmatmul.f32.gmra.mxu0 %v2572_v8 }
 0x20e   : > { %v2137_v51 = vpop.f32.mrf.mxu2 }
 0x20f   : > { %v2233_v32 = vadd.f32 %v2137_v51, %v1974_v50  ;;  %v2395_v14 = vpop.f32.mrf.mxu3  ;;  %v2316_v50 = vld [vmem:[#allocation2 + $0x111] sm:$0xff] }
 0x211   : > { %v2491_v44 = vadd.f32 %v2395_v14, %v2233_v32  ;;  %v2575_v32 = vld [vmem:[#allocation2 + $0x122] sm:$0xff] }
 0x212   : > { %v1884_v19 = vpop.f32.mrf.mxu1  ;;  %v2659_v33 = vpop.f32.mrf.mxu0 }
 0x213   : > { %v2749_v29 = vadd.f32 %v2653_v20, %v2491_v44  ;;  %2187 = vmatmul.f32.gmra.mxu2 %v2056_v10  ;;  %v1976_v20 = vadd.f32 %v1884_v19, %v4110_v13 }
 0x214   : > { %2445 = vmatmul.f32.gmra.mxu3 %v2314_v16 }
 0x215   : > { %2845 = vst [vmem:[%s4287_s25] sm:$0xff] %v2749_v29  ;;  %1931 = vmatmul.f32.gmra.mxu1 %v2571_v41  ;;  %2706 = vmatmul.f32.gmra.mxu0 %v2573_v58  ;;  %v2914_v26 = vmul.f32 %v2749_v29, %v2749_v29 }
 0x216   : > { %v2140_v30 = vpop.f32.mrf.mxu2 }
 0x217   : > { %v2234_v48 = vadd.f32 %v2140_v30, %v1975_v5  ;;  %v2398_v9 = vpop.f32.mrf.mxu3  ;;  %v2059_v5 = vld [vmem:[#allocation2 + $0x120] sm:$0xff] }
 0x219   : > { %v2492_v55 = vadd.f32 %v2398_v9, %v2234_v48  ;;  %v2317_v48 = vld [vmem:[#allocation2 + $0x121] sm:$0xff] }
 0x21a   : > { %v1887_v31 = vpop.f32.mrf.mxu1  ;;  %v2662_v21 = vpop.f32.mrf.mxu0 }
 0x21b   : > { %v2750_v53 = vadd.f32 %v2656_v1, %v2492_v55  ;;  %2190 = vmatmul.f32.gmra.mxu2 %v2057_v6  ;;  %v1977_v13 = vadd.f32 %v1887_v31, %v4119_v17 }
 0x21c   : > { %2448 = vmatmul.f32.gmra.mxu3 %v2315_v27 }
 0x21d   : > { %2846 = vst [vmem:[%s4287_s25 + $0x8] sm:$0xff] %v2750_v53  ;;  %v2877_v0 = vadd.f32 %v2750_v53, %v2749_v29  ;;  %v2915_v41 = vmul.f32 %v2750_v53, %v2750_v53  ;;  %1934 = vmatmul.f32.gmra.mxu1 %v2572_v8  ;;  %2709 = vmatmul.f32.gmra.mxu0 %v2574_v62 }
 0x21e   : > { %v2143_v12 = vpop.f32.mrf.mxu2 }
 0x21f   : > { %v2946_v15 = vadd.f32 %v2915_v41, %v2914_v26  ;;  %v2235_v47 = vadd.f32 %v2143_v12, %v1976_v20  ;;  %v2401_v35 = vpop.f32.mrf.mxu3  ;;  %v2318_v12 = vld [vmem:[#allocation2 + $0x129] sm:$0xff] }
 0x221   : > { %v2493_v54 = vadd.f32 %v2401_v35, %v2235_v47 }
 0x222   : > { %v1890_v51 = vpop.f32.mrf.mxu1  ;;  %v2665_v1 = vpop.f32.mrf.mxu0 }
 0x223   : > { %v2751_v14 = vadd.f32 %v2659_v33, %v2493_v54  ;;  %2193 = vmatmul.f32.gmra.mxu2 %v2058_v4  ;;  %v2576_v33 = vld [vmem:[#allocation2 + $0x12a] sm:$0xff]  ;;  %v1978_v17 = vadd.f32 %v1890_v51, %v4134_v56 }
 0x224   : > { %2451 = vmatmul.f32.gmra.mxu3 %v2316_v50 }
 0x225   : > { %2847 = vst [vmem:[%s4287_s25 + $0x10] sm:$0xff] %v2751_v14  ;;  %v2878_v10 = vadd.f32 %v2877_v0, %v2751_v14  ;;  %v2916_v8 = vmul.f32 %v2751_v14, %v2751_v14  ;;  %1937 = vmatmul.f32.gmra.mxu1 %v2573_v58  ;;  %2712 = vmatmul.f32.gmra.mxu0 %v2575_v32  ;;  %v2060_v0 = vld [vmem:[#allocation2 + $0x128] sm:$0xff] }
 0x226   : > { %v2146_v44 = vpop.f32.mrf.mxu2 }
 0x227   : > { %v2947_v16 = vadd.f32 %v2946_v15, %v2916_v8  ;;  %v2236_v19 = vadd.f32 %v2146_v44, %v1977_v13  ;;  %v2404_v29 = vpop.f32.mrf.mxu3  ;;  %v2061_v13 = vld [vmem:[#allocation2 + $0x138] sm:$0xff] }
 0x228   : > { %v2319_v8 = vld [vmem:[#allocation2 + $0x139] sm:$0xff] }
 0x229   : > { %v2494_v30 = vadd.f32 %v2404_v29, %v2236_v19 }
 0x22a   : > { %v1893_v9 = vpop.f32.mrf.mxu1  ;;  %v2668_v6 = vpop.f32.mrf.mxu0 }
 0x22b   : > { %v2752_v55 = vadd.f32 %v2662_v21, %v2494_v30  ;;  %2196 = vmatmul.f32.gmra.mxu2 %v2059_v5  ;;  %v2577_v21 = vld [vmem:[#allocation2 + $0x13a] sm:$0xff]  ;;  %v1979_v56 = vadd.f32 %v1893_v9, %v4142_v38 }
 0x22c   : > { %2454 = vmatmul.f32.gmra.mxu3 %v2317_v48 }
 0x22d   : > { %2848 = vst [vmem:[%s4287_s25 + $0x18] sm:$0xff] %v2752_v55  ;;  %v2879_v27 = vadd.f32 %v2878_v10, %v2752_v55  ;;  %v2917_v58 = vmul.f32 %v2752_v55, %v2752_v55  ;;  %1940 = vmatmul.f32.gmra.mxu1 %v2574_v62  ;;  %2715 = vmatmul.f32.gmra.mxu0 %v2576_v33  ;;  %v2062_v55 = vld [vmem:[#allocation2 + $0x140] sm:$0xff] }
 0x22e   : > { %v2149_v31 = vpop.f32.mrf.mxu2 }
 0x22f   : > { %v2948_v53 = vadd.f32 %v2947_v16, %v2917_v58  ;;  %v2237_v20 = vadd.f32 %v2149_v31, %v1978_v17  ;;  %v2407_v26 = vpop.f32.mrf.mxu3 }
 0x231   : > { %v2495_v41 = vadd.f32 %v2407_v26, %v2237_v20 }
 0x232   : > { %v1896_v15 = vpop.f32.mrf.mxu1  ;;  %v2671_v47 = vpop.f32.mrf.mxu0 }
 0x233   : > { %v2753_v35 = vadd.f32 %v2665_v1, %v2495_v41  ;;  %2199 = vmatmul.f32.gmra.mxu2 %v2060_v0  ;;  %v2578_v1 = vld [vmem:[#allocation2 + $0x142] sm:$0xff]  ;;  %v1980_v38 = vadd.f32 %v1896_v15, %v4155_v46  ;;  %v2063_v15 = vld [vmem:[#allocation2 + $0x150] sm:$0xff] }
 0x234   : > { %2457 = vmatmul.f32.gmra.mxu3 %v2318_v12 }
 0x235   : > { %2849 = vst [vmem:[%s4287_s25 + $0x20] sm:$0xff] %v2753_v35  ;;  %v2880_v4 = vadd.f32 %v2879_v27, %v2753_v35  ;;  %v2918_v62 = vmul.f32 %v2753_v35, %v2753_v35  ;;  %1943 = vmatmul.f32.gmra.mxu1 %v2575_v32  ;;  %2718 = vmatmul.f32.gmra.mxu0 %v2577_v21  ;;  %v2320_v27 = vld [vmem:[#allocation2 + $0x141] sm:$0xff] }
 0x236   : > { %v2152_v54 = vpop.f32.mrf.mxu2 }
 0x237   : > { %v2949_v50 = vadd.f32 %v2948_v53, %v2918_v62  ;;  %v2238_v51 = vadd.f32 %v2152_v54, %v1979_v56  ;;  %v2410_v14 = vpop.f32.mrf.mxu3  ;;  %v2321_v56 = vld [vmem:[#allocation2 + $0x151] sm:$0xff] }
 0x239   : > { %v2496_v10 = vadd.f32 %v2410_v14, %v2238_v51 }
 0x23a   : > { %v1899_v44 = vpop.f32.mrf.mxu1  ;;  %v2674_v16 = vpop.f32.mrf.mxu0 }
 0x23b   : > { %v2754_v19 = vadd.f32 %v2668_v6, %v2496_v10  ;;  %2202 = vmatmul.f32.gmra.mxu2 %v2061_v13  ;;  %v2579_v6 = vld [vmem:[#allocation2 + $0x152] sm:$0xff]  ;;  %v1981_v46 = vadd.f32 %v1899_v44, %v4161_v60 }
 0x23c   : > { %2460 = vmatmul.f32.gmra.mxu3 %v2319_v8  ;;  %v2064_v8 = vld [vmem:[#allocation2 + $0x158] sm:$0xff] }
 0x23d   : > { %2850 = vst [vmem:[%s4287_s25 + $0x28] sm:$0xff] %v2754_v19  ;;  %v2881_v29 = vadd.f32 %v2880_v4, %v2754_v19  ;;  %v2919_v32 = vmul.f32 %v2754_v19, %v2754_v19  ;;  %1946 = vmatmul.f32.gmra.mxu1 %v2576_v33  ;;  %2721 = vmatmul.f32.gmra.mxu0 %v2578_v1  ;;  %v2322_v19 = vld [vmem:[#allocation2 + $0x159] sm:$0xff] }
 0x23e   : > { %v2155_v5 = vpop.f32.mrf.mxu2 }
 0x23f   : > { %v2950_v30 = vadd.f32 %v2949_v50, %v2919_v32  ;;  %v2239_v48 = vadd.f32 %v2155_v5, %v1980_v38  ;;  %v2413_v9 = vpop.f32.mrf.mxu3 }
 0x241   : > { %v2497_v17 = vadd.f32 %v2413_v9, %v2239_v48 }
 0x242   : > { %v1902_v58 = vpop.f32.mrf.mxu1  ;;  %v2677_v31 = vpop.f32.mrf.mxu0 }
 0x243   : > { %v2755_v53 = vadd.f32 %v2671_v47, %v2497_v17  ;;  %2205 = vmatmul.f32.gmra.mxu2 %v2062_v55  ;;  %v2580_v47 = vld [vmem:[#allocation2 + $0x15a] sm:$0xff]  ;;  %v1982_v60 = vadd.f32 %v1902_v58, %v4182_v7  ;;  %v2065_v17 = vld [vmem:[#allocation2 + $0x168] sm:$0xff] }
 0x244   : > { %2463 = vmatmul.f32.gmra.mxu3 %v2320_v27  ;;  %v2323_v58 = vld [vmem:[#allocation2 + $0x169] sm:$0xff] }
 0x245   : > { %2851 = vst [vmem:[%s4287_s25 + $0x30] sm:$0xff] %v2755_v53  ;;  %v2882_v20 = vadd.f32 %v2881_v29, %v2755_v53  ;;  %v2920_v33 = vmul.f32 %v2755_v53, %v2755_v53  ;;  %1949 = vmatmul.f32.gmra.mxu1 %v2577_v21  ;;  %2724 = vmatmul.f32.gmra.mxu0 %v2579_v6 }
 0x246   : > { %v2158_v26 = vpop.f32.mrf.mxu2 }
 0x247   : > { %v2951_v0 = vadd.f32 %v2950_v30, %v2920_v33  ;;  %v2240_v41 = vadd.f32 %v2158_v26, %v1981_v46  ;;  %v2416_v12 = vpop.f32.mrf.mxu3 }
 0x249   : > { %v2498_v35 = vadd.f32 %v2416_v12, %v2240_v41 }
 0x24a   : > { %v1905_v4 = vpop.f32.mrf.mxu1  ;;  %v2680_v62 = vpop.f32.mrf.mxu0 }
 0x24b   : > { %v2756_v54 = vadd.f32 %v2674_v16, %v2498_v35  ;;  %2208 = vmatmul.f32.gmra.mxu2 %v2063_v15  ;;  %v2581_v16 = vld [vmem:[#allocation2 + $0x16a] sm:$0xff]  ;;  %v1983_v7 = vadd.f32 %v1905_v4, %v4194_v22 }
 0x24c   : > { %2466 = vmatmul.f32.gmra.mxu3 %v2321_v56  ;;  %v2066_v15 = vld [vmem:[#allocation2 + $0x170] sm:$0xff] }
 0x24d   : > { %2852 = vst [vmem:[%s4287_s25 + $0x38] sm:$0xff] %v2756_v54  ;;  %v2883_v50 = vadd.f32 %v2882_v20, %v2756_v54  ;;  %v2921_v21 = vmul.f32 %v2756_v54, %v2756_v54  ;;  %1952 = vmatmul.f32.gmra.mxu1 %v2578_v1  ;;  %2727 = vmatmul.f32.gmra.mxu0 %v2580_v47  ;;  %v2324_v56 = vld [vmem:[#allocation2 + $0x171] sm:$0xff] }
 0x24e   : > { %v2161_v51 = vpop.f32.mrf.mxu2 }
 0x24f   : > { %v2952_v14 = vadd.f32 %v2951_v0, %v2921_v21  ;;  %v2241_v13 = vadd.f32 %v2161_v51, %v1982_v60  ;;  %v2419_v10 = vpop.f32.mrf.mxu3 }
 0x251   : > { %v2499_v44 = vadd.f32 %v2419_v10, %v2241_v13  ;;  %v2067_v10 = vld [vmem:[#allocation2 + $0x180] sm:$0xff] }
 0x252   : > { %v1908_v38 = vpop.f32.mrf.mxu1  ;;  %v2683_v29 = vpop.f32.mrf.mxu0 }
 0x253   : > { %v2757_v32 = vadd.f32 %v2677_v31, %v2499_v44  ;;  %2211 = vmatmul.f32.gmra.mxu2 %v2064_v8  ;;  %v2582_v31 = vld [vmem:[#allocation2 + $0x172] sm:$0xff]  ;;  %v1984_v22 = vadd.f32 %v1908_v38, %v4209_v34  ;;  %v2325_v44 = vld [vmem:[#allocation2 + $0x181] sm:$0xff] }
 0x254   : > { %2469 = vmatmul.f32.gmra.mxu3 %v2322_v19 }
 0x255   : > { %2853 = vst [vmem:[%s4287_s25 + $0x40] sm:$0xff] %v2757_v32  ;;  %v2884_v5 = vadd.f32 %v2883_v50, %v2757_v32  ;;  %v2922_v1 = vmul.f32 %v2757_v32, %v2757_v32  ;;  %1955 = vmatmul.f32.gmra.mxu1 %v2579_v6  ;;  %2730 = vmatmul.f32.gmra.mxu0 %v2581_v16 }
 0x256   : > { %v2164_v30 = vpop.f32.mrf.mxu2 }
 0x257   : > { %v2953_v48 = vadd.f32 %v2952_v14, %v2922_v1  ;;  %v2242_v9 = vadd.f32 %v2164_v30, %v1983_v7  ;;  %v2422_v55 = vpop.f32.mrf.mxu3 }
 0x259   : > { %v2500_v27 = vadd.f32 %v2422_v55, %v2242_v9  ;;  %v2068_v9 = vld [vmem:[#allocation2 + $0x188] sm:$0xff] }
 0x25a   : > { %v1911_v53 = vpop.f32.mrf.mxu1  ;;  %v2686_v46 = vpop.f32.mrf.mxu0 }
 0x25b   : > { %v2758_v20 = vadd.f32 %v2680_v62, %v2500_v27  ;;  %2214 = vmatmul.f32.gmra.mxu2 %v2065_v17  ;;  %v2583_v62 = vld [vmem:[#allocation2 + $0x182] sm:$0xff]  ;;  %v1985_v34 = vadd.f32 %v1911_v53, %v4215_v42  ;;  %v2585_v53 = vld [vmem:[#allocation2 + $0x19a] sm:$0xff] }
 0x25c   : > { %2472 = vmatmul.f32.gmra.mxu3 %v2323_v58  ;;  %v2326_v17 = vld [vmem:[#allocation2 + $0x189] sm:$0xff] }
 0x25d   : > { %2854 = vst [vmem:[%s4287_s25 + $0x48] sm:$0xff] %v2758_v20  ;;  %v2885_v33 = vadd.f32 %v2884_v5, %v2758_v20  ;;  %v2923_v6 = vmul.f32 %v2758_v20, %v2758_v20  ;;  %1958 = vmatmul.f32.gmra.mxu1 %v2580_v47  ;;  %2733 = vmatmul.f32.gmra.mxu0 %v2582_v31 }
 0x25e   : > { %v2167_v26 = vpop.f32.mrf.mxu2 }
 0x25f   : > { %v2954_v0 = vadd.f32 %v2953_v48, %v2923_v6  ;;  %v2243_v41 = vadd.f32 %v2167_v26, %v1984_v22  ;;  %v2425_v12 = vpop.f32.mrf.mxu3 }
 0x261   : > { %v2501_v35 = vadd.f32 %v2425_v12, %v2243_v41  ;;  %v2327_v41 = vld [vmem:[#allocation2 + $0x199] sm:$0xff] }
 0x262   : > { %v1914_v4 = vpop.f32.mrf.mxu1  ;;  %v2689_v54 = vpop.f32.mrf.mxu0 }
 0x263   : > { %v2759_v60 = vadd.f32 %v2683_v29, %v2501_v35  ;;  %2217 = vmatmul.f32.gmra.mxu2 %v2066_v15  ;;  %v2584_v29 = vld [vmem:[#allocation2 + $0x18a] sm:$0xff]  ;;  %v1986_v42 = vadd.f32 %v1914_v4, %v4218_v11  ;;  %v2586_v35 = vld [vmem:[#allocation2 + $0x1a2] sm:$0xff] }
 0x264   : > { %2475 = vmatmul.f32.gmra.mxu3 %v2324_v56  ;;  %v3276_v4 = vld [vmem:[#allocation2] sm:$0xff] }
 0x265   : > { %2855 = vst [vmem:[%s4287_s25 + $0x50] sm:$0xff] %v2759_v60  ;;  %v2886_v50 = vadd.f32 %v2885_v33, %v2759_v60  ;;  %v2924_v47 = vmul.f32 %v2759_v60, %v2759_v60  ;;  %1961 = vmatmul.f32.gmra.mxu1 %v2581_v16  ;;  %2736 = vmatmul.f32.gmra.mxu0 %v2583_v62 }
 0x266   : > { %v2170_v21 = vpop.f32.mrf.mxu2 }
 0x267   : > { %v2955_v51 = vadd.f32 %v2954_v0, %v2924_v47  ;;  %v2244_v14 = vadd.f32 %v2170_v21, %v1985_v34  ;;  %v2428_v13 = vpop.f32.mrf.mxu3 }
 0x269   : > { %v2502_v8 = vadd.f32 %v2428_v13, %v2244_v14 }
 0x26a   : > { %v1917_v19 = vpop.f32.mrf.mxu1  ;;  %v2692_v38 = vpop.f32.mrf.mxu0 }
 0x26b   : > { %v2760_v32 = vadd.f32 %v2686_v46, %v2502_v8  ;;  %2220 = vmatmul.f32.gmra.mxu2 %v2067_v10  ;;  %v1987_v11 = vadd.f32 %v1917_v19, %v4223_v25 }
 0x26c   : > { %2478 = vmatmul.f32.gmra.mxu3 %v2325_v44 }
 0x26d   : > { %2856 = vst [vmem:[%s4287_s25 + $0x58] sm:$0xff] %v2760_v32  ;;  %v2887_v7 = vadd.f32 %v2886_v50, %v2760_v32  ;;  %v2925_v16 = vmul.f32 %v2760_v32, %v2760_v32  ;;  %1964 = vmatmul.f32.gmra.mxu1 %v2582_v31  ;;  %2739 = vmatmul.f32.gmra.mxu0 %v2584_v29 }
 0x26e   : > { %v2173_v5 = vpop.f32.mrf.mxu2 }
 0x26f   : > { %v2956_v1 = vadd.f32 %v2955_v51, %v2925_v16  ;;  %v2245_v30 = vadd.f32 %v2173_v5, %v1986_v42  ;;  %v2431_v48 = vpop.f32.mrf.mxu3  ;;  %v2328_v51 = vld [vmem:[#allocation2 + $0x1a1] sm:$0xff] }
 0x271   : > { %v2503_v55 = vadd.f32 %v2431_v48, %v2245_v30 }
 0x272   : > { %v1920_v27 = vpop.f32.mrf.mxu1  ;;  %v2695_v58 = vpop.f32.mrf.mxu0 }
 0x273   : > { %v2761_v46 = vadd.f32 %v2689_v54, %v2503_v55  ;;  %2223 = vmatmul.f32.gmra.mxu2 %v2068_v9  ;;  %v1988_v25 = vadd.f32 %v1920_v27, %v4228_v37 }
 0x274   : > { %2481 = vmatmul.f32.gmra.mxu3 %v2326_v17 }
 0x275   : > { %2857 = vst [vmem:[%s4287_s25 + $0x60] sm:$0xff] %v2761_v46  ;;  %v2888_v20 = vadd.f32 %v2887_v7, %v2761_v46  ;;  %v2926_v31 = vmul.f32 %v2761_v46, %v2761_v46  ;;  %1967 = vmatmul.f32.gmra.mxu1 %v2583_v62  ;;  %2742 = vmatmul.f32.gmra.mxu0 %v2585_v53 }
 0x276   : > { %v2176_v22 = vpop.f32.mrf.mxu2 }
 0x277   : > { %v2957_v33 = vadd.f32 %v2956_v1, %v2926_v31  ;;  %v2246_v6 = vadd.f32 %v2176_v22, %v1987_v11  ;;  %v2434_v26 = vpop.f32.mrf.mxu3 }
 0x279   : > { %v2504_v0 = vadd.f32 %v2434_v26, %v2246_v6 }
 0x27a   : > { %v1923_v12 = vpop.f32.mrf.mxu1  ;;  %v2698_v15 = vpop.f32.mrf.mxu0 }
 0x27b   : > { %v2762_v56 = vadd.f32 %v2692_v38, %v2504_v0  ;;  %2226 = vmatmul.f32.gmra.mxu2 %v3276_v4  ;;  %v1989_v37 = vadd.f32 %v1923_v12, %v4231_v24 }
 0x27c   : > { %2484 = vmatmul.f32.gmra.mxu3 %v2327_v41 }
 0x27d   : > { %2858 = vst [vmem:[%s4287_s25 + $0x68] sm:$0xff] %v2762_v56  ;;  %v2889_v54 = vadd.f32 %v2888_v20, %v2762_v56  ;;  %v2927_v62 = vmul.f32 %v2762_v56, %v2762_v56  ;;  %1970 = vmatmul.f32.gmra.mxu1 %v2584_v29  ;;  %2745 = vmatmul.f32.gmra.mxu0 %v2586_v35 }
 0x27e   : > { %v2179_v60 = vpop.f32.mrf.mxu2 }
 0x27f   : > { %v2958_v34 = vadd.f32 %v2957_v33, %v2927_v62  ;;  %v2247_v50 = vadd.f32 %v2179_v60, %v1988_v25  ;;  %v2437_v47 = vpop.f32.mrf.mxu3 }
 0x281   : > { %v2505_v21 = vadd.f32 %v2437_v47, %v2247_v50 }
 0x282   : > { %v1926_v14 = vpop.f32.mrf.mxu1  ;;  %v2701_v13 = vpop.f32.mrf.mxu0 }
 0x283   : > { %v2763_v10 = vadd.f32 %v2695_v58, %v2505_v21  ;;  %2229 = vmatmul.f32.gmra.mxu2 %v3276_v4  ;;  %v1990_v1 = vadd.f32 %v1926_v14, %v4234_v59 }
 0x284   : > { %2487 = vmatmul.f32.gmra.mxu3 %v2328_v51 }
 0x285   : > { %2859 = vst [vmem:[%s4287_s25 + $0x70] sm:$0xff] %v2763_v10  ;;  %v2890_v8 = vadd.f32 %v2889_v54, %v2763_v10  ;;  %v2928_v44 = vmul.f32 %v2763_v10, %v2763_v10 }
 0x286   : > { %v2182_v19 = vpop.f32.mrf.mxu2 }
 0x287   : > { %v2959_v38 = vadd.f32 %v2958_v34, %v2928_v44  ;;  %v2248_v29 = vadd.f32 %v2182_v19, %v1989_v37  ;;  %v2440_v32 = vpop.f32.mrf.mxu3 }
 0x289   : > { %v2506_v42 = vadd.f32 %v2440_v32, %v2248_v29 }
 0x28a   : > { %v1929_v7 = vpop.f32.mrf.mxu1  ;;  %v2704_v16 = vpop.f32.mrf.mxu0 }
 0x28b   : > { %v2764_v5 = vadd.f32 %v2698_v15, %v2506_v42  ;;  %v1991_v11 = vadd.f32 %v1929_v7, %v4237_v49 }
 0x28d   : > { %2860 = vst [vmem:[%s4287_s25 + $0x78] sm:$0xff] %v2764_v5  ;;  %v2891_v30 = vadd.f32 %v2890_v8, %v2764_v5  ;;  %v2929_v48 = vmul.f32 %v2764_v5, %v2764_v5 }
 0x28e   : > { %v2185_v9 = vpop.f32.mrf.mxu2 }
 0x28f   : > { %v2960_v55 = vadd.f32 %v2959_v38, %v2929_v48  ;;  %v2249_v24 = vadd.f32 %v2185_v9, %v1990_v1  ;;  %v2443_v17 = vpop.f32.mrf.mxu3 }
 0x291   : > { %v2507_v27 = vadd.f32 %v2443_v17, %v2249_v24 }
 0x292   : > { %v1932_v58 = vpop.f32.mrf.mxu1  ;;  %v2707_v53 = vpop.f32.mrf.mxu0 }
 0x293   : > { %v2765_v46 = vadd.f32 %v2701_v13, %v2507_v27  ;;  %v1992_v15 = vadd.f32 %v1932_v58, %v4240_v2 }
 0x295   : > { %2861 = vst [vmem:[%s4287_s25 + $0x80] sm:$0xff] %v2765_v46  ;;  %v2892_v20 = vadd.f32 %v2891_v30, %v2765_v46  ;;  %v2930_v31 = vmul.f32 %v2765_v46, %v2765_v46 }
 0x296   : > { %v2188_v22 = vpop.f32.mrf.mxu2 }
 0x297   : > { %v2961_v33 = vadd.f32 %v2960_v55, %v2930_v31  ;;  %v2250_v59 = vadd.f32 %v2188_v22, %v1991_v11  ;;  %v2446_v6 = vpop.f32.mrf.mxu3 }
 0x299   : > { %v2508_v26 = vadd.f32 %v2446_v6, %v2250_v59 }
 0x29a   : > { %v1935_v0 = vpop.f32.mrf.mxu1  ;;  %v2710_v41 = vpop.f32.mrf.mxu0 }
 0x29b   : > { %v2766_v12 = vadd.f32 %v2704_v16, %v2508_v26  ;;  %v1993_v47 = vadd.f32 %v1935_v0, %v4243_v63 }
 0x29d   : > { %2862 = vst [vmem:[%s4287_s25 + $0x88] sm:$0xff] %v2766_v12  ;;  %v2893_v35 = vadd.f32 %v2892_v20, %v2766_v12  ;;  %v2931_v56 = vmul.f32 %v2766_v12, %v2766_v12 }
 0x29e   : > { %v2191_v4 = vpop.f32.mrf.mxu2 }
 0x29f   : > { %v2962_v25 = vadd.f32 %v2961_v33, %v2931_v56  ;;  %v2251_v49 = vadd.f32 %v2191_v4, %v1992_v15  ;;  %v2449_v54 = vpop.f32.mrf.mxu3 }
 0x2a1   : > { %v2509_v62 = vadd.f32 %v2449_v54, %v2251_v49 }
 0x2a2   : > { %v1938_v60 = vpop.f32.mrf.mxu1  ;;  %v2713_v34 = vpop.f32.mrf.mxu0 }
 0x2a3   : > { %v2767_v50 = vadd.f32 %v2707_v53, %v2509_v62  ;;  %v1994_v38 = vadd.f32 %v1938_v60, %v4246_v57 }
 0x2a5   : > { %2863 = vst [vmem:[%s4287_s25 + $0x90] sm:$0xff] %v2767_v50  ;;  %v2894_v21 = vadd.f32 %v2893_v35, %v2767_v50  ;;  %v2932_v51 = vmul.f32 %v2767_v50, %v2767_v50 }
 0x2a6   : > { %v2194_v14 = vpop.f32.mrf.mxu2 }
 0x2a7   : > { %v2963_v13 = vadd.f32 %v2962_v25, %v2932_v51  ;;  %v2252_v2 = vadd.f32 %v2194_v14, %v1993_v47  ;;  %v2452_v10 = vpop.f32.mrf.mxu3 }
 0x2a9   : > { %v2510_v37 = vadd.f32 %v2452_v10, %v2252_v2 }
 0x2aa   : > { %v1941_v8 = vpop.f32.mrf.mxu1  ;;  %v2716_v44 = vpop.f32.mrf.mxu0 }
 0x2ab   : > { %v2768_v19 = vadd.f32 %v2710_v41, %v2510_v37  ;;  %v1995_v9 = vadd.f32 %v1941_v8, %v4249_v43 }
 0x2ad   : > { %2864 = vst [vmem:[%s4287_s25 + $0x98] sm:$0xff] %v2768_v19  ;;  %v2895_v29 = vadd.f32 %v2894_v21, %v2768_v19  ;;  %v2933_v32 = vmul.f32 %v2768_v19, %v2768_v19 }
 0x2ae   : > { %v2197_v42 = vpop.f32.mrf.mxu2 }
 0x2af   : > { %v2964_v7 = vadd.f32 %v2963_v13, %v2933_v32  ;;  %v2253_v63 = vadd.f32 %v2197_v42, %v1994_v38  ;;  %v2455_v16 = vpop.f32.mrf.mxu3 }
 0x2b1   : > { %v2511_v5 = vadd.f32 %v2455_v16, %v2253_v63 }
 0x2b2   : > { %v1944_v1 = vpop.f32.mrf.mxu1  ;;  %v2719_v30 = vpop.f32.mrf.mxu0 }
 0x2b3   : > { %v2769_v48 = vadd.f32 %v2713_v34, %v2511_v5  ;;  %v1996_v31 = vadd.f32 %v1944_v1, %v4252_v3 }
 0x2b5   : > { %2865 = vst [vmem:[%s4287_s25 + $0xa0] sm:$0xff] %v2769_v48  ;;  %v2896_v55 = vadd.f32 %v2895_v29, %v2769_v48  ;;  %v2934_v24 = vmul.f32 %v2769_v48, %v2769_v48 }
 0x2b6   : > { %v2200_v17 = vpop.f32.mrf.mxu2 }
 0x2b7   : > { %v2965_v27 = vadd.f32 %v2964_v7, %v2934_v24  ;;  %v2254_v57 = vadd.f32 %v2200_v17, %v1995_v9  ;;  %v2458_v58 = vpop.f32.mrf.mxu3 }
 0x2b9   : > { %v2512_v53 = vadd.f32 %v2458_v58, %v2254_v57 }
 0x2ba   : > { %v1947_v46 = vpop.f32.mrf.mxu1  ;;  %v2722_v11 = vpop.f32.mrf.mxu0 }
 0x2bb   : > { %v2770_v20 = vadd.f32 %v2716_v44, %v2512_v53  ;;  %v1997_v35 = vadd.f32 %v1947_v46, %v4255_v28 }
 0x2bd   : > { %2866 = vst [vmem:[%s4287_s25 + $0xa8] sm:$0xff] %v2770_v20  ;;  %v2897_v22 = vadd.f32 %v2896_v55, %v2770_v20  ;;  %v2935_v33 = vmul.f32 %v2770_v20, %v2770_v20 }
 0x2be   : > { %v2203_v59 = vpop.f32.mrf.mxu2 }
 0x2bf   : > { %v2966_v6 = vadd.f32 %v2965_v27, %v2935_v33  ;;  %v2255_v43 = vadd.f32 %v2203_v59, %v1996_v31  ;;  %v2461_v26 = vpop.f32.mrf.mxu3 }
 0x2c1   : > { %v2513_v0 = vadd.f32 %v2461_v26, %v2255_v43 }
 0x2c2   : > { %v1950_v41 = vpop.f32.mrf.mxu1  ;;  %v2725_v12 = vpop.f32.mrf.mxu0 }
 0x2c3   : > { %v2771_v15 = vadd.f32 %v2719_v30, %v2513_v0  ;;  %v1998_v47 = vadd.f32 %v1950_v41, %v4258_v40 }
 0x2c5   : > { %2867 = vst [vmem:[%s4287_s25 + $0xb0] sm:$0xff] %v2771_v15  ;;  %v2898_v56 = vadd.f32 %v2897_v22, %v2771_v15  ;;  %v2936_v4 = vmul.f32 %v2771_v15, %v2771_v15 }
 0x2c6   : > { %v2206_v25 = vpop.f32.mrf.mxu2 }
 0x2c7   : > { %v2967_v49 = vadd.f32 %v2966_v6, %v2936_v4  ;;  %v2256_v3 = vadd.f32 %v2206_v25, %v1997_v35  ;;  %v2464_v54 = vpop.f32.mrf.mxu3 }
 0x2c9   : > { %v2514_v62 = vadd.f32 %v2464_v54, %v2256_v3 }
 0x2ca   : > { %v1953_v60 = vpop.f32.mrf.mxu1  ;;  %v2728_v50 = vpop.f32.mrf.mxu0 }
 0x2cb   : > { %v2772_v34 = vadd.f32 %v2722_v11, %v2514_v62  ;;  %v1999_v44 = vadd.f32 %v1953_v60, %v4261_v61 }
 0x2cd   : > { %2868 = vst [vmem:[%s4287_s25 + $0xb8] sm:$0xff] %v2772_v34  ;;  %v2899_v21 = vadd.f32 %v2898_v56, %v2772_v34  ;;  %v2937_v51 = vmul.f32 %v2772_v34, %v2772_v34 }
 0x2ce   : > { %v2209_v14 = vpop.f32.mrf.mxu2 }
 0x2cf   : > { %v2968_v13 = vadd.f32 %v2967_v49, %v2937_v51  ;;  %v2257_v28 = vadd.f32 %v2209_v14, %v1998_v47  ;;  %v2467_v2 = vpop.f32.mrf.mxu3 }
 0x2d1   : > { %v2515_v10 = vadd.f32 %v2467_v2, %v2257_v28 }
 0x2d2   : > { %v1956_v37 = vpop.f32.mrf.mxu1  ;;  %v2731_v32 = vpop.f32.mrf.mxu0 }
 0x2d3   : > { %v2773_v8 = vadd.f32 %v2725_v12, %v2515_v10  ;;  %v2000_v1 = vadd.f32 %v1956_v37, %v4264_v39 }
 0x2d5   : > { %2869 = vst [vmem:[%s4287_s25 + $0xc0] sm:$0xff] %v2773_v8  ;;  %v2900_v19 = vadd.f32 %v2899_v21, %v2773_v8  ;;  %v2938_v38 = vmul.f32 %v2773_v8, %v2773_v8 }
 0x2d6   : > { %v2212_v29 = vpop.f32.mrf.mxu2 }
 0x2d7   : > { %v2969_v42 = vadd.f32 %v2968_v13, %v2938_v38  ;;  %v2258_v40 = vadd.f32 %v2212_v29, %v1999_v44  ;;  %v2470_v7 = vpop.f32.mrf.mxu3 }
 0x2d9   : > { %v2516_v63 = vadd.f32 %v2470_v7, %v2258_v40 }
 0x2da   : > { %v1959_v16 = vpop.f32.mrf.mxu1  ;;  %v2734_v17 = vpop.f32.mrf.mxu0 }
 0x2db   : > { %v2774_v5 = vadd.f32 %v2728_v50, %v2516_v63  ;;  %v2001_v53 = vadd.f32 %v1959_v16, %v4267_v18 }
 0x2dd   : > { %2870 = vst [vmem:[%s4287_s25 + $0xc8] sm:$0xff] %v2774_v5  ;;  %v2901_v30 = vadd.f32 %v2900_v19, %v2774_v5  ;;  %v2939_v48 = vmul.f32 %v2774_v5, %v2774_v5 }
 0x2de   : > { %v2215_v9 = vpop.f32.mrf.mxu2 }
 0x2df   : > { %v2970_v55 = vadd.f32 %v2969_v42, %v2939_v48  ;;  %v2259_v61 = vadd.f32 %v2215_v9, %v2000_v1  ;;  %v2473_v24 = vpop.f32.mrf.mxu3 }
 0x2e1   : > { %v2517_v27 = vadd.f32 %v2473_v24, %v2259_v61 }
 0x2e2   : > { %v1962_v58 = vpop.f32.mrf.mxu1  ;;  %v2737_v59 = vpop.f32.mrf.mxu0 }
 0x2e3   : > { %v2775_v57 = vadd.f32 %v2731_v32, %v2517_v27  ;;  %v2002_v43 = vadd.f32 %v1962_v58, %v4270_v52 }
 0x2e5   : > { %2871 = vst [vmem:[%s4287_s25 + $0xd0] sm:$0xff] %v2775_v57  ;;  %v2902_v46 = vadd.f32 %v2901_v30, %v2775_v57  ;;  %v2940_v11 = vmul.f32 %v2775_v57, %v2775_v57 }
 0x2e6   : > { %v2218_v20 = vpop.f32.mrf.mxu2 }
 0x2e7   : > { %v2971_v31 = vadd.f32 %v2970_v55, %v2940_v11  ;;  %v2260_v39 = vadd.f32 %v2218_v20, %v2001_v53  ;;  %v2476_v22 = vpop.f32.mrf.mxu3 }
 0x2e9   : > { %v2518_v33 = vadd.f32 %v2476_v22, %v2260_v39 }
 0x2ea   : > { %v1965_v12 = vpop.f32.mrf.mxu1  ;;  %v2740_v25 = vpop.f32.mrf.mxu0 }
 0x2eb   : > { %v2776_v6 = vadd.f32 %v2734_v17, %v2518_v33  ;;  %v2003_v49 = vadd.f32 %v1965_v12, %v4273_v36 }
 0x2ed   : > { %2872 = vst [vmem:[%s4287_s25 + $0xd8] sm:$0xff] %v2776_v6  ;;  %v2903_v26 = vadd.f32 %v2902_v46, %v2776_v6  ;;  %v2941_v0 = vmul.f32 %v2776_v6, %v2776_v6 }
 0x2ee   : > { %v2221_v41 = vpop.f32.mrf.mxu2 }
 0x2ef   : > { %v2972_v15 = vadd.f32 %v2971_v31, %v2941_v0  ;;  %v2261_v18 = vadd.f32 %v2221_v41, %v2002_v43  ;;  %v2479_v35 = vpop.f32.mrf.mxu3 }
 0x2f1   : > { %v2519_v56 = vadd.f32 %v2479_v35, %v2261_v18 }
 0x2f2   : > { %v1968_v50 = vpop.f32.mrf.mxu1  ;;  %v2743_v2 = vpop.f32.mrf.mxu0 }
 0x2f3   : > { %v2777_v4 = vadd.f32 %v2737_v59, %v2519_v56  ;;  %v2004_v51 = vadd.f32 %v1968_v50, %v4276_v23 }
 0x2f5   : > { %2873 = vst [vmem:[%s4287_s25 + $0xe0] sm:$0xff] %v2777_v4  ;;  %v2904_v3 = vadd.f32 %v2903_v26, %v2777_v4  ;;  %v2942_v54 = vmul.f32 %v2777_v4, %v2777_v4 }
 0x2f6   : > { %v2224_v62 = vpop.f32.mrf.mxu2 }
 0x2f7   : > { %v2973_v60 = vadd.f32 %v2972_v15, %v2942_v54  ;;  %v2262_v52 = vadd.f32 %v2224_v62, %v2003_v49  ;;  %v2482_v34 = vpop.f32.mrf.mxu3 }
 0x2f9   : > { %v2520_v47 = vadd.f32 %v2482_v34, %v2262_v52 }
 0x2fa   : > { %v1971_v44 = vpop.f32.mrf.mxu1  ;;  %v2746_v63 = vpop.f32.mrf.mxu0 }
 0x2fb   : > { %v2778_v21 = vadd.f32 %v2740_v25, %v2520_v47  ;;  %v2005_v38 = vadd.f32 %v1971_v44, %v4279_v45 }
 0x2fd   : > { %2874 = vst [vmem:[%s4287_s25 + $0xe8] sm:$0xff] %v2778_v21  ;;  %v2905_v14 = vadd.f32 %v2904_v3, %v2778_v21  ;;  %v2943_v13 = vmul.f32 %v2778_v21, %v2778_v21 }
 0x2fe   : > { %v2227_v28 = vpop.f32.mrf.mxu2 }
 0x2ff   : > { %v2974_v10 = vadd.f32 %v2973_v60, %v2943_v13  ;;  %v2263_v36 = vadd.f32 %v2227_v28, %v2004_v51  ;;  %v2485_v37 = vpop.f32.mrf.mxu3 }
 0x301   : > { %v2521_v8 = vadd.f32 %v2485_v37, %v2263_v36 }
 0x303   : > { %v2779_v19 = vadd.f32 %v2743_v2, %v2521_v8 }
 0x305   : > { %2875 = vst [vmem:[%s4287_s25 + $0xf0] sm:$0xff] %v2779_v19  ;;  %v2906_v29 = vadd.f32 %v2905_v14, %v2779_v19  ;;  %v2944_v32 = vmul.f32 %v2779_v19, %v2779_v19 }
 0x306   : > { %v2230_v42 = vpop.f32.mrf.mxu2 }
 0x307   : > { %v2975_v40 = vadd.f32 %v2974_v10, %v2944_v32  ;;  %v2264_v23 = vadd.f32 %v2230_v42, %v2005_v38  ;;  %v2488_v7 = vpop.f32.mrf.mxu3 }
 0x309   : > { %v2522_v16 = vadd.f32 %v2488_v7, %v2264_v23 }
 0x30b   : > { %v2780_v5 = vadd.f32 %v2746_v63, %v2522_v16 }
 0x30d   : > { %2876 = vst [vmem:[%s4287_s25 + $0xf8] sm:$0xff] %v2780_v5  ;;  %v2907_v1 = vadd.f32 %v2906_v29, %v2780_v5  ;;  %v2945_v30 = vmul.f32 %v2780_v5, %v2780_v5 }
 0x30f   : > { %v2908_v48 = vrot.slane %v2907_v1, 4  ;;  %v2976_v9 = vadd.f32 %v2975_v40, %v2945_v30 }
 0x311   : > { %v2909_v55 = vadd.f32 %v2908_v48, %v2907_v1  ;;  %v2977_v61 = vrot.slane %v2976_v9, 4 }
 0x313   : > { %v2910_v24 = vrot.slane %v2909_v55, 2  ;;  %v2978_v45 = vadd.f32 %v2977_v61, %v2976_v9 }
 0x315   : > { %v2911_v17 = vadd.f32 %v2910_v24, %v2909_v55  ;;  %v2979_v27 = vrot.slane %v2978_v45, 2 }
 0x317   : > { %v2912_v57 = vrot.slane %v2911_v17, 1  ;;  %v2980_v58 = vadd.f32 %v2979_v27, %v2978_v45 }
 0x319   : > { %v2981_v53 = vrot.slane %v2980_v58, 1  ;;  %v2913_v46 = vadd.f32 %v2912_v57, %v2911_v17 }
 0x31b   : > { %v2982_v11 = vadd.f32 %v2981_v53, %v2980_v58 }
 0x31d   : > { %v2984_v20 = vsel %vm2983_vm0, %v2913_v46, %v2982_v11 }
 0x31e   : > { %2985 = vst [vmem:[%s235_s29] sm:$0x3] %v2984_v20 }
 0x31f PF: > { %s16_s18 = sadd.s32 1, %s3283_s18  }
 0x320   : > { %p13_p4 = scmp.ge.s32.totalorder %s16_s18, 4  }
 0x322   :  { %15 = sbr.rel (!%p13_p4) target bundleno = 1 (0x1), region = 88 }

// kernel: bottleneck_forward.7
= control target key start
LH: loop header
LB: loop body
LE: loop exit
PB: predicated region body
PF: predicated region fallthrough
CT: control target
= control target key end

     0   :  { %s5420_s3 = inlined_call_operand.vmem [shape: f32[128,512], index: 3, kind: input, shape index: {}]   ;;  %s5421_s0 = inlined_call_operand.vmem [shape: f32[512,128], index: 0, kind: input, shape index: {}]   ;;  %s5422_s1 = inlined_call_operand.vmem [shape: f32[1,128], index: 1, kind: input, shape index: {}]   ;;  %s5423_s2 = inlined_call_operand.vmem [shape: f32[1,128], index: 2, kind: input, shape index: {}]   ;;  %s5424_s4 = inlined_call_operand.vmem [shape: f32[1,512], index: 4, kind: input, shape index: {}]   ;;  %s5425_s5 = inlined_call_operand.vmem [shape: f32[1,512], index: 5, kind: input, shape index: {}]   ;;  %s5426_s6 = inlined_call_operand.vmem [shape: f32[512,512], index: 6, kind: input, shape index: {}, may-alias: {6,7}]   ;;  %s5427_s7 = inlined_call_operand.vmem [shape: f32[512,512], index: 7, kind: output, shape index: {}, may-alias: {6,7}]  }
   0x1   :  { %v352_v0 = vld [vmem:[%s5420_s3 + $0x1f0] sm:$0xff]  ;;  %v353_v1 = vld [vmem:[%s5420_s3 + $0x1f8] sm:$0xff]  ;;  %v350_v6 = vld [vmem:[%s5420_s3 + $0x1e0] sm:$0xff] }
   0x2   :  { %v348_v2 = vld [vmem:[%s5420_s3 + $0x1d0] sm:$0xff]  ;;  %772 = vmatpush.msra.mxu2 %v352_v0  ;;  %981 = vmatpush.msra.mxu3 %v353_v1  ;;  %v349_v3 = vld [vmem:[%s5420_s3 + $0x1d8] sm:$0xff]  ;;  %v351_v7 = vld [vmem:[%s5420_s3 + $0x1e8] sm:$0xff] }
   0x3   :  { %v344_v4 = vld [vmem:[%s5420_s3 + $0x1b0] sm:$0xff]  ;;  %v345_v5 = vld [vmem:[%s5420_s3 + $0x1b8] sm:$0xff]  ;;  %v346_v8 = vld [vmem:[%s5420_s3 + $0x1c0] sm:$0xff]  ;;  %354 = vmatpush.msra.mxu0 %v350_v6  ;;  %563 = vmatpush.msra.mxu1 %v351_v7 }
   0x4   :  { %773 = vmatpush.msra.mxu2 %v348_v2  ;;  %982 = vmatpush.msra.mxu3 %v349_v3  ;;  %v347_v9 = vld [vmem:[%s5420_s3 + $0x1c8] sm:$0xff]  ;;  %v340_v10 = vld [vmem:[%s5420_s3 + $0x190] sm:$0xff]  ;;  %v341_v11 = vld [vmem:[%s5420_s3 + $0x198] sm:$0xff] }
   0x5   :  { %v342_v12 = vld [vmem:[%s5420_s3 + $0x1a0] sm:$0xff]  ;;  %v343_v13 = vld [vmem:[%s5420_s3 + $0x1a8] sm:$0xff]  ;;  %355 = vmatpush.msra.mxu0 %v346_v8  ;;  %564 = vmatpush.msra.mxu1 %v347_v9  ;;  %v336_v14 = vld [vmem:[%s5420_s3 + $0x170] sm:$0xff] }
   0x6   :  { %774 = vmatpush.msra.mxu2 %v344_v4  ;;  %983 = vmatpush.msra.mxu3 %v345_v5  ;;  %v337_v15 = vld [vmem:[%s5420_s3 + $0x178] sm:$0xff]  ;;  %v338_v16 = vld [vmem:[%s5420_s3 + $0x180] sm:$0xff]  ;;  %v339_v17 = vld [vmem:[%s5420_s3 + $0x188] sm:$0xff] }
   0x7   :  { %356 = vmatpush.msra.mxu0 %v342_v12  ;;  %565 = vmatpush.msra.mxu1 %v343_v13  ;;  %v332_v18 = vld [vmem:[%s5420_s3 + $0x150] sm:$0xff]  ;;  %v333_v19 = vld [vmem:[%s5420_s3 + $0x158] sm:$0xff]  ;;  %v334_v20 = vld [vmem:[%s5420_s3 + $0x160] sm:$0xff] }
   0x8   :  { %775 = vmatpush.msra.mxu2 %v340_v10  ;;  %984 = vmatpush.msra.mxu3 %v341_v11  ;;  %v335_v21 = vld [vmem:[%s5420_s3 + $0x168] sm:$0xff]  ;;  %v328_v22 = vld [vmem:[%s5420_s3 + $0x130] sm:$0xff]  ;;  %v329_v23 = vld [vmem:[%s5420_s3 + $0x138] sm:$0xff] }
   0x9   :  { %357 = vmatpush.msra.mxu0 %v338_v16  ;;  %566 = vmatpush.msra.mxu1 %v339_v17  ;;  %v330_v24 = vld [vmem:[%s5420_s3 + $0x140] sm:$0xff]  ;;  %v331_v25 = vld [vmem:[%s5420_s3 + $0x148] sm:$0xff]  ;;  %v324_v26 = vld [vmem:[%s5420_s3 + $0x110] sm:$0xff] }
   0xa   :  { %776 = vmatpush.msra.mxu2 %v336_v14  ;;  %985 = vmatpush.msra.mxu3 %v337_v15  ;;  %v325_v27 = vld [vmem:[%s5420_s3 + $0x118] sm:$0xff]  ;;  %v326_v28 = vld [vmem:[%s5420_s3 + $0x120] sm:$0xff]  ;;  %v327_v29 = vld [vmem:[%s5420_s3 + $0x128] sm:$0xff] }
   0xb   :  { %358 = vmatpush.msra.mxu0 %v334_v20  ;;  %567 = vmatpush.msra.mxu1 %v335_v21  ;;  %v320_v30 = vld [vmem:[%s5420_s3 + $0xf0] sm:$0xff]  ;;  %v321_v31 = vld [vmem:[%s5420_s3 + $0xf8] sm:$0xff]  ;;  %v322_v32 = vld [vmem:[%s5420_s3 + $0x100] sm:$0xff] }
   0xc   :  { %777 = vmatpush.msra.mxu2 %v332_v18  ;;  %986 = vmatpush.msra.mxu3 %v333_v19  ;;  %v323_v33 = vld [vmem:[%s5420_s3 + $0x108] sm:$0xff]  ;;  %v316_v34 = vld [vmem:[%s5420_s3 + $0xd0] sm:$0xff]  ;;  %v317_v35 = vld [vmem:[%s5420_s3 + $0xd8] sm:$0xff] }
   0xd   :  { %359 = vmatpush.msra.mxu0 %v330_v24  ;;  %568 = vmatpush.msra.mxu1 %v331_v25  ;;  %v312_v36 = vld [vmem:[%s5420_s3 + $0xb0] sm:$0xff]  ;;  %v313_v37 = vld [vmem:[%s5420_s3 + $0xb8] sm:$0xff]  ;;  %v318_v38 = vld [vmem:[%s5420_s3 + $0xe0] sm:$0xff] }
   0xe   :  { %778 = vmatpush.msra.mxu2 %v328_v22  ;;  %987 = vmatpush.msra.mxu3 %v329_v23  ;;  %v319_v39 = vld [vmem:[%s5420_s3 + $0xe8] sm:$0xff]  ;;  %v308_v40 = vld [vmem:[%s5420_s3 + $0x90] sm:$0xff]  ;;  %v309_v41 = vld [vmem:[%s5420_s3 + $0x98] sm:$0xff] }
   0xf   :  { %360 = vmatpush.msra.mxu0 %v326_v28  ;;  %569 = vmatpush.msra.mxu1 %v327_v29  ;;  %v314_v42 = vld [vmem:[%s5420_s3 + $0xc0] sm:$0xff]  ;;  %v315_v43 = vld [vmem:[%s5420_s3 + $0xc8] sm:$0xff]  ;;  %v304_v49 = vld [vmem:[%s5420_s3 + $0x70] sm:$0xff] }
  0x10   :  { %779 = vmatpush.msra.mxu2 %v324_v26  ;;  %988 = vmatpush.msra.mxu3 %v325_v27  ;;  %v26_v44 = vld [vmem:[%s5421_s0] sm:$0xff]  ;;  %v311_v48 = vld [vmem:[%s5420_s3 + $0xa8] sm:$0xff]  ;;  %v305_v50 = vld [vmem:[%s5420_s3 + $0x78] sm:$0xff] }
  0x11   :  { %361 = vmatpush.msra.mxu0 %v322_v32  ;;  %570 = vmatpush.msra.mxu1 %v323_v33  ;;  %v2936_v45 = vld [vmem:[%s5422_s1] ss:$0 sm:$0xff]  ;;  %v307_v53 = vld [vmem:[%s5420_s3 + $0x88] sm:$0xff]  ;;  %v300_v54 = vld [vmem:[%s5420_s3 + $0x50] sm:$0xff] }
  0x12   :  { %780 = vmatpush.msra.mxu2 %v320_v30  ;;  %989 = vmatpush.msra.mxu3 %v321_v31  ;;  %v2941_v46 = vld [vmem:[%s5423_s2] ss:$0 sm:$0xff]  ;;  %v94_v51 = vmul.f32 %v2936_v45, %v26_v44  ;;  %v301_v55 = vld [vmem:[%s5420_s3 + $0x58] sm:$0xff]  ;;  %v303_v58 = vld [vmem:[%s5420_s3 + $0x68] sm:$0xff] }
  0x13   :  { %362 = vmatpush.msra.mxu0 %v318_v38  ;;  %571 = vmatpush.msra.mxu1 %v319_v39  ;;  %v310_v47 = vld [vmem:[%s5420_s3 + $0xa0] sm:$0xff]  ;;  %v27_v59 = vld [vmem:[%s5421_s0 + $0x8] sm:$0xff]  ;;  %v296_v60 = vld [vmem:[%s5420_s3 + $0x30] sm:$0xff] }
  0x14   :  { %781 = vmatpush.msra.mxu2 %v316_v34  ;;  %990 = vmatpush.msra.mxu3 %v317_v35  ;;  %v306_v52 = vld [vmem:[%s5420_s3 + $0x80] sm:$0xff]  ;;  %v162_v56 = vadd.f32 %v2941_v46, %v94_v51  ;;  %v297_v61 = vld [vmem:[%s5420_s3 + $0x38] sm:$0xff]  ;;  %v299_v63 = vld [vmem:[%s5420_s3 + $0x48] sm:$0xff]  ;;  %v95_v3 = vmul.f32 %v2936_v45, %v27_v59 }
  0x15   :  { %363 = vmatpush.msra.mxu0 %v314_v42  ;;  %572 = vmatpush.msra.mxu1 %v315_v43  ;;  %v302_v57 = vld [vmem:[%s5420_s3 + $0x60] sm:$0xff]  ;;  %v292_v0 = vld [vmem:[%s5420_s3 + $0x10] sm:$0xff]  ;;  %v293_v1 = vld [vmem:[%s5420_s3 + $0x18] sm:$0xff] }
  0x16   :  { %782 = vmatpush.msra.mxu2 %v312_v36  ;;  %991 = vmatpush.msra.mxu3 %v313_v37  ;;  %v298_v62 = vld [vmem:[%s5420_s3 + $0x40] sm:$0xff]  ;;  %v226_v2 = vmax.f32 %v162_v56, 0.0  ;;  %v295_v5 = vld [vmem:[%s5420_s3 + $0x28] sm:$0xff]  ;;  %v163_v8 = vadd.f32 %v2941_v46, %v95_v3  ;;  %v28_v9 = vld [vmem:[%s5421_s0 + $0x10] sm:$0xff] }
  0x17   :  { %364 = vmatpush.msra.mxu0 %v310_v47  ;;  %573 = vmatpush.msra.mxu1 %v311_v48  ;;  %v294_v4 = vld [vmem:[%s5420_s3 + $0x20] sm:$0xff]  ;;  %v291_v7 = vld [vmem:[%s5420_s3 + $0x8] sm:$0xff]  ;;  %v96_v11 = vmul.f32 %v2936_v45, %v28_v9  ;;  %v29_v13 = vld [vmem:[%s5421_s0 + $0x18] sm:$0xff] }
  0x18   :  { %783 = vmatpush.msra.mxu2 %v308_v40  ;;  %992 = vmatpush.msra.mxu3 %v309_v41  ;;  %v290_v6 = vld [vmem:[%s5420_s3] sm:$0xff]  ;;  %v227_v10 = vmax.f32 %v163_v8, 0.0  ;;  %v97_v15 = vmul.f32 %v2936_v45, %v29_v13  ;;  %v31_v21 = vld [vmem:[%s5421_s0 + $0x28] sm:$0xff]  ;;  %v32_v25 = vld [vmem:[%s5421_s0 + $0x30] sm:$0xff] }
  0x19   :  { %365 = vmatpush.msra.mxu0 %v306_v52  ;;  %574 = vmatpush.msra.mxu1 %v307_v53  ;;  %v164_v12 = vadd.f32 %v2941_v46, %v96_v11  ;;  %v30_v17 = vld [vmem:[%s5421_s0 + $0x20] sm:$0xff]  ;;  %v99_v23 = vmul.f32 %v2936_v45, %v31_v21  ;;  %v100_v27 = vmul.f32 %v2936_v45, %v32_v25  ;;  %v33_v29 = vld [vmem:[%s5421_s0 + $0x38] sm:$0xff]  ;;  %v35_v37 = vld [vmem:[%s5421_s0 + $0x48] sm:$0xff] }
  0x1a   :  { %784 = vmatpush.msra.mxu2 %v304_v49  ;;  %993 = vmatpush.msra.mxu3 %v305_v50  ;;  %v165_v16 = vadd.f32 %v2941_v46, %v97_v15  ;;  %v98_v19 = vmul.f32 %v2936_v45, %v30_v17  ;;  %v101_v31 = vmul.f32 %v2936_v45, %v33_v29  ;;  %v34_v33 = vld [vmem:[%s5421_s0 + $0x40] sm:$0xff]  ;;  %v36_v41 = vld [vmem:[%s5421_s0 + $0x50] sm:$0xff]  ;;  %v37_v47 = vld [vmem:[%s5421_s0 + $0x58] sm:$0xff] }
  0x1b   :  { %366 = vmatpush.msra.mxu0 %v302_v57  ;;  %575 = vmatpush.msra.mxu1 %v303_v58  ;;  %v228_v14 = vmax.f32 %v164_v12, 0.0  ;;  %v167_v24 = vadd.f32 %v2941_v46, %v99_v23  ;;  %v168_v28 = vadd.f32 %v2941_v46, %v100_v27  ;;  %v102_v35 = vmul.f32 %v2936_v45, %v34_v33  ;;  %v38_v51 = vld [vmem:[%s5421_s0 + $0x60] sm:$0xff]  ;;  %v40_v59 = vld [vmem:[%s5421_s0 + $0x70] sm:$0xff]  ;;  %v1723_v27 = vld [vmem:[%s5426_s6 + $0x8] sm:$0xff] }
  0x1c   :  { %785 = vmatpush.msra.mxu2 %v300_v54  ;;  %994 = vmatpush.msra.mxu3 %v301_v55  ;;  %v229_v18 = vmax.f32 %v165_v16, 0.0  ;;  %v166_v20 = vadd.f32 %v2941_v46, %v98_v19  ;;  %v169_v32 = vadd.f32 %v2941_v46, %v101_v31  ;;  %v103_v39 = vmul.f32 %v2936_v45, %v35_v37  ;;  %v39_v55 = vld [vmem:[%s5421_s0 + $0x68] sm:$0xff]  ;;  %v42_v3 = vld [vmem:[%s5421_s0 + $0x80] sm:$0xff]  ;;  %v44_v19 = vld [vmem:[%s5421_s0 + $0x90] sm:$0xff] }
  0x1d   :  { %367 = vmatpush.msra.mxu0 %v298_v62  ;;  %576 = vmatpush.msra.mxu1 %v299_v63  ;;  %v231_v26 = vmax.f32 %v167_v24, 0.0  ;;  %v232_v30 = vmax.f32 %v168_v28, 0.0  ;;  %v170_v36 = vadd.f32 %v2941_v46, %v102_v35  ;;  %v104_v43 = vmul.f32 %v2936_v45, %v36_v41  ;;  %v41_v63 = vld [vmem:[%s5421_s0 + $0x78] sm:$0xff]  ;;  %v1190_v8 = vld [vmem:[%s5424_s4] sm:$0xf] }
  0x1e   :  { %786 = vmatpush.msra.mxu2 %v296_v60  ;;  %995 = vmatpush.msra.mxu3 %v297_v61  ;;  %v230_v22 = vmax.f32 %v166_v20, 0.0  ;;  %v233_v34 = vmax.f32 %v169_v32, 0.0  ;;  %v171_v40 = vadd.f32 %v2941_v46, %v103_v39  ;;  %v105_v49 = vmul.f32 %v2936_v45, %v37_v47  ;;  %v1456_v11 = vld [vmem:[%s5425_s5] sm:$0xf]  ;;  %v1725_v37 = vld [vmem:[%s5426_s6 + $0x18] sm:$0xff] }
  0x1f   :  { %368 = vmatpush.msra.mxu0 %v294_v4  ;;  %577 = vmatpush.msra.mxu1 %v295_v5  ;;  %v234_v38 = vmax.f32 %v170_v36, 0.0  ;;  %v172_v44 = vadd.f32 %v2941_v46, %v104_v43  ;;  %v106_v53 = vmul.f32 %v2936_v45, %v38_v51  ;;  %v107_v57 = vmul.f32 %v2936_v45, %v39_v55  ;;  %v1724_v36 = vld [vmem:[%s5426_s6 + $0x10] sm:$0xff] }
  0x20   :  { %787 = vmatpush.msra.mxu2 %v292_v0  ;;  %996 = vmatpush.msra.mxu3 %v293_v1  ;;  %v235_v42 = vmax.f32 %v171_v40, 0.0  ;;  %v173_v50 = vadd.f32 %v2941_v46, %v105_v49  ;;  %v108_v61 = vmul.f32 %v2936_v45, %v40_v59  ;;  %v109_v1 = vmul.f32 %v2936_v45, %v41_v63  ;;  %v45_v49 = vld [vmem:[%s5421_s0 + $0x98] sm:$0xff] }
  0x21   :  { %788 = vmatmul.f32.vlgmr.msra.gmra.mxu2 %v226_v2  ;;  %997 = vmatmul.f32.vlgmr.msra.gmra.mxu3 %v226_v2  ;;  %v236_v48 = vmax.f32 %v172_v44, 0.0  ;;  %v174_v54 = vadd.f32 %v2941_v46, %v106_v53  ;;  %v175_v58 = vadd.f32 %v2941_v46, %v107_v57  ;;  %v110_v5 = vmul.f32 %v2936_v45, %v42_v3 }
  0x22   :  { %369 = vmatpush.msra.mxu0 %v290_v6  ;;  %578 = vmatpush.msra.mxu1 %v291_v7  ;;  %v237_v52 = vmax.f32 %v173_v50, 0.0  ;;  %v176_v62 = vadd.f32 %v2941_v46, %v108_v61  ;;  %v43_v7 = vld [vmem:[%s5421_s0 + $0x88] sm:$0xff]  ;;  %v3095_v12 = vperm.slane %v1190_v8, 0  ;;  %v3097_v13 = vperm.slane %v1190_v8, 1 }
  0x23   :  { %370 = vmatmul.f32.vlgmr.msra.gmra.mxu0 %v226_v2  ;;  %579 = vmatmul.f32.vlgmr.msra.gmra.mxu1 %v226_v2  ;;  %v238_v56 = vmax.f32 %v174_v54, 0.0  ;;  %v239_v60 = vmax.f32 %v175_v58, 0.0  ;;  %v177_v2 = vadd.f32 %v2941_v46, %v109_v1  ;;  %v178_v6 = vadd.f32 %v2941_v46, %v110_v5 }
  0x24   :  { %v240_v0 = vmax.f32 %v176_v62, 0.0  ;;  %v111_v9 = vmul.f32 %v2936_v45, %v43_v7  ;;  %v3100_v15 = vperm.slane %v1456_v11, 0  ;;  %v3102_v16 = vperm.slane %v1456_v11, 1 }
  0x25   :  { %v241_v4 = vmax.f32 %v177_v2, 0.0  ;;  %v3104_v17 = vperm.slane %v1190_v8, 2  ;;  %v3113_v24 = vperm.slane %v1456_v11, 2  ;;  %v3115_v25 = vperm.slane %v1456_v11, 3 }
  0x26   :  { %v112_v31 = vmul.f32 %v2936_v45, %v44_v19  ;;  %v113_v61 = vmul.f32 %v2936_v45, %v45_v49  ;;  %v46_v19 = vld [vmem:[%s5421_s0 + $0xa0] sm:$0xff] }
  0x29   :  { %791 = vmatmul.f32.gmra.mxu2 %v227_v10  ;;  %1000 = vmatmul.f32.gmra.mxu3 %v227_v10 }
  0x2b   :  { %373 = vmatmul.f32.gmra.mxu0 %v227_v10  ;;  %582 = vmatmul.f32.gmra.mxu1 %v227_v10  ;;  %v242_v10 = vmax.f32 %v178_v6, 0.0 }
  0x31   :  { %794 = vmatmul.f32.gmra.mxu2 %v228_v14  ;;  %1003 = vmatmul.f32.gmra.mxu3 %v228_v14 }
  0x33   :  { %376 = vmatmul.f32.gmra.mxu0 %v228_v14  ;;  %585 = vmatmul.f32.gmra.mxu1 %v228_v14  ;;  %v179_v14 = vadd.f32 %v2941_v46, %v111_v9 }
  0x39   :  { %797 = vmatmul.f32.gmra.mxu2 %v229_v18  ;;  %1006 = vmatmul.f32.gmra.mxu3 %v229_v18 }
  0x3b   :  { %379 = vmatmul.f32.gmra.mxu0 %v229_v18  ;;  %588 = vmatmul.f32.gmra.mxu1 %v229_v18  ;;  %v3106_v18 = vperm.slane %v1190_v8, 3  ;;  %v181_v8 = vadd.f32 %v2941_v46, %v113_v61 }
  0x41   :  { %800 = vmatmul.f32.gmra.mxu2 %v230_v22  ;;  %1009 = vmatmul.f32.gmra.mxu3 %v230_v22 }
  0x43   :  { %382 = vmatmul.f32.gmra.mxu0 %v230_v22  ;;  %591 = vmatmul.f32.gmra.mxu1 %v230_v22 }
  0x49   :  { %803 = vmatmul.f32.gmra.mxu2 %v231_v26  ;;  %1012 = vmatmul.f32.gmra.mxu3 %v231_v26 }
  0x4b   :  { %385 = vmatmul.f32.gmra.mxu0 %v231_v26  ;;  %594 = vmatmul.f32.gmra.mxu1 %v231_v26  ;;  %v1722_v26 = vld [vmem:[%s5426_s6] sm:$0xff] }
  0x51   :  { %806 = vmatmul.f32.gmra.mxu2 %v232_v30  ;;  %1015 = vmatmul.f32.gmra.mxu3 %v232_v30 }
  0x53   :  { %388 = vmatmul.f32.gmra.mxu0 %v232_v30  ;;  %597 = vmatmul.f32.gmra.mxu1 %v232_v30  ;;  %v243_v30 = vmax.f32 %v179_v14, 0.0 }
  0x59   :  { %809 = vmatmul.f32.gmra.mxu2 %v233_v34  ;;  %1018 = vmatmul.f32.gmra.mxu3 %v233_v34 }
  0x5b   :  { %391 = vmatmul.f32.gmra.mxu0 %v233_v34  ;;  %600 = vmatmul.f32.gmra.mxu1 %v233_v34 }
  0x61   :  { %812 = vmatmul.f32.gmra.mxu2 %v234_v38  ;;  %1021 = vmatmul.f32.gmra.mxu3 %v234_v38 }
  0x63   :  { %394 = vmatmul.f32.gmra.mxu0 %v234_v38  ;;  %603 = vmatmul.f32.gmra.mxu1 %v234_v38 }
  0x69   :  { %815 = vmatmul.f32.gmra.mxu2 %v235_v42  ;;  %1024 = vmatmul.f32.gmra.mxu3 %v235_v42 }
  0x6b   :  { %397 = vmatmul.f32.gmra.mxu0 %v235_v42  ;;  %606 = vmatmul.f32.gmra.mxu1 %v235_v42  ;;  %v180_v42 = vadd.f32 %v2941_v46, %v112_v31 }
  0x71   :  { %818 = vmatmul.f32.gmra.mxu2 %v236_v48  ;;  %1027 = vmatmul.f32.gmra.mxu3 %v236_v48 }
  0x73   :  { %400 = vmatmul.f32.gmra.mxu0 %v236_v48  ;;  %609 = vmatmul.f32.gmra.mxu1 %v236_v48 }
  0x79   :  { %821 = vmatmul.f32.gmra.mxu2 %v237_v52  ;;  %1030 = vmatmul.f32.gmra.mxu3 %v237_v52 }
  0x7b   :  { %403 = vmatmul.f32.gmra.mxu0 %v237_v52  ;;  %612 = vmatmul.f32.gmra.mxu1 %v237_v52 }
  0x81   :  { %824 = vmatmul.f32.gmra.mxu2 %v238_v56  ;;  %1033 = vmatmul.f32.gmra.mxu3 %v238_v56 }
  0x83   :  { %406 = vmatmul.f32.gmra.mxu0 %v238_v56  ;;  %615 = vmatmul.f32.gmra.mxu1 %v238_v56 }
  0x89   :  { %827 = vmatmul.f32.gmra.mxu2 %v239_v60  ;;  %1036 = vmatmul.f32.gmra.mxu3 %v239_v60 }
  0x8b   :  { %409 = vmatmul.f32.gmra.mxu0 %v239_v60  ;;  %618 = vmatmul.f32.gmra.mxu1 %v239_v60  ;;  %v244_v60 = vmax.f32 %v180_v42, 0.0 }
  0x91   :  { %830 = vmatmul.f32.gmra.mxu2 %v240_v0  ;;  %1039 = vmatmul.f32.gmra.mxu3 %v240_v0 }
  0x93   :  { %412 = vmatmul.f32.gmra.mxu0 %v240_v0  ;;  %621 = vmatmul.f32.gmra.mxu1 %v240_v0 }
  0x99   :  { %833 = vmatmul.f32.gmra.mxu2 %v241_v4  ;;  %1042 = vmatmul.f32.gmra.mxu3 %v241_v4 }
  0x9b   :  { %415 = vmatmul.f32.gmra.mxu0 %v241_v4  ;;  %624 = vmatmul.f32.gmra.mxu1 %v241_v4 }
  0xa0   :  { %v371_v20 = vpop.f32.mrf.mxu0  ;;  %v580_v21 = vpop.f32.mrf.mxu1 }
  0xa1   :  { %836 = vmatmul.f32.gmra.mxu2 %v242_v10  ;;  %1045 = vmatmul.f32.gmra.mxu3 %v242_v10  ;;  %v1200_v22 = vmul.f32 %v3095_v12, %v371_v20  ;;  %v1201_v23 = vmul.f32 %v3097_v13, %v580_v21 }
  0xa3   :  { %v1466_v32 = vadd.f32 %v3100_v15, %v1200_v22  ;;  %v1467_v33 = vadd.f32 %v3102_v16, %v1201_v23  ;;  %418 = vmatmul.f32.gmra.mxu0 %v242_v10  ;;  %627 = vmatmul.f32.gmra.mxu1 %v242_v10 }
  0xa4   :  { %v789_v28 = vpop.f32.mrf.mxu2  ;;  %v998_v29 = vpop.f32.mrf.mxu3 }
  0xa5   :  { %v1202_v34 = vmul.f32 %v3104_v17, %v789_v28  ;;  %v1203_v35 = vmul.f32 %v3106_v18, %v998_v29  ;;  %v1978_v38 = vadd.f32 %v1722_v26, %v1466_v32  ;;  %v1979_v39 = vadd.f32 %v1723_v27, %v1467_v33 }
  0xa6   :  { %v245_v32 = vmax.f32 %v181_v8, 0.0  ;;  %v114_v33 = vmul.f32 %v2936_v45, %v46_v19 }
  0xa7   :  { %v1468_v40 = vadd.f32 %v3113_v24, %v1202_v34  ;;  %v1469_v41 = vadd.f32 %v3115_v25, %v1203_v35  ;;  %v2234_v43 = vmax.f32 %v1978_v38, 0.0  ;;  %v2235_v44 = vmax.f32 %v1979_v39, 0.0 }
  0xa8   :  { %v374_v50 = vpop.f32.mrf.mxu0  ;;  %v583_v51 = vpop.f32.mrf.mxu1 }
  0xa9   :  { %v1980_v47 = vadd.f32 %v1724_v36, %v1468_v40  ;;  %v1981_v48 = vadd.f32 %v1725_v37, %v1469_v41  ;;  %839 = vmatmul.f32.gmra.mxu2 %v243_v30  ;;  %1048 = vmatmul.f32.gmra.mxu3 %v243_v30  ;;  %2490 = vst [vmem:[%s5427_s7] sm:$0xff] %v2234_v43 }
  0xaa   :  { %v1204_v54 = vmul.f32 %v3095_v12, %v374_v50  ;;  %v1205_v55 = vmul.f32 %v3097_v13, %v583_v51  ;;  %2491 = vst [vmem:[%s5427_s7 + $0x8] sm:$0xff] %v2235_v44  ;;  %v182_v44 = vadd.f32 %v2941_v46, %v114_v33  ;;  %v47_v51 = vld [vmem:[%s5421_s0 + $0xa8] sm:$0xff] }
  0xab   :  { %v2236_v52 = vmax.f32 %v1980_v47, 0.0  ;;  %v2237_v53 = vmax.f32 %v1981_v48, 0.0  ;;  %421 = vmatmul.f32.gmra.mxu0 %v243_v30  ;;  %630 = vmatmul.f32.gmra.mxu1 %v243_v30 }
  0xac   :  { %v792_v58 = vpop.f32.mrf.mxu2  ;;  %v1001_v59 = vpop.f32.mrf.mxu3  ;;  %v1470_v62 = vadd.f32 %v3100_v15, %v1204_v54  ;;  %v1471_v63 = vadd.f32 %v3102_v16, %v1205_v55 }
  0xad   :  { %v1206_v0 = vmul.f32 %v3104_v17, %v792_v58  ;;  %v1207_v1 = vmul.f32 %v3106_v18, %v1001_v59 }
  0xaf   :  { %v1472_v6 = vadd.f32 %v3113_v24, %v1206_v0  ;;  %v1473_v7 = vadd.f32 %v3115_v25, %v1207_v1 }
  0xb0   :  { %v377_v20 = vpop.f32.mrf.mxu0  ;;  %v586_v21 = vpop.f32.mrf.mxu1 }
  0xb1   :  { %v1726_v56 = vld [vmem:[%s5426_s6 + $0x20] sm:$0xff]  ;;  %v1727_v57 = vld [vmem:[%s5426_s6 + $0x28] sm:$0xff]  ;;  %842 = vmatmul.f32.gmra.mxu2 %v244_v60  ;;  %1051 = vmatmul.f32.gmra.mxu3 %v244_v60  ;;  %v1208_v26 = vmul.f32 %v3095_v12, %v377_v20  ;;  %v1209_v27 = vmul.f32 %v3097_v13, %v586_v21  ;;  %v48_v21 = vld [vmem:[%s5421_s0 + $0xb0] sm:$0xff] }
  0xb2   :  { %2492 = vst [vmem:[%s5427_s7 + $0x10] sm:$0xff] %v2236_v52  ;;  %v1982_v4 = vadd.f32 %v1726_v56, %v1470_v62  ;;  %v1983_v5 = vadd.f32 %v1727_v57, %v1471_v63  ;;  %v246_v62 = vmax.f32 %v182_v44, 0.0  ;;  %v115_v63 = vmul.f32 %v2936_v45, %v47_v51 }
  0xb3   :  { %2493 = vst [vmem:[%s5427_s7 + $0x18] sm:$0xff] %v2237_v53  ;;  %v1474_v34 = vadd.f32 %v3100_v15, %v1208_v26  ;;  %v1475_v35 = vadd.f32 %v3102_v16, %v1209_v27  ;;  %424 = vmatmul.f32.gmra.mxu0 %v244_v60  ;;  %633 = vmatmul.f32.gmra.mxu1 %v244_v60 }
  0xb4   :  { %v2238_v9 = vmax.f32 %v1982_v4, 0.0  ;;  %v2239_v10 = vmax.f32 %v1983_v5, 0.0  ;;  %v795_v30 = vpop.f32.mrf.mxu2  ;;  %v1004_v31 = vpop.f32.mrf.mxu3 }
  0xb5   :  { %v1210_v36 = vmul.f32 %v3104_v17, %v795_v30  ;;  %v1211_v37 = vmul.f32 %v3106_v18, %v1004_v31 }
  0xb7   :  { %v1476_v42 = vadd.f32 %v3113_v24, %v1210_v36  ;;  %v1477_v43 = vadd.f32 %v3115_v25, %v1211_v37 }
  0xb8   :  { %v380_v52 = vpop.f32.mrf.mxu0  ;;  %v589_v53 = vpop.f32.mrf.mxu1 }
  0xb9   :  { %845 = vmatmul.f32.gmra.mxu2 %v245_v32  ;;  %1054 = vmatmul.f32.gmra.mxu3 %v245_v32  ;;  %v1212_v56 = vmul.f32 %v3095_v12, %v380_v52  ;;  %v1213_v57 = vmul.f32 %v3097_v13, %v589_v53  ;;  %v49_v53 = vld [vmem:[%s5421_s0 + $0xb8] sm:$0xff] }
  0xba   :  { %v1728_v2 = vld [vmem:[%s5426_s6 + $0x30] sm:$0xff]  ;;  %v1729_v3 = vld [vmem:[%s5426_s6 + $0x38] sm:$0xff] }
  0xbb   :  { %v1984_v11 = vadd.f32 %v1728_v2, %v1472_v6  ;;  %v1985_v14 = vadd.f32 %v1729_v3, %v1473_v7  ;;  %2494 = vst [vmem:[%s5427_s7 + $0x20] sm:$0xff] %v2238_v9  ;;  %v1478_v0 = vadd.f32 %v3100_v15, %v1212_v56  ;;  %v1479_v1 = vadd.f32 %v3102_v16, %v1213_v57 }
  0xbc   :  { %2495 = vst [vmem:[%s5427_s7 + $0x28] sm:$0xff] %v2239_v10  ;;  %v798_v60 = vpop.f32.mrf.mxu2  ;;  %v1007_v61 = vpop.f32.mrf.mxu3  ;;  %427 = vmatmul.f32.gmra.mxu0 %v245_v32  ;;  %636 = vmatmul.f32.gmra.mxu1 %v245_v32  ;;  %v183_v10 = vadd.f32 %v2941_v46, %v115_v63 }
  0xbd   :  { %v2240_v22 = vmax.f32 %v1984_v11, 0.0  ;;  %v2241_v23 = vmax.f32 %v1985_v14, 0.0  ;;  %v1214_v2 = vmul.f32 %v3104_v17, %v798_v60  ;;  %v1215_v3 = vmul.f32 %v3106_v18, %v1007_v61 }
  0xbf   :  { %v1480_v8 = vadd.f32 %v3113_v24, %v1214_v2  ;;  %v1481_v9 = vadd.f32 %v3115_v25, %v1215_v3 }
  0xc1   :  { %848 = vmatmul.f32.gmra.mxu2 %v246_v62  ;;  %1057 = vmatmul.f32.gmra.mxu3 %v246_v62 }
  0xc3   :  { %v1730_v28 = vld [vmem:[%s5426_s6 + $0x40] sm:$0xff]  ;;  %v1731_v29 = vld [vmem:[%s5426_s6 + $0x48] sm:$0xff] }
  0xc4   :  { %2496 = vst [vmem:[%s5427_s7 + $0x30] sm:$0xff] %v2240_v22  ;;  %v1986_v40 = vadd.f32 %v1730_v28, %v1474_v34  ;;  %v1987_v41 = vadd.f32 %v1731_v29, %v1475_v35  ;;  %v383_v22 = vpop.f32.mrf.mxu0  ;;  %v801_v32 = vpop.f32.mrf.mxu2  ;;  %v247_v34 = vmax.f32 %v183_v10, 0.0  ;;  %v116_v35 = vmul.f32 %v2936_v45, %v48_v21  ;;  %430 = vmatmul.f32.gmra.mxu0 %v246_v62 }
  0xc5   :  { %2497 = vst [vmem:[%s5427_s7 + $0x38] sm:$0xff] %v2241_v23  ;;  %v592_v23 = vpop.f32.mrf.mxu1  ;;  %v1216_v28 = vmul.f32 %v3095_v12, %v383_v22  ;;  %v1010_v33 = vpop.f32.mrf.mxu3  ;;  %639 = vmatmul.f32.gmra.mxu1 %v246_v62 }
  0xc6   :  { %v2242_v47 = vmax.f32 %v1986_v40, 0.0  ;;  %v2243_v48 = vmax.f32 %v1987_v41, 0.0  ;;  %v1217_v29 = vmul.f32 %v3097_v13, %v592_v23  ;;  %v50_v23 = vld [vmem:[%s5421_s0 + $0xc0] sm:$0xff] }
  0xc7   :  { %v1482_v36 = vadd.f32 %v3100_v15, %v1216_v28 }
  0xc8   :  { %v1483_v37 = vadd.f32 %v3102_v16, %v1217_v29 }
  0xc9   :  { %851 = vmatmul.f32.gmra.mxu2 %v247_v34  ;;  %1060 = vmatmul.f32.gmra.mxu3 %v247_v34 }
  0xcc   :  { %v1732_v38 = vld [vmem:[%s5426_s6 + $0x50] sm:$0xff]  ;;  %v1733_v39 = vld [vmem:[%s5426_s6 + $0x58] sm:$0xff]  ;;  %v804_v62 = vpop.f32.mrf.mxu2  ;;  %433 = vmatmul.f32.gmra.mxu0 %v247_v34 }
  0xcd   :  { %v1988_v49 = vadd.f32 %v1732_v38, %v1476_v42  ;;  %v1989_v50 = vadd.f32 %v1733_v39, %v1477_v43  ;;  %2498 = vst [vmem:[%s5427_s7 + $0x40] sm:$0xff] %v2242_v47  ;;  %v1218_v38 = vmul.f32 %v3104_v17, %v801_v32  ;;  %v1219_v39 = vmul.f32 %v3106_v18, %v1010_v33  ;;  %v1013_v63 = vpop.f32.mrf.mxu3 }
  0xce   :  { %2499 = vst [vmem:[%s5427_s7 + $0x48] sm:$0xff] %v2243_v48  ;;  %v184_v48 = vadd.f32 %v2941_v46, %v116_v35  ;;  %642 = vmatmul.f32.gmra.mxu1 %v247_v34 }
  0xcf   :  { %v2244_v54 = vmax.f32 %v1988_v49, 0.0  ;;  %v2245_v55 = vmax.f32 %v1989_v50, 0.0  ;;  %v1484_v44 = vadd.f32 %v3113_v24, %v1218_v38  ;;  %v1485_v47 = vadd.f32 %v3115_v25, %v1219_v39 }
  0xd4   :  { %v807_v34 = vpop.f32.mrf.mxu2 }
  0xd5   :  { %v1734_v58 = vld [vmem:[%s5426_s6 + $0x60] sm:$0xff]  ;;  %v1735_v59 = vld [vmem:[%s5426_s6 + $0x68] sm:$0xff]  ;;  %v1016_v35 = vpop.f32.mrf.mxu3 }
  0xd6   :  { %2500 = vst [vmem:[%s5427_s7 + $0x50] sm:$0xff] %v2244_v54  ;;  %v1990_v6 = vadd.f32 %v1734_v58, %v1478_v0  ;;  %v1991_v7 = vadd.f32 %v1735_v59, %v1479_v1  ;;  %v386_v54 = vpop.f32.mrf.mxu0  ;;  %v248_v0 = vmax.f32 %v184_v48, 0.0  ;;  %v117_v1 = vmul.f32 %v2936_v45, %v49_v53 }
  0xd7   :  { %2501 = vst [vmem:[%s5427_s7 + $0x58] sm:$0xff] %v2245_v55  ;;  %v595_v55 = vpop.f32.mrf.mxu1  ;;  %v1220_v58 = vmul.f32 %v3095_v12, %v386_v54 }
  0xd8   :  { %v2246_v11 = vmax.f32 %v1990_v6, 0.0  ;;  %v2247_v14 = vmax.f32 %v1991_v7, 0.0  ;;  %v1221_v59 = vmul.f32 %v3097_v13, %v595_v55  ;;  %854 = vmatmul.f32.gmra.mxu2 %v248_v0  ;;  %1063 = vmatmul.f32.gmra.mxu3 %v248_v0  ;;  %v51_v55 = vld [vmem:[%s5421_s0 + $0xc8] sm:$0xff] }
  0xd9   :  { %v1486_v2 = vadd.f32 %v3100_v15, %v1220_v58  ;;  %436 = vmatmul.f32.gmra.mxu0 %v248_v0  ;;  %645 = vmatmul.f32.gmra.mxu1 %v248_v0 }
  0xda   :  { %v1487_v3 = vadd.f32 %v3102_v16, %v1221_v59 }
  0xdc   :  { %v810_v0 = vpop.f32.mrf.mxu2 }
  0xde   :  { %v1736_v4 = vld [vmem:[%s5426_s6 + $0x70] sm:$0xff]  ;;  %v1737_v5 = vld [vmem:[%s5426_s6 + $0x78] sm:$0xff] }
  0xdf   :  { %v1992_v19 = vadd.f32 %v1736_v4, %v1480_v8  ;;  %v1993_v20 = vadd.f32 %v1737_v5, %v1481_v9  ;;  %2502 = vst [vmem:[%s5427_s7 + $0x60] sm:$0xff] %v2246_v11  ;;  %v1222_v4 = vmul.f32 %v3104_v17, %v804_v62  ;;  %v1223_v5 = vmul.f32 %v3106_v18, %v1013_v63 }
  0xe0   :  { %2503 = vst [vmem:[%s5427_s7 + $0x68] sm:$0xff] %v2247_v14  ;;  %v185_v14 = vadd.f32 %v2941_v46, %v117_v1  ;;  %v1019_v1 = vpop.f32.mrf.mxu3 }
  0xe1   :  { %v2248_v26 = vmax.f32 %v1992_v19, 0.0  ;;  %v2249_v27 = vmax.f32 %v1993_v20, 0.0  ;;  %v1488_v10 = vadd.f32 %v3113_v24, %v1222_v4  ;;  %v1489_v11 = vadd.f32 %v3115_v25, %v1223_v5 }
  0xe7   :  { %v1738_v30 = vld [vmem:[%s5426_s6 + $0x80] sm:$0xff]  ;;  %v1739_v31 = vld [vmem:[%s5426_s6 + $0x88] sm:$0xff] }
  0xe8   :  { %2504 = vst [vmem:[%s5427_s7 + $0x70] sm:$0xff] %v2248_v26  ;;  %v1994_v42 = vadd.f32 %v1738_v30, %v1482_v36  ;;  %v1995_v43 = vadd.f32 %v1739_v31, %v1483_v37  ;;  %v389_v26 = vpop.f32.mrf.mxu0  ;;  %v249_v36 = vmax.f32 %v185_v14, 0.0  ;;  %v118_v37 = vmul.f32 %v2936_v45, %v50_v23 }
  0xe9   :  { %2505 = vst [vmem:[%s5427_s7 + $0x78] sm:$0xff] %v2249_v27  ;;  %v598_v27 = vpop.f32.mrf.mxu1  ;;  %v1224_v30 = vmul.f32 %v3095_v12, %v389_v26 }
  0xea   :  { %v2250_v49 = vmax.f32 %v1994_v42, 0.0  ;;  %v2251_v50 = vmax.f32 %v1995_v43, 0.0  ;;  %v1225_v31 = vmul.f32 %v3097_v13, %v598_v27  ;;  %857 = vmatmul.f32.gmra.mxu2 %v249_v36  ;;  %1066 = vmatmul.f32.gmra.mxu3 %v249_v36  ;;  %v52_v27 = vld [vmem:[%s5421_s0 + $0xd0] sm:$0xff] }
  0xeb   :  { %v1490_v38 = vadd.f32 %v3100_v15, %v1224_v30  ;;  %439 = vmatmul.f32.gmra.mxu0 %v249_v36  ;;  %648 = vmatmul.f32.gmra.mxu1 %v249_v36  ;;  %v813_v36 = vpop.f32.mrf.mxu2 }
  0xec   :  { %v1491_v39 = vadd.f32 %v3102_v16, %v1225_v31 }
  0xf0   :  { %v1740_v40 = vld [vmem:[%s5426_s6 + $0x90] sm:$0xff]  ;;  %v1741_v41 = vld [vmem:[%s5426_s6 + $0x98] sm:$0xff] }
  0xf1   :  { %v1996_v51 = vadd.f32 %v1740_v40, %v1484_v44  ;;  %v1997_v52 = vadd.f32 %v1741_v41, %v1485_v47  ;;  %2506 = vst [vmem:[%s5427_s7 + $0x80] sm:$0xff] %v2250_v49  ;;  %v1226_v40 = vmul.f32 %v3104_v17, %v807_v34  ;;  %v1227_v41 = vmul.f32 %v3106_v18, %v1016_v35 }
  0xf2   :  { %2507 = vst [vmem:[%s5427_s7 + $0x88] sm:$0xff] %v2251_v50  ;;  %v186_v50 = vadd.f32 %v2941_v46, %v118_v37  ;;  %v1022_v37 = vpop.f32.mrf.mxu3 }
  0xf3   :  { %v2252_v56 = vmax.f32 %v1996_v51, 0.0  ;;  %v2253_v57 = vmax.f32 %v1997_v52, 0.0  ;;  %v1492_v48 = vadd.f32 %v3113_v24, %v1226_v40  ;;  %v1493_v49 = vadd.f32 %v3115_v25, %v1227_v41 }
  0xf9   :  { %v1742_v60 = vld [vmem:[%s5426_s6 + $0xa0] sm:$0xff]  ;;  %v1743_v61 = vld [vmem:[%s5426_s6 + $0xa8] sm:$0xff] }
  0xfa   :  { %2508 = vst [vmem:[%s5427_s7 + $0x90] sm:$0xff] %v2252_v56  ;;  %v1998_v8 = vadd.f32 %v1742_v60, %v1486_v2  ;;  %v1999_v9 = vadd.f32 %v1743_v61, %v1487_v3  ;;  %v392_v56 = vpop.f32.mrf.mxu0  ;;  %v250_v2 = vmax.f32 %v186_v50, 0.0  ;;  %v119_v3 = vmul.f32 %v2936_v45, %v51_v55 }
  0xfb   :  { %2509 = vst [vmem:[%s5427_s7 + $0x98] sm:$0xff] %v2253_v57  ;;  %v601_v57 = vpop.f32.mrf.mxu1  ;;  %v1228_v60 = vmul.f32 %v3095_v12, %v392_v56  ;;  %v53_v56 = vld [vmem:[%s5421_s0 + $0xd8] sm:$0xff] }
  0xfc   :  { %v2254_v19 = vmax.f32 %v1998_v8, 0.0  ;;  %v2255_v20 = vmax.f32 %v1999_v9, 0.0  ;;  %v1229_v61 = vmul.f32 %v3097_v13, %v601_v57  ;;  %860 = vmatmul.f32.gmra.mxu2 %v250_v2  ;;  %1069 = vmatmul.f32.gmra.mxu3 %v250_v2 }
  0xfd   :  { %v1494_v4 = vadd.f32 %v3100_v15, %v1228_v60  ;;  %442 = vmatmul.f32.gmra.mxu0 %v250_v2  ;;  %651 = vmatmul.f32.gmra.mxu1 %v250_v2 }
  0xfe   :  { %v1495_v5 = vadd.f32 %v3102_v16, %v1229_v61 }
 0x102   :  { %v1744_v6 = vld [vmem:[%s5426_s6 + $0xb0] sm:$0xff]  ;;  %v1745_v7 = vld [vmem:[%s5426_s6 + $0xb8] sm:$0xff] }
 0x103   :  { %v2000_v21 = vadd.f32 %v1744_v6, %v1488_v10  ;;  %v2001_v22 = vadd.f32 %v1745_v7, %v1489_v11  ;;  %2510 = vst [vmem:[%s5427_s7 + $0xa0] sm:$0xff] %v2254_v19  ;;  %v1230_v6 = vmul.f32 %v3104_v17, %v810_v0  ;;  %v1231_v7 = vmul.f32 %v3106_v18, %v1019_v1  ;;  %v816_v0 = vpop.f32.mrf.mxu2  ;;  %v1025_v1 = vpop.f32.mrf.mxu3 }
 0x104   :  { %2511 = vst [vmem:[%s5427_s7 + $0xa8] sm:$0xff] %v2255_v20  ;;  %v187_v20 = vadd.f32 %v2941_v46, %v119_v3  ;;  %v3453_v3 = vld [vmem:[%s5422_s1] ss:$0 sm:$0xff] }
 0x105   :  { %v2256_v28 = vmax.f32 %v2000_v21, 0.0  ;;  %v2257_v29 = vmax.f32 %v2001_v22, 0.0  ;;  %v1496_v14 = vadd.f32 %v3113_v24, %v1230_v6  ;;  %v1497_v19 = vadd.f32 %v3115_v25, %v1231_v7 }
 0x106   :  { %v1238_v7 = vmul.f32 %v3104_v17, %v816_v0 }
 0x10b   :  { %v1746_v32 = vld [vmem:[%s5426_s6 + $0xc0] sm:$0xff]  ;;  %v1747_v33 = vld [vmem:[%s5426_s6 + $0xc8] sm:$0xff] }
 0x10c   :  { %2512 = vst [vmem:[%s5427_s7 + $0xb0] sm:$0xff] %v2256_v28  ;;  %v2002_v44 = vadd.f32 %v1746_v32, %v1490_v38  ;;  %v2003_v47 = vadd.f32 %v1747_v33, %v1491_v39  ;;  %v395_v28 = vpop.f32.mrf.mxu0  ;;  %v251_v38 = vmax.f32 %v187_v20, 0.0  ;;  %v120_v39 = vmul.f32 %v2936_v45, %v52_v27 }
 0x10d   :  { %2513 = vst [vmem:[%s5427_s7 + $0xb8] sm:$0xff] %v2257_v29  ;;  %v604_v29 = vpop.f32.mrf.mxu1  ;;  %v1232_v32 = vmul.f32 %v3095_v12, %v395_v28 }
 0x10e   :  { %v2258_v51 = vmax.f32 %v2002_v44, 0.0  ;;  %v2259_v52 = vmax.f32 %v2003_v47, 0.0  ;;  %v1233_v33 = vmul.f32 %v3097_v13, %v604_v29  ;;  %863 = vmatmul.f32.gmra.mxu2 %v251_v38  ;;  %1072 = vmatmul.f32.gmra.mxu3 %v251_v38  ;;  %v54_v29 = vld [vmem:[%s5421_s0 + $0xe0] sm:$0xff] }
 0x10f   :  { %v1498_v40 = vadd.f32 %v3100_v15, %v1232_v32  ;;  %445 = vmatmul.f32.gmra.mxu0 %v251_v38  ;;  %654 = vmatmul.f32.gmra.mxu1 %v251_v38  ;;  %v819_v38 = vpop.f32.mrf.mxu2 }
 0x110   :  { %v1499_v41 = vadd.f32 %v3102_v16, %v1233_v33 }
 0x114   :  { %v1748_v42 = vld [vmem:[%s5426_s6 + $0xd0] sm:$0xff]  ;;  %v1749_v43 = vld [vmem:[%s5426_s6 + $0xd8] sm:$0xff]  ;;  %v398_v57 = vpop.f32.mrf.mxu0 }
 0x115   :  { %v2004_v53 = vadd.f32 %v1748_v42, %v1492_v48  ;;  %v2005_v54 = vadd.f32 %v1749_v43, %v1493_v49  ;;  %2514 = vst [vmem:[%s5427_s7 + $0xc0] sm:$0xff] %v2258_v51  ;;  %v1234_v42 = vmul.f32 %v3104_v17, %v813_v36  ;;  %v1235_v43 = vmul.f32 %v3106_v18, %v1022_v37 }
 0x116   :  { %2515 = vst [vmem:[%s5427_s7 + $0xc8] sm:$0xff] %v2259_v52  ;;  %v188_v51 = vadd.f32 %v2941_v46, %v120_v39  ;;  %v1236_v46 = vmul.f32 %v3095_v12, %v398_v57  ;;  %v1028_v39 = vpop.f32.mrf.mxu3 }
 0x117   :  { %v2260_v58 = vmax.f32 %v2004_v53, 0.0  ;;  %v2261_v59 = vmax.f32 %v2005_v54, 0.0  ;;  %v1500_v49 = vadd.f32 %v3113_v24, %v1234_v42  ;;  %v1501_v50 = vadd.f32 %v3115_v25, %v1235_v43 }
 0x118   :  { %v252_v2 = vmax.f32 %v188_v51, 0.0 }
 0x11a   :  { %866 = vmatmul.f32.gmra.mxu2 %v252_v2  ;;  %1075 = vmatmul.f32.gmra.mxu3 %v252_v2 }
 0x11b   :  { %448 = vmatmul.f32.gmra.mxu0 %v252_v2  ;;  %657 = vmatmul.f32.gmra.mxu1 %v252_v2  ;;  %v822_v2 = vpop.f32.mrf.mxu2 }
 0x11d   :  { %v1750_v62 = vld [vmem:[%s5426_s6 + $0xe0] sm:$0xff]  ;;  %v1751_v63 = vld [vmem:[%s5426_s6 + $0xe8] sm:$0xff] }
 0x11e   :  { %2516 = vst [vmem:[%s5427_s7 + $0xd0] sm:$0xff] %v2260_v58  ;;  %v2006_v10 = vadd.f32 %v1750_v62, %v1494_v4  ;;  %v2007_v11 = vadd.f32 %v1751_v63, %v1495_v5  ;;  %v607_v58 = vpop.f32.mrf.mxu1  ;;  %v121_v4 = vmul.f32 %v3453_v3, %v53_v56  ;;  %v1502_v5 = vadd.f32 %v3100_v15, %v1236_v46 }
 0x11f   :  { %2517 = vst [vmem:[%s5427_s7 + $0xd8] sm:$0xff] %v2261_v59  ;;  %v1237_v61 = vmul.f32 %v3097_v13, %v607_v58  ;;  %v55_v58 = vld [vmem:[%s5421_s0 + $0xe8] sm:$0xff] }
 0x120   :  { %v2262_v21 = vmax.f32 %v2006_v10, 0.0  ;;  %v2263_v22 = vmax.f32 %v2007_v11, 0.0 }
 0x121   :  { %v1503_v6 = vadd.f32 %v3102_v16, %v1237_v61 }
 0x126   :  { %v1752_v8 = vld [vmem:[%s5426_s6 + $0xf0] sm:$0xff]  ;;  %v1753_v9 = vld [vmem:[%s5426_s6 + $0xf8] sm:$0xff] }
 0x127   :  { %v2008_v23 = vadd.f32 %v1752_v8, %v1496_v14  ;;  %v2009_v26 = vadd.f32 %v1753_v9, %v1497_v19  ;;  %2518 = vst [vmem:[%s5427_s7 + $0xe0] sm:$0xff] %v2262_v21  ;;  %v1239_v8 = vmul.f32 %v3106_v18, %v1025_v1  ;;  %v1504_v19 = vadd.f32 %v3113_v24, %v1238_v7  ;;  %v3477_v21 = vld [vmem:[%s5423_s2] ss:$0 sm:$0xff] }
 0x128   :  { %2519 = vst [vmem:[%s5427_s7 + $0xe8] sm:$0xff] %v2263_v22  ;;  %v189_v22 = vadd.f32 %v3477_v21, %v121_v4  ;;  %v1031_v4 = vpop.f32.mrf.mxu3 }
 0x129   :  { %v2264_v30 = vmax.f32 %v2008_v23, 0.0  ;;  %v2265_v31 = vmax.f32 %v2009_v26, 0.0  ;;  %v1505_v20 = vadd.f32 %v3115_v25, %v1239_v8 }
 0x12f   :  { %v1754_v34 = vld [vmem:[%s5426_s6 + $0x100] sm:$0xff]  ;;  %v1755_v35 = vld [vmem:[%s5426_s6 + $0x108] sm:$0xff] }
 0x130   :  { %2520 = vst [vmem:[%s5427_s7 + $0xf0] sm:$0xff] %v2264_v30  ;;  %v2010_v47 = vadd.f32 %v1754_v34, %v1498_v40  ;;  %v2011_v48 = vadd.f32 %v1755_v35, %v1499_v41  ;;  %v401_v30 = vpop.f32.mrf.mxu0  ;;  %v253_v40 = vmax.f32 %v189_v22, 0.0  ;;  %v122_v41 = vmul.f32 %v3453_v3, %v54_v29 }
 0x131   :  { %2521 = vst [vmem:[%s5427_s7 + $0xf8] sm:$0xff] %v2265_v31  ;;  %v610_v31 = vpop.f32.mrf.mxu1  ;;  %v1240_v34 = vmul.f32 %v3095_v12, %v401_v30 }
 0x132   :  { %v2266_v52 = vmax.f32 %v2010_v47, 0.0  ;;  %v2267_v53 = vmax.f32 %v2011_v48, 0.0  ;;  %v1241_v35 = vmul.f32 %v3097_v13, %v610_v31  ;;  %869 = vmatmul.f32.gmra.mxu2 %v253_v40  ;;  %1078 = vmatmul.f32.gmra.mxu3 %v253_v40  ;;  %v56_v31 = vld [vmem:[%s5421_s0 + $0xf0] sm:$0xff] }
 0x133   :  { %v1506_v42 = vadd.f32 %v3100_v15, %v1240_v34  ;;  %451 = vmatmul.f32.gmra.mxu0 %v253_v40  ;;  %660 = vmatmul.f32.gmra.mxu1 %v253_v40  ;;  %v825_v40 = vpop.f32.mrf.mxu2 }
 0x134   :  { %v1507_v43 = vadd.f32 %v3102_v16, %v1241_v35 }
 0x138   :  { %v1756_v45 = vld [vmem:[%s5426_s6 + $0x110] sm:$0xff]  ;;  %v1757_v44 = vld [vmem:[%s5426_s6 + $0x118] sm:$0xff] }
 0x139   :  { %v2012_v54 = vadd.f32 %v1756_v45, %v1500_v49  ;;  %v2013_v55 = vadd.f32 %v1757_v44, %v1501_v50  ;;  %2522 = vst [vmem:[%s5427_s7 + $0x100] sm:$0xff] %v2266_v52  ;;  %v1242_v45 = vmul.f32 %v3104_v17, %v819_v38  ;;  %v1243_v44 = vmul.f32 %v3106_v18, %v1028_v39 }
 0x13a   :  { %2523 = vst [vmem:[%s5427_s7 + $0x108] sm:$0xff] %v2267_v53  ;;  %v190_v53 = vadd.f32 %v3477_v21, %v122_v41  ;;  %v1034_v41 = vpop.f32.mrf.mxu3 }
 0x13b   :  { %v2268_v59 = vmax.f32 %v2012_v54, 0.0  ;;  %v2269_v60 = vmax.f32 %v2013_v55, 0.0  ;;  %v1508_v51 = vadd.f32 %v3113_v24, %v1242_v45  ;;  %v1509_v52 = vadd.f32 %v3115_v25, %v1243_v44 }
 0x141   :  { %v1758_v62 = vld [vmem:[%s5426_s6 + $0x120] sm:$0xff]  ;;  %v1759_v63 = vld [vmem:[%s5426_s6 + $0x128] sm:$0xff] }
 0x142   :  { %2524 = vst [vmem:[%s5427_s7 + $0x110] sm:$0xff] %v2268_v59  ;;  %v2014_v11 = vadd.f32 %v1758_v62, %v1502_v5  ;;  %v2015_v14 = vadd.f32 %v1759_v63, %v1503_v6  ;;  %v404_v59 = vpop.f32.mrf.mxu0  ;;  %v254_v5 = vmax.f32 %v190_v53, 0.0  ;;  %v123_v6 = vmul.f32 %v3453_v3, %v55_v58 }
 0x143   :  { %2525 = vst [vmem:[%s5427_s7 + $0x118] sm:$0xff] %v2269_v60  ;;  %v613_v60 = vpop.f32.mrf.mxu1  ;;  %v1244_v62 = vmul.f32 %v3095_v12, %v404_v59 }
 0x144   :  { %v2270_v23 = vmax.f32 %v2014_v11, 0.0  ;;  %v2271_v26 = vmax.f32 %v2015_v14, 0.0  ;;  %v1245_v63 = vmul.f32 %v3097_v13, %v613_v60  ;;  %872 = vmatmul.f32.gmra.mxu2 %v254_v5  ;;  %1081 = vmatmul.f32.gmra.mxu3 %v254_v5  ;;  %v57_v60 = vld [vmem:[%s5421_s0 + $0xf8] sm:$0xff] }
 0x145   :  { %v1510_v7 = vadd.f32 %v3100_v15, %v1244_v62  ;;  %454 = vmatmul.f32.gmra.mxu0 %v254_v5  ;;  %663 = vmatmul.f32.gmra.mxu1 %v254_v5  ;;  %v828_v5 = vpop.f32.mrf.mxu2 }
 0x146   :  { %v1511_v8 = vadd.f32 %v3102_v16, %v1245_v63 }
 0x14a   :  { %v1760_v9 = vld [vmem:[%s5426_s6 + $0x130] sm:$0xff]  ;;  %v1761_v10 = vld [vmem:[%s5426_s6 + $0x138] sm:$0xff] }
 0x14b   :  { %v2016_v27 = vadd.f32 %v1760_v9, %v1504_v19  ;;  %v2017_v28 = vadd.f32 %v1761_v10, %v1505_v20  ;;  %2526 = vst [vmem:[%s5427_s7 + $0x120] sm:$0xff] %v2270_v23  ;;  %v1246_v9 = vmul.f32 %v3104_v17, %v822_v2  ;;  %v1247_v10 = vmul.f32 %v3106_v18, %v1031_v4 }
 0x14c   :  { %2527 = vst [vmem:[%s5427_s7 + $0x128] sm:$0xff] %v2271_v26  ;;  %v191_v26 = vadd.f32 %v3477_v21, %v123_v6  ;;  %v1037_v6 = vpop.f32.mrf.mxu3 }
 0x14d   :  { %v2272_v32 = vmax.f32 %v2016_v27, 0.0  ;;  %v2273_v33 = vmax.f32 %v2017_v28, 0.0  ;;  %v1512_v22 = vadd.f32 %v3113_v24, %v1246_v9  ;;  %v1513_v23 = vadd.f32 %v3115_v25, %v1247_v10 }
 0x153   :  { %v1762_v36 = vld [vmem:[%s5426_s6 + $0x140] sm:$0xff]  ;;  %v1763_v37 = vld [vmem:[%s5426_s6 + $0x148] sm:$0xff] }
 0x154   :  { %2528 = vst [vmem:[%s5427_s7 + $0x130] sm:$0xff] %v2272_v32  ;;  %v2018_v49 = vadd.f32 %v1762_v36, %v1506_v42  ;;  %v2019_v50 = vadd.f32 %v1763_v37, %v1507_v43  ;;  %v407_v32 = vpop.f32.mrf.mxu0  ;;  %v255_v42 = vmax.f32 %v191_v26, 0.0  ;;  %v124_v43 = vmul.f32 %v3453_v3, %v56_v31 }
 0x155   :  { %2529 = vst [vmem:[%s5427_s7 + $0x138] sm:$0xff] %v2273_v33  ;;  %v616_v33 = vpop.f32.mrf.mxu1  ;;  %v1248_v36 = vmul.f32 %v3095_v12, %v407_v32 }
 0x156   :  { %v2274_v54 = vmax.f32 %v2018_v49, 0.0  ;;  %v2275_v55 = vmax.f32 %v2019_v50, 0.0  ;;  %v1249_v37 = vmul.f32 %v3097_v13, %v616_v33  ;;  %875 = vmatmul.f32.gmra.mxu2 %v255_v42  ;;  %1084 = vmatmul.f32.gmra.mxu3 %v255_v42  ;;  %v58_v33 = vld [vmem:[%s5421_s0 + $0x100] sm:$0xff] }
 0x157   :  { %v1514_v45 = vadd.f32 %v3100_v15, %v1248_v36  ;;  %457 = vmatmul.f32.gmra.mxu0 %v255_v42  ;;  %666 = vmatmul.f32.gmra.mxu1 %v255_v42  ;;  %v831_v42 = vpop.f32.mrf.mxu2 }
 0x158   :  { %v1515_v44 = vadd.f32 %v3102_v16, %v1249_v37 }
 0x15c   :  { %v1764_v47 = vld [vmem:[%s5426_s6 + $0x150] sm:$0xff]  ;;  %v1765_v48 = vld [vmem:[%s5426_s6 + $0x158] sm:$0xff] }
 0x15d   :  { %v2020_v56 = vadd.f32 %v1764_v47, %v1508_v51  ;;  %v2021_v57 = vadd.f32 %v1765_v48, %v1509_v52  ;;  %2530 = vst [vmem:[%s5427_s7 + $0x140] sm:$0xff] %v2274_v54  ;;  %v1250_v47 = vmul.f32 %v3104_v17, %v825_v40  ;;  %v1251_v48 = vmul.f32 %v3106_v18, %v1034_v41 }
 0x15e   :  { %2531 = vst [vmem:[%s5427_s7 + $0x148] sm:$0xff] %v2275_v55  ;;  %v192_v55 = vadd.f32 %v3477_v21, %v124_v43  ;;  %v1040_v43 = vpop.f32.mrf.mxu3 }
 0x15f   :  { %v2276_v46 = vmax.f32 %v2020_v56, 0.0  ;;  %v2277_v61 = vmax.f32 %v2021_v57, 0.0  ;;  %v1516_v53 = vadd.f32 %v3113_v24, %v1250_v47  ;;  %v1517_v54 = vadd.f32 %v3115_v25, %v1251_v48 }
 0x165   :  { %v1766_v0 = vld [vmem:[%s5426_s6 + $0x160] sm:$0xff]  ;;  %v1767_v1 = vld [vmem:[%s5426_s6 + $0x168] sm:$0xff] }
 0x166   :  { %2532 = vst [vmem:[%s5427_s7 + $0x150] sm:$0xff] %v2276_v46  ;;  %v2022_v19 = vadd.f32 %v1766_v0, %v1510_v7  ;;  %v2023_v20 = vadd.f32 %v1767_v1, %v1511_v8  ;;  %v410_v46 = vpop.f32.mrf.mxu0  ;;  %v256_v7 = vmax.f32 %v192_v55, 0.0  ;;  %v125_v8 = vmul.f32 %v3453_v3, %v57_v60 }
 0x167   :  { %2533 = vst [vmem:[%s5427_s7 + $0x158] sm:$0xff] %v2277_v61  ;;  %v619_v61 = vpop.f32.mrf.mxu1  ;;  %v1252_v0 = vmul.f32 %v3095_v12, %v410_v46 }
 0x168   :  { %v2278_v27 = vmax.f32 %v2022_v19, 0.0  ;;  %v2279_v28 = vmax.f32 %v2023_v20, 0.0  ;;  %v1253_v1 = vmul.f32 %v3097_v13, %v619_v61  ;;  %878 = vmatmul.f32.gmra.mxu2 %v256_v7  ;;  %1087 = vmatmul.f32.gmra.mxu3 %v256_v7  ;;  %v59_v61 = vld [vmem:[%s5421_s0 + $0x108] sm:$0xff] }
 0x169   :  { %v1518_v9 = vadd.f32 %v3100_v15, %v1252_v0  ;;  %460 = vmatmul.f32.gmra.mxu0 %v256_v7  ;;  %669 = vmatmul.f32.gmra.mxu1 %v256_v7  ;;  %v834_v7 = vpop.f32.mrf.mxu2 }
 0x16a   :  { %v1519_v10 = vadd.f32 %v3102_v16, %v1253_v1 }
 0x16e   :  { %v1768_v11 = vld [vmem:[%s5426_s6 + $0x170] sm:$0xff]  ;;  %v1769_v14 = vld [vmem:[%s5426_s6 + $0x178] sm:$0xff] }
 0x16f   :  { %v2024_v29 = vadd.f32 %v1768_v11, %v1512_v22  ;;  %v2025_v30 = vadd.f32 %v1769_v14, %v1513_v23  ;;  %2534 = vst [vmem:[%s5427_s7 + $0x160] sm:$0xff] %v2278_v27  ;;  %v1254_v11 = vmul.f32 %v3104_v17, %v828_v5  ;;  %v1255_v14 = vmul.f32 %v3106_v18, %v1037_v6 }
 0x170   :  { %2535 = vst [vmem:[%s5427_s7 + $0x168] sm:$0xff] %v2279_v28  ;;  %v193_v28 = vadd.f32 %v3477_v21, %v125_v8  ;;  %v1043_v8 = vpop.f32.mrf.mxu3 }
 0x171   :  { %v2280_v34 = vmax.f32 %v2024_v29, 0.0  ;;  %v2281_v35 = vmax.f32 %v2025_v30, 0.0  ;;  %v1520_v26 = vadd.f32 %v3113_v24, %v1254_v11  ;;  %v1521_v27 = vadd.f32 %v3115_v25, %v1255_v14 }
 0x177   :  { %v1770_v38 = vld [vmem:[%s5426_s6 + $0x180] sm:$0xff]  ;;  %v1771_v39 = vld [vmem:[%s5426_s6 + $0x188] sm:$0xff] }
 0x178   :  { %2536 = vst [vmem:[%s5427_s7 + $0x170] sm:$0xff] %v2280_v34  ;;  %v2026_v51 = vadd.f32 %v1770_v38, %v1514_v45  ;;  %v2027_v52 = vadd.f32 %v1771_v39, %v1515_v44  ;;  %v413_v34 = vpop.f32.mrf.mxu0  ;;  %v257_v45 = vmax.f32 %v193_v28, 0.0  ;;  %v126_v44 = vmul.f32 %v3453_v3, %v58_v33 }
 0x179   :  { %2537 = vst [vmem:[%s5427_s7 + $0x178] sm:$0xff] %v2281_v35  ;;  %v622_v35 = vpop.f32.mrf.mxu1  ;;  %v1256_v38 = vmul.f32 %v3095_v12, %v413_v34 }
 0x17a   :  { %v2282_v56 = vmax.f32 %v2026_v51, 0.0  ;;  %v2283_v57 = vmax.f32 %v2027_v52, 0.0  ;;  %v1257_v39 = vmul.f32 %v3097_v13, %v622_v35  ;;  %881 = vmatmul.f32.gmra.mxu2 %v257_v45  ;;  %1090 = vmatmul.f32.gmra.mxu3 %v257_v45 }
 0x17b   :  { %v1522_v47 = vadd.f32 %v3100_v15, %v1256_v38  ;;  %463 = vmatmul.f32.gmra.mxu0 %v257_v45  ;;  %672 = vmatmul.f32.gmra.mxu1 %v257_v45  ;;  %v1046_v45 = vpop.f32.mrf.mxu3 }
 0x17c   :  { %v1523_v48 = vadd.f32 %v3102_v16, %v1257_v39 }
 0x180   :  { %v1772_v49 = vld [vmem:[%s5426_s6 + $0x190] sm:$0xff]  ;;  %v1773_v50 = vld [vmem:[%s5426_s6 + $0x198] sm:$0xff] }
 0x181   :  { %v2028_v58 = vadd.f32 %v1772_v49, %v1516_v53  ;;  %v2029_v59 = vadd.f32 %v1773_v50, %v1517_v54  ;;  %2538 = vst [vmem:[%s5427_s7 + $0x180] sm:$0xff] %v2282_v56  ;;  %v1258_v49 = vmul.f32 %v3104_v17, %v831_v42  ;;  %v1259_v50 = vmul.f32 %v3106_v18, %v1040_v43  ;;  %v837_v43 = vpop.f32.mrf.mxu2 }
 0x182   :  { %2539 = vst [vmem:[%s5427_s7 + $0x188] sm:$0xff] %v2283_v57  ;;  %v194_v57 = vadd.f32 %v3477_v21, %v126_v44 }
 0x183   :  { %v2284_v62 = vmax.f32 %v2028_v58, 0.0  ;;  %v2285_v63 = vmax.f32 %v2029_v59, 0.0  ;;  %v1524_v55 = vadd.f32 %v3113_v24, %v1258_v49  ;;  %v1525_v56 = vadd.f32 %v3115_v25, %v1259_v50 }
 0x184   :  { %v1266_v49 = vmul.f32 %v3104_v17, %v837_v43  ;;  %v1267_v50 = vmul.f32 %v3106_v18, %v1046_v45 }
 0x189   :  { %v1774_v2 = vld [vmem:[%s5426_s6 + $0x1a0] sm:$0xff]  ;;  %v1775_v4 = vld [vmem:[%s5426_s6 + $0x1a8] sm:$0xff] }
 0x18a   :  { %2540 = vst [vmem:[%s5427_s7 + $0x190] sm:$0xff] %v2284_v62  ;;  %v2030_v22 = vadd.f32 %v1774_v2, %v1518_v9  ;;  %v2031_v23 = vadd.f32 %v1775_v4, %v1519_v10  ;;  %v416_v62 = vpop.f32.mrf.mxu0  ;;  %v258_v9 = vmax.f32 %v194_v57, 0.0  ;;  %v127_v10 = vmul.f32 %v3453_v3, %v59_v61 }
 0x18b   :  { %2541 = vst [vmem:[%s5427_s7 + $0x198] sm:$0xff] %v2285_v63  ;;  %v625_v63 = vpop.f32.mrf.mxu1  ;;  %v1260_v2 = vmul.f32 %v3095_v12, %v416_v62  ;;  %v1533_v57 = vadd.f32 %v3115_v25, %v1267_v50 }
 0x18c   :  { %v2286_v29 = vmax.f32 %v2030_v22, 0.0  ;;  %v2287_v30 = vmax.f32 %v2031_v23, 0.0  ;;  %v1261_v4 = vmul.f32 %v3097_v13, %v625_v63  ;;  %884 = vmatmul.f32.gmra.mxu2 %v258_v9  ;;  %1093 = vmatmul.f32.gmra.mxu3 %v258_v9  ;;  %v61_v63 = vld [vmem:[%s5421_s0 + $0x118] sm:$0xff] }
 0x18d   :  { %v1526_v11 = vadd.f32 %v3100_v15, %v1260_v2  ;;  %466 = vmatmul.f32.gmra.mxu0 %v258_v9  ;;  %675 = vmatmul.f32.gmra.mxu1 %v258_v9 }
 0x18e   :  { %v1527_v14 = vadd.f32 %v3102_v16, %v1261_v4 }
 0x192   :  { %v1776_v19 = vld [vmem:[%s5426_s6 + $0x1b0] sm:$0xff]  ;;  %v1777_v20 = vld [vmem:[%s5426_s6 + $0x1b8] sm:$0xff]  ;;  %v419_v35 = vpop.f32.mrf.mxu0 }
 0x193   :  { %v2032_v31 = vadd.f32 %v1776_v19, %v1520_v26  ;;  %v2033_v32 = vadd.f32 %v1777_v20, %v1521_v27  ;;  %2542 = vst [vmem:[%s5427_s7 + $0x1a0] sm:$0xff] %v2286_v29  ;;  %v1262_v19 = vmul.f32 %v3104_v17, %v834_v7  ;;  %v1263_v20 = vmul.f32 %v3106_v18, %v1043_v8  ;;  %v840_v7 = vpop.f32.mrf.mxu2  ;;  %v1049_v8 = vpop.f32.mrf.mxu3 }
 0x194   :  { %2543 = vst [vmem:[%s5427_s7 + $0x1a8] sm:$0xff] %v2287_v30  ;;  %v195_v30 = vadd.f32 %v3477_v21, %v127_v10  ;;  %v1264_v39 = vmul.f32 %v3095_v12, %v419_v35 }
 0x195   :  { %v2288_v36 = vmax.f32 %v2032_v31, 0.0  ;;  %v2289_v37 = vmax.f32 %v2033_v32, 0.0  ;;  %v1528_v28 = vadd.f32 %v3113_v24, %v1262_v19  ;;  %v1529_v29 = vadd.f32 %v3115_v25, %v1263_v20 }
 0x196   :  { %v259_v44 = vmax.f32 %v195_v30, 0.0  ;;  %v129_v20 = vmul.f32 %v3453_v3, %v61_v63 }
 0x198   :  { %887 = vmatmul.f32.gmra.mxu2 %v259_v44  ;;  %1096 = vmatmul.f32.gmra.mxu3 %v259_v44 }
 0x199   :  { %469 = vmatmul.f32.gmra.mxu0 %v259_v44  ;;  %678 = vmatmul.f32.gmra.mxu1 %v259_v44 }
 0x19a   :  { %v422_v2 = vpop.f32.mrf.mxu0 }
 0x19b   :  { %v1778_v40 = vld [vmem:[%s5426_s6 + $0x1c0] sm:$0xff]  ;;  %v1779_v41 = vld [vmem:[%s5426_s6 + $0x1c8] sm:$0xff]  ;;  %v843_v45 = vpop.f32.mrf.mxu2  ;;  %v1052_v44 = vpop.f32.mrf.mxu3 }
 0x19c   :  { %2544 = vst [vmem:[%s5427_s7 + $0x1b0] sm:$0xff] %v2288_v36  ;;  %v2034_v53 = vadd.f32 %v1778_v40, %v1522_v47  ;;  %v2035_v54 = vadd.f32 %v1779_v41, %v1523_v48  ;;  %v60_v36 = vld [vmem:[%s5421_s0 + $0x110] sm:$0xff]  ;;  %v628_v40 = vpop.f32.mrf.mxu1  ;;  %v1530_v47 = vadd.f32 %v3100_v15, %v1264_v39  ;;  %v1275_v50 = vmul.f32 %v3106_v18, %v1052_v44 }
 0x19d   :  { %2545 = vst [vmem:[%s5427_s7 + $0x1b8] sm:$0xff] %v2289_v37  ;;  %v1265_v42 = vmul.f32 %v3097_v13, %v628_v40 }
 0x19e   :  { %v2290_v58 = vmax.f32 %v2034_v53, 0.0  ;;  %v2291_v59 = vmax.f32 %v2035_v54, 0.0 }
 0x1a2   :  { %v425_v40 = vpop.f32.mrf.mxu0 }
 0x1a4   :  { %v1780_v51 = vld [vmem:[%s5426_s6 + $0x1d0] sm:$0xff]  ;;  %v1781_v52 = vld [vmem:[%s5426_s6 + $0x1d8] sm:$0xff]  ;;  %v631_v4 = vpop.f32.mrf.mxu1 }
 0x1a5   :  { %v2036_v60 = vadd.f32 %v1780_v51, %v1524_v55  ;;  %v2037_v46 = vadd.f32 %v1781_v52, %v1525_v56  ;;  %2546 = vst [vmem:[%s5427_s7 + $0x1c0] sm:$0xff] %v2290_v58  ;;  %v128_v51 = vmul.f32 %v3453_v3, %v60_v36  ;;  %v1531_v52 = vadd.f32 %v3102_v16, %v1265_v42 }
 0x1a6   :  { %2547 = vst [vmem:[%s5427_s7 + $0x1c8] sm:$0xff] %v2291_v59  ;;  %v1532_v56 = vadd.f32 %v3113_v24, %v1266_v49  ;;  %v1272_v42 = vmul.f32 %v3095_v12, %v425_v40  ;;  %v1274_v49 = vmul.f32 %v3104_v17, %v843_v45 }
 0x1a7   :  { %v2292_v0 = vmax.f32 %v2036_v60, 0.0  ;;  %v2293_v1 = vmax.f32 %v2037_v46, 0.0  ;;  %v196_v61 = vadd.f32 %v3477_v21, %v128_v51 }
 0x1a9   :  { %v260_v19 = vmax.f32 %v196_v61, 0.0 }
 0x1ab   :  { %890 = vmatmul.f32.gmra.mxu2 %v260_v19  ;;  %1099 = vmatmul.f32.gmra.mxu3 %v260_v19 }
 0x1ac   :  { %472 = vmatmul.f32.gmra.mxu0 %v260_v19  ;;  %681 = vmatmul.f32.gmra.mxu1 %v260_v19 }
 0x1ad   :  { %v1782_v5 = vld [vmem:[%s5426_s6 + $0x1e0] sm:$0xff]  ;;  %v1783_v6 = vld [vmem:[%s5426_s6 + $0x1e8] sm:$0xff] }
 0x1ae   :  { %2548 = vst [vmem:[%s5427_s7 + $0x1d0] sm:$0xff] %v2292_v0  ;;  %v2038_v26 = vadd.f32 %v1782_v5, %v1526_v11  ;;  %v2039_v27 = vadd.f32 %v1783_v6, %v1527_v14  ;;  %v1268_v5 = vmul.f32 %v3095_v12, %v422_v2  ;;  %v1269_v6 = vmul.f32 %v3097_v13, %v631_v4 }
 0x1af   :  { %2549 = vst [vmem:[%s5427_s7 + $0x1d8] sm:$0xff] %v2293_v1  ;;  %v1270_v11 = vmul.f32 %v3104_v17, %v840_v7  ;;  %v1271_v14 = vmul.f32 %v3106_v18, %v1049_v8 }
 0x1b0   :  { %v2294_v31 = vmax.f32 %v2038_v26, 0.0  ;;  %v2295_v32 = vmax.f32 %v2039_v27, 0.0 }
 0x1b6   :  { %v1784_v22 = vld [vmem:[%s5426_s6 + $0x1f0] sm:$0xff]  ;;  %v1785_v23 = vld [vmem:[%s5426_s6 + $0x1f8] sm:$0xff] }
 0x1b7   :  { %v2040_v33 = vadd.f32 %v1784_v22, %v1528_v28  ;;  %v2041_v34 = vadd.f32 %v1785_v23, %v1529_v29  ;;  %2550 = vst [vmem:[%s5427_s7 + $0x1e0] sm:$0xff] %v2294_v31  ;;  %v1534_v22 = vadd.f32 %v3100_v15, %v1268_v5  ;;  %v1535_v23 = vadd.f32 %v3102_v16, %v1269_v6  ;;  %v428_v5 = vpop.f32.mrf.mxu0 }
 0x1b8   :  { %2551 = vst [vmem:[%s5427_s7 + $0x1e8] sm:$0xff] %v2295_v32  ;;  %v1536_v28 = vadd.f32 %v3113_v24, %v1270_v11  ;;  %v1537_v29 = vadd.f32 %v3115_v25, %v1271_v14  ;;  %v1276_v7 = vmul.f32 %v3095_v12, %v428_v5 }
 0x1b9   :  { %v2296_v37 = vmax.f32 %v2040_v33, 0.0  ;;  %v2297_v38 = vmax.f32 %v2041_v34, 0.0  ;;  %v197_v34 = vadd.f32 %v3477_v21, %v129_v20 }
 0x1bb   :  { %v261_v51 = vmax.f32 %v197_v34, 0.0 }
 0x1bd   :  { %893 = vmatmul.f32.gmra.mxu2 %v261_v51  ;;  %1102 = vmatmul.f32.gmra.mxu3 %v261_v51 }
 0x1be   :  { %475 = vmatmul.f32.gmra.mxu0 %v261_v51  ;;  %684 = vmatmul.f32.gmra.mxu1 %v261_v51 }
 0x1bf   :  { %v1786_v41 = vld [vmem:[%s5426_s6 + $0x200] sm:$0xff] }
 0x1c0   :  { %2552 = vst [vmem:[%s5427_s7 + $0x1f0] sm:$0xff] %v2296_v37  ;;  %v2042_v55 = vadd.f32 %v1786_v41, %v1530_v47  ;;  %v62_v37 = vld [vmem:[%s5421_s0 + $0x120] sm:$0xff]  ;;  %v634_v41 = vpop.f32.mrf.mxu1 }
 0x1c1   :  { %v1273_v43 = vmul.f32 %v3097_v13, %v634_v41 }
 0x1c2   :  { %v2298_v59 = vmax.f32 %v2042_v55, 0.0 }
 0x1c7   :  { %v1787_v48 = vld [vmem:[%s5426_s6 + $0x208] sm:$0xff] }
 0x1c8   :  { %2553 = vst [vmem:[%s5427_s7 + $0x1f8] sm:$0xff] %v2297_v38  ;;  %v2043_v58 = vadd.f32 %v1787_v48, %v1531_v52  ;;  %v130_v52 = vmul.f32 %v3453_v3, %v62_v37  ;;  %v637_v6 = vpop.f32.mrf.mxu1 }
 0x1c9   :  { %v1277_v8 = vmul.f32 %v3097_v13, %v637_v6 }
 0x1ca   :  { %v2299_v62 = vmax.f32 %v2043_v58, 0.0  ;;  %v1541_v58 = vadd.f32 %v3115_v25, %v1275_v50 }
 0x1cf   :  { %v1788_v53 = vld [vmem:[%s5426_s6 + $0x210] sm:$0xff]  ;;  %v1789_v54 = vld [vmem:[%s5426_s6 + $0x218] sm:$0xff] }
 0x1d0   :  { %v2044_v60 = vadd.f32 %v1788_v53, %v1532_v56  ;;  %v2045_v46 = vadd.f32 %v1789_v54, %v1533_v57  ;;  %2554 = vst [vmem:[%s5427_s7 + $0x200] sm:$0xff] %v2298_v59  ;;  %v1538_v53 = vadd.f32 %v3100_v15, %v1272_v42  ;;  %v1539_v54 = vadd.f32 %v3102_v16, %v1273_v43  ;;  %v431_v42 = vpop.f32.mrf.mxu0  ;;  %v640_v43 = vpop.f32.mrf.mxu1 }
 0x1d1   :  { %2555 = vst [vmem:[%s5427_s7 + $0x208] sm:$0xff] %v2299_v62  ;;  %v1540_v57 = vadd.f32 %v3113_v24, %v1274_v49  ;;  %v198_v62 = vadd.f32 %v3477_v21, %v130_v52  ;;  %v1280_v45 = vmul.f32 %v3095_v12, %v431_v42  ;;  %v1281_v44 = vmul.f32 %v3097_v13, %v640_v43 }
 0x1d2   :  { %v2300_v0 = vmax.f32 %v2044_v60, 0.0  ;;  %v2301_v1 = vmax.f32 %v2045_v46, 0.0 }
 0x1d4   :  { %2556 = vst [vmem:[%s5427_s7 + $0x210] sm:$0xff] %v2300_v0 }
 0x1db   :  { %v1790_v9 = vld [vmem:[%s5426_s6 + $0x220] sm:$0xff]  ;;  %v1791_v10 = vld [vmem:[%s5426_s6 + $0x228] sm:$0xff] }
 0x1dc   :  { %2557 = vst [vmem:[%s5427_s7 + $0x218] sm:$0xff] %v2301_v1  ;;  %v2046_v30 = vadd.f32 %v1790_v9, %v1534_v22  ;;  %v2047_v31 = vadd.f32 %v1791_v10, %v1535_v23  ;;  %v63_v1 = vld [vmem:[%s5421_s0 + $0x128] sm:$0xff]  ;;  %v846_v9 = vpop.f32.mrf.mxu2  ;;  %v1055_v10 = vpop.f32.mrf.mxu3  ;;  %v262_v22 = vmax.f32 %v198_v62, 0.0 }
 0x1dd   :  { %v1278_v19 = vmul.f32 %v3104_v17, %v846_v9  ;;  %v1279_v20 = vmul.f32 %v3106_v18, %v1055_v10  ;;  %v131_v23 = vmul.f32 %v3453_v3, %v63_v1 }
 0x1de   :  { %v2302_v35 = vmax.f32 %v2046_v30, 0.0  ;;  %v2303_v36 = vmax.f32 %v2047_v31, 0.0  ;;  %896 = vmatmul.f32.gmra.mxu2 %v262_v22  ;;  %1105 = vmatmul.f32.gmra.mxu3 %v262_v22 }
 0x1df   :  { %v1544_v30 = vadd.f32 %v3113_v24, %v1278_v19  ;;  %v1545_v31 = vadd.f32 %v3115_v25, %v1279_v20  ;;  %478 = vmatmul.f32.gmra.mxu0 %v262_v22  ;;  %687 = vmatmul.f32.gmra.mxu1 %v262_v22 }
 0x1e3   :  { %v1792_v26 = vld [vmem:[%s5426_s6 + $0x230] sm:$0xff]  ;;  %v1793_v27 = vld [vmem:[%s5426_s6 + $0x238] sm:$0xff] }
 0x1e4   :  { %v2048_v32 = vadd.f32 %v1792_v26, %v1536_v28  ;;  %v2049_v33 = vadd.f32 %v1793_v27, %v1537_v29  ;;  %2558 = vst [vmem:[%s5427_s7 + $0x220] sm:$0xff] %v2302_v35  ;;  %v1542_v26 = vadd.f32 %v3100_v15, %v1276_v7  ;;  %v1543_v27 = vadd.f32 %v3102_v16, %v1277_v8  ;;  %v434_v7 = vpop.f32.mrf.mxu0  ;;  %v643_v8 = vpop.f32.mrf.mxu1 }
 0x1e5   :  { %2559 = vst [vmem:[%s5427_s7 + $0x228] sm:$0xff] %v2303_v36  ;;  %v199_v36 = vadd.f32 %v3477_v21, %v131_v23  ;;  %v1284_v9 = vmul.f32 %v3095_v12, %v434_v7  ;;  %v1285_v10 = vmul.f32 %v3097_v13, %v643_v8 }
 0x1e6   :  { %v2304_v38 = vmax.f32 %v2048_v32, 0.0  ;;  %v2305_v39 = vmax.f32 %v2049_v33, 0.0 }
 0x1ec   :  { %v1794_v47 = vld [vmem:[%s5426_s6 + $0x240] sm:$0xff]  ;;  %v1795_v48 = vld [vmem:[%s5426_s6 + $0x248] sm:$0xff] }
 0x1ed   :  { %2560 = vst [vmem:[%s5427_s7 + $0x230] sm:$0xff] %v2304_v38  ;;  %v2050_v59 = vadd.f32 %v1794_v47, %v1538_v53  ;;  %v2051_v60 = vadd.f32 %v1795_v48, %v1539_v54  ;;  %v849_v47 = vpop.f32.mrf.mxu2  ;;  %v1058_v48 = vpop.f32.mrf.mxu3  ;;  %v263_v53 = vmax.f32 %v199_v36, 0.0 }
 0x1ee   :  { %v1282_v51 = vmul.f32 %v3104_v17, %v849_v47  ;;  %v1283_v52 = vmul.f32 %v3106_v18, %v1058_v48 }
 0x1ef   :  { %v2306_v63 = vmax.f32 %v2050_v59, 0.0  ;;  %v2307_v0 = vmax.f32 %v2051_v60, 0.0  ;;  %899 = vmatmul.f32.gmra.mxu2 %v263_v53  ;;  %1108 = vmatmul.f32.gmra.mxu3 %v263_v53 }
 0x1f0   :  { %v1548_v59 = vadd.f32 %v3113_v24, %v1282_v51  ;;  %v1549_v60 = vadd.f32 %v3115_v25, %v1283_v52  ;;  %481 = vmatmul.f32.gmra.mxu0 %v263_v53  ;;  %690 = vmatmul.f32.gmra.mxu1 %v263_v53 }
 0x1f4   :  { %v1796_v55 = vld [vmem:[%s5426_s6 + $0x250] sm:$0xff]  ;;  %v1797_v56 = vld [vmem:[%s5426_s6 + $0x258] sm:$0xff] }
 0x1f5   :  { %2561 = vst [vmem:[%s5427_s7 + $0x238] sm:$0xff] %v2305_v39  ;;  %v2052_v46 = vadd.f32 %v1796_v55, %v1540_v57  ;;  %v2053_v61 = vadd.f32 %v1797_v56, %v1541_v58  ;;  %v64_v39 = vld [vmem:[%s5421_s0 + $0x130] sm:$0xff]  ;;  %v1546_v55 = vadd.f32 %v3100_v15, %v1280_v45  ;;  %v1547_v56 = vadd.f32 %v3102_v16, %v1281_v44  ;;  %v437_v45 = vpop.f32.mrf.mxu0  ;;  %v646_v44 = vpop.f32.mrf.mxu1 }
 0x1f6   :  { %2562 = vst [vmem:[%s5427_s7 + $0x240] sm:$0xff] %v2306_v63  ;;  %v132_v54 = vmul.f32 %v3453_v3, %v64_v39  ;;  %v1288_v47 = vmul.f32 %v3095_v12, %v437_v45  ;;  %v1289_v48 = vmul.f32 %v3097_v13, %v646_v44 }
 0x1f7   :  { %v2308_v2 = vmax.f32 %v2052_v46, 0.0  ;;  %v2309_v4 = vmax.f32 %v2053_v61, 0.0  ;;  %2563 = vst [vmem:[%s5427_s7 + $0x248] sm:$0xff] %v2307_v0 }
 0x1f8   :  { %v200_v0 = vadd.f32 %v3477_v21, %v132_v54 }
 0x1fe   :  { %v1798_v11 = vld [vmem:[%s5426_s6 + $0x260] sm:$0xff]  ;;  %v1799_v14 = vld [vmem:[%s5426_s6 + $0x268] sm:$0xff] }
 0x1ff   :  { %2564 = vst [vmem:[%s5427_s7 + $0x250] sm:$0xff] %v2308_v2  ;;  %v2054_v32 = vadd.f32 %v1798_v11, %v1542_v26  ;;  %v2055_v33 = vadd.f32 %v1799_v14, %v1543_v27  ;;  %v852_v11 = vpop.f32.mrf.mxu2  ;;  %v1061_v14 = vpop.f32.mrf.mxu3  ;;  %v264_v26 = vmax.f32 %v200_v0, 0.0 }
 0x200   :  { %v1286_v22 = vmul.f32 %v3104_v17, %v852_v11  ;;  %v1287_v23 = vmul.f32 %v3106_v18, %v1061_v14 }
 0x201   :  { %v2310_v37 = vmax.f32 %v2054_v32, 0.0  ;;  %v2311_v38 = vmax.f32 %v2055_v33, 0.0  ;;  %902 = vmatmul.f32.gmra.mxu2 %v264_v26  ;;  %1111 = vmatmul.f32.gmra.mxu3 %v264_v26 }
 0x202   :  { %v1552_v32 = vadd.f32 %v3113_v24, %v1286_v22  ;;  %v1553_v33 = vadd.f32 %v3115_v25, %v1287_v23  ;;  %484 = vmatmul.f32.gmra.mxu0 %v264_v26  ;;  %693 = vmatmul.f32.gmra.mxu1 %v264_v26 }
 0x206   :  { %v1800_v28 = vld [vmem:[%s5426_s6 + $0x270] sm:$0xff]  ;;  %v1801_v29 = vld [vmem:[%s5426_s6 + $0x278] sm:$0xff] }
 0x207   :  { %2565 = vst [vmem:[%s5427_s7 + $0x258] sm:$0xff] %v2309_v4  ;;  %v2056_v34 = vadd.f32 %v1800_v28, %v1544_v30  ;;  %v2057_v35 = vadd.f32 %v1801_v29, %v1545_v31  ;;  %v65_v4 = vld [vmem:[%s5421_s0 + $0x138] sm:$0xff]  ;;  %v1550_v28 = vadd.f32 %v3100_v15, %v1284_v9  ;;  %v1551_v29 = vadd.f32 %v3102_v16, %v1285_v10  ;;  %v440_v9 = vpop.f32.mrf.mxu0  ;;  %v649_v10 = vpop.f32.mrf.mxu1 }
 0x208   :  { %2566 = vst [vmem:[%s5427_s7 + $0x260] sm:$0xff] %v2310_v37  ;;  %v133_v27 = vmul.f32 %v3453_v3, %v65_v4  ;;  %v1292_v11 = vmul.f32 %v3095_v12, %v440_v9  ;;  %v1293_v14 = vmul.f32 %v3097_v13, %v649_v10 }
 0x209   :  { %v2312_v40 = vmax.f32 %v2056_v34, 0.0  ;;  %v2313_v41 = vmax.f32 %v2057_v35, 0.0  ;;  %2567 = vst [vmem:[%s5427_s7 + $0x268] sm:$0xff] %v2311_v38 }
 0x20a   :  { %v201_v38 = vadd.f32 %v3477_v21, %v133_v27 }
 0x20f   :  { %v443_v44 = vpop.f32.mrf.mxu0 }
 0x210   :  { %v1802_v49 = vld [vmem:[%s5426_s6 + $0x280] sm:$0xff]  ;;  %v1803_v50 = vld [vmem:[%s5426_s6 + $0x288] sm:$0xff] }
 0x211   :  { %2568 = vst [vmem:[%s5427_s7 + $0x270] sm:$0xff] %v2312_v40  ;;  %v2058_v46 = vadd.f32 %v1802_v49, %v1546_v55  ;;  %v2059_v61 = vadd.f32 %v1803_v50, %v1547_v56  ;;  %v855_v49 = vpop.f32.mrf.mxu2  ;;  %v1064_v50 = vpop.f32.mrf.mxu3  ;;  %v265_v55 = vmax.f32 %v201_v38, 0.0 }
 0x212   :  { %v1290_v53 = vmul.f32 %v3104_v17, %v855_v49  ;;  %v1291_v54 = vmul.f32 %v3106_v18, %v1064_v50 }
 0x213   :  { %v2314_v1 = vmax.f32 %v2058_v46, 0.0  ;;  %v2315_v2 = vmax.f32 %v2059_v61, 0.0  ;;  %905 = vmatmul.f32.gmra.mxu2 %v265_v55  ;;  %1114 = vmatmul.f32.gmra.mxu3 %v265_v55 }
 0x214   :  { %v1556_v46 = vadd.f32 %v3113_v24, %v1290_v53  ;;  %v1557_v61 = vadd.f32 %v3115_v25, %v1291_v54  ;;  %487 = vmatmul.f32.gmra.mxu0 %v265_v55  ;;  %696 = vmatmul.f32.gmra.mxu1 %v265_v55 }
 0x218   :  { %v1804_v57 = vld [vmem:[%s5426_s6 + $0x290] sm:$0xff]  ;;  %v1805_v58 = vld [vmem:[%s5426_s6 + $0x298] sm:$0xff] }
 0x219   :  { %2569 = vst [vmem:[%s5427_s7 + $0x278] sm:$0xff] %v2313_v41  ;;  %v2060_v62 = vadd.f32 %v1804_v57, %v1548_v59  ;;  %v2061_v63 = vadd.f32 %v1805_v58, %v1549_v60  ;;  %v66_v41 = vld [vmem:[%s5421_s0 + $0x140] sm:$0xff]  ;;  %v1554_v57 = vadd.f32 %v3100_v15, %v1288_v47  ;;  %v1555_v58 = vadd.f32 %v3102_v16, %v1289_v48  ;;  %v652_v47 = vpop.f32.mrf.mxu1 }
 0x21a   :  { %2570 = vst [vmem:[%s5427_s7 + $0x280] sm:$0xff] %v2314_v1  ;;  %v134_v56 = vmul.f32 %v3453_v3, %v66_v41  ;;  %v1296_v48 = vmul.f32 %v3095_v12, %v443_v44  ;;  %v1297_v49 = vmul.f32 %v3097_v13, %v652_v47 }
 0x21b   :  { %v2316_v5 = vmax.f32 %v2060_v62, 0.0  ;;  %v2317_v6 = vmax.f32 %v2061_v63, 0.0  ;;  %2571 = vst [vmem:[%s5427_s7 + $0x288] sm:$0xff] %v2315_v2 }
 0x21c   :  { %v202_v2 = vadd.f32 %v3477_v21, %v134_v56  ;;  %v4020_v56 = vld [vmem:[%s5422_s1] ss:$0 sm:$0xff] }
 0x222   :  { %v1806_v19 = vld [vmem:[%s5426_s6 + $0x2a0] sm:$0xff]  ;;  %v1807_v20 = vld [vmem:[%s5426_s6 + $0x2a8] sm:$0xff] }
 0x223   :  { %2572 = vst [vmem:[%s5427_s7 + $0x290] sm:$0xff] %v2316_v5  ;;  %v2062_v34 = vadd.f32 %v1806_v19, %v1550_v28  ;;  %v2063_v35 = vadd.f32 %v1807_v20, %v1551_v29  ;;  %v858_v19 = vpop.f32.mrf.mxu2  ;;  %v1067_v20 = vpop.f32.mrf.mxu3  ;;  %v266_v28 = vmax.f32 %v202_v2, 0.0 }
 0x224   :  { %v1294_v26 = vmul.f32 %v3104_v17, %v858_v19  ;;  %v1295_v27 = vmul.f32 %v3106_v18, %v1067_v20 }
 0x225   :  { %v2318_v39 = vmax.f32 %v2062_v34, 0.0  ;;  %v2319_v40 = vmax.f32 %v2063_v35, 0.0  ;;  %908 = vmatmul.f32.gmra.mxu2 %v266_v28  ;;  %1117 = vmatmul.f32.gmra.mxu3 %v266_v28 }
 0x226   :  { %v1561_v34 = vadd.f32 %v3115_v25, %v1295_v27  ;;  %490 = vmatmul.f32.gmra.mxu0 %v266_v28  ;;  %699 = vmatmul.f32.gmra.mxu1 %v266_v28 }
 0x22a   :  { %v1808_v30 = vld [vmem:[%s5426_s6 + $0x2b0] sm:$0xff]  ;;  %v1809_v31 = vld [vmem:[%s5426_s6 + $0x2b8] sm:$0xff] }
 0x22b   :  { %2573 = vst [vmem:[%s5427_s7 + $0x298] sm:$0xff] %v2317_v6  ;;  %v2064_v36 = vadd.f32 %v1808_v30, %v1552_v32  ;;  %v2065_v37 = vadd.f32 %v1809_v31, %v1553_v33  ;;  %v67_v6 = vld [vmem:[%s5421_s0 + $0x148] sm:$0xff]  ;;  %v1558_v30 = vadd.f32 %v3100_v15, %v1292_v11  ;;  %v1559_v31 = vadd.f32 %v3102_v16, %v1293_v14  ;;  %v861_v50 = vpop.f32.mrf.mxu2  ;;  %v446_v11 = vpop.f32.mrf.mxu0 }
 0x22c   :  { %2574 = vst [vmem:[%s5427_s7 + $0x2a0] sm:$0xff] %v2318_v39  ;;  %v135_v29 = vmul.f32 %v3453_v3, %v67_v6  ;;  %v1560_v3 = vadd.f32 %v3113_v24, %v1294_v26  ;;  %v1298_v53 = vmul.f32 %v3104_v17, %v861_v50  ;;  %v655_v14 = vpop.f32.mrf.mxu1  ;;  %v1300_v19 = vmul.f32 %v3095_v12, %v446_v11 }
 0x22d   :  { %v2320_v42 = vmax.f32 %v2064_v36, 0.0  ;;  %v2321_v43 = vmax.f32 %v2065_v37, 0.0  ;;  %2575 = vst [vmem:[%s5427_s7 + $0x2a8] sm:$0xff] %v2319_v40  ;;  %v1301_v20 = vmul.f32 %v3097_v13, %v655_v14 }
 0x22e   :  { %v203_v39 = vadd.f32 %v3477_v21, %v135_v29  ;;  %v1070_v21 = vpop.f32.mrf.mxu3 }
 0x22f   :  { %v1299_v54 = vmul.f32 %v3106_v18, %v1070_v21 }
 0x230   :  { %v267_v55 = vmax.f32 %v203_v39, 0.0 }
 0x232   :  { %911 = vmatmul.f32.gmra.mxu2 %v267_v55  ;;  %1120 = vmatmul.f32.gmra.mxu3 %v267_v55 }
 0x233   :  { %493 = vmatmul.f32.gmra.mxu0 %v267_v55  ;;  %702 = vmatmul.f32.gmra.mxu1 %v267_v55 }
 0x234   :  { %v1810_v51 = vld [vmem:[%s5426_s6 + $0x2c0] sm:$0xff]  ;;  %v1811_v52 = vld [vmem:[%s5426_s6 + $0x2c8] sm:$0xff] }
 0x235   :  { %2576 = vst [vmem:[%s5427_s7 + $0x2b0] sm:$0xff] %v2320_v42  ;;  %v2066_v62 = vadd.f32 %v1810_v51, %v1554_v57  ;;  %v2067_v63 = vadd.f32 %v1811_v52, %v1555_v58  ;;  %v68_v42 = vld [vmem:[%s5421_s0 + $0x150] sm:$0xff]  ;;  %v1562_v58 = vadd.f32 %v3100_v15, %v1296_v48  ;;  %v449_v48 = vpop.f32.mrf.mxu0 }
 0x236   :  { %v136_v57 = vmul.f32 %v4020_v56, %v68_v42  ;;  %v1304_v50 = vmul.f32 %v3095_v12, %v449_v48 }
 0x237   :  { %v2322_v4 = vmax.f32 %v2066_v62, 0.0  ;;  %v2323_v5 = vmax.f32 %v2067_v63, 0.0  ;;  %v1565_v62 = vadd.f32 %v3115_v25, %v1299_v54 }
 0x23c   :  { %v1812_v59 = vld [vmem:[%s5426_s6 + $0x2d0] sm:$0xff]  ;;  %v1813_v60 = vld [vmem:[%s5426_s6 + $0x2d8] sm:$0xff] }
 0x23d   :  { %2577 = vst [vmem:[%s5427_s7 + $0x2b8] sm:$0xff] %v2321_v43  ;;  %v2068_v0 = vadd.f32 %v1812_v59, %v1556_v46  ;;  %v2069_v1 = vadd.f32 %v1813_v60, %v1557_v61  ;;  %v1563_v59 = vadd.f32 %v3102_v16, %v1297_v49  ;;  %v1564_v61 = vadd.f32 %v3113_v24, %v1298_v53  ;;  %v658_v49 = vpop.f32.mrf.mxu1 }
 0x23e   :  { %2578 = vst [vmem:[%s5427_s7 + $0x2c0] sm:$0xff] %v2322_v4  ;;  %v4042_v4 = vld [vmem:[%s5423_s2] ss:$0 sm:$0xff]  ;;  %v1305_v21 = vmul.f32 %v3097_v13, %v658_v49 }
 0x23f   :  { %v2324_v7 = vmax.f32 %v2068_v0, 0.0  ;;  %v2325_v8 = vmax.f32 %v2069_v1, 0.0  ;;  %2579 = vst [vmem:[%s5427_s7 + $0x2c8] sm:$0xff] %v2323_v5  ;;  %v204_v5 = vadd.f32 %v4042_v4, %v136_v57 }
 0x246   :  { %v1814_v22 = vld [vmem:[%s5426_s6 + $0x2e0] sm:$0xff]  ;;  %v1815_v23 = vld [vmem:[%s5426_s6 + $0x2e8] sm:$0xff] }
 0x247   :  { %2580 = vst [vmem:[%s5427_s7 + $0x2d0] sm:$0xff] %v2324_v7  ;;  %v2070_v35 = vadd.f32 %v1814_v22, %v1558_v30  ;;  %v2071_v36 = vadd.f32 %v1815_v23, %v1559_v31  ;;  %v864_v22 = vpop.f32.mrf.mxu2  ;;  %v1073_v23 = vpop.f32.mrf.mxu3  ;;  %v268_v30 = vmax.f32 %v204_v5, 0.0 }
 0x248   :  { %v1302_v28 = vmul.f32 %v3104_v17, %v864_v22  ;;  %v1303_v29 = vmul.f32 %v3106_v18, %v1073_v23 }
 0x249   :  { %v2326_v40 = vmax.f32 %v2070_v35, 0.0  ;;  %v2327_v41 = vmax.f32 %v2071_v36, 0.0  ;;  %914 = vmatmul.f32.gmra.mxu2 %v268_v30  ;;  %1123 = vmatmul.f32.gmra.mxu3 %v268_v30 }
 0x24a   :  { %v1568_v35 = vadd.f32 %v3113_v24, %v1302_v28  ;;  %v1569_v36 = vadd.f32 %v3115_v25, %v1303_v29  ;;  %496 = vmatmul.f32.gmra.mxu0 %v268_v30  ;;  %705 = vmatmul.f32.gmra.mxu1 %v268_v30 }
 0x24e   :  { %v1816_v32 = vld [vmem:[%s5426_s6 + $0x2f0] sm:$0xff]  ;;  %v1817_v33 = vld [vmem:[%s5426_s6 + $0x2f8] sm:$0xff] }
 0x24f   :  { %2581 = vst [vmem:[%s5427_s7 + $0x2d8] sm:$0xff] %v2325_v8  ;;  %v2072_v37 = vadd.f32 %v1816_v32, %v1560_v3  ;;  %v2073_v38 = vadd.f32 %v1817_v33, %v1561_v34  ;;  %v69_v8 = vld [vmem:[%s5421_s0 + $0x158] sm:$0xff]  ;;  %v1566_v32 = vadd.f32 %v3100_v15, %v1300_v19  ;;  %v1567_v33 = vadd.f32 %v3102_v16, %v1301_v20  ;;  %v452_v19 = vpop.f32.mrf.mxu0  ;;  %v661_v20 = vpop.f32.mrf.mxu1 }
 0x250   :  { %2582 = vst [vmem:[%s5427_s7 + $0x2e0] sm:$0xff] %v2326_v40  ;;  %v137_v31 = vmul.f32 %v4020_v56, %v69_v8  ;;  %v1308_v22 = vmul.f32 %v3095_v12, %v452_v19  ;;  %v1309_v23 = vmul.f32 %v3097_v13, %v661_v20 }
 0x251   :  { %v2328_v43 = vmax.f32 %v2072_v37, 0.0  ;;  %v2329_v45 = vmax.f32 %v2073_v38, 0.0  ;;  %2583 = vst [vmem:[%s5427_s7 + $0x2e8] sm:$0xff] %v2327_v41 }
 0x252   :  { %v205_v41 = vadd.f32 %v4042_v4, %v137_v31 }
 0x258   :  { %v1818_v51 = vld [vmem:[%s5426_s6 + $0x300] sm:$0xff]  ;;  %v1819_v52 = vld [vmem:[%s5426_s6 + $0x308] sm:$0xff] }
 0x259   :  { %2584 = vst [vmem:[%s5427_s7 + $0x2f0] sm:$0xff] %v2328_v43  ;;  %v2074_v63 = vadd.f32 %v1818_v51, %v1562_v58  ;;  %v2075_v0 = vadd.f32 %v1819_v52, %v1563_v59  ;;  %v867_v51 = vpop.f32.mrf.mxu2  ;;  %v1076_v52 = vpop.f32.mrf.mxu3  ;;  %v269_v58 = vmax.f32 %v205_v41, 0.0 }
 0x25a   :  { %v1306_v55 = vmul.f32 %v3104_v17, %v867_v51  ;;  %v1307_v57 = vmul.f32 %v3106_v18, %v1076_v52 }
 0x25b   :  { %v2330_v6 = vmax.f32 %v2074_v63, 0.0  ;;  %v2331_v7 = vmax.f32 %v2075_v0, 0.0  ;;  %917 = vmatmul.f32.gmra.mxu2 %v269_v58  ;;  %1126 = vmatmul.f32.gmra.mxu3 %v269_v58 }
 0x25c   :  { %v1572_v63 = vadd.f32 %v3113_v24, %v1306_v55  ;;  %v1573_v0 = vadd.f32 %v3115_v25, %v1307_v57  ;;  %499 = vmatmul.f32.gmra.mxu0 %v269_v58  ;;  %708 = vmatmul.f32.gmra.mxu1 %v269_v58 }
 0x260   :  { %v1820_v60 = vld [vmem:[%s5426_s6 + $0x310] sm:$0xff]  ;;  %v1821_v46 = vld [vmem:[%s5426_s6 + $0x318] sm:$0xff] }
 0x261   :  { %2585 = vst [vmem:[%s5427_s7 + $0x2f8] sm:$0xff] %v2329_v45  ;;  %v2076_v1 = vadd.f32 %v1820_v60, %v1564_v61  ;;  %v2077_v2 = vadd.f32 %v1821_v46, %v1565_v62  ;;  %v70_v45 = vld [vmem:[%s5421_s0 + $0x160] sm:$0xff]  ;;  %v1570_v60 = vadd.f32 %v3100_v15, %v1304_v50  ;;  %v1571_v46 = vadd.f32 %v3102_v16, %v1305_v21  ;;  %v455_v50 = vpop.f32.mrf.mxu0  ;;  %v664_v21 = vpop.f32.mrf.mxu1 }
 0x262   :  { %2586 = vst [vmem:[%s5427_s7 + $0x300] sm:$0xff] %v2330_v6  ;;  %v138_v59 = vmul.f32 %v4020_v56, %v70_v45  ;;  %v1312_v51 = vmul.f32 %v3095_v12, %v455_v50  ;;  %v1313_v52 = vmul.f32 %v3097_v13, %v664_v21 }
 0x263   :  { %v2332_v9 = vmax.f32 %v2076_v1, 0.0  ;;  %v2333_v10 = vmax.f32 %v2077_v2, 0.0  ;;  %2587 = vst [vmem:[%s5427_s7 + $0x308] sm:$0xff] %v2331_v7 }
 0x264   :  { %v206_v7 = vadd.f32 %v4042_v4, %v138_v59 }
 0x26a   :  { %v1822_v26 = vld [vmem:[%s5426_s6 + $0x320] sm:$0xff]  ;;  %v1823_v27 = vld [vmem:[%s5426_s6 + $0x328] sm:$0xff] }
 0x26b   :  { %2588 = vst [vmem:[%s5427_s7 + $0x310] sm:$0xff] %v2332_v9  ;;  %v2078_v37 = vadd.f32 %v1822_v26, %v1566_v32  ;;  %v2079_v38 = vadd.f32 %v1823_v27, %v1567_v33  ;;  %v870_v26 = vpop.f32.mrf.mxu2  ;;  %v1079_v27 = vpop.f32.mrf.mxu3  ;;  %v270_v32 = vmax.f32 %v206_v7, 0.0 }
 0x26c   :  { %v1310_v30 = vmul.f32 %v3104_v17, %v870_v26  ;;  %v1311_v31 = vmul.f32 %v3106_v18, %v1079_v27 }
 0x26d   :  { %v2334_v42 = vmax.f32 %v2078_v37, 0.0  ;;  %v2335_v43 = vmax.f32 %v2079_v38, 0.0  ;;  %920 = vmatmul.f32.gmra.mxu2 %v270_v32  ;;  %1129 = vmatmul.f32.gmra.mxu3 %v270_v32 }
 0x26e   :  { %v1576_v37 = vadd.f32 %v3113_v24, %v1310_v30  ;;  %v1577_v38 = vadd.f32 %v3115_v25, %v1311_v31  ;;  %502 = vmatmul.f32.gmra.mxu0 %v270_v32  ;;  %711 = vmatmul.f32.gmra.mxu1 %v270_v32 }
 0x272   :  { %v1824_v3 = vld [vmem:[%s5426_s6 + $0x330] sm:$0xff]  ;;  %v1825_v34 = vld [vmem:[%s5426_s6 + $0x338] sm:$0xff] }
 0x273   :  { %2589 = vst [vmem:[%s5427_s7 + $0x318] sm:$0xff] %v2333_v10  ;;  %v2080_v39 = vadd.f32 %v1824_v3, %v1568_v35  ;;  %v2081_v40 = vadd.f32 %v1825_v34, %v1569_v36  ;;  %v71_v10 = vld [vmem:[%s5421_s0 + $0x168] sm:$0xff]  ;;  %v1574_v3 = vadd.f32 %v3100_v15, %v1308_v22  ;;  %v1575_v34 = vadd.f32 %v3102_v16, %v1309_v23  ;;  %v458_v22 = vpop.f32.mrf.mxu0  ;;  %v667_v23 = vpop.f32.mrf.mxu1 }
 0x274   :  { %2590 = vst [vmem:[%s5427_s7 + $0x320] sm:$0xff] %v2334_v42  ;;  %v139_v33 = vmul.f32 %v4020_v56, %v71_v10  ;;  %v1316_v26 = vmul.f32 %v3095_v12, %v458_v22  ;;  %v1317_v27 = vmul.f32 %v3097_v13, %v667_v23 }
 0x275   :  { %v2336_v44 = vmax.f32 %v2080_v39, 0.0  ;;  %v2337_v47 = vmax.f32 %v2081_v40, 0.0  ;;  %2591 = vst [vmem:[%s5427_s7 + $0x328] sm:$0xff] %v2335_v43 }
 0x276   :  { %v207_v43 = vadd.f32 %v4042_v4, %v139_v33 }
 0x27c   :  { %v1826_v53 = vld [vmem:[%s5426_s6 + $0x340] sm:$0xff]  ;;  %v1827_v54 = vld [vmem:[%s5426_s6 + $0x348] sm:$0xff] }
 0x27d   :  { %2592 = vst [vmem:[%s5427_s7 + $0x330] sm:$0xff] %v2336_v44  ;;  %v2082_v1 = vadd.f32 %v1826_v53, %v1570_v60  ;;  %v2083_v2 = vadd.f32 %v1827_v54, %v1571_v46  ;;  %v873_v53 = vpop.f32.mrf.mxu2  ;;  %v1082_v54 = vpop.f32.mrf.mxu3  ;;  %v271_v60 = vmax.f32 %v207_v43, 0.0 }
 0x27e   :  { %v1314_v58 = vmul.f32 %v3104_v17, %v873_v53  ;;  %v1315_v59 = vmul.f32 %v3106_v18, %v1082_v54 }
 0x27f   :  { %v2338_v8 = vmax.f32 %v2082_v1, 0.0  ;;  %v2339_v9 = vmax.f32 %v2083_v2, 0.0  ;;  %923 = vmatmul.f32.gmra.mxu2 %v271_v60  ;;  %1132 = vmatmul.f32.gmra.mxu3 %v271_v60 }
 0x280   :  { %v1580_v1 = vadd.f32 %v3113_v24, %v1314_v58  ;;  %v1581_v2 = vadd.f32 %v3115_v25, %v1315_v59  ;;  %505 = vmatmul.f32.gmra.mxu0 %v271_v60  ;;  %714 = vmatmul.f32.gmra.mxu1 %v271_v60 }
 0x284   :  { %v1828_v61 = vld [vmem:[%s5426_s6 + $0x350] sm:$0xff]  ;;  %v1829_v62 = vld [vmem:[%s5426_s6 + $0x358] sm:$0xff] }
 0x285   :  { %2593 = vst [vmem:[%s5427_s7 + $0x338] sm:$0xff] %v2337_v47  ;;  %v2084_v5 = vadd.f32 %v1828_v61, %v1572_v63  ;;  %v2085_v6 = vadd.f32 %v1829_v62, %v1573_v0  ;;  %v72_v47 = vld [vmem:[%s5421_s0 + $0x170] sm:$0xff]  ;;  %v1578_v61 = vadd.f32 %v3100_v15, %v1312_v51  ;;  %v1579_v62 = vadd.f32 %v3102_v16, %v1313_v52  ;;  %v461_v51 = vpop.f32.mrf.mxu0  ;;  %v670_v52 = vpop.f32.mrf.mxu1 }
 0x286   :  { %2594 = vst [vmem:[%s5427_s7 + $0x340] sm:$0xff] %v2338_v8  ;;  %v140_v46 = vmul.f32 %v4020_v56, %v72_v47  ;;  %v1320_v53 = vmul.f32 %v3095_v12, %v461_v51  ;;  %v1321_v54 = vmul.f32 %v3097_v13, %v670_v52 }
 0x287   :  { %v2340_v11 = vmax.f32 %v2084_v5, 0.0  ;;  %v2341_v14 = vmax.f32 %v2085_v6, 0.0  ;;  %2595 = vst [vmem:[%s5427_s7 + $0x348] sm:$0xff] %v2339_v9 }
 0x288   :  { %v208_v9 = vadd.f32 %v4042_v4, %v140_v46 }
 0x28e   :  { %v1830_v28 = vld [vmem:[%s5426_s6 + $0x360] sm:$0xff]  ;;  %v1831_v29 = vld [vmem:[%s5426_s6 + $0x368] sm:$0xff] }
 0x28f   :  { %2596 = vst [vmem:[%s5427_s7 + $0x350] sm:$0xff] %v2340_v11  ;;  %v2086_v39 = vadd.f32 %v1830_v28, %v1574_v3  ;;  %v2087_v40 = vadd.f32 %v1831_v29, %v1575_v34  ;;  %v876_v28 = vpop.f32.mrf.mxu2  ;;  %v1085_v29 = vpop.f32.mrf.mxu3  ;;  %v272_v3 = vmax.f32 %v208_v9, 0.0 }
 0x290   :  { %v1318_v32 = vmul.f32 %v3104_v17, %v876_v28  ;;  %v1319_v33 = vmul.f32 %v3106_v18, %v1085_v29 }
 0x291   :  { %v2342_v45 = vmax.f32 %v2086_v39, 0.0  ;;  %v2343_v44 = vmax.f32 %v2087_v40, 0.0  ;;  %926 = vmatmul.f32.gmra.mxu2 %v272_v3  ;;  %1135 = vmatmul.f32.gmra.mxu3 %v272_v3 }
 0x292   :  { %v1584_v39 = vadd.f32 %v3113_v24, %v1318_v32  ;;  %v1585_v40 = vadd.f32 %v3115_v25, %v1319_v33  ;;  %508 = vmatmul.f32.gmra.mxu0 %v272_v3  ;;  %717 = vmatmul.f32.gmra.mxu1 %v272_v3 }
 0x296   :  { %v1832_v35 = vld [vmem:[%s5426_s6 + $0x370] sm:$0xff]  ;;  %v1833_v36 = vld [vmem:[%s5426_s6 + $0x378] sm:$0xff] }
 0x297   :  { %2597 = vst [vmem:[%s5427_s7 + $0x358] sm:$0xff] %v2341_v14  ;;  %v2088_v41 = vadd.f32 %v1832_v35, %v1576_v37  ;;  %v2089_v42 = vadd.f32 %v1833_v36, %v1577_v38  ;;  %v73_v14 = vld [vmem:[%s5421_s0 + $0x178] sm:$0xff]  ;;  %v1582_v35 = vadd.f32 %v3100_v15, %v1316_v26  ;;  %v1583_v36 = vadd.f32 %v3102_v16, %v1317_v27  ;;  %v464_v26 = vpop.f32.mrf.mxu0  ;;  %v673_v27 = vpop.f32.mrf.mxu1 }
 0x298   :  { %2598 = vst [vmem:[%s5427_s7 + $0x360] sm:$0xff] %v2342_v45  ;;  %v141_v34 = vmul.f32 %v4020_v56, %v73_v14  ;;  %v1324_v28 = vmul.f32 %v3095_v12, %v464_v26  ;;  %v1325_v29 = vmul.f32 %v3097_v13, %v673_v27 }
 0x299   :  { %v2344_v48 = vmax.f32 %v2088_v41, 0.0  ;;  %v2345_v49 = vmax.f32 %v2089_v42, 0.0  ;;  %2599 = vst [vmem:[%s5427_s7 + $0x368] sm:$0xff] %v2343_v44 }
 0x29a   :  { %v209_v44 = vadd.f32 %v4042_v4, %v141_v34 }
 0x2a0   :  { %v1834_v55 = vld [vmem:[%s5426_s6 + $0x380] sm:$0xff]  ;;  %v1835_v57 = vld [vmem:[%s5426_s6 + $0x388] sm:$0xff] }
 0x2a1   :  { %2600 = vst [vmem:[%s5427_s7 + $0x370] sm:$0xff] %v2344_v48  ;;  %v2090_v5 = vadd.f32 %v1834_v55, %v1578_v61  ;;  %v2091_v6 = vadd.f32 %v1835_v57, %v1579_v62  ;;  %v879_v55 = vpop.f32.mrf.mxu2  ;;  %v1088_v57 = vpop.f32.mrf.mxu3  ;;  %v273_v61 = vmax.f32 %v209_v44, 0.0 }
 0x2a2   :  { %v1322_v60 = vmul.f32 %v3104_v17, %v879_v55  ;;  %v1323_v46 = vmul.f32 %v3106_v18, %v1088_v57 }
 0x2a3   :  { %v2346_v10 = vmax.f32 %v2090_v5, 0.0  ;;  %v2347_v11 = vmax.f32 %v2091_v6, 0.0  ;;  %929 = vmatmul.f32.gmra.mxu2 %v273_v61  ;;  %1138 = vmatmul.f32.gmra.mxu3 %v273_v61 }
 0x2a4   :  { %v1588_v5 = vadd.f32 %v3113_v24, %v1322_v60  ;;  %v1589_v6 = vadd.f32 %v3115_v25, %v1323_v46  ;;  %511 = vmatmul.f32.gmra.mxu0 %v273_v61  ;;  %720 = vmatmul.f32.gmra.mxu1 %v273_v61 }
 0x2a8   :  { %v1836_v63 = vld [vmem:[%s5426_s6 + $0x390] sm:$0xff]  ;;  %v1837_v0 = vld [vmem:[%s5426_s6 + $0x398] sm:$0xff] }
 0x2a9   :  { %2601 = vst [vmem:[%s5427_s7 + $0x378] sm:$0xff] %v2345_v49  ;;  %v2092_v7 = vadd.f32 %v1836_v63, %v1580_v1  ;;  %v2093_v8 = vadd.f32 %v1837_v0, %v1581_v2  ;;  %v74_v49 = vld [vmem:[%s5421_s0 + $0x180] sm:$0xff]  ;;  %v1586_v63 = vadd.f32 %v3100_v15, %v1320_v53  ;;  %v1587_v0 = vadd.f32 %v3102_v16, %v1321_v54  ;;  %v467_v53 = vpop.f32.mrf.mxu0  ;;  %v676_v54 = vpop.f32.mrf.mxu1 }
 0x2aa   :  { %2602 = vst [vmem:[%s5427_s7 + $0x380] sm:$0xff] %v2346_v10  ;;  %v142_v62 = vmul.f32 %v4020_v56, %v74_v49  ;;  %v1328_v55 = vmul.f32 %v3095_v12, %v467_v53  ;;  %v1329_v57 = vmul.f32 %v3097_v13, %v676_v54 }
 0x2ab   :  { %v2348_v19 = vmax.f32 %v2092_v7, 0.0  ;;  %v2349_v20 = vmax.f32 %v2093_v8, 0.0  ;;  %2603 = vst [vmem:[%s5427_s7 + $0x388] sm:$0xff] %v2347_v11 }
 0x2ac   :  { %v210_v11 = vadd.f32 %v4042_v4, %v142_v62 }
 0x2b2   :  { %v1838_v30 = vld [vmem:[%s5426_s6 + $0x3a0] sm:$0xff]  ;;  %v1839_v31 = vld [vmem:[%s5426_s6 + $0x3a8] sm:$0xff] }
 0x2b3   :  { %2604 = vst [vmem:[%s5427_s7 + $0x390] sm:$0xff] %v2348_v19  ;;  %v2094_v41 = vadd.f32 %v1838_v30, %v1582_v35  ;;  %v2095_v42 = vadd.f32 %v1839_v31, %v1583_v36  ;;  %v882_v30 = vpop.f32.mrf.mxu2  ;;  %v1091_v31 = vpop.f32.mrf.mxu3  ;;  %v274_v35 = vmax.f32 %v210_v11, 0.0 }
 0x2b4   :  { %v1326_v3 = vmul.f32 %v3104_v17, %v882_v30  ;;  %v1327_v34 = vmul.f32 %v3106_v18, %v1091_v31 }
 0x2b5   :  { %v2350_v47 = vmax.f32 %v2094_v41, 0.0  ;;  %v2351_v48 = vmax.f32 %v2095_v42, 0.0  ;;  %932 = vmatmul.f32.gmra.mxu2 %v274_v35  ;;  %1141 = vmatmul.f32.gmra.mxu3 %v274_v35 }
 0x2b6   :  { %v1592_v41 = vadd.f32 %v3113_v24, %v1326_v3  ;;  %v1593_v42 = vadd.f32 %v3115_v25, %v1327_v34  ;;  %514 = vmatmul.f32.gmra.mxu0 %v274_v35  ;;  %723 = vmatmul.f32.gmra.mxu1 %v274_v35 }
 0x2ba   :  { %v1840_v37 = vld [vmem:[%s5426_s6 + $0x3b0] sm:$0xff]  ;;  %v1841_v38 = vld [vmem:[%s5426_s6 + $0x3b8] sm:$0xff] }
 0x2bb   :  { %2605 = vst [vmem:[%s5427_s7 + $0x398] sm:$0xff] %v2349_v20  ;;  %v2096_v43 = vadd.f32 %v1840_v37, %v1584_v39  ;;  %v2097_v45 = vadd.f32 %v1841_v38, %v1585_v40  ;;  %v75_v20 = vld [vmem:[%s5421_s0 + $0x188] sm:$0xff]  ;;  %v1590_v37 = vadd.f32 %v3100_v15, %v1324_v28  ;;  %v1591_v38 = vadd.f32 %v3102_v16, %v1325_v29  ;;  %v470_v28 = vpop.f32.mrf.mxu0  ;;  %v679_v29 = vpop.f32.mrf.mxu1 }
 0x2bc   :  { %2606 = vst [vmem:[%s5427_s7 + $0x3a0] sm:$0xff] %v2350_v47  ;;  %v143_v36 = vmul.f32 %v4020_v56, %v75_v20  ;;  %v1332_v30 = vmul.f32 %v3095_v12, %v470_v28  ;;  %v1333_v31 = vmul.f32 %v3097_v13, %v679_v29 }
 0x2bd   :  { %v2352_v50 = vmax.f32 %v2096_v43, 0.0  ;;  %v2353_v21 = vmax.f32 %v2097_v45, 0.0  ;;  %2607 = vst [vmem:[%s5427_s7 + $0x3a8] sm:$0xff] %v2351_v48 }
 0x2be   :  { %v211_v48 = vadd.f32 %v4042_v4, %v143_v36 }
 0x2c4   :  { %v1842_v58 = vld [vmem:[%s5426_s6 + $0x3c0] sm:$0xff]  ;;  %v1843_v59 = vld [vmem:[%s5426_s6 + $0x3c8] sm:$0xff] }
 0x2c5   :  { %2608 = vst [vmem:[%s5427_s7 + $0x3b0] sm:$0xff] %v2352_v50  ;;  %v2098_v7 = vadd.f32 %v1842_v58, %v1586_v63  ;;  %v2099_v8 = vadd.f32 %v1843_v59, %v1587_v0  ;;  %v885_v58 = vpop.f32.mrf.mxu2  ;;  %v1094_v59 = vpop.f32.mrf.mxu3  ;;  %v275_v63 = vmax.f32 %v211_v48, 0.0 }
 0x2c6   :  { %v1330_v61 = vmul.f32 %v3104_v17, %v885_v58  ;;  %v1331_v62 = vmul.f32 %v3106_v18, %v1094_v59 }
 0x2c7   :  { %v2354_v14 = vmax.f32 %v2098_v7, 0.0  ;;  %v2355_v19 = vmax.f32 %v2099_v8, 0.0  ;;  %935 = vmatmul.f32.gmra.mxu2 %v275_v63  ;;  %1144 = vmatmul.f32.gmra.mxu3 %v275_v63 }
 0x2c8   :  { %v1596_v7 = vadd.f32 %v3113_v24, %v1330_v61  ;;  %v1597_v8 = vadd.f32 %v3115_v25, %v1331_v62  ;;  %517 = vmatmul.f32.gmra.mxu0 %v275_v63  ;;  %726 = vmatmul.f32.gmra.mxu1 %v275_v63 }
 0x2cc   :  { %v1844_v1 = vld [vmem:[%s5426_s6 + $0x3d0] sm:$0xff]  ;;  %v1845_v2 = vld [vmem:[%s5426_s6 + $0x3d8] sm:$0xff] }
 0x2cd   :  { %2609 = vst [vmem:[%s5427_s7 + $0x3b8] sm:$0xff] %v2353_v21  ;;  %v2100_v9 = vadd.f32 %v1844_v1, %v1588_v5  ;;  %v2101_v10 = vadd.f32 %v1845_v2, %v1589_v6  ;;  %v76_v21 = vld [vmem:[%s5421_s0 + $0x190] sm:$0xff]  ;;  %v1594_v1 = vadd.f32 %v3100_v15, %v1328_v55  ;;  %v1595_v2 = vadd.f32 %v3102_v16, %v1329_v57  ;;  %v473_v55 = vpop.f32.mrf.mxu0  ;;  %v682_v57 = vpop.f32.mrf.mxu1 }
 0x2ce   :  { %2610 = vst [vmem:[%s5427_s7 + $0x3c0] sm:$0xff] %v2354_v14  ;;  %v144_v0 = vmul.f32 %v4020_v56, %v76_v21  ;;  %v1336_v58 = vmul.f32 %v3095_v12, %v473_v55  ;;  %v1337_v59 = vmul.f32 %v3097_v13, %v682_v57 }
 0x2cf   :  { %v2356_v22 = vmax.f32 %v2100_v9, 0.0  ;;  %v2357_v23 = vmax.f32 %v2101_v10, 0.0  ;;  %2611 = vst [vmem:[%s5427_s7 + $0x3c8] sm:$0xff] %v2355_v19 }
 0x2d0   :  { %v212_v19 = vadd.f32 %v4042_v4, %v144_v0 }
 0x2d6   :  { %v1846_v32 = vld [vmem:[%s5426_s6 + $0x3e0] sm:$0xff]  ;;  %v1847_v33 = vld [vmem:[%s5426_s6 + $0x3e8] sm:$0xff] }
 0x2d7   :  { %2612 = vst [vmem:[%s5427_s7 + $0x3d0] sm:$0xff] %v2356_v22  ;;  %v2102_v43 = vadd.f32 %v1846_v32, %v1590_v37  ;;  %v2103_v45 = vadd.f32 %v1847_v33, %v1591_v38  ;;  %v888_v32 = vpop.f32.mrf.mxu2  ;;  %v1097_v33 = vpop.f32.mrf.mxu3  ;;  %v276_v37 = vmax.f32 %v212_v19, 0.0 }
 0x2d8   :  { %v1334_v35 = vmul.f32 %v3104_v17, %v888_v32  ;;  %v1335_v36 = vmul.f32 %v3106_v18, %v1097_v33 }
 0x2d9   :  { %v2358_v49 = vmax.f32 %v2102_v43, 0.0  ;;  %v2359_v50 = vmax.f32 %v2103_v45, 0.0  ;;  %938 = vmatmul.f32.gmra.mxu2 %v276_v37  ;;  %1147 = vmatmul.f32.gmra.mxu3 %v276_v37 }
 0x2da   :  { %v1600_v43 = vadd.f32 %v3113_v24, %v1334_v35  ;;  %v1601_v45 = vadd.f32 %v3115_v25, %v1335_v36  ;;  %520 = vmatmul.f32.gmra.mxu0 %v276_v37  ;;  %729 = vmatmul.f32.gmra.mxu1 %v276_v37 }
 0x2de   :  { %v1848_v39 = vld [vmem:[%s5426_s6 + $0x3f0] sm:$0xff]  ;;  %v1849_v40 = vld [vmem:[%s5426_s6 + $0x3f8] sm:$0xff] }
 0x2df   :  { %2613 = vst [vmem:[%s5427_s7 + $0x3d8] sm:$0xff] %v2357_v23  ;;  %v2104_v44 = vadd.f32 %v1848_v39, %v1592_v41  ;;  %v2105_v47 = vadd.f32 %v1849_v40, %v1593_v42  ;;  %v77_v23 = vld [vmem:[%s5421_s0 + $0x198] sm:$0xff]  ;;  %v1598_v39 = vadd.f32 %v3100_v15, %v1332_v30  ;;  %v1599_v40 = vadd.f32 %v3102_v16, %v1333_v31  ;;  %v476_v30 = vpop.f32.mrf.mxu0  ;;  %v685_v31 = vpop.f32.mrf.mxu1 }
 0x2e0   :  { %2614 = vst [vmem:[%s5427_s7 + $0x3e0] sm:$0xff] %v2358_v49  ;;  %v145_v38 = vmul.f32 %v4020_v56, %v77_v23  ;;  %v1340_v32 = vmul.f32 %v3095_v12, %v476_v30  ;;  %v1341_v33 = vmul.f32 %v3097_v13, %v685_v31 }
 0x2e1   :  { %v2360_v51 = vmax.f32 %v2104_v44, 0.0  ;;  %v2361_v52 = vmax.f32 %v2105_v47, 0.0  ;;  %2615 = vst [vmem:[%s5427_s7 + $0x3e8] sm:$0xff] %v2359_v50 }
 0x2e2   :  { %v213_v50 = vadd.f32 %v4042_v4, %v145_v38 }
 0x2e8   :  { %v1850_v60 = vld [vmem:[%s5426_s6 + $0x400] sm:$0xff]  ;;  %v1851_v46 = vld [vmem:[%s5426_s6 + $0x408] sm:$0xff] }
 0x2e9   :  { %2616 = vst [vmem:[%s5427_s7 + $0x3f0] sm:$0xff] %v2360_v51  ;;  %v2106_v9 = vadd.f32 %v1850_v60, %v1594_v1  ;;  %v2107_v10 = vadd.f32 %v1851_v46, %v1595_v2  ;;  %v891_v60 = vpop.f32.mrf.mxu2  ;;  %v1100_v46 = vpop.f32.mrf.mxu3  ;;  %v277_v1 = vmax.f32 %v213_v50, 0.0 }
 0x2ea   :  { %v1338_v63 = vmul.f32 %v3104_v17, %v891_v60  ;;  %v1339_v0 = vmul.f32 %v3106_v18, %v1100_v46 }
 0x2eb   :  { %v2362_v20 = vmax.f32 %v2106_v9, 0.0  ;;  %v2363_v22 = vmax.f32 %v2107_v10, 0.0  ;;  %941 = vmatmul.f32.gmra.mxu2 %v277_v1  ;;  %1150 = vmatmul.f32.gmra.mxu3 %v277_v1 }
 0x2ec   :  { %v1604_v9 = vadd.f32 %v3113_v24, %v1338_v63  ;;  %v1605_v10 = vadd.f32 %v3115_v25, %v1339_v0  ;;  %523 = vmatmul.f32.gmra.mxu0 %v277_v1  ;;  %732 = vmatmul.f32.gmra.mxu1 %v277_v1 }
 0x2f0   :  { %v1852_v5 = vld [vmem:[%s5426_s6 + $0x410] sm:$0xff]  ;;  %v1853_v6 = vld [vmem:[%s5426_s6 + $0x418] sm:$0xff] }
 0x2f1   :  { %2617 = vst [vmem:[%s5427_s7 + $0x3f8] sm:$0xff] %v2361_v52  ;;  %v2108_v11 = vadd.f32 %v1852_v5, %v1596_v7  ;;  %v2109_v14 = vadd.f32 %v1853_v6, %v1597_v8  ;;  %v78_v52 = vld [vmem:[%s5421_s0 + $0x1a0] sm:$0xff]  ;;  %v1602_v5 = vadd.f32 %v3100_v15, %v1336_v58  ;;  %v1603_v6 = vadd.f32 %v3102_v16, %v1337_v59  ;;  %v479_v58 = vpop.f32.mrf.mxu0  ;;  %v688_v59 = vpop.f32.mrf.mxu1 }
 0x2f2   :  { %2618 = vst [vmem:[%s5427_s7 + $0x400] sm:$0xff] %v2362_v20  ;;  %v146_v2 = vmul.f32 %v4020_v56, %v78_v52  ;;  %v1344_v60 = vmul.f32 %v3095_v12, %v479_v58  ;;  %v1345_v46 = vmul.f32 %v3097_v13, %v688_v59 }
 0x2f3   :  { %v2364_v26 = vmax.f32 %v2108_v11, 0.0  ;;  %v2365_v27 = vmax.f32 %v2109_v14, 0.0  ;;  %2619 = vst [vmem:[%s5427_s7 + $0x408] sm:$0xff] %v2363_v22 }
 0x2f4   :  { %v214_v22 = vadd.f32 %v4042_v4, %v146_v2 }
 0x2fa   :  { %v1854_v3 = vld [vmem:[%s5426_s6 + $0x420] sm:$0xff]  ;;  %v1855_v34 = vld [vmem:[%s5426_s6 + $0x428] sm:$0xff] }
 0x2fb   :  { %2620 = vst [vmem:[%s5427_s7 + $0x410] sm:$0xff] %v2364_v26  ;;  %v2110_v44 = vadd.f32 %v1854_v3, %v1598_v39  ;;  %v2111_v47 = vadd.f32 %v1855_v34, %v1599_v40  ;;  %v894_v3 = vpop.f32.mrf.mxu2  ;;  %v1103_v34 = vpop.f32.mrf.mxu3  ;;  %v278_v39 = vmax.f32 %v214_v22, 0.0 }
 0x2fc   :  { %v1342_v37 = vmul.f32 %v3104_v17, %v894_v3  ;;  %v1343_v38 = vmul.f32 %v3106_v18, %v1103_v34 }
 0x2fd   :  { %v2366_v21 = vmax.f32 %v2110_v44, 0.0  ;;  %v2367_v51 = vmax.f32 %v2111_v47, 0.0  ;;  %944 = vmatmul.f32.gmra.mxu2 %v278_v39  ;;  %1153 = vmatmul.f32.gmra.mxu3 %v278_v39 }
 0x2fe   :  { %v1608_v44 = vadd.f32 %v3113_v24, %v1342_v37  ;;  %v1609_v47 = vadd.f32 %v3115_v25, %v1343_v38  ;;  %526 = vmatmul.f32.gmra.mxu0 %v278_v39  ;;  %735 = vmatmul.f32.gmra.mxu1 %v278_v39 }
 0x302   :  { %v1856_v41 = vld [vmem:[%s5426_s6 + $0x430] sm:$0xff]  ;;  %v1857_v42 = vld [vmem:[%s5426_s6 + $0x438] sm:$0xff] }
 0x303   :  { %2621 = vst [vmem:[%s5427_s7 + $0x418] sm:$0xff] %v2365_v27  ;;  %v2112_v48 = vadd.f32 %v1856_v41, %v1600_v43  ;;  %v2113_v49 = vadd.f32 %v1857_v42, %v1601_v45  ;;  %v79_v27 = vld [vmem:[%s5421_s0 + $0x1a8] sm:$0xff]  ;;  %v1606_v41 = vadd.f32 %v3100_v15, %v1340_v32  ;;  %v1607_v42 = vadd.f32 %v3102_v16, %v1341_v33  ;;  %v482_v32 = vpop.f32.mrf.mxu0  ;;  %v691_v33 = vpop.f32.mrf.mxu1 }
 0x304   :  { %2622 = vst [vmem:[%s5427_s7 + $0x420] sm:$0xff] %v2366_v21  ;;  %v147_v40 = vmul.f32 %v4020_v56, %v79_v27  ;;  %v1348_v3 = vmul.f32 %v3095_v12, %v482_v32  ;;  %v1349_v34 = vmul.f32 %v3097_v13, %v691_v33 }
 0x305   :  { %v2368_v53 = vmax.f32 %v2112_v48, 0.0  ;;  %v2369_v54 = vmax.f32 %v2113_v49, 0.0  ;;  %2623 = vst [vmem:[%s5427_s7 + $0x428] sm:$0xff] %v2367_v51 }
 0x306   :  { %v215_v51 = vadd.f32 %v4042_v4, %v147_v40 }
 0x30c   :  { %v1858_v61 = vld [vmem:[%s5426_s6 + $0x440] sm:$0xff]  ;;  %v1859_v62 = vld [vmem:[%s5426_s6 + $0x448] sm:$0xff] }
 0x30d   :  { %2624 = vst [vmem:[%s5427_s7 + $0x430] sm:$0xff] %v2368_v53  ;;  %v2114_v11 = vadd.f32 %v1858_v61, %v1602_v5  ;;  %v2115_v14 = vadd.f32 %v1859_v62, %v1603_v6  ;;  %v897_v61 = vpop.f32.mrf.mxu2  ;;  %v1106_v62 = vpop.f32.mrf.mxu3  ;;  %v279_v5 = vmax.f32 %v215_v51, 0.0 }
 0x30e   :  { %v1346_v1 = vmul.f32 %v3104_v17, %v897_v61  ;;  %v1347_v2 = vmul.f32 %v3106_v18, %v1106_v62 }
 0x30f   :  { %v2370_v23 = vmax.f32 %v2114_v11, 0.0  ;;  %v2371_v26 = vmax.f32 %v2115_v14, 0.0  ;;  %947 = vmatmul.f32.gmra.mxu2 %v279_v5  ;;  %1156 = vmatmul.f32.gmra.mxu3 %v279_v5 }
 0x310   :  { %v1612_v11 = vadd.f32 %v3113_v24, %v1346_v1  ;;  %v1613_v14 = vadd.f32 %v3115_v25, %v1347_v2  ;;  %529 = vmatmul.f32.gmra.mxu0 %v279_v5  ;;  %738 = vmatmul.f32.gmra.mxu1 %v279_v5 }
 0x314   :  { %v1860_v7 = vld [vmem:[%s5426_s6 + $0x450] sm:$0xff]  ;;  %v1861_v8 = vld [vmem:[%s5426_s6 + $0x458] sm:$0xff] }
 0x315   :  { %2625 = vst [vmem:[%s5427_s7 + $0x438] sm:$0xff] %v2369_v54  ;;  %v2116_v19 = vadd.f32 %v1860_v7, %v1604_v9  ;;  %v2117_v20 = vadd.f32 %v1861_v8, %v1605_v10  ;;  %v80_v54 = vld [vmem:[%s5421_s0 + $0x1b0] sm:$0xff]  ;;  %v1610_v7 = vadd.f32 %v3100_v15, %v1344_v60  ;;  %v1611_v8 = vadd.f32 %v3102_v16, %v1345_v46  ;;  %v485_v60 = vpop.f32.mrf.mxu0  ;;  %v694_v46 = vpop.f32.mrf.mxu1 }
 0x316   :  { %2626 = vst [vmem:[%s5427_s7 + $0x440] sm:$0xff] %v2370_v23  ;;  %v148_v6 = vmul.f32 %v4020_v56, %v80_v54  ;;  %v1352_v61 = vmul.f32 %v3095_v12, %v485_v60  ;;  %v1353_v62 = vmul.f32 %v3097_v13, %v694_v46 }
 0x317   :  { %v2372_v28 = vmax.f32 %v2116_v19, 0.0  ;;  %v2373_v29 = vmax.f32 %v2117_v20, 0.0  ;;  %2627 = vst [vmem:[%s5427_s7 + $0x448] sm:$0xff] %v2371_v26 }
 0x318   :  { %v216_v26 = vadd.f32 %v4042_v4, %v148_v6 }
 0x31d   :  { %v488_v33 = vpop.f32.mrf.mxu0 }
 0x31e   :  { %v1862_v35 = vld [vmem:[%s5426_s6 + $0x460] sm:$0xff]  ;;  %v1863_v36 = vld [vmem:[%s5426_s6 + $0x468] sm:$0xff] }
 0x31f   :  { %2628 = vst [vmem:[%s5427_s7 + $0x450] sm:$0xff] %v2372_v28  ;;  %v2118_v48 = vadd.f32 %v1862_v35, %v1606_v41  ;;  %v2119_v49 = vadd.f32 %v1863_v36, %v1607_v42  ;;  %v900_v35 = vpop.f32.mrf.mxu2  ;;  %v1109_v36 = vpop.f32.mrf.mxu3  ;;  %v280_v41 = vmax.f32 %v216_v26, 0.0 }
 0x320   :  { %v1350_v39 = vmul.f32 %v3104_v17, %v900_v35  ;;  %v1351_v40 = vmul.f32 %v3106_v18, %v1109_v36 }
 0x321   :  { %v2374_v52 = vmax.f32 %v2118_v48, 0.0  ;;  %v2375_v53 = vmax.f32 %v2119_v49, 0.0  ;;  %950 = vmatmul.f32.gmra.mxu2 %v280_v41  ;;  %1159 = vmatmul.f32.gmra.mxu3 %v280_v41 }
 0x322   :  { %v1616_v48 = vadd.f32 %v3113_v24, %v1350_v39  ;;  %v1617_v49 = vadd.f32 %v3115_v25, %v1351_v40  ;;  %532 = vmatmul.f32.gmra.mxu0 %v280_v41  ;;  %741 = vmatmul.f32.gmra.mxu1 %v280_v41 }
 0x326   :  { %v1864_v43 = vld [vmem:[%s5426_s6 + $0x470] sm:$0xff]  ;;  %v1865_v45 = vld [vmem:[%s5426_s6 + $0x478] sm:$0xff] }
 0x327   :  { %2629 = vst [vmem:[%s5427_s7 + $0x458] sm:$0xff] %v2373_v29  ;;  %v2120_v50 = vadd.f32 %v1864_v43, %v1608_v44  ;;  %v2121_v21 = vadd.f32 %v1865_v45, %v1609_v47  ;;  %v81_v29 = vld [vmem:[%s5421_s0 + $0x1b8] sm:$0xff]  ;;  %v1614_v43 = vadd.f32 %v3100_v15, %v1348_v3  ;;  %v1615_v45 = vadd.f32 %v3102_v16, %v1349_v34  ;;  %v697_v3 = vpop.f32.mrf.mxu1 }
 0x328   :  { %2630 = vst [vmem:[%s5427_s7 + $0x460] sm:$0xff] %v2374_v52  ;;  %v149_v42 = vmul.f32 %v4020_v56, %v81_v29  ;;  %v1356_v34 = vmul.f32 %v3095_v12, %v488_v33  ;;  %v1357_v35 = vmul.f32 %v3097_v13, %v697_v3 }
 0x329   :  { %v2376_v55 = vmax.f32 %v2120_v50, 0.0  ;;  %v2377_v57 = vmax.f32 %v2121_v21, 0.0  ;;  %2631 = vst [vmem:[%s5427_s7 + $0x468] sm:$0xff] %v2375_v53 }
 0x32a   :  { %v217_v53 = vadd.f32 %v4042_v4, %v149_v42  ;;  %v4585_v42 = vld [vmem:[%s5422_s1] ss:$0 sm:$0xff] }
 0x330   :  { %v1866_v63 = vld [vmem:[%s5426_s6 + $0x480] sm:$0xff]  ;;  %v1867_v0 = vld [vmem:[%s5426_s6 + $0x488] sm:$0xff] }
 0x331   :  { %2632 = vst [vmem:[%s5427_s7 + $0x470] sm:$0xff] %v2376_v55  ;;  %v2122_v19 = vadd.f32 %v1866_v63, %v1610_v7  ;;  %v2123_v20 = vadd.f32 %v1867_v0, %v1611_v8  ;;  %v903_v63 = vpop.f32.mrf.mxu2  ;;  %v1112_v0 = vpop.f32.mrf.mxu3  ;;  %v281_v7 = vmax.f32 %v217_v53, 0.0 }
 0x332   :  { %v1354_v5 = vmul.f32 %v3104_v17, %v903_v63  ;;  %v1355_v6 = vmul.f32 %v3106_v18, %v1112_v0 }
 0x333   :  { %v2378_v27 = vmax.f32 %v2122_v19, 0.0  ;;  %v2379_v28 = vmax.f32 %v2123_v20, 0.0  ;;  %953 = vmatmul.f32.gmra.mxu2 %v281_v7  ;;  %1162 = vmatmul.f32.gmra.mxu3 %v281_v7 }
 0x334   :  { %v1621_v19 = vadd.f32 %v3115_v25, %v1355_v6  ;;  %535 = vmatmul.f32.gmra.mxu0 %v281_v7  ;;  %744 = vmatmul.f32.gmra.mxu1 %v281_v7 }
 0x338   :  { %v1868_v9 = vld [vmem:[%s5426_s6 + $0x490] sm:$0xff]  ;;  %v1869_v10 = vld [vmem:[%s5426_s6 + $0x498] sm:$0xff] }
 0x339   :  { %2633 = vst [vmem:[%s5427_s7 + $0x478] sm:$0xff] %v2377_v57  ;;  %v2124_v22 = vadd.f32 %v1868_v9, %v1612_v11  ;;  %v2125_v23 = vadd.f32 %v1869_v10, %v1613_v14  ;;  %v82_v57 = vld [vmem:[%s5421_s0 + $0x1c0] sm:$0xff]  ;;  %v1618_v9 = vadd.f32 %v3100_v15, %v1352_v61  ;;  %v1619_v10 = vadd.f32 %v3102_v16, %v1353_v62  ;;  %v906_v36 = vpop.f32.mrf.mxu2  ;;  %v491_v61 = vpop.f32.mrf.mxu0 }
 0x33a   :  { %2634 = vst [vmem:[%s5427_s7 + $0x480] sm:$0xff] %v2378_v27  ;;  %v150_v8 = vmul.f32 %v4020_v56, %v82_v57  ;;  %v1620_v56 = vadd.f32 %v3113_v24, %v1354_v5  ;;  %v1358_v39 = vmul.f32 %v3104_v17, %v906_v36  ;;  %v700_v62 = vpop.f32.mrf.mxu1  ;;  %v1360_v63 = vmul.f32 %v3095_v12, %v491_v61 }
 0x33b   :  { %v2380_v30 = vmax.f32 %v2124_v22, 0.0  ;;  %v2381_v31 = vmax.f32 %v2125_v23, 0.0  ;;  %2635 = vst [vmem:[%s5427_s7 + $0x488] sm:$0xff] %v2379_v28  ;;  %v1361_v0 = vmul.f32 %v3097_v13, %v700_v62 }
 0x33c   :  { %v218_v27 = vadd.f32 %v4042_v4, %v150_v8  ;;  %v1115_v4 = vpop.f32.mrf.mxu3 }
 0x33d   :  { %v1359_v40 = vmul.f32 %v3106_v18, %v1115_v4 }
 0x33e   :  { %v282_v41 = vmax.f32 %v218_v27, 0.0 }
 0x340   :  { %956 = vmatmul.f32.gmra.mxu2 %v282_v41  ;;  %1165 = vmatmul.f32.gmra.mxu3 %v282_v41 }
 0x341   :  { %538 = vmatmul.f32.gmra.mxu0 %v282_v41  ;;  %747 = vmatmul.f32.gmra.mxu1 %v282_v41 }
 0x342   :  { %v1870_v37 = vld [vmem:[%s5426_s6 + $0x4a0] sm:$0xff]  ;;  %v1871_v38 = vld [vmem:[%s5426_s6 + $0x4a8] sm:$0xff] }
 0x343   :  { %2636 = vst [vmem:[%s5427_s7 + $0x490] sm:$0xff] %v2380_v30  ;;  %v2126_v50 = vadd.f32 %v1870_v37, %v1614_v43  ;;  %v2127_v21 = vadd.f32 %v1871_v38, %v1615_v45  ;;  %v83_v30 = vld [vmem:[%s5421_s0 + $0x1c8] sm:$0xff]  ;;  %v1622_v45 = vadd.f32 %v3100_v15, %v1356_v34  ;;  %v494_v34 = vpop.f32.mrf.mxu0 }
 0x344   :  { %v151_v43 = vmul.f32 %v4585_v42, %v83_v30  ;;  %v1364_v36 = vmul.f32 %v3095_v12, %v494_v34 }
 0x345   :  { %v2382_v54 = vmax.f32 %v2126_v50, 0.0  ;;  %v2383_v55 = vmax.f32 %v2127_v21, 0.0  ;;  %v1625_v50 = vadd.f32 %v3115_v25, %v1359_v40 }
 0x34a   :  { %v1872_v44 = vld [vmem:[%s5426_s6 + $0x4b0] sm:$0xff]  ;;  %v1873_v47 = vld [vmem:[%s5426_s6 + $0x4b8] sm:$0xff] }
 0x34b   :  { %2637 = vst [vmem:[%s5427_s7 + $0x498] sm:$0xff] %v2381_v31  ;;  %v2128_v51 = vadd.f32 %v1872_v44, %v1616_v48  ;;  %v2129_v52 = vadd.f32 %v1873_v47, %v1617_v49  ;;  %v1623_v44 = vadd.f32 %v3102_v16, %v1357_v35  ;;  %v1624_v49 = vadd.f32 %v3113_v24, %v1358_v39  ;;  %v703_v35 = vpop.f32.mrf.mxu1 }
 0x34c   :  { %2638 = vst [vmem:[%s5427_s7 + $0x4a0] sm:$0xff] %v2382_v54  ;;  %v4607_v54 = vld [vmem:[%s5423_s2] ss:$0 sm:$0xff]  ;;  %v1365_v4 = vmul.f32 %v3097_v13, %v703_v35 }
 0x34d   :  { %v2384_v58 = vmax.f32 %v2128_v51, 0.0  ;;  %v2385_v59 = vmax.f32 %v2129_v52, 0.0  ;;  %2639 = vst [vmem:[%s5427_s7 + $0x4a8] sm:$0xff] %v2383_v55  ;;  %v219_v55 = vadd.f32 %v4607_v54, %v151_v43 }
 0x354   :  { %v1874_v1 = vld [vmem:[%s5426_s6 + $0x4c0] sm:$0xff]  ;;  %v1875_v2 = vld [vmem:[%s5426_s6 + $0x4c8] sm:$0xff] }
 0x355   :  { %2640 = vst [vmem:[%s5427_s7 + $0x4b0] sm:$0xff] %v2384_v58  ;;  %v2130_v20 = vadd.f32 %v1874_v1, %v1618_v9  ;;  %v2131_v22 = vadd.f32 %v1875_v2, %v1619_v10  ;;  %v909_v1 = vpop.f32.mrf.mxu2  ;;  %v1118_v2 = vpop.f32.mrf.mxu3  ;;  %v283_v9 = vmax.f32 %v219_v55, 0.0 }
 0x356   :  { %v1362_v7 = vmul.f32 %v3104_v17, %v909_v1  ;;  %v1363_v8 = vmul.f32 %v3106_v18, %v1118_v2 }
 0x357   :  { %v2386_v28 = vmax.f32 %v2130_v20, 0.0  ;;  %v2387_v29 = vmax.f32 %v2131_v22, 0.0  ;;  %959 = vmatmul.f32.gmra.mxu2 %v283_v9  ;;  %1168 = vmatmul.f32.gmra.mxu3 %v283_v9 }
 0x358   :  { %v1628_v20 = vadd.f32 %v3113_v24, %v1362_v7  ;;  %v1629_v22 = vadd.f32 %v3115_v25, %v1363_v8  ;;  %541 = vmatmul.f32.gmra.mxu0 %v283_v9  ;;  %750 = vmatmul.f32.gmra.mxu1 %v283_v9 }
 0x35c   :  { %v1876_v11 = vld [vmem:[%s5426_s6 + $0x4d0] sm:$0xff]  ;;  %v1877_v14 = vld [vmem:[%s5426_s6 + $0x4d8] sm:$0xff] }
 0x35d   :  { %2641 = vst [vmem:[%s5427_s7 + $0x4b8] sm:$0xff] %v2385_v59  ;;  %v2132_v23 = vadd.f32 %v1876_v11, %v1620_v56  ;;  %v2133_v26 = vadd.f32 %v1877_v14, %v1621_v19  ;;  %v84_v59 = vld [vmem:[%s5421_s0 + $0x1d0] sm:$0xff]  ;;  %v1626_v11 = vadd.f32 %v3100_v15, %v1360_v63  ;;  %v1627_v14 = vadd.f32 %v3102_v16, %v1361_v0  ;;  %v497_v63 = vpop.f32.mrf.mxu0  ;;  %v706_v0 = vpop.f32.mrf.mxu1 }
 0x35e   :  { %2642 = vst [vmem:[%s5427_s7 + $0x4c0] sm:$0xff] %v2386_v28  ;;  %v152_v10 = vmul.f32 %v4585_v42, %v84_v59  ;;  %v1368_v1 = vmul.f32 %v3095_v12, %v497_v63  ;;  %v1369_v2 = vmul.f32 %v3097_v13, %v706_v0 }
 0x35f   :  { %v2388_v31 = vmax.f32 %v2132_v23, 0.0  ;;  %v2389_v32 = vmax.f32 %v2133_v26, 0.0  ;;  %2643 = vst [vmem:[%s5427_s7 + $0x4c8] sm:$0xff] %v2387_v29 }
 0x360   :  { %v220_v29 = vadd.f32 %v4607_v54, %v152_v10 }
 0x366   :  { %v1878_v37 = vld [vmem:[%s5426_s6 + $0x4e0] sm:$0xff]  ;;  %v1879_v38 = vld [vmem:[%s5426_s6 + $0x4e8] sm:$0xff] }
 0x367   :  { %2644 = vst [vmem:[%s5427_s7 + $0x4d0] sm:$0xff] %v2388_v31  ;;  %v2134_v21 = vadd.f32 %v1878_v37, %v1622_v45  ;;  %v2135_v51 = vadd.f32 %v1879_v38, %v1623_v44  ;;  %v912_v37 = vpop.f32.mrf.mxu2  ;;  %v1121_v38 = vpop.f32.mrf.mxu3  ;;  %v284_v45 = vmax.f32 %v220_v29, 0.0 }
 0x368   :  { %v1366_v41 = vmul.f32 %v3104_v17, %v912_v37  ;;  %v1367_v43 = vmul.f32 %v3106_v18, %v1121_v38 }
 0x369   :  { %v2390_v57 = vmax.f32 %v2134_v21, 0.0  ;;  %v2391_v58 = vmax.f32 %v2135_v51, 0.0  ;;  %962 = vmatmul.f32.gmra.mxu2 %v284_v45  ;;  %1171 = vmatmul.f32.gmra.mxu3 %v284_v45 }
 0x36a   :  { %v1632_v21 = vadd.f32 %v3113_v24, %v1366_v41  ;;  %v1633_v51 = vadd.f32 %v3115_v25, %v1367_v43  ;;  %544 = vmatmul.f32.gmra.mxu0 %v284_v45  ;;  %753 = vmatmul.f32.gmra.mxu1 %v284_v45 }
 0x36e   :  { %v1880_v47 = vld [vmem:[%s5426_s6 + $0x4f0] sm:$0xff]  ;;  %v1881_v48 = vld [vmem:[%s5426_s6 + $0x4f8] sm:$0xff] }
 0x36f   :  { %2645 = vst [vmem:[%s5427_s7 + $0x4d8] sm:$0xff] %v2389_v32  ;;  %v2136_v52 = vadd.f32 %v1880_v47, %v1624_v49  ;;  %v2137_v53 = vadd.f32 %v1881_v48, %v1625_v50  ;;  %v85_v32 = vld [vmem:[%s5421_s0 + $0x1d8] sm:$0xff]  ;;  %v1630_v47 = vadd.f32 %v3100_v15, %v1364_v36  ;;  %v1631_v48 = vadd.f32 %v3102_v16, %v1365_v4  ;;  %v500_v36 = vpop.f32.mrf.mxu0  ;;  %v709_v4 = vpop.f32.mrf.mxu1 }
 0x370   :  { %2646 = vst [vmem:[%s5427_s7 + $0x4e0] sm:$0xff] %v2390_v57  ;;  %v153_v44 = vmul.f32 %v4585_v42, %v85_v32  ;;  %v1372_v37 = vmul.f32 %v3095_v12, %v500_v36  ;;  %v1373_v38 = vmul.f32 %v3097_v13, %v709_v4 }
 0x371   :  { %v2392_v60 = vmax.f32 %v2136_v52, 0.0  ;;  %v2393_v46 = vmax.f32 %v2137_v53, 0.0  ;;  %2647 = vst [vmem:[%s5427_s7 + $0x4e8] sm:$0xff] %v2391_v58 }
 0x372   :  { %v221_v58 = vadd.f32 %v4607_v54, %v153_v44 }
 0x378   :  { %v1882_v5 = vld [vmem:[%s5426_s6 + $0x500] sm:$0xff]  ;;  %v1883_v6 = vld [vmem:[%s5426_s6 + $0x508] sm:$0xff] }
 0x379   :  { %2648 = vst [vmem:[%s5427_s7 + $0x4f0] sm:$0xff] %v2392_v60  ;;  %v2138_v23 = vadd.f32 %v1882_v5, %v1626_v11  ;;  %v2139_v26 = vadd.f32 %v1883_v6, %v1627_v14  ;;  %v915_v5 = vpop.f32.mrf.mxu2  ;;  %v1124_v6 = vpop.f32.mrf.mxu3  ;;  %v285_v11 = vmax.f32 %v221_v58, 0.0 }
 0x37a   :  { %v1370_v9 = vmul.f32 %v3104_v17, %v915_v5  ;;  %v1371_v10 = vmul.f32 %v3106_v18, %v1124_v6 }
 0x37b   :  { %v2394_v30 = vmax.f32 %v2138_v23, 0.0  ;;  %v2395_v31 = vmax.f32 %v2139_v26, 0.0  ;;  %965 = vmatmul.f32.gmra.mxu2 %v285_v11  ;;  %1174 = vmatmul.f32.gmra.mxu3 %v285_v11 }
 0x37c   :  { %v1636_v23 = vadd.f32 %v3113_v24, %v1370_v9  ;;  %v1637_v26 = vadd.f32 %v3115_v25, %v1371_v10  ;;  %547 = vmatmul.f32.gmra.mxu0 %v285_v11  ;;  %756 = vmatmul.f32.gmra.mxu1 %v285_v11 }
 0x380   :  { %v1884_v56 = vld [vmem:[%s5426_s6 + $0x510] sm:$0xff]  ;;  %v1885_v19 = vld [vmem:[%s5426_s6 + $0x518] sm:$0xff] }
 0x381   :  { %2649 = vst [vmem:[%s5427_s7 + $0x4f8] sm:$0xff] %v2393_v46  ;;  %v2140_v27 = vadd.f32 %v1884_v56, %v1628_v20  ;;  %v2141_v28 = vadd.f32 %v1885_v19, %v1629_v22  ;;  %v86_v46 = vld [vmem:[%s5421_s0 + $0x1e0] sm:$0xff]  ;;  %v1634_v56 = vadd.f32 %v3100_v15, %v1368_v1  ;;  %v1635_v19 = vadd.f32 %v3102_v16, %v1369_v2  ;;  %v503_v1 = vpop.f32.mrf.mxu0  ;;  %v712_v2 = vpop.f32.mrf.mxu1 }
 0x382   :  { %2650 = vst [vmem:[%s5427_s7 + $0x500] sm:$0xff] %v2394_v30  ;;  %v154_v14 = vmul.f32 %v4585_v42, %v86_v46  ;;  %v1376_v5 = vmul.f32 %v3095_v12, %v503_v1  ;;  %v1377_v6 = vmul.f32 %v3097_v13, %v712_v2 }
 0x383   :  { %v2396_v33 = vmax.f32 %v2140_v27, 0.0  ;;  %v2397_v3 = vmax.f32 %v2141_v28, 0.0  ;;  %2651 = vst [vmem:[%s5427_s7 + $0x508] sm:$0xff] %v2395_v31 }
 0x384   :  { %v222_v31 = vadd.f32 %v4607_v54, %v154_v14 }
 0x38a   :  { %v1886_v39 = vld [vmem:[%s5426_s6 + $0x520] sm:$0xff]  ;;  %v1887_v40 = vld [vmem:[%s5426_s6 + $0x528] sm:$0xff] }
 0x38b   :  { %2652 = vst [vmem:[%s5427_s7 + $0x510] sm:$0xff] %v2396_v33  ;;  %v2142_v52 = vadd.f32 %v1886_v39, %v1630_v47  ;;  %v2143_v53 = vadd.f32 %v1887_v40, %v1631_v48  ;;  %v918_v39 = vpop.f32.mrf.mxu2  ;;  %v1127_v40 = vpop.f32.mrf.mxu3  ;;  %v286_v47 = vmax.f32 %v222_v31, 0.0 }
 0x38c   :  { %v1374_v45 = vmul.f32 %v3104_v17, %v918_v39  ;;  %v1375_v44 = vmul.f32 %v3106_v18, %v1127_v40 }
 0x38d   :  { %v2398_v59 = vmax.f32 %v2142_v52, 0.0  ;;  %v2399_v60 = vmax.f32 %v2143_v53, 0.0  ;;  %968 = vmatmul.f32.gmra.mxu2 %v286_v47  ;;  %1177 = vmatmul.f32.gmra.mxu3 %v286_v47 }
 0x38e   :  { %v1640_v52 = vadd.f32 %v3113_v24, %v1374_v45  ;;  %v1641_v53 = vadd.f32 %v3115_v25, %v1375_v44  ;;  %550 = vmatmul.f32.gmra.mxu0 %v286_v47  ;;  %759 = vmatmul.f32.gmra.mxu1 %v286_v47 }
 0x392   :  { %v1888_v49 = vld [vmem:[%s5426_s6 + $0x530] sm:$0xff]  ;;  %v1889_v50 = vld [vmem:[%s5426_s6 + $0x538] sm:$0xff] }
 0x393   :  { %2653 = vst [vmem:[%s5427_s7 + $0x518] sm:$0xff] %v2397_v3  ;;  %v2144_v55 = vadd.f32 %v1888_v49, %v1632_v21  ;;  %v2145_v57 = vadd.f32 %v1889_v50, %v1633_v51  ;;  %v87_v3 = vld [vmem:[%s5421_s0 + $0x1e8] sm:$0xff]  ;;  %v1638_v49 = vadd.f32 %v3100_v15, %v1372_v37  ;;  %v1639_v50 = vadd.f32 %v3102_v16, %v1373_v38  ;;  %v506_v37 = vpop.f32.mrf.mxu0  ;;  %v715_v38 = vpop.f32.mrf.mxu1 }
 0x394   :  { %2654 = vst [vmem:[%s5427_s7 + $0x520] sm:$0xff] %v2398_v59  ;;  %v155_v48 = vmul.f32 %v4585_v42, %v87_v3  ;;  %v1380_v39 = vmul.f32 %v3095_v12, %v506_v37  ;;  %v1381_v40 = vmul.f32 %v3097_v13, %v715_v38 }
 0x395   :  { %v2400_v61 = vmax.f32 %v2144_v55, 0.0  ;;  %v2401_v62 = vmax.f32 %v2145_v57, 0.0  ;;  %2655 = vst [vmem:[%s5427_s7 + $0x528] sm:$0xff] %v2399_v60 }
 0x396   :  { %v223_v60 = vadd.f32 %v4607_v54, %v155_v48 }
 0x39b   :  { %v509_v1 = vpop.f32.mrf.mxu0  ;;  %v718_v2 = vpop.f32.mrf.mxu1 }
 0x39c   :  { %v1890_v7 = vld [vmem:[%s5426_s6 + $0x540] sm:$0xff]  ;;  %v1891_v8 = vld [vmem:[%s5426_s6 + $0x548] sm:$0xff] }
 0x39d   :  { %2656 = vst [vmem:[%s5427_s7 + $0x530] sm:$0xff] %v2400_v61  ;;  %v2146_v27 = vadd.f32 %v1890_v7, %v1634_v56  ;;  %v2147_v28 = vadd.f32 %v1891_v8, %v1635_v19  ;;  %v921_v7 = vpop.f32.mrf.mxu2  ;;  %v1130_v8 = vpop.f32.mrf.mxu3  ;;  %v287_v56 = vmax.f32 %v223_v60, 0.0 }
 0x39e   :  { %v1378_v11 = vmul.f32 %v3104_v17, %v921_v7  ;;  %v1379_v14 = vmul.f32 %v3106_v18, %v1130_v8 }
 0x39f   :  { %v2402_v32 = vmax.f32 %v2146_v27, 0.0  ;;  %v2403_v33 = vmax.f32 %v2147_v28, 0.0  ;;  %971 = vmatmul.f32.gmra.mxu2 %v287_v56  ;;  %1180 = vmatmul.f32.gmra.mxu3 %v287_v56 }
 0x3a0   :  { %v1644_v27 = vadd.f32 %v3113_v24, %v1378_v11  ;;  %v1645_v28 = vadd.f32 %v3115_v25, %v1379_v14  ;;  %553 = vmatmul.f32.gmra.mxu0 %v287_v56  ;;  %762 = vmatmul.f32.gmra.mxu1 %v287_v56 }
 0x3a4   :  { %v1892_v20 = vld [vmem:[%s5426_s6 + $0x550] sm:$0xff]  ;;  %v1893_v22 = vld [vmem:[%s5426_s6 + $0x558] sm:$0xff] }
 0x3a5   :  { %2657 = vst [vmem:[%s5427_s7 + $0x538] sm:$0xff] %v2401_v62  ;;  %v2148_v29 = vadd.f32 %v1892_v20, %v1636_v23  ;;  %v2149_v30 = vadd.f32 %v1893_v22, %v1637_v26  ;;  %v88_v62 = vld [vmem:[%s5421_s0 + $0x1f0] sm:$0xff]  ;;  %v1642_v20 = vadd.f32 %v3100_v15, %v1376_v5  ;;  %v1643_v22 = vadd.f32 %v3102_v16, %v1377_v6 }
 0x3a6   :  { %2658 = vst [vmem:[%s5427_s7 + $0x540] sm:$0xff] %v2402_v32  ;;  %v156_v19 = vmul.f32 %v4585_v42, %v88_v62  ;;  %v1384_v5 = vmul.f32 %v3095_v12, %v509_v1  ;;  %v1385_v6 = vmul.f32 %v3097_v13, %v718_v2 }
 0x3a7   :  { %v2404_v34 = vmax.f32 %v2148_v29, 0.0  ;;  %v2405_v35 = vmax.f32 %v2149_v30, 0.0  ;;  %2659 = vst [vmem:[%s5427_s7 + $0x548] sm:$0xff] %v2403_v33 }
 0x3a8   :  { %v224_v33 = vadd.f32 %v4607_v54, %v156_v19  ;;  %v1650_v56 = vadd.f32 %v3100_v15, %v1384_v5  ;;  %v1651_v19 = vadd.f32 %v3102_v16, %v1385_v6 }
 0x3ae   :  { %v1894_v41 = vld [vmem:[%s5426_s6 + $0x560] sm:$0xff]  ;;  %v1895_v43 = vld [vmem:[%s5426_s6 + $0x568] sm:$0xff] }
 0x3af   :  { %2660 = vst [vmem:[%s5427_s7 + $0x550] sm:$0xff] %v2404_v34  ;;  %v2150_v55 = vadd.f32 %v1894_v41, %v1638_v49  ;;  %v2151_v57 = vadd.f32 %v1895_v43, %v1639_v50  ;;  %v924_v41 = vpop.f32.mrf.mxu2  ;;  %v1133_v43 = vpop.f32.mrf.mxu3  ;;  %v288_v49 = vmax.f32 %v224_v33, 0.0 }
 0x3b0   :  { %v1382_v47 = vmul.f32 %v3104_v17, %v924_v41  ;;  %v1383_v48 = vmul.f32 %v3106_v18, %v1133_v43 }
 0x3b1   :  { %v2406_v46 = vmax.f32 %v2150_v55, 0.0  ;;  %v2407_v61 = vmax.f32 %v2151_v57, 0.0  ;;  %974 = vmatmul.f32.gmra.mxu2 %v288_v49  ;;  %1183 = vmatmul.f32.gmra.mxu3 %v288_v49 }
 0x3b2   :  { %v1649_v55 = vadd.f32 %v3115_v25, %v1383_v48  ;;  %556 = vmatmul.f32.gmra.mxu0 %v288_v49  ;;  %765 = vmatmul.f32.gmra.mxu1 %v288_v49 }
 0x3b6   :  { %v1896_v21 = vld [vmem:[%s5426_s6 + $0x570] sm:$0xff]  ;;  %v1897_v51 = vld [vmem:[%s5426_s6 + $0x578] sm:$0xff] }
 0x3b7   :  { %2661 = vst [vmem:[%s5427_s7 + $0x558] sm:$0xff] %v2405_v35  ;;  %v2152_v58 = vadd.f32 %v1896_v21, %v1640_v52  ;;  %v2153_v59 = vadd.f32 %v1897_v51, %v1641_v53  ;;  %v89_v35 = vld [vmem:[%s5421_s0 + $0x1f8] sm:$0xff]  ;;  %v1646_v21 = vadd.f32 %v3100_v15, %v1380_v39  ;;  %v1647_v51 = vadd.f32 %v3102_v16, %v1381_v40  ;;  %v927_v7 = vpop.f32.mrf.mxu2  ;;  %v1136_v8 = vpop.f32.mrf.mxu3 }
 0x3b8   :  { %2662 = vst [vmem:[%s5427_s7 + $0x560] sm:$0xff] %v2406_v46  ;;  %v157_v50 = vmul.f32 %v4585_v42, %v89_v35  ;;  %v1648_v42 = vadd.f32 %v3113_v24, %v1382_v47  ;;  %v1387_v11 = vmul.f32 %v3106_v18, %v1136_v8  ;;  %v721_v35 = vpop.f32.mrf.mxu1 }
 0x3b9   :  { %v2408_v63 = vmax.f32 %v2152_v58, 0.0  ;;  %v2409_v0 = vmax.f32 %v2153_v59, 0.0  ;;  %2663 = vst [vmem:[%s5427_s7 + $0x568] sm:$0xff] %v2407_v61 }
 0x3ba   :  { %v225_v46 = vadd.f32 %v4607_v54, %v157_v50 }
 0x3bc   :  { %v289_v14 = vmax.f32 %v225_v46, 0.0 }
 0x3be   :  { %977 = vmatmul.f32.gmra.mxu2 %v289_v14  ;;  %1186 = vmatmul.f32.gmra.mxu3 %v289_v14 }
 0x3bf   :  { %v930_v37 = vpop.f32.mrf.mxu2  ;;  %v1139_v38 = vpop.f32.mrf.mxu3  ;;  %559 = vmatmul.f32.gmra.mxu0 %v289_v14  ;;  %768 = vmatmul.f32.gmra.mxu1 %v289_v14 }
 0x3c0   :  { %v1898_v9 = vld [vmem:[%s5426_s6 + $0x580] sm:$0xff]  ;;  %v1899_v10 = vld [vmem:[%s5426_s6 + $0x588] sm:$0xff]  ;;  %v1390_v41 = vmul.f32 %v3104_v17, %v930_v37  ;;  %v1391_v43 = vmul.f32 %v3106_v18, %v1139_v38 }
 0x3c1   :  { %2664 = vst [vmem:[%s5427_s7 + $0x570] sm:$0xff] %v2408_v63  ;;  %v2154_v29 = vadd.f32 %v1898_v9, %v1642_v20  ;;  %v2155_v30 = vadd.f32 %v1899_v10, %v1643_v22  ;;  %v1386_v10 = vmul.f32 %v3104_v17, %v927_v7 }
 0x3c2   :  { %v1656_v49 = vadd.f32 %v3113_v24, %v1390_v41  ;;  %v1657_v50 = vadd.f32 %v3115_v25, %v1391_v43 }
 0x3c3   :  { %v2410_v3 = vmax.f32 %v2154_v29, 0.0  ;;  %v2411_v34 = vmax.f32 %v2155_v30, 0.0 }
 0x3c8   :  { %v1900_v23 = vld [vmem:[%s5426_s6 + $0x590] sm:$0xff]  ;;  %v1901_v26 = vld [vmem:[%s5426_s6 + $0x598] sm:$0xff] }
 0x3c9   :  { %2665 = vst [vmem:[%s5427_s7 + $0x578] sm:$0xff] %v2409_v0  ;;  %v2156_v31 = vadd.f32 %v1900_v23, %v1644_v27  ;;  %v2157_v32 = vadd.f32 %v1901_v26, %v1645_v28  ;;  %v1652_v23 = vadd.f32 %v3113_v24, %v1386_v10  ;;  %v1653_v26 = vadd.f32 %v3115_v25, %v1387_v11 }
 0x3ca   :  { %2666 = vst [vmem:[%s5427_s7 + $0x580] sm:$0xff] %v2410_v3 }
 0x3cb   :  { %v2412_v36 = vmax.f32 %v2156_v31, 0.0  ;;  %v2413_v4 = vmax.f32 %v2157_v32, 0.0  ;;  %2667 = vst [vmem:[%s5427_s7 + $0x588] sm:$0xff] %v2411_v34  ;;  %v512_v34 = vpop.f32.mrf.mxu0 }
 0x3d2   :  { %v1902_v45 = vld [vmem:[%s5426_s6 + $0x5a0] sm:$0xff]  ;;  %v1903_v44 = vld [vmem:[%s5426_s6 + $0x5a8] sm:$0xff] }
 0x3d3   :  { %2668 = vst [vmem:[%s5427_s7 + $0x590] sm:$0xff] %v2412_v36  ;;  %v2158_v57 = vadd.f32 %v1902_v45, %v1646_v21  ;;  %v2159_v58 = vadd.f32 %v1903_v44, %v1647_v51  ;;  %v1388_v36 = vmul.f32 %v3095_v12, %v512_v34 }
 0x3d5   :  { %v2414_v61 = vmax.f32 %v2158_v57, 0.0  ;;  %v2415_v62 = vmax.f32 %v2159_v58, 0.0  ;;  %v1654_v45 = vadd.f32 %v3100_v15, %v1388_v36 }
 0x3da   :  { %v1904_v52 = vld [vmem:[%s5426_s6 + $0x5b0] sm:$0xff]  ;;  %v1905_v53 = vld [vmem:[%s5426_s6 + $0x5b8] sm:$0xff] }
 0x3db   :  { %2669 = vst [vmem:[%s5427_s7 + $0x598] sm:$0xff] %v2413_v4  ;;  %v2160_v59 = vadd.f32 %v1904_v52, %v1648_v42  ;;  %v2161_v60 = vadd.f32 %v1905_v53, %v1649_v55  ;;  %v1389_v4 = vmul.f32 %v3097_v13, %v721_v35 }
 0x3dc   :  { %2670 = vst [vmem:[%s5427_s7 + $0x5a0] sm:$0xff] %v2414_v61 }
 0x3dd   :  { %v2416_v63 = vmax.f32 %v2160_v59, 0.0  ;;  %v2417_v0 = vmax.f32 %v2161_v60, 0.0  ;;  %2671 = vst [vmem:[%s5427_s7 + $0x5a8] sm:$0xff] %v2415_v62  ;;  %v1655_v44 = vadd.f32 %v3102_v16, %v1389_v4  ;;  %v515_v59 = vpop.f32.mrf.mxu0  ;;  %v724_v60 = vpop.f32.mrf.mxu1 }
 0x3de   :  { %v1392_v46 = vmul.f32 %v3095_v12, %v515_v59  ;;  %v1393_v61 = vmul.f32 %v3097_v13, %v724_v60  ;;  %v933_v62 = vpop.f32.mrf.mxu2 }
 0x3df   :  { %v1394_v2 = vmul.f32 %v3104_v17, %v933_v62 }
 0x3e0   :  { %v1658_v6 = vadd.f32 %v3100_v15, %v1392_v46  ;;  %v1659_v7 = vadd.f32 %v3102_v16, %v1393_v61 }
 0x3e4   :  { %v1906_v54 = vld [vmem:[%s5426_s6 + $0x5c0] sm:$0xff]  ;;  %v1907_v9 = vld [vmem:[%s5426_s6 + $0x5c8] sm:$0xff] }
 0x3e5   :  { %2672 = vst [vmem:[%s5427_s7 + $0x5b0] sm:$0xff] %v2416_v63  ;;  %v2162_v27 = vadd.f32 %v1906_v54, %v1650_v56  ;;  %v2163_v28 = vadd.f32 %v1907_v9, %v1651_v19  ;;  %v1142_v63 = vpop.f32.mrf.mxu3  ;;  %v1660_v9 = vadd.f32 %v3113_v24, %v1394_v2 }
 0x3e6   :  { %v1395_v5 = vmul.f32 %v3106_v18, %v1142_v63 }
 0x3e7   :  { %v2418_v31 = vmax.f32 %v2162_v27, 0.0  ;;  %v2419_v32 = vmax.f32 %v2163_v28, 0.0  ;;  %v518_v27 = vpop.f32.mrf.mxu0  ;;  %v727_v28 = vpop.f32.mrf.mxu1 }
 0x3e8   :  { %v1661_v10 = vadd.f32 %v3115_v25, %v1395_v5 }
 0x3ec   :  { %v1908_v20 = vld [vmem:[%s5426_s6 + $0x5d0] sm:$0xff]  ;;  %v1909_v22 = vld [vmem:[%s5426_s6 + $0x5d8] sm:$0xff] }
 0x3ed   :  { %2673 = vst [vmem:[%s5427_s7 + $0x5b8] sm:$0xff] %v2417_v0  ;;  %v2164_v29 = vadd.f32 %v1908_v20, %v1652_v23  ;;  %v2165_v30 = vadd.f32 %v1909_v22, %v1653_v26 }
 0x3ee   :  { %2674 = vst [vmem:[%s5427_s7 + $0x5c0] sm:$0xff] %v2418_v31  ;;  %v936_v31 = vpop.f32.mrf.mxu2 }
 0x3ef   :  { %v2420_v33 = vmax.f32 %v2164_v29, 0.0  ;;  %v2421_v3 = vmax.f32 %v2165_v30, 0.0  ;;  %2675 = vst [vmem:[%s5427_s7 + $0x5c8] sm:$0xff] %v2419_v32  ;;  %v1396_v29 = vmul.f32 %v3095_v12, %v518_v27  ;;  %v1397_v30 = vmul.f32 %v3097_v13, %v727_v28  ;;  %v1145_v32 = vpop.f32.mrf.mxu3 }
 0x3f0   :  { %v1398_v34 = vmul.f32 %v3104_v17, %v936_v31  ;;  %v1399_v35 = vmul.f32 %v3106_v18, %v1145_v32 }
 0x3f1   :  { %v1662_v36 = vadd.f32 %v3100_v15, %v1396_v29  ;;  %v1663_v4 = vadd.f32 %v3102_v16, %v1397_v30 }
 0x3f6   :  { %v1910_v39 = vld [vmem:[%s5426_s6 + $0x5e0] sm:$0xff]  ;;  %v1911_v40 = vld [vmem:[%s5426_s6 + $0x5e8] sm:$0xff] }
 0x3f7   :  { %2676 = vst [vmem:[%s5427_s7 + $0x5d0] sm:$0xff] %v2420_v33  ;;  %v2166_v21 = vadd.f32 %v1910_v39, %v1654_v45  ;;  %v2167_v51 = vadd.f32 %v1911_v40, %v1655_v44  ;;  %v1664_v39 = vadd.f32 %v3113_v24, %v1398_v34  ;;  %v1665_v40 = vadd.f32 %v3115_v25, %v1399_v35 }
 0x3f9   :  { %v2422_v42 = vmax.f32 %v2166_v21, 0.0  ;;  %v2423_v55 = vmax.f32 %v2167_v51, 0.0  ;;  %v521_v21 = vpop.f32.mrf.mxu0  ;;  %v730_v51 = vpop.f32.mrf.mxu1 }
 0x3fe   :  { %v1912_v47 = vld [vmem:[%s5426_s6 + $0x5f0] sm:$0xff]  ;;  %v1913_v48 = vld [vmem:[%s5426_s6 + $0x5f8] sm:$0xff] }
 0x3ff   :  { %2677 = vst [vmem:[%s5427_s7 + $0x5d8] sm:$0xff] %v2421_v3  ;;  %v2168_v52 = vadd.f32 %v1912_v47, %v1656_v49  ;;  %v2169_v53 = vadd.f32 %v1913_v48, %v1657_v50 }
 0x400   :  { %2678 = vst [vmem:[%s5427_s7 + $0x5e0] sm:$0xff] %v2422_v42  ;;  %v939_v42 = vpop.f32.mrf.mxu2 }
 0x401   :  { %v2424_v57 = vmax.f32 %v2168_v52, 0.0  ;;  %v2425_v58 = vmax.f32 %v2169_v53, 0.0  ;;  %2679 = vst [vmem:[%s5427_s7 + $0x5e8] sm:$0xff] %v2423_v55  ;;  %v1400_v52 = vmul.f32 %v3095_v12, %v521_v21  ;;  %v1401_v53 = vmul.f32 %v3097_v13, %v730_v51  ;;  %v1148_v55 = vpop.f32.mrf.mxu3 }
 0x402   :  { %v1402_v59 = vmul.f32 %v3104_v17, %v939_v42  ;;  %v1403_v60 = vmul.f32 %v3106_v18, %v1148_v55 }
 0x403   :  { %v1666_v46 = vadd.f32 %v3100_v15, %v1400_v52  ;;  %v1667_v61 = vadd.f32 %v3102_v16, %v1401_v53 }
 0x408   :  { %v1914_v0 = vld [vmem:[%s5426_s6 + $0x600] sm:$0xff]  ;;  %v1915_v1 = vld [vmem:[%s5426_s6 + $0x608] sm:$0xff] }
 0x409   :  { %2680 = vst [vmem:[%s5427_s7 + $0x5f0] sm:$0xff] %v2424_v57  ;;  %v2170_v11 = vadd.f32 %v1914_v0, %v1658_v6  ;;  %v2171_v14 = vadd.f32 %v1915_v1, %v1659_v7  ;;  %v1668_v0 = vadd.f32 %v3113_v24, %v1402_v59  ;;  %v1669_v1 = vadd.f32 %v3115_v25, %v1403_v60 }
 0x40b   :  { %v2426_v20 = vmax.f32 %v2170_v11, 0.0  ;;  %v2427_v22 = vmax.f32 %v2171_v14, 0.0  ;;  %v524_v11 = vpop.f32.mrf.mxu0  ;;  %v733_v14 = vpop.f32.mrf.mxu1 }
 0x410   :  { %v1916_v8 = vld [vmem:[%s5426_s6 + $0x610] sm:$0xff]  ;;  %v1917_v54 = vld [vmem:[%s5426_s6 + $0x618] sm:$0xff] }
 0x411   :  { %2681 = vst [vmem:[%s5427_s7 + $0x5f8] sm:$0xff] %v2425_v58  ;;  %v2172_v56 = vadd.f32 %v1916_v8, %v1660_v9  ;;  %v2173_v19 = vadd.f32 %v1917_v54, %v1661_v10 }
 0x412   :  { %2682 = vst [vmem:[%s5427_s7 + $0x600] sm:$0xff] %v2426_v20  ;;  %v942_v20 = vpop.f32.mrf.mxu2 }
 0x413   :  { %v2428_v23 = vmax.f32 %v2172_v56, 0.0  ;;  %v2429_v26 = vmax.f32 %v2173_v19, 0.0  ;;  %2683 = vst [vmem:[%s5427_s7 + $0x608] sm:$0xff] %v2427_v22  ;;  %v1404_v56 = vmul.f32 %v3095_v12, %v524_v11  ;;  %v1405_v19 = vmul.f32 %v3097_v13, %v733_v14  ;;  %v1151_v22 = vpop.f32.mrf.mxu3 }
 0x414   :  { %v1406_v27 = vmul.f32 %v3104_v17, %v942_v20  ;;  %v1407_v28 = vmul.f32 %v3106_v18, %v1151_v22 }
 0x415   :  { %v1670_v29 = vadd.f32 %v3100_v15, %v1404_v56  ;;  %v1671_v30 = vadd.f32 %v3102_v16, %v1405_v19 }
 0x41a   :  { %v1918_v33 = vld [vmem:[%s5426_s6 + $0x620] sm:$0xff]  ;;  %v1919_v3 = vld [vmem:[%s5426_s6 + $0x628] sm:$0xff] }
 0x41b   :  { %2684 = vst [vmem:[%s5427_s7 + $0x610] sm:$0xff] %v2428_v23  ;;  %v2174_v41 = vadd.f32 %v1918_v33, %v1662_v36  ;;  %v2175_v43 = vadd.f32 %v1919_v3, %v1663_v4  ;;  %v1672_v33 = vadd.f32 %v3113_v24, %v1406_v27  ;;  %v1673_v3 = vadd.f32 %v3115_v25, %v1407_v28 }
 0x41d   :  { %v2430_v47 = vmax.f32 %v2174_v41, 0.0  ;;  %v2431_v48 = vmax.f32 %v2175_v43, 0.0  ;;  %v527_v41 = vpop.f32.mrf.mxu0  ;;  %v736_v43 = vpop.f32.mrf.mxu1 }
 0x422   :  { %v1920_v37 = vld [vmem:[%s5426_s6 + $0x630] sm:$0xff]  ;;  %v1921_v38 = vld [vmem:[%s5426_s6 + $0x638] sm:$0xff] }
 0x423   :  { %2685 = vst [vmem:[%s5427_s7 + $0x618] sm:$0xff] %v2429_v26  ;;  %v2176_v45 = vadd.f32 %v1920_v37, %v1664_v39  ;;  %v2177_v44 = vadd.f32 %v1921_v38, %v1665_v40 }
 0x424   :  { %2686 = vst [vmem:[%s5427_s7 + $0x620] sm:$0xff] %v2430_v47  ;;  %v945_v47 = vpop.f32.mrf.mxu2 }
 0x425   :  { %v2432_v49 = vmax.f32 %v2176_v45, 0.0  ;;  %v2433_v50 = vmax.f32 %v2177_v44, 0.0  ;;  %2687 = vst [vmem:[%s5427_s7 + $0x628] sm:$0xff] %v2431_v48  ;;  %v1408_v45 = vmul.f32 %v3095_v12, %v527_v41  ;;  %v1409_v44 = vmul.f32 %v3097_v13, %v736_v43  ;;  %v1154_v48 = vpop.f32.mrf.mxu3 }
 0x426   :  { %v1410_v21 = vmul.f32 %v3104_v17, %v945_v47  ;;  %v1411_v51 = vmul.f32 %v3106_v18, %v1154_v48 }
 0x427   :  { %v1674_v52 = vadd.f32 %v3100_v15, %v1408_v45  ;;  %v1675_v53 = vadd.f32 %v3102_v16, %v1409_v44 }
 0x42c   :  { %v1922_v57 = vld [vmem:[%s5426_s6 + $0x640] sm:$0xff]  ;;  %v1923_v58 = vld [vmem:[%s5426_s6 + $0x648] sm:$0xff] }
 0x42d   :  { %2688 = vst [vmem:[%s5427_s7 + $0x630] sm:$0xff] %v2432_v49  ;;  %v2178_v2 = vadd.f32 %v1922_v57, %v1666_v46  ;;  %v2179_v5 = vadd.f32 %v1923_v58, %v1667_v61  ;;  %v1676_v57 = vadd.f32 %v3113_v24, %v1410_v21  ;;  %v1677_v58 = vadd.f32 %v3115_v25, %v1411_v51 }
 0x42f   :  { %v2434_v8 = vmax.f32 %v2178_v2, 0.0  ;;  %v2435_v54 = vmax.f32 %v2179_v5, 0.0  ;;  %v530_v2 = vpop.f32.mrf.mxu0  ;;  %v739_v5 = vpop.f32.mrf.mxu1 }
 0x434   :  { %v1924_v62 = vld [vmem:[%s5426_s6 + $0x650] sm:$0xff]  ;;  %v1925_v63 = vld [vmem:[%s5426_s6 + $0x658] sm:$0xff] }
 0x435   :  { %2689 = vst [vmem:[%s5427_s7 + $0x638] sm:$0xff] %v2433_v50  ;;  %v2180_v6 = vadd.f32 %v1924_v62, %v1668_v0  ;;  %v2181_v7 = vadd.f32 %v1925_v63, %v1669_v1 }
 0x436   :  { %2690 = vst [vmem:[%s5427_s7 + $0x640] sm:$0xff] %v2434_v8  ;;  %v948_v8 = vpop.f32.mrf.mxu2 }
 0x437   :  { %v2436_v9 = vmax.f32 %v2180_v6, 0.0  ;;  %v2437_v10 = vmax.f32 %v2181_v7, 0.0  ;;  %2691 = vst [vmem:[%s5427_s7 + $0x648] sm:$0xff] %v2435_v54  ;;  %v1412_v6 = vmul.f32 %v3095_v12, %v530_v2  ;;  %v1413_v7 = vmul.f32 %v3097_v13, %v739_v5  ;;  %v1157_v54 = vpop.f32.mrf.mxu3 }
 0x438   :  { %v1414_v11 = vmul.f32 %v3104_v17, %v948_v8  ;;  %v1415_v14 = vmul.f32 %v3106_v18, %v1157_v54 }
 0x439   :  { %v1678_v56 = vadd.f32 %v3100_v15, %v1412_v6  ;;  %v1679_v19 = vadd.f32 %v3102_v16, %v1413_v7 }
 0x43e   :  { %v1926_v23 = vld [vmem:[%s5426_s6 + $0x660] sm:$0xff]  ;;  %v1927_v26 = vld [vmem:[%s5426_s6 + $0x668] sm:$0xff] }
 0x43f   :  { %2692 = vst [vmem:[%s5427_s7 + $0x650] sm:$0xff] %v2436_v9  ;;  %v2182_v34 = vadd.f32 %v1926_v23, %v1670_v29  ;;  %v2183_v35 = vadd.f32 %v1927_v26, %v1671_v30  ;;  %v1680_v23 = vadd.f32 %v3113_v24, %v1414_v11  ;;  %v1681_v26 = vadd.f32 %v3115_v25, %v1415_v14 }
 0x441   :  { %v2438_v37 = vmax.f32 %v2182_v34, 0.0  ;;  %v2439_v38 = vmax.f32 %v2183_v35, 0.0  ;;  %v533_v34 = vpop.f32.mrf.mxu0  ;;  %v742_v35 = vpop.f32.mrf.mxu1 }
 0x446   :  { %v1928_v31 = vld [vmem:[%s5426_s6 + $0x670] sm:$0xff]  ;;  %v1929_v32 = vld [vmem:[%s5426_s6 + $0x678] sm:$0xff] }
 0x447   :  { %2693 = vst [vmem:[%s5427_s7 + $0x658] sm:$0xff] %v2437_v10  ;;  %v2184_v36 = vadd.f32 %v1928_v31, %v1672_v33  ;;  %v2185_v4 = vadd.f32 %v1929_v32, %v1673_v3 }
 0x448   :  { %2694 = vst [vmem:[%s5427_s7 + $0x660] sm:$0xff] %v2438_v37  ;;  %v951_v37 = vpop.f32.mrf.mxu2 }
 0x449   :  { %v2440_v39 = vmax.f32 %v2184_v36, 0.0  ;;  %v2441_v40 = vmax.f32 %v2185_v4, 0.0  ;;  %2695 = vst [vmem:[%s5427_s7 + $0x668] sm:$0xff] %v2439_v38  ;;  %v1416_v36 = vmul.f32 %v3095_v12, %v533_v34  ;;  %v1417_v4 = vmul.f32 %v3097_v13, %v742_v35  ;;  %v1160_v38 = vpop.f32.mrf.mxu3 }
 0x44a   :  { %v1418_v41 = vmul.f32 %v3104_v17, %v951_v37  ;;  %v1419_v43 = vmul.f32 %v3106_v18, %v1160_v38 }
 0x44b   :  { %v1682_v45 = vadd.f32 %v3100_v15, %v1416_v36  ;;  %v1683_v44 = vadd.f32 %v3102_v16, %v1417_v4 }
 0x450   :  { %v1930_v49 = vld [vmem:[%s5426_s6 + $0x680] sm:$0xff]  ;;  %v1931_v50 = vld [vmem:[%s5426_s6 + $0x688] sm:$0xff] }
 0x451   :  { %2696 = vst [vmem:[%s5427_s7 + $0x670] sm:$0xff] %v2440_v39  ;;  %v2186_v59 = vadd.f32 %v1930_v49, %v1674_v52  ;;  %v2187_v60 = vadd.f32 %v1931_v50, %v1675_v53  ;;  %v1684_v49 = vadd.f32 %v3113_v24, %v1418_v41  ;;  %v1685_v50 = vadd.f32 %v3115_v25, %v1419_v43 }
 0x453   :  { %v2442_v62 = vmax.f32 %v2186_v59, 0.0  ;;  %v2443_v63 = vmax.f32 %v2187_v60, 0.0  ;;  %v536_v59 = vpop.f32.mrf.mxu0  ;;  %v745_v60 = vpop.f32.mrf.mxu1 }
 0x458   :  { %v1932_v42 = vld [vmem:[%s5426_s6 + $0x690] sm:$0xff]  ;;  %v1933_v55 = vld [vmem:[%s5426_s6 + $0x698] sm:$0xff] }
 0x459   :  { %2697 = vst [vmem:[%s5427_s7 + $0x678] sm:$0xff] %v2441_v40  ;;  %v2188_v46 = vadd.f32 %v1932_v42, %v1676_v57  ;;  %v2189_v61 = vadd.f32 %v1933_v55, %v1677_v58 }
 0x45a   :  { %2698 = vst [vmem:[%s5427_s7 + $0x680] sm:$0xff] %v2442_v62  ;;  %v954_v62 = vpop.f32.mrf.mxu2 }
 0x45b   :  { %v2444_v0 = vmax.f32 %v2188_v46, 0.0  ;;  %v2445_v1 = vmax.f32 %v2189_v61, 0.0  ;;  %2699 = vst [vmem:[%s5427_s7 + $0x688] sm:$0xff] %v2443_v63  ;;  %v1420_v46 = vmul.f32 %v3095_v12, %v536_v59  ;;  %v1421_v61 = vmul.f32 %v3097_v13, %v745_v60  ;;  %v1163_v63 = vpop.f32.mrf.mxu3 }
 0x45c   :  { %v1422_v2 = vmul.f32 %v3104_v17, %v954_v62  ;;  %v1423_v5 = vmul.f32 %v3106_v18, %v1163_v63 }
 0x45d   :  { %v1686_v6 = vadd.f32 %v3100_v15, %v1420_v46  ;;  %v1687_v7 = vadd.f32 %v3102_v16, %v1421_v61 }
 0x462   :  { %v1934_v9 = vld [vmem:[%s5426_s6 + $0x6a0] sm:$0xff]  ;;  %v1935_v10 = vld [vmem:[%s5426_s6 + $0x6a8] sm:$0xff] }
 0x463   :  { %2700 = vst [vmem:[%s5427_s7 + $0x690] sm:$0xff] %v2444_v0  ;;  %v2190_v27 = vadd.f32 %v1934_v9, %v1678_v56  ;;  %v2191_v28 = vadd.f32 %v1935_v10, %v1679_v19  ;;  %v1688_v9 = vadd.f32 %v3113_v24, %v1422_v2  ;;  %v1689_v10 = vadd.f32 %v3115_v25, %v1423_v5 }
 0x465   :  { %v2446_v31 = vmax.f32 %v2190_v27, 0.0  ;;  %v2447_v32 = vmax.f32 %v2191_v28, 0.0  ;;  %v539_v27 = vpop.f32.mrf.mxu0  ;;  %v748_v28 = vpop.f32.mrf.mxu1 }
 0x46a   :  { %v1936_v20 = vld [vmem:[%s5426_s6 + $0x6b0] sm:$0xff]  ;;  %v1937_v22 = vld [vmem:[%s5426_s6 + $0x6b8] sm:$0xff] }
 0x46b   :  { %2701 = vst [vmem:[%s5427_s7 + $0x698] sm:$0xff] %v2445_v1  ;;  %v2192_v29 = vadd.f32 %v1936_v20, %v1680_v23  ;;  %v2193_v30 = vadd.f32 %v1937_v22, %v1681_v26 }
 0x46c   :  { %2702 = vst [vmem:[%s5427_s7 + $0x6a0] sm:$0xff] %v2446_v31  ;;  %v957_v31 = vpop.f32.mrf.mxu2 }
 0x46d   :  { %v2448_v33 = vmax.f32 %v2192_v29, 0.0  ;;  %v2449_v3 = vmax.f32 %v2193_v30, 0.0  ;;  %2703 = vst [vmem:[%s5427_s7 + $0x6a8] sm:$0xff] %v2447_v32  ;;  %v1424_v29 = vmul.f32 %v3095_v12, %v539_v27  ;;  %v1425_v30 = vmul.f32 %v3097_v13, %v748_v28  ;;  %v1166_v32 = vpop.f32.mrf.mxu3 }
 0x46e   :  { %v1426_v34 = vmul.f32 %v3104_v17, %v957_v31  ;;  %v1427_v35 = vmul.f32 %v3106_v18, %v1166_v32 }
 0x46f   :  { %v1690_v36 = vadd.f32 %v3100_v15, %v1424_v29  ;;  %v1691_v4 = vadd.f32 %v3102_v16, %v1425_v30 }
 0x474   :  { %v1938_v39 = vld [vmem:[%s5426_s6 + $0x6c0] sm:$0xff]  ;;  %v1939_v40 = vld [vmem:[%s5426_s6 + $0x6c8] sm:$0xff] }
 0x475   :  { %2704 = vst [vmem:[%s5427_s7 + $0x6b0] sm:$0xff] %v2448_v33  ;;  %v2194_v21 = vadd.f32 %v1938_v39, %v1682_v45  ;;  %v2195_v51 = vadd.f32 %v1939_v40, %v1683_v44  ;;  %v1692_v39 = vadd.f32 %v3113_v24, %v1426_v34  ;;  %v1693_v40 = vadd.f32 %v3115_v25, %v1427_v35 }
 0x477   :  { %v2450_v42 = vmax.f32 %v2194_v21, 0.0  ;;  %v2451_v55 = vmax.f32 %v2195_v51, 0.0  ;;  %v542_v21 = vpop.f32.mrf.mxu0  ;;  %v751_v51 = vpop.f32.mrf.mxu1 }
 0x47c   :  { %v1940_v47 = vld [vmem:[%s5426_s6 + $0x6d0] sm:$0xff]  ;;  %v1941_v48 = vld [vmem:[%s5426_s6 + $0x6d8] sm:$0xff] }
 0x47d   :  { %2705 = vst [vmem:[%s5427_s7 + $0x6b8] sm:$0xff] %v2449_v3  ;;  %v2196_v52 = vadd.f32 %v1940_v47, %v1684_v49  ;;  %v2197_v53 = vadd.f32 %v1941_v48, %v1685_v50 }
 0x47e   :  { %2706 = vst [vmem:[%s5427_s7 + $0x6c0] sm:$0xff] %v2450_v42  ;;  %v960_v42 = vpop.f32.mrf.mxu2 }
 0x47f   :  { %v2452_v57 = vmax.f32 %v2196_v52, 0.0  ;;  %v2453_v58 = vmax.f32 %v2197_v53, 0.0  ;;  %2707 = vst [vmem:[%s5427_s7 + $0x6c8] sm:$0xff] %v2451_v55  ;;  %v1428_v52 = vmul.f32 %v3095_v12, %v542_v21  ;;  %v1429_v53 = vmul.f32 %v3097_v13, %v751_v51  ;;  %v1169_v55 = vpop.f32.mrf.mxu3 }
 0x480   :  { %v1430_v59 = vmul.f32 %v3104_v17, %v960_v42  ;;  %v1431_v60 = vmul.f32 %v3106_v18, %v1169_v55 }
 0x481   :  { %v1694_v46 = vadd.f32 %v3100_v15, %v1428_v52  ;;  %v1695_v61 = vadd.f32 %v3102_v16, %v1429_v53 }
 0x486   :  { %v1942_v0 = vld [vmem:[%s5426_s6 + $0x6e0] sm:$0xff]  ;;  %v1943_v1 = vld [vmem:[%s5426_s6 + $0x6e8] sm:$0xff] }
 0x487   :  { %2708 = vst [vmem:[%s5427_s7 + $0x6d0] sm:$0xff] %v2452_v57  ;;  %v2198_v11 = vadd.f32 %v1942_v0, %v1686_v6  ;;  %v2199_v14 = vadd.f32 %v1943_v1, %v1687_v7  ;;  %v1696_v0 = vadd.f32 %v3113_v24, %v1430_v59  ;;  %v1697_v1 = vadd.f32 %v3115_v25, %v1431_v60 }
 0x489   :  { %v2454_v20 = vmax.f32 %v2198_v11, 0.0  ;;  %v2455_v22 = vmax.f32 %v2199_v14, 0.0  ;;  %v545_v11 = vpop.f32.mrf.mxu0  ;;  %v754_v14 = vpop.f32.mrf.mxu1 }
 0x48e   :  { %v1944_v8 = vld [vmem:[%s5426_s6 + $0x6f0] sm:$0xff]  ;;  %v1945_v54 = vld [vmem:[%s5426_s6 + $0x6f8] sm:$0xff] }
 0x48f   :  { %2709 = vst [vmem:[%s5427_s7 + $0x6d8] sm:$0xff] %v2453_v58  ;;  %v2200_v56 = vadd.f32 %v1944_v8, %v1688_v9  ;;  %v2201_v19 = vadd.f32 %v1945_v54, %v1689_v10 }
 0x490   :  { %2710 = vst [vmem:[%s5427_s7 + $0x6e0] sm:$0xff] %v2454_v20  ;;  %v963_v20 = vpop.f32.mrf.mxu2 }
 0x491   :  { %v2456_v23 = vmax.f32 %v2200_v56, 0.0  ;;  %v2457_v26 = vmax.f32 %v2201_v19, 0.0  ;;  %2711 = vst [vmem:[%s5427_s7 + $0x6e8] sm:$0xff] %v2455_v22  ;;  %v1432_v56 = vmul.f32 %v3095_v12, %v545_v11  ;;  %v1433_v19 = vmul.f32 %v3097_v13, %v754_v14  ;;  %v1172_v22 = vpop.f32.mrf.mxu3 }
 0x492   :  { %v1434_v27 = vmul.f32 %v3104_v17, %v963_v20  ;;  %v1435_v28 = vmul.f32 %v3106_v18, %v1172_v22 }
 0x493   :  { %v1698_v29 = vadd.f32 %v3100_v15, %v1432_v56  ;;  %v1699_v30 = vadd.f32 %v3102_v16, %v1433_v19 }
 0x498   :  { %v1946_v33 = vld [vmem:[%s5426_s6 + $0x700] sm:$0xff]  ;;  %v1947_v3 = vld [vmem:[%s5426_s6 + $0x708] sm:$0xff] }
 0x499   :  { %2712 = vst [vmem:[%s5427_s7 + $0x6f0] sm:$0xff] %v2456_v23  ;;  %v2202_v41 = vadd.f32 %v1946_v33, %v1690_v36  ;;  %v2203_v43 = vadd.f32 %v1947_v3, %v1691_v4  ;;  %v1700_v33 = vadd.f32 %v3113_v24, %v1434_v27  ;;  %v1701_v3 = vadd.f32 %v3115_v25, %v1435_v28 }
 0x49b   :  { %v2458_v47 = vmax.f32 %v2202_v41, 0.0  ;;  %v2459_v48 = vmax.f32 %v2203_v43, 0.0  ;;  %v548_v41 = vpop.f32.mrf.mxu0  ;;  %v757_v43 = vpop.f32.mrf.mxu1 }
 0x4a0   :  { %v1948_v37 = vld [vmem:[%s5426_s6 + $0x710] sm:$0xff]  ;;  %v1949_v38 = vld [vmem:[%s5426_s6 + $0x718] sm:$0xff] }
 0x4a1   :  { %2713 = vst [vmem:[%s5427_s7 + $0x6f8] sm:$0xff] %v2457_v26  ;;  %v2204_v45 = vadd.f32 %v1948_v37, %v1692_v39  ;;  %v2205_v44 = vadd.f32 %v1949_v38, %v1693_v40 }
 0x4a2   :  { %2714 = vst [vmem:[%s5427_s7 + $0x700] sm:$0xff] %v2458_v47  ;;  %v966_v47 = vpop.f32.mrf.mxu2 }
 0x4a3   :  { %v2460_v49 = vmax.f32 %v2204_v45, 0.0  ;;  %v2461_v50 = vmax.f32 %v2205_v44, 0.0  ;;  %2715 = vst [vmem:[%s5427_s7 + $0x708] sm:$0xff] %v2459_v48  ;;  %v1436_v45 = vmul.f32 %v3095_v12, %v548_v41  ;;  %v1437_v44 = vmul.f32 %v3097_v13, %v757_v43  ;;  %v1175_v48 = vpop.f32.mrf.mxu3 }
 0x4a4   :  { %v1438_v21 = vmul.f32 %v3104_v17, %v966_v47  ;;  %v1439_v51 = vmul.f32 %v3106_v18, %v1175_v48 }
 0x4a5   :  { %v1702_v52 = vadd.f32 %v3100_v15, %v1436_v45  ;;  %v1703_v53 = vadd.f32 %v3102_v16, %v1437_v44 }
 0x4aa   :  { %v1950_v57 = vld [vmem:[%s5426_s6 + $0x720] sm:$0xff]  ;;  %v1951_v58 = vld [vmem:[%s5426_s6 + $0x728] sm:$0xff] }
 0x4ab   :  { %2716 = vst [vmem:[%s5427_s7 + $0x710] sm:$0xff] %v2460_v49  ;;  %v2206_v2 = vadd.f32 %v1950_v57, %v1694_v46  ;;  %v2207_v5 = vadd.f32 %v1951_v58, %v1695_v61  ;;  %v1704_v57 = vadd.f32 %v3113_v24, %v1438_v21  ;;  %v1705_v58 = vadd.f32 %v3115_v25, %v1439_v51 }
 0x4ad   :  { %v2462_v8 = vmax.f32 %v2206_v2, 0.0  ;;  %v2463_v54 = vmax.f32 %v2207_v5, 0.0  ;;  %v551_v2 = vpop.f32.mrf.mxu0  ;;  %v760_v5 = vpop.f32.mrf.mxu1 }
 0x4b2   :  { %v1952_v62 = vld [vmem:[%s5426_s6 + $0x730] sm:$0xff]  ;;  %v1953_v63 = vld [vmem:[%s5426_s6 + $0x738] sm:$0xff] }
 0x4b3   :  { %2717 = vst [vmem:[%s5427_s7 + $0x718] sm:$0xff] %v2461_v50  ;;  %v2208_v6 = vadd.f32 %v1952_v62, %v1696_v0  ;;  %v2209_v7 = vadd.f32 %v1953_v63, %v1697_v1 }
 0x4b4   :  { %2718 = vst [vmem:[%s5427_s7 + $0x720] sm:$0xff] %v2462_v8  ;;  %v969_v8 = vpop.f32.mrf.mxu2 }
 0x4b5   :  { %v2464_v9 = vmax.f32 %v2208_v6, 0.0  ;;  %v2465_v10 = vmax.f32 %v2209_v7, 0.0  ;;  %2719 = vst [vmem:[%s5427_s7 + $0x728] sm:$0xff] %v2463_v54  ;;  %v1440_v6 = vmul.f32 %v3095_v12, %v551_v2  ;;  %v1441_v7 = vmul.f32 %v3097_v13, %v760_v5  ;;  %v1178_v54 = vpop.f32.mrf.mxu3 }
 0x4b6   :  { %v1442_v11 = vmul.f32 %v3104_v17, %v969_v8  ;;  %v1443_v14 = vmul.f32 %v3106_v18, %v1178_v54 }
 0x4b7   :  { %v1706_v56 = vadd.f32 %v3100_v15, %v1440_v6  ;;  %v1707_v19 = vadd.f32 %v3102_v16, %v1441_v7 }
 0x4bc   :  { %v1954_v23 = vld [vmem:[%s5426_s6 + $0x740] sm:$0xff]  ;;  %v1955_v26 = vld [vmem:[%s5426_s6 + $0x748] sm:$0xff] }
 0x4bd   :  { %2720 = vst [vmem:[%s5427_s7 + $0x730] sm:$0xff] %v2464_v9  ;;  %v2210_v34 = vadd.f32 %v1954_v23, %v1698_v29  ;;  %v2211_v35 = vadd.f32 %v1955_v26, %v1699_v30  ;;  %v1708_v23 = vadd.f32 %v3113_v24, %v1442_v11  ;;  %v1709_v26 = vadd.f32 %v3115_v25, %v1443_v14 }
 0x4bf   :  { %v2466_v37 = vmax.f32 %v2210_v34, 0.0  ;;  %v2467_v38 = vmax.f32 %v2211_v35, 0.0  ;;  %v554_v34 = vpop.f32.mrf.mxu0  ;;  %v763_v35 = vpop.f32.mrf.mxu1 }
 0x4c4   :  { %v1956_v31 = vld [vmem:[%s5426_s6 + $0x750] sm:$0xff]  ;;  %v1957_v32 = vld [vmem:[%s5426_s6 + $0x758] sm:$0xff] }
 0x4c5   :  { %2721 = vst [vmem:[%s5427_s7 + $0x738] sm:$0xff] %v2465_v10  ;;  %v2212_v36 = vadd.f32 %v1956_v31, %v1700_v33  ;;  %v2213_v4 = vadd.f32 %v1957_v32, %v1701_v3 }
 0x4c6   :  { %2722 = vst [vmem:[%s5427_s7 + $0x740] sm:$0xff] %v2466_v37  ;;  %v972_v37 = vpop.f32.mrf.mxu2 }
 0x4c7   :  { %v2468_v39 = vmax.f32 %v2212_v36, 0.0  ;;  %v2469_v40 = vmax.f32 %v2213_v4, 0.0  ;;  %2723 = vst [vmem:[%s5427_s7 + $0x748] sm:$0xff] %v2467_v38  ;;  %v1444_v36 = vmul.f32 %v3095_v12, %v554_v34  ;;  %v1445_v4 = vmul.f32 %v3097_v13, %v763_v35  ;;  %v1181_v38 = vpop.f32.mrf.mxu3 }
 0x4c8   :  { %v1446_v41 = vmul.f32 %v3104_v17, %v972_v37  ;;  %v1447_v43 = vmul.f32 %v3106_v18, %v1181_v38 }
 0x4c9   :  { %v1710_v45 = vadd.f32 %v3100_v15, %v1444_v36  ;;  %v1711_v44 = vadd.f32 %v3102_v16, %v1445_v4 }
 0x4ce   :  { %v1958_v49 = vld [vmem:[%s5426_s6 + $0x760] sm:$0xff]  ;;  %v1959_v50 = vld [vmem:[%s5426_s6 + $0x768] sm:$0xff] }
 0x4cf   :  { %2724 = vst [vmem:[%s5427_s7 + $0x750] sm:$0xff] %v2468_v39  ;;  %v2214_v59 = vadd.f32 %v1958_v49, %v1702_v52  ;;  %v2215_v60 = vadd.f32 %v1959_v50, %v1703_v53  ;;  %v1712_v49 = vadd.f32 %v3113_v24, %v1446_v41  ;;  %v1713_v50 = vadd.f32 %v3115_v25, %v1447_v43 }
 0x4d1   :  { %v2470_v62 = vmax.f32 %v2214_v59, 0.0  ;;  %v2471_v63 = vmax.f32 %v2215_v60, 0.0  ;;  %v557_v59 = vpop.f32.mrf.mxu0  ;;  %v766_v60 = vpop.f32.mrf.mxu1 }
 0x4d6   :  { %v1960_v42 = vld [vmem:[%s5426_s6 + $0x770] sm:$0xff]  ;;  %v1961_v55 = vld [vmem:[%s5426_s6 + $0x778] sm:$0xff] }
 0x4d7   :  { %2725 = vst [vmem:[%s5427_s7 + $0x758] sm:$0xff] %v2469_v40  ;;  %v2216_v46 = vadd.f32 %v1960_v42, %v1704_v57  ;;  %v2217_v61 = vadd.f32 %v1961_v55, %v1705_v58 }
 0x4d8   :  { %2726 = vst [vmem:[%s5427_s7 + $0x760] sm:$0xff] %v2470_v62  ;;  %v975_v62 = vpop.f32.mrf.mxu2 }
 0x4d9   :  { %v2472_v0 = vmax.f32 %v2216_v46, 0.0  ;;  %v2473_v1 = vmax.f32 %v2217_v61, 0.0  ;;  %2727 = vst [vmem:[%s5427_s7 + $0x768] sm:$0xff] %v2471_v63  ;;  %v1448_v46 = vmul.f32 %v3095_v12, %v557_v59  ;;  %v1449_v61 = vmul.f32 %v3097_v13, %v766_v60  ;;  %v1184_v63 = vpop.f32.mrf.mxu3 }
 0x4da   :  { %v1450_v2 = vmul.f32 %v3104_v17, %v975_v62  ;;  %v1451_v5 = vmul.f32 %v3106_v18, %v1184_v63 }
 0x4db   :  { %v1714_v6 = vadd.f32 %v3100_v15, %v1448_v46  ;;  %v1715_v7 = vadd.f32 %v3102_v16, %v1449_v61 }
 0x4e0   :  { %v1962_v9 = vld [vmem:[%s5426_s6 + $0x780] sm:$0xff]  ;;  %v1963_v10 = vld [vmem:[%s5426_s6 + $0x788] sm:$0xff] }
 0x4e1   :  { %2728 = vst [vmem:[%s5427_s7 + $0x770] sm:$0xff] %v2472_v0  ;;  %v2218_v27 = vadd.f32 %v1962_v9, %v1706_v56  ;;  %v2219_v28 = vadd.f32 %v1963_v10, %v1707_v19  ;;  %v1716_v9 = vadd.f32 %v3113_v24, %v1450_v2  ;;  %v1717_v10 = vadd.f32 %v3115_v25, %v1451_v5 }
 0x4e3   :  { %v2474_v31 = vmax.f32 %v2218_v27, 0.0  ;;  %v2475_v32 = vmax.f32 %v2219_v28, 0.0  ;;  %v560_v27 = vpop.f32.mrf.mxu0  ;;  %v769_v28 = vpop.f32.mrf.mxu1 }
 0x4e8   :  { %v1964_v20 = vld [vmem:[%s5426_s6 + $0x790] sm:$0xff]  ;;  %v1965_v22 = vld [vmem:[%s5426_s6 + $0x798] sm:$0xff] }
 0x4e9   :  { %2729 = vst [vmem:[%s5427_s7 + $0x778] sm:$0xff] %v2473_v1  ;;  %v2220_v29 = vadd.f32 %v1964_v20, %v1708_v23  ;;  %v2221_v30 = vadd.f32 %v1965_v22, %v1709_v26 }
 0x4ea   :  { %2730 = vst [vmem:[%s5427_s7 + $0x780] sm:$0xff] %v2474_v31  ;;  %v978_v31 = vpop.f32.mrf.mxu2 }
 0x4eb   :  { %v2476_v33 = vmax.f32 %v2220_v29, 0.0  ;;  %v2477_v3 = vmax.f32 %v2221_v30, 0.0  ;;  %2731 = vst [vmem:[%s5427_s7 + $0x788] sm:$0xff] %v2475_v32  ;;  %v1452_v29 = vmul.f32 %v3095_v12, %v560_v27  ;;  %v1453_v30 = vmul.f32 %v3097_v13, %v769_v28  ;;  %v1187_v32 = vpop.f32.mrf.mxu3 }
 0x4ec   :  { %v1454_v34 = vmul.f32 %v3104_v17, %v978_v31  ;;  %v1455_v12 = vmul.f32 %v3106_v18, %v1187_v32 }
 0x4ed   :  { %v1718_v13 = vadd.f32 %v3100_v15, %v1452_v29  ;;  %v1719_v35 = vadd.f32 %v3102_v16, %v1453_v30 }
 0x4ee   :  { %v1720_v17 = vadd.f32 %v3113_v24, %v1454_v34  ;;  %v1721_v18 = vadd.f32 %v3115_v25, %v1455_v12 }
 0x4f2   :  { %v1966_v39 = vld [vmem:[%s5426_s6 + $0x7a0] sm:$0xff]  ;;  %v1967_v40 = vld [vmem:[%s5426_s6 + $0x7a8] sm:$0xff] }
 0x4f3   :  { %2732 = vst [vmem:[%s5427_s7 + $0x790] sm:$0xff] %v2476_v33  ;;  %v2222_v21 = vadd.f32 %v1966_v39, %v1710_v45  ;;  %v2223_v51 = vadd.f32 %v1967_v40, %v1711_v44 }
 0x4f5   :  { %v2478_v42 = vmax.f32 %v2222_v21, 0.0  ;;  %v2479_v55 = vmax.f32 %v2223_v51, 0.0 }
 0x4fa   :  { %v1968_v47 = vld [vmem:[%s5426_s6 + $0x7b0] sm:$0xff]  ;;  %v1969_v48 = vld [vmem:[%s5426_s6 + $0x7b8] sm:$0xff] }
 0x4fb   :  { %2733 = vst [vmem:[%s5427_s7 + $0x798] sm:$0xff] %v2477_v3  ;;  %v2224_v52 = vadd.f32 %v1968_v47, %v1712_v49  ;;  %v2225_v53 = vadd.f32 %v1969_v48, %v1713_v50 }
 0x4fc   :  { %2734 = vst [vmem:[%s5427_s7 + $0x7a0] sm:$0xff] %v2478_v42 }
 0x4fd   :  { %v2480_v57 = vmax.f32 %v2224_v52, 0.0  ;;  %v2481_v58 = vmax.f32 %v2225_v53, 0.0  ;;  %2735 = vst [vmem:[%s5427_s7 + $0x7a8] sm:$0xff] %v2479_v55 }
 0x504   :  { %v1970_v0 = vld [vmem:[%s5426_s6 + $0x7c0] sm:$0xff]  ;;  %v1971_v1 = vld [vmem:[%s5426_s6 + $0x7c8] sm:$0xff] }
 0x505   :  { %2736 = vst [vmem:[%s5427_s7 + $0x7b0] sm:$0xff] %v2480_v57  ;;  %v2226_v11 = vadd.f32 %v1970_v0, %v1714_v6  ;;  %v2227_v14 = vadd.f32 %v1971_v1, %v1715_v7 }
 0x507   :  { %v2482_v20 = vmax.f32 %v2226_v11, 0.0  ;;  %v2483_v22 = vmax.f32 %v2227_v14, 0.0 }
 0x50c   :  { %v1972_v8 = vld [vmem:[%s5426_s6 + $0x7d0] sm:$0xff]  ;;  %v1973_v54 = vld [vmem:[%s5426_s6 + $0x7d8] sm:$0xff] }
 0x50d   :  { %2737 = vst [vmem:[%s5427_s7 + $0x7b8] sm:$0xff] %v2481_v58  ;;  %v2228_v56 = vadd.f32 %v1972_v8, %v1716_v9  ;;  %v2229_v19 = vadd.f32 %v1973_v54, %v1717_v10 }
 0x50e   :  { %2738 = vst [vmem:[%s5427_s7 + $0x7c0] sm:$0xff] %v2482_v20 }
 0x50f   :  { %v2484_v23 = vmax.f32 %v2228_v56, 0.0  ;;  %v2485_v26 = vmax.f32 %v2229_v19, 0.0  ;;  %2739 = vst [vmem:[%s5427_s7 + $0x7c8] sm:$0xff] %v2483_v22 }
 0x516   :  { %v1974_v33 = vld [vmem:[%s5426_s6 + $0x7e0] sm:$0xff]  ;;  %v1975_v3 = vld [vmem:[%s5426_s6 + $0x7e8] sm:$0xff] }
 0x517   :  { %2740 = vst [vmem:[%s5427_s7 + $0x7d0] sm:$0xff] %v2484_v23  ;;  %v2230_v37 = vadd.f32 %v1974_v33, %v1718_v13  ;;  %v2231_v15 = vadd.f32 %v1975_v3, %v1719_v35 }
 0x519   :  { %v2486_v39 = vmax.f32 %v2230_v37, 0.0  ;;  %v2487_v40 = vmax.f32 %v2231_v15, 0.0 }
 0x51e   :  { %v1976_v36 = vld [vmem:[%s5426_s6 + $0x7f0] sm:$0xff]  ;;  %v1977_v4 = vld [vmem:[%s5426_s6 + $0x7f8] sm:$0xff] }
 0x51f   :  { %2741 = vst [vmem:[%s5427_s7 + $0x7d8] sm:$0xff] %v2485_v26  ;;  %v2232_v38 = vadd.f32 %v1976_v36, %v1720_v17  ;;  %v2233_v16 = vadd.f32 %v1977_v4, %v1721_v18 }
 0x520   :  { %2742 = vst [vmem:[%s5427_s7 + $0x7e0] sm:$0xff] %v2486_v39 }
 0x521   :  { %v2488_v41 = vmax.f32 %v2232_v38, 0.0  ;;  %v2489_v43 = vmax.f32 %v2233_v16, 0.0  ;;  %2743 = vst [vmem:[%s5427_s7 + $0x7e8] sm:$0xff] %v2487_v40 }
 0x523   :  { %2744 = vst [vmem:[%s5427_s7 + $0x7f0] sm:$0xff] %v2488_v41 }
 0x524   :  { %2745 = vst [vmem:[%s5427_s7 + $0x7f8] sm:$0xff] %v2489_v43 }

</bundles_post_ra>
